<compile_context>
chip_gen: v7x
topology: tpu7x:2x2x1
jax: 0.10.0
libtpu: 0.0.40
codegen_flags: <defaults>
</compile_context>

<pallas_src>
import math
import functools

import jax
import jax.numpy as jnp
from jax.experimental import pallas as pl
from jax.experimental.pallas import tpu as pltpu


# ----------------------------------------------------------------------------- kernel
def encoder_stack_kernel(x_ref, mask_ref,
                         wqkv_ref, bqkv_ref, wo_ref, bo_ref,
                         lnw_ref, lnb_ref, w1_ref, b1_ref, w2_ref, b2_ref,
                         o_ref, *, n_layers, n_heads):
    """Full encoder stack for one block of batch elements."""
    BB, S, D = x_ref.shape
    H = n_heads
    Dh = D // H

    # Key-padding additive bias, (BB, 1, S); mask input is lane-padded to S_pad >= S.
    bias = mask_ref[...][:, :, :S]

    x0 = x_ref[...].reshape(BB * S, D)            # f32 activations, rows = BB*S
    inv_n = 1.0 / float(S * D)

    def layer_body(l, x):
        wqkv = wqkv_ref[l]; bqkv = bqkv_ref[l]    # (D, 3D) bf16 / (1, 3D) f32
        wo = wo_ref[l];     bo = bo_ref[l]        # (D, D)  bf16 / (1, D)  f32
        lnw = lnw_ref[l];   lnb = lnb_ref[l]      # (S, D)  f32
        w1 = w1_ref[l];     b1 = b1_ref[l]        # (D, Dff) bf16 / (1, Dff) f32
        w2 = w2_ref[l];     b2 = b2_ref[l]        # (Dff, D) bf16 / (1, D)   f32

        # ---- fused QKV projection: ONE big matmul over all rows of the block -------
        xb = x.astype(jnp.bfloat16)
        qkv = jnp.dot(xb, wqkv, preferred_element_type=jnp.float32) + bqkv   # (BB*S, 3D)
        q = qkv[:, :D].astype(jnp.bfloat16).reshape(BB, S, D)                # scale folded in
        k = qkv[:, D:2 * D].astype(jnp.bfloat16).reshape(BB, S, D)
        v = qkv[:, 2 * D:].astype(jnp.bfloat16).reshape(BB, S, D)

        # ---- attention: batched over the batch block via 3-D einsums ---------------
        head_ctx = []
        for h in range(H):
            cs = slice(h * Dh, (h + 1) * Dh)
            s = jnp.einsum('bqd,bkd->bqk', q[:, :, cs], k[:, :, cs],
                           preferred_element_type=jnp.float32)               # (BB, S, S)
            s = s + bias                                                      # key-pad bias
            s = s - jnp.max(s, axis=-1, keepdims=True)
            p = jnp.exp(s)
            p = p / jnp.sum(p, axis=-1, keepdims=True)                        # exact softmax
            head_ctx.append(jnp.einsum('bqk,bkd->bqd', p.astype(jnp.bfloat16),
                                       v[:, :, cs],
                                       preferred_element_type=jnp.float32))   # (BB, S, Dh)
        ctx = jnp.concatenate(head_ctx, axis=-1).reshape(BB * S, D)

        # ONE output-projection matmul for all heads / all rows
        attn = jnp.dot(ctx.astype(jnp.bfloat16), wo,
                       preferred_element_type=jnp.float32) + bo

        # ---- LayerNorm over the whole (S, D) slab, vectorized over BB, two-pass ----
        def layer_norm(y2d):
            y3 = y2d.reshape(BB, S, D)
            m = jnp.sum(jnp.sum(y3, axis=2, keepdims=True), axis=1, keepdims=True) * inv_n
            d = y3 - m
            var = jnp.sum(jnp.sum(d * d, axis=2, keepdims=True), axis=1, keepdims=True) * inv_n
            out = d * jax.lax.rsqrt(var + 1e-6) * lnw + lnb
            return out.reshape(BB * S, D)

        x1 = layer_norm(x + attn)                 # dropout == identity (eval)

        # ---- feed-forward: big matmuls over all rows --------------------------------
        h1 = jnp.maximum(
            jnp.dot(x1.astype(jnp.bfloat16), w1, preferred_element_type=jnp.float32) + b1,
            0.0)
        z = jnp.dot(h1.astype(jnp.bfloat16), w2,
                    preferred_element_type=jnp.float32) + b2

        return layer_norm(z + x1)                 # same LayerNorm params (reference quirk)

    if n_layers <= 4:
        x = x0
        for l in range(n_layers):                 # small L: unrolled, weights static-indexed
            x = layer_body(l, x)
    else:
        # large L: bound live ranges / code size with fori_loop (dynamic layer indexing)
        x = jax.lax.fori_loop(0, n_layers, layer_body, x0)

    o_ref[...] = x.reshape(BB, S, D)


# ----------------------------------------------------------------------------- helpers
def _stack_layer_params(layers, n_heads):
    """Stack per-layer params on a leading L axis; fuse wq|wk|wv into one (D,3D) weight;
    fold 1/sqrt(Dh) into the q projection; cast matmul weights to bf16 (biases/LN stay f32)."""
    D = layers[0]["wq"].shape[0]
    scale = 1.0 / math.sqrt(D // n_heads)

    def stk(name):
        return jnp.stack([p[name] for p in layers], axis=0)

    wqkv = jnp.concatenate([stk("wq") * scale, stk("wk"), stk("wv")], axis=-1)   # (L, D, 3D)
    bqkv = jnp.concatenate([stk("bq") * scale, stk("bk"), stk("bv")], axis=-1)   # (L, 1, 3D)
    return {
        "wqkv": wqkv.astype(jnp.bfloat16),
        "bqkv": bqkv.astype(jnp.float32),
        "wo": stk("wo").astype(jnp.bfloat16), "bo": stk("bo"),
        "ln_w": stk("ln_w"), "ln_b": stk("ln_b"),
        "w1": stk("w1").astype(jnp.bfloat16), "b1": stk("b1"),
        "w2": stk("w2").astype(jnp.bfloat16), "b2": stk("b2"),
    }


def _pick_batch_block(B, S, target_rows=256):
    """Choose the batch block so bb*S fills the MXU rows (>=256 targets v6e/v7x; v5e only
    needs 128).  If the whole batch is smaller than that, run a single grid step."""
    if B * S <= target_rows:
        return B
    for bb in range(1, B + 1):
        if B % bb == 0 and bb * S >= target_rows:
            return bb
    return B


def _physical_vmem_bytes(default=64 << 20):
    try:
        info = pltpu.get_tpu_info()
        return int(getattr(info, "vmem_capacity_bytes", default))
    except Exception:
        return default


# ----------------------------------------------------------------------------- wrapper
def encoder_stack(x, mask_bias, stacked, *, n_layers, n_heads, batch_block=None):
    B, S, D = x.shape
    S_pad = mask_bias.shape[-1]
    d_ff = stacked["w1"].shape[-1]
    assert D % n_heads == 0
    assert stacked["ln_w"].shape[1] == S, "reference LayerNorm requires seq_len == max_len"

    bb = batch_block if batch_block is not None else _pick_batch_block(B, S)
    assert B % bb == 0, "batch_block must divide the batch size"
    grid = (B // bb,)

    weight_names = ["wqkv", "bqkv", "wo", "bo", "ln_w", "ln_b", "w1", "b1", "w2", "b2"]
    weights = [stacked[n] for n in weight_names]
    weight_bytes = sum(int(w.size) * w.dtype.itemsize for w in weights)
    act_bytes = bb * S * D * 4 * 2 + bb * S_pad * 4
    phys_vmem = _physical_vmem_bytes()

    # Advisory cost estimate for the XLA scheduler.
    flops = int(n_layers * B * (2 * S * D * (3 * D)      # fused QKV
                                + 4 * S * S * D          # scores + context (all heads)
                                + 2 * S * D * D          # output projection
                                + 4 * S * D * d_ff))     # FFN
    transcendentals = int(n_layers * B * n_heads * S * S)
    bytes_accessed = int(sum(int(a.size) * a.dtype.itemsize
                             for a in [x, mask_bias] + weights) + B * S * D * 4)
    cost = pl.CostEstimate(flops=flops, transcendentals=transcendentals,
                           bytes_accessed=bytes_accessed)

    kernel = functools.partial(encoder_stack_kernel, n_layers=n_layers, n_heads=n_heads)

    def build_and_run(single_buffer):
        if single_buffer:
            # Constant-index weight blocks: single buffer halves their VMEM footprint.
            def w_spec(a):
                return pl.BlockSpec(a.shape, lambda i: (0, 0, 0),
                                    pipeline_mode=pl.Buffered(buffer_count=1))
            wf = 1
        else:
            def w_spec(a):
                return pl.BlockSpec(a.shape, lambda i: (0, 0, 0))
            wf = 2

        in_specs = [
            pl.BlockSpec((bb, S, D), lambda i: (i, 0, 0)),       # x block
            pl.BlockSpec((bb, 1, S_pad), lambda i: (i, 0, 0)),   # lane-padded key-pad bias
        ] + [w_spec(w) for w in weights]
        out_spec = pl.BlockSpec((bb, S, D), lambda i: (i, 0, 0))

        needed = wf * weight_bytes + 2 * act_bytes + (8 << 20)
        vmem_limit = int(min(max(needed, 32 << 20), max(phys_vmem - (4 << 20), 32 << 20)))

        return pl.pallas_call(
            kernel,
            out_shape=jax.ShapeDtypeStruct((B, S, D), jnp.float32),
            grid=grid,
            in_specs=in_specs,
            out_specs=out_spec,
            compiler_params=pltpu.CompilerParams(
                dimension_semantics=("parallel",),
                vmem_limit_bytes=vmem_limit),
            cost_estimate=cost,
        )(x, mask_bias, *weights)

    try:
        out = build_and_run(True)
        return jax.block_until_ready(out)
    except Exception:
        # Fallback: default (double) buffering for the weight blocks.
        return build_and_run(False)


# ----------------------------------------------------------------------------- params
def make_positional_encoding(d_model, max_len):
    position = jnp.arange(max_len, dtype=jnp.float32)[:, None]
    div_term = jnp.exp(jnp.arange(0, d_model, 2, dtype=jnp.float32)
                       * (-math.log(10000.0) / d_model))
    pe = jnp.zeros((max_len, 1, d_model), dtype=jnp.float32)
    pe = pe.at[:, 0, 0::2].set(jnp.sin(position * div_term))
    pe = pe.at[:, 0, 1::2].set(jnp.cos(position * div_term))
    return pe


def init_layer_params(key, d_model, d_ff, max_len):
    ks = jax.random.split(key, 10)
    s = 0.05
    return {
        "wq": jax.random.normal(ks[0], (d_model, d_model), jnp.float32) * s,
        "bq": jax.random.normal(ks[1], (1, d_model), jnp.float32) * 0.01,
        "wk": jax.random.normal(ks[2], (d_model, d_model), jnp.float32) * s,
        "bk": jax.random.normal(ks[3], (1, d_model), jnp.float32) * 0.01,
        "wv": jax.random.normal(ks[4], (d_model, d_model), jnp.float32) * s,
        "bv": jax.random.normal(ks[5], (1, d_model), jnp.float32) * 0.01,
        "wo": jax.random.normal(ks[6], (d_model, d_model), jnp.float32) * s,
        "bo": jax.random.normal(ks[7], (1, d_model), jnp.float32) * 0.01,
        "ln_w": jnp.ones((max_len, d_model), jnp.float32),
        "ln_b": jnp.zeros((max_len, d_model), jnp.float32),
        "w1": jax.random.normal(ks[8], (d_model, d_ff), jnp.float32) * s,
        "b1": jnp.zeros((1, d_ff), jnp.float32),
        "w2": jax.random.normal(ks[9], (d_ff, d_model), jnp.float32) * s,
        "b2": jnp.zeros((1, d_model), jnp.float32),
    }


def init_params(key, n_vocabs, n_layers, d_ff, d_model, max_len):
    k_emb, *k_layers = jax.random.split(key, n_layers + 1)
    emb = jax.random.normal(k_emb, (n_vocabs, d_model), jnp.float32)
    emb = emb.at[0].set(0.0)                      # padding_idx=0
    return {
        "embedding": emb,
        "pe": make_positional_encoding(d_model, max_len),
        "layers": [init_layer_params(k, d_model, d_ff, max_len) for k in k_layers],
    }


# ----------------------------------------------------------------------------- forward
def encoders_forward(tokens, params, *, n_layers, n_heads, batch_block=None):
    B, S = tokens.shape
    padding_mask = tokens == 0                                          # (B, S)
    x = params["embedding"][tokens]                                     # (B, S, D)
    # PositionalEncoding exactly as the reference writes it: pe[:x.size(0)],
    # i.e. indexed by the BATCH dim and broadcast across the sequence.
    x = x + params["pe"][:B]                                            # (B,1,D) bcast
    x = jnp.where(padding_mask[..., None], 0.0, x).astype(jnp.float32)

    # Lane-dense key-padding bias: pad the key axis to a multiple of 128.
    S_pad = ((S + 127) // 128) * 128
    neg = jnp.where(padding_mask, -1e30, 0.0).astype(jnp.float32)       # (B, S)
    mask_bias = jnp.zeros((B, 1, S_pad), jnp.float32).at[:, 0, :S].set(neg)

    stacked = _stack_layer_params(params["layers"], n_heads)
    x = encoder_stack(x, mask_bias, stacked,
                      n_layers=n_layers, n_heads=n_heads, batch_block=batch_block)
    x = jnp.where(padding_mask[..., None], 0.0, x)
    return x


if __name__ == "__main__":
    # Small shapes consistent with the module defaults: d_model=128 (lane-dense),
    # n_heads=8, d_ff=512, short sequence.  S must equal max_len because the reference
    # LayerNorm normalizes over [max_len, d_model].
    B, S = 2, 8
    n_vocabs, n_layers = 16, 2
    d_model, n_heads, d_ff = 128, 8, 512
    max_len = S

    key = jax.random.PRNGKey(0)
    k_tok, k_par = jax.random.split(key)
    tokens = jax.random.randint(k_tok, (B, S), 0, n_vocabs)
    tokens = tokens.at[:, 0].set(1)   # guarantee at least one non-pad key per row

    params = init_params(k_par, n_vocabs, n_layers, d_ff, d_model, max_len)

    out = encoders_forward(tokens, params, n_layers=n_layers, n_heads=n_heads)
    out = jax.block_until_ready(out)
    assert out.shape == (B, S, d_model)
    assert bool(jnp.all(jnp.isfinite(out)))
    print("KERNEL_OK")
</pallas_src>

<mosaic_0001>
module attributes {stable_mosaic.version = 11 : i64} {
  func.func @encoder_stack_kernel(%arg0: i32, %arg1: memref<2x8x128xf32, #tpu.memory_space<vmem>>, %arg2: memref<2x1x128xf32, #tpu.memory_space<vmem>>, %arg3: memref<2x128x384xbf16, #tpu.memory_space<vmem>>, %arg4: memref<2x1x384xf32, #tpu.memory_space<vmem>>, %arg5: memref<2x128x128xbf16, #tpu.memory_space<vmem>>, %arg6: memref<2x1x128xf32, #tpu.memory_space<vmem>>, %arg7: memref<2x8x128xf32, #tpu.memory_space<vmem>>, %arg8: memref<2x8x128xf32, #tpu.memory_space<vmem>>, %arg9: memref<2x128x512xbf16, #tpu.memory_space<vmem>>, %arg10: memref<2x1x512xf32, #tpu.memory_space<vmem>>, %arg11: memref<2x512x128xbf16, #tpu.memory_space<vmem>>, %arg12: memref<2x1x128xf32, #tpu.memory_space<vmem>>, %arg13: memref<2x8x128xf32, #tpu.memory_space<vmem>>) attributes {dimension_semantics = [#tpu.dimension_semantics<parallel>], iteration_bounds = array<i64: 1>, scalar_prefetch = 0 : i64, scratch_operands = 0 : i64, tpu.core_type = #tpu.core_type<tc>, window_params = [{transform_indices = @transform_0, window_bounds = array<i64: 2, 8, 128>}, {transform_indices = @transform_1, window_bounds = array<i64: 2, 1, 128>}, {pipeline_mode = #tpu.pipeline_mode<synchronous>, transform_indices = @transform_2, window_bounds = array<i64: 2, 128, 384>}, {pipeline_mode = #tpu.pipeline_mode<synchronous>, transform_indices = @transform_3, window_bounds = array<i64: 2, 1, 384>}, {pipeline_mode = #tpu.pipeline_mode<synchronous>, transform_indices = @transform_4, window_bounds = array<i64: 2, 128, 128>}, {pipeline_mode = #tpu.pipeline_mode<synchronous>, transform_indices = @transform_5, window_bounds = array<i64: 2, 1, 128>}, {pipeline_mode = #tpu.pipeline_mode<synchronous>, transform_indices = @transform_6, window_bounds = array<i64: 2, 8, 128>}, {pipeline_mode = #tpu.pipeline_mode<synchronous>, transform_indices = @transform_7, window_bounds = array<i64: 2, 8, 128>}, {pipeline_mode = #tpu.pipeline_mode<synchronous>, transform_indices = @transform_8, window_bounds = array<i64: 2, 128, 512>}, {pipeline_mode = #tpu.pipeline_mode<synchronous>, transform_indices = @transform_9, window_bounds = array<i64: 2, 1, 512>}, {pipeline_mode = #tpu.pipeline_mode<synchronous>, transform_indices = @transform_10, window_bounds = array<i64: 2, 512, 128>}, {pipeline_mode = #tpu.pipeline_mode<synchronous>, transform_indices = @transform_11, window_bounds = array<i64: 2, 1, 128>}, {transform_indices = @transform_12, window_bounds = array<i64: 2, 8, 128>}]} {
    %c0 = arith.constant 0 : index
    %c0_0 = arith.constant 0 : index
    %c0_1 = arith.constant 0 : index
    %0 = vector.load %arg2[%c0, %c0_0, %c0_1] : memref<2x1x128xf32, #tpu.memory_space<vmem>>, vector<2x1x128xf32>
    %1 = vector.extract_strided_slice %0 {offsets = [0, 0, 0], sizes = [2, 1, 8], strides = [1, 1, 1]} : vector<2x1x128xf32> to vector<2x1x8xf32>
    %c0_2 = arith.constant 0 : index
    %c0_3 = arith.constant 0 : index
    %c0_4 = arith.constant 0 : index
    %2 = vector.load %arg1[%c0_2, %c0_3, %c0_4] : memref<2x8x128xf32, #tpu.memory_space<vmem>>, vector<2x8x128xf32>
    %3 = vector.shape_cast %2 : vector<2x8x128xf32> to vector<16x128xf32>
    %c0_5 = arith.constant 0 : index
    %c0_6 = arith.constant 0 : index
    %c0_7 = arith.constant 0 : index
    %4 = vector.load %arg3[%c0_5, %c0_6, %c0_7] : memref<2x128x384xbf16, #tpu.memory_space<vmem>>, vector<1x128x384xbf16>
    %5 = vector.shape_cast %4 : vector<1x128x384xbf16> to vector<128x384xbf16>
    %c0_8 = arith.constant 0 : index
    %c0_9 = arith.constant 0 : index
    %c0_10 = arith.constant 0 : index
    %6 = vector.load %arg4[%c0_8, %c0_9, %c0_10] : memref<2x1x384xf32, #tpu.memory_space<vmem>>, vector<1x1x384xf32>
    %7 = vector.shape_cast %6 : vector<1x1x384xf32> to vector<1x384xf32>
    %c0_11 = arith.constant 0 : index
    %c0_12 = arith.constant 0 : index
    %c0_13 = arith.constant 0 : index
    %8 = vector.load %arg5[%c0_11, %c0_12, %c0_13] : memref<2x128x128xbf16, #tpu.memory_space<vmem>>, vector<1x128x128xbf16>
    %9 = vector.shape_cast %8 : vector<1x128x128xbf16> to vector<128x128xbf16>
    %c0_14 = arith.constant 0 : index
    %c0_15 = arith.constant 0 : index
    %c0_16 = arith.constant 0 : index
    %10 = vector.load %arg6[%c0_14, %c0_15, %c0_16] : memref<2x1x128xf32, #tpu.memory_space<vmem>>, vector<1x1x128xf32>
    %11 = vector.shape_cast %10 : vector<1x1x128xf32> to vector<1x128xf32>
    %c0_17 = arith.constant 0 : index
    %c0_18 = arith.constant 0 : index
    %c0_19 = arith.constant 0 : index
    %12 = vector.load %arg7[%c0_17, %c0_18, %c0_19] : memref<2x8x128xf32, #tpu.memory_space<vmem>>, vector<1x8x128xf32>
    %13 = vector.shape_cast %12 : vector<1x8x128xf32> to vector<8x128xf32>
    %c0_20 = arith.constant 0 : index
    %c0_21 = arith.constant 0 : index
    %c0_22 = arith.constant 0 : index
    %14 = vector.load %arg8[%c0_20, %c0_21, %c0_22] : memref<2x8x128xf32, #tpu.memory_space<vmem>>, vector<1x8x128xf32>
    %15 = vector.shape_cast %14 : vector<1x8x128xf32> to vector<8x128xf32>
    %c0_23 = arith.constant 0 : index
    %c0_24 = arith.constant 0 : index
    %c0_25 = arith.constant 0 : index
    %16 = vector.load %arg9[%c0_23, %c0_24, %c0_25] : memref<2x128x512xbf16, #tpu.memory_space<vmem>>, vector<1x128x512xbf16>
    %17 = vector.shape_cast %16 : vector<1x128x512xbf16> to vector<128x512xbf16>
    %c0_26 = arith.constant 0 : index
    %c0_27 = arith.constant 0 : index
    %c0_28 = arith.constant 0 : index
    %18 = vector.load %arg10[%c0_26, %c0_27, %c0_28] : memref<2x1x512xf32, #tpu.memory_space<vmem>>, vector<1x1x512xf32>
    %19 = vector.shape_cast %18 : vector<1x1x512xf32> to vector<1x512xf32>
    %c0_29 = arith.constant 0 : index
    %c0_30 = arith.constant 0 : index
    %c0_31 = arith.constant 0 : index
    %20 = vector.load %arg11[%c0_29, %c0_30, %c0_31] : memref<2x512x128xbf16, #tpu.memory_space<vmem>>, vector<1x512x128xbf16>
    %21 = vector.shape_cast %20 : vector<1x512x128xbf16> to vector<512x128xbf16>
    %c0_32 = arith.constant 0 : index
    %c0_33 = arith.constant 0 : index
    %c0_34 = arith.constant 0 : index
    %22 = vector.load %arg12[%c0_32, %c0_33, %c0_34] : memref<2x1x128xf32, #tpu.memory_space<vmem>>, vector<1x1x128xf32>
    %23 = vector.shape_cast %22 : vector<1x1x128xf32> to vector<1x128xf32>
    %24 = arith.truncf %3 : vector<16x128xf32> to vector<16x128xbf16>
    %cst = arith.constant dense<0.000000e+00> : vector<16x384xf32>
    %25 = tpu.matmul %24, %5, %cst {dimension_numbers = #tpu.dot_dimension_numbers<[1], [0], [0], [1], [0, 0, 1, 1], [], []>} : vector<16x128xbf16>, vector<128x384xbf16>, vector<16x384xf32> -> vector<16x384xf32>
    %26 = vector.broadcast %7 : vector<1x384xf32> to vector<16x384xf32>
    %27 = arith.addf %25, %26 : vector<16x384xf32>
    %28 = vector.extract_strided_slice %27 {offsets = [0, 0], sizes = [16, 128], strides = [1, 1]} : vector<16x384xf32> to vector<16x128xf32>
    %29 = arith.truncf %28 : vector<16x128xf32> to vector<16x128xbf16>
    %30 = vector.shape_cast %29 : vector<16x128xbf16> to vector<2x8x128xbf16>
    %31 = vector.extract_strided_slice %27 {offsets = [0, 128], sizes = [16, 128], strides = [1, 1]} : vector<16x384xf32> to vector<16x128xf32>
    %32 = arith.truncf %31 : vector<16x128xf32> to vector<16x128xbf16>
    %33 = vector.shape_cast %32 : vector<16x128xbf16> to vector<2x8x128xbf16>
    %34 = vector.extract_strided_slice %27 {offsets = [0, 256], sizes = [16, 128], strides = [1, 1]} : vector<16x384xf32> to vector<16x128xf32>
    %35 = arith.truncf %34 : vector<16x128xf32> to vector<16x128xbf16>
    %36 = vector.shape_cast %35 : vector<16x128xbf16> to vector<2x8x128xbf16>
    %37 = vector.extract_strided_slice %30 {offsets = [0, 0, 0], sizes = [2, 8, 16], strides = [1, 1, 1]} : vector<2x8x128xbf16> to vector<2x8x16xbf16>
    %38 = vector.extract_strided_slice %33 {offsets = [0, 0, 0], sizes = [2, 8, 16], strides = [1, 1, 1]} : vector<2x8x128xbf16> to vector<2x8x16xbf16>
    "tpu.trace_start"() <{level = 10 : i32, message = "bqd,bkd->bqk"}> : () -> ()
    %cst_35 = arith.constant dense<0.000000e+00> : vector<2x8x8xf32>
    %39 = tpu.matmul %37, %38, %cst_35 {dimension_numbers = #tpu.dot_dimension_numbers<[2], [2], [1], [1], [0, 0, 0, 1, 1, 1], [0], [0]>} : vector<2x8x16xbf16>, vector<2x8x16xbf16>, vector<2x8x8xf32> -> vector<2x8x8xf32>
    "tpu.trace_stop"() : () -> ()
    %40 = vector.broadcast %1 : vector<2x1x8xf32> to vector<2x8x8xf32>
    %41 = arith.addf %39, %40 : vector<2x8x8xf32>
    %cst_36 = arith.constant dense<0xFF800000> : vector<2x8xf32>
    %42 = vector.multi_reduction <maximumf>, %41, %cst_36 [2] : vector<2x8x8xf32> to vector<2x8xf32>
    %43 = vector.shape_cast %42 : vector<2x8xf32> to vector<2x8x1xf32>
    %44 = vector.broadcast %43 : vector<2x8x1xf32> to vector<2x8x8xf32>
    %45 = arith.subf %41, %44 : vector<2x8x8xf32>
    %46 = math.exp %45 : vector<2x8x8xf32>
    %cst_37 = arith.constant dense<0.000000e+00> : vector<2x8xf32>
    %47 = vector.multi_reduction <add>, %46, %cst_37 [2] : vector<2x8x8xf32> to vector<2x8xf32>
    %48 = vector.shape_cast %47 : vector<2x8xf32> to vector<2x8x1xf32>
    %49 = vector.broadcast %48 : vector<2x8x1xf32> to vector<2x8x8xf32>
    %50 = arith.divf %46, %49 : vector<2x8x8xf32>
    %51 = arith.truncf %50 : vector<2x8x8xf32> to vector<2x8x8xbf16>
    %52 = vector.extract_strided_slice %36 {offsets = [0, 0, 0], sizes = [2, 8, 16], strides = [1, 1, 1]} : vector<2x8x128xbf16> to vector<2x8x16xbf16>
    "tpu.trace_start"() <{level = 10 : i32, message = "bqk,bkd->bqd"}> : () -> ()
    %cst_38 = arith.constant dense<0.000000e+00> : vector<2x8x16xf32>
    %53 = tpu.matmul %51, %52, %cst_38 {dimension_numbers = #tpu.dot_dimension_numbers<[2], [1], [1], [2], [0, 0, 0, 1, 1, 2], [0], [0]>} : vector<2x8x8xbf16>, vector<2x8x16xbf16>, vector<2x8x16xf32> -> vector<2x8x16xf32>
    "tpu.trace_stop"() : () -> ()
    %54 = vector.extract_strided_slice %30 {offsets = [0, 0, 16], sizes = [2, 8, 16], strides = [1, 1, 1]} : vector<2x8x128xbf16> to vector<2x8x16xbf16>
    %55 = vector.extract_strided_slice %33 {offsets = [0, 0, 16], sizes = [2, 8, 16], strides = [1, 1, 1]} : vector<2x8x128xbf16> to vector<2x8x16xbf16>
    "tpu.trace_start"() <{level = 10 : i32, message = "bqd,bkd->bqk"}> : () -> ()
    %cst_39 = arith.constant dense<0.000000e+00> : vector<2x8x8xf32>
    %56 = tpu.matmul %54, %55, %cst_39 {dimension_numbers = #tpu.dot_dimension_numbers<[2], [2], [1], [1], [0, 0, 0, 1, 1, 1], [0], [0]>} : vector<2x8x16xbf16>, vector<2x8x16xbf16>, vector<2x8x8xf32> -> vector<2x8x8xf32>
    "tpu.trace_stop"() : () -> ()
    %57 = vector.broadcast %1 : vector<2x1x8xf32> to vector<2x8x8xf32>
    %58 = arith.addf %56, %57 : vector<2x8x8xf32>
    %cst_40 = arith.constant dense<0xFF800000> : vector<2x8xf32>
    %59 = vector.multi_reduction <maximumf>, %58, %cst_40 [2] : vector<2x8x8xf32> to vector<2x8xf32>
    %60 = vector.shape_cast %59 : vector<2x8xf32> to vector<2x8x1xf32>
    %61 = vector.broadcast %60 : vector<2x8x1xf32> to vector<2x8x8xf32>
    %62 = arith.subf %58, %61 : vector<2x8x8xf32>
    %63 = math.exp %62 : vector<2x8x8xf32>
    %cst_41 = arith.constant dense<0.000000e+00> : vector<2x8xf32>
    %64 = vector.multi_reduction <add>, %63, %cst_41 [2] : vector<2x8x8xf32> to vector<2x8xf32>
    %65 = vector.shape_cast %64 : vector<2x8xf32> to vector<2x8x1xf32>
    %66 = vector.broadcast %65 : vector<2x8x1xf32> to vector<2x8x8xf32>
    %67 = arith.divf %63, %66 : vector<2x8x8xf32>
    %68 = arith.truncf %67 : vector<2x8x8xf32> to vector<2x8x8xbf16>
    %69 = vector.extract_strided_slice %36 {offsets = [0, 0, 16], sizes = [2, 8, 16], strides = [1, 1, 1]} : vector<2x8x128xbf16> to vector<2x8x16xbf16>
    "tpu.trace_start"() <{level = 10 : i32, message = "bqk,bkd->bqd"}> : () -> ()
    %cst_42 = arith.constant dense<0.000000e+00> : vector<2x8x16xf32>
    %70 = tpu.matmul %68, %69, %cst_42 {dimension_numbers = #tpu.dot_dimension_numbers<[2], [1], [1], [2], [0, 0, 0, 1, 1, 2], [0], [0]>} : vector<2x8x8xbf16>, vector<2x8x16xbf16>, vector<2x8x16xf32> -> vector<2x8x16xf32>
    "tpu.trace_stop"() : () -> ()
    %71 = vector.extract_strided_slice %30 {offsets = [0, 0, 32], sizes = [2, 8, 16], strides = [1, 1, 1]} : vector<2x8x128xbf16> to vector<2x8x16xbf16>
    %72 = vector.extract_strided_slice %33 {offsets = [0, 0, 32], sizes = [2, 8, 16], strides = [1, 1, 1]} : vector<2x8x128xbf16> to vector<2x8x16xbf16>
    "tpu.trace_start"() <{level = 10 : i32, message = "bqd,bkd->bqk"}> : () -> ()
    %cst_43 = arith.constant dense<0.000000e+00> : vector<2x8x8xf32>
    %73 = tpu.matmul %71, %72, %cst_43 {dimension_numbers = #tpu.dot_dimension_numbers<[2], [2], [1], [1], [0, 0, 0, 1, 1, 1], [0], [0]>} : vector<2x8x16xbf16>, vector<2x8x16xbf16>, vector<2x8x8xf32> -> vector<2x8x8xf32>
    "tpu.trace_stop"() : () -> ()
    %74 = vector.broadcast %1 : vector<2x1x8xf32> to vector<2x8x8xf32>
    %75 = arith.addf %73, %74 : vector<2x8x8xf32>
    %cst_44 = arith.constant dense<0xFF800000> : vector<2x8xf32>
    %76 = vector.multi_reduction <maximumf>, %75, %cst_44 [2] : vector<2x8x8xf32> to vector<2x8xf32>
    %77 = vector.shape_cast %76 : vector<2x8xf32> to vector<2x8x1xf32>
    %78 = vector.broadcast %77 : vector<2x8x1xf32> to vector<2x8x8xf32>
    %79 = arith.subf %75, %78 : vector<2x8x8xf32>
    %80 = math.exp %79 : vector<2x8x8xf32>
    %cst_45 = arith.constant dense<0.000000e+00> : vector<2x8xf32>
    %81 = vector.multi_reduction <add>, %80, %cst_45 [2] : vector<2x8x8xf32> to vector<2x8xf32>
    %82 = vector.shape_cast %81 : vector<2x8xf32> to vector<2x8x1xf32>
    %83 = vector.broadcast %82 : vector<2x8x1xf32> to vector<2x8x8xf32>
    %84 = arith.divf %80, %83 : vector<2x8x8xf32>
    %85 = arith.truncf %84 : vector<2x8x8xf32> to vector<2x8x8xbf16>
    %86 = vector.extract_strided_slice %36 {offsets = [0, 0, 32], sizes = [2, 8, 16], strides = [1, 1, 1]} : vector<2x8x128xbf16> to vector<2x8x16xbf16>
    "tpu.trace_start"() <{level = 10 : i32, message = "bqk,bkd->bqd"}> : () -> ()
    %cst_46 = arith.constant dense<0.000000e+00> : vector<2x8x16xf32>
    %87 = tpu.matmul %85, %86, %cst_46 {dimension_numbers = #tpu.dot_dimension_numbers<[2], [1], [1], [2], [0, 0, 0, 1, 1, 2], [0], [0]>} : vector<2x8x8xbf16>, vector<2x8x16xbf16>, vector<2x8x16xf32> -> vector<2x8x16xf32>
    "tpu.trace_stop"() : () -> ()
    %88 = vector.extract_strided_slice %30 {offsets = [0, 0, 48], sizes = [2, 8, 16], strides = [1, 1, 1]} : vector<2x8x128xbf16> to vector<2x8x16xbf16>
    %89 = vector.extract_strided_slice %33 {offsets = [0, 0, 48], sizes = [2, 8, 16], strides = [1, 1, 1]} : vector<2x8x128xbf16> to vector<2x8x16xbf16>
    "tpu.trace_start"() <{level = 10 : i32, message = "bqd,bkd->bqk"}> : () -> ()
    %cst_47 = arith.constant dense<0.000000e+00> : vector<2x8x8xf32>
    %90 = tpu.matmul %88, %89, %cst_47 {dimension_numbers = #tpu.dot_dimension_numbers<[2], [2], [1], [1], [0, 0, 0, 1, 1, 1], [0], [0]>} : vector<2x8x16xbf16>, vector<2x8x16xbf16>, vector<2x8x8xf32> -> vector<2x8x8xf32>
    "tpu.trace_stop"() : () -> ()
    %91 = vector.broadcast %1 : vector<2x1x8xf32> to vector<2x8x8xf32>
    %92 = arith.addf %90, %91 : vector<2x8x8xf32>
    %cst_48 = arith.constant dense<0xFF800000> : vector<2x8xf32>
    %93 = vector.multi_reduction <maximumf>, %92, %cst_48 [2] : vector<2x8x8xf32> to vector<2x8xf32>
    %94 = vector.shape_cast %93 : vector<2x8xf32> to vector<2x8x1xf32>
    %95 = vector.broadcast %94 : vector<2x8x1xf32> to vector<2x8x8xf32>
    %96 = arith.subf %92, %95 : vector<2x8x8xf32>
    %97 = math.exp %96 : vector<2x8x8xf32>
    %cst_49 = arith.constant dense<0.000000e+00> : vector<2x8xf32>
    %98 = vector.multi_reduction <add>, %97, %cst_49 [2] : vector<2x8x8xf32> to vector<2x8xf32>
    %99 = vector.shape_cast %98 : vector<2x8xf32> to vector<2x8x1xf32>
    %100 = vector.broadcast %99 : vector<2x8x1xf32> to vector<2x8x8xf32>
    %101 = arith.divf %97, %100 : vector<2x8x8xf32>
    %102 = arith.truncf %101 : vector<2x8x8xf32> to vector<2x8x8xbf16>
    %103 = vector.extract_strided_slice %36 {offsets = [0, 0, 48], sizes = [2, 8, 16], strides = [1, 1, 1]} : vector<2x8x128xbf16> to vector<2x8x16xbf16>
    "tpu.trace_start"() <{level = 10 : i32, message = "bqk,bkd->bqd"}> : () -> ()
    %cst_50 = arith.constant dense<0.000000e+00> : vector<2x8x16xf32>
    %104 = tpu.matmul %102, %103, %cst_50 {dimension_numbers = #tpu.dot_dimension_numbers<[2], [1], [1], [2], [0, 0, 0, 1, 1, 2], [0], [0]>} : vector<2x8x8xbf16>, vector<2x8x16xbf16>, vector<2x8x16xf32> -> vector<2x8x16xf32>
    "tpu.trace_stop"() : () -> ()
    %105 = vector.extract_strided_slice %30 {offsets = [0, 0, 64], sizes = [2, 8, 16], strides = [1, 1, 1]} : vector<2x8x128xbf16> to vector<2x8x16xbf16>
    %106 = vector.extract_strided_slice %33 {offsets = [0, 0, 64], sizes = [2, 8, 16], strides = [1, 1, 1]} : vector<2x8x128xbf16> to vector<2x8x16xbf16>
    "tpu.trace_start"() <{level = 10 : i32, message = "bqd,bkd->bqk"}> : () -> ()
    %cst_51 = arith.constant dense<0.000000e+00> : vector<2x8x8xf32>
    %107 = tpu.matmul %105, %106, %cst_51 {dimension_numbers = #tpu.dot_dimension_numbers<[2], [2], [1], [1], [0, 0, 0, 1, 1, 1], [0], [0]>} : vector<2x8x16xbf16>, vector<2x8x16xbf16>, vector<2x8x8xf32> -> vector<2x8x8xf32>
    "tpu.trace_stop"() : () -> ()
    %108 = vector.broadcast %1 : vector<2x1x8xf32> to vector<2x8x8xf32>
    %109 = arith.addf %107, %108 : vector<2x8x8xf32>
    %cst_52 = arith.constant dense<0xFF800000> : vector<2x8xf32>
    %110 = vector.multi_reduction <maximumf>, %109, %cst_52 [2] : vector<2x8x8xf32> to vector<2x8xf32>
    %111 = vector.shape_cast %110 : vector<2x8xf32> to vector<2x8x1xf32>
    %112 = vector.broadcast %111 : vector<2x8x1xf32> to vector<2x8x8xf32>
    %113 = arith.subf %109, %112 : vector<2x8x8xf32>
    %114 = math.exp %113 : vector<2x8x8xf32>
    %cst_53 = arith.constant dense<0.000000e+00> : vector<2x8xf32>
    %115 = vector.multi_reduction <add>, %114, %cst_53 [2] : vector<2x8x8xf32> to vector<2x8xf32>
    %116 = vector.shape_cast %115 : vector<2x8xf32> to vector<2x8x1xf32>
    %117 = vector.broadcast %116 : vector<2x8x1xf32> to vector<2x8x8xf32>
    %118 = arith.divf %114, %117 : vector<2x8x8xf32>
    %119 = arith.truncf %118 : vector<2x8x8xf32> to vector<2x8x8xbf16>
    %120 = vector.extract_strided_slice %36 {offsets = [0, 0, 64], sizes = [2, 8, 16], strides = [1, 1, 1]} : vector<2x8x128xbf16> to vector<2x8x16xbf16>
    "tpu.trace_start"() <{level = 10 : i32, message = "bqk,bkd->bqd"}> : () -> ()
    %cst_54 = arith.constant dense<0.000000e+00> : vector<2x8x16xf32>
    %121 = tpu.matmul %119, %120, %cst_54 {dimension_numbers = #tpu.dot_dimension_numbers<[2], [1], [1], [2], [0, 0, 0, 1, 1, 2], [0], [0]>} : vector<2x8x8xbf16>, vector<2x8x16xbf16>, vector<2x8x16xf32> -> vector<2x8x16xf32>
    "tpu.trace_stop"() : () -> ()
    %122 = vector.extract_strided_slice %30 {offsets = [0, 0, 80], sizes = [2, 8, 16], strides = [1, 1, 1]} : vector<2x8x128xbf16> to vector<2x8x16xbf16>
    %123 = vector.extract_strided_slice %33 {offsets = [0, 0, 80], sizes = [2, 8, 16], strides = [1, 1, 1]} : vector<2x8x128xbf16> to vector<2x8x16xbf16>
    "tpu.trace_start"() <{level = 10 : i32, message = "bqd,bkd->bqk"}> : () -> ()
    %cst_55 = arith.constant dense<0.000000e+00> : vector<2x8x8xf32>
    %124 = tpu.matmul %122, %123, %cst_55 {dimension_numbers = #tpu.dot_dimension_numbers<[2], [2], [1], [1], [0, 0, 0, 1, 1, 1], [0], [0]>} : vector<2x8x16xbf16>, vector<2x8x16xbf16>, vector<2x8x8xf32> -> vector<2x8x8xf32>
    "tpu.trace_stop"() : () -> ()
    %125 = vector.broadcast %1 : vector<2x1x8xf32> to vector<2x8x8xf32>
    %126 = arith.addf %124, %125 : vector<2x8x8xf32>
    %cst_56 = arith.constant dense<0xFF800000> : vector<2x8xf32>
    %127 = vector.multi_reduction <maximumf>, %126, %cst_56 [2] : vector<2x8x8xf32> to vector<2x8xf32>
    %128 = vector.shape_cast %127 : vector<2x8xf32> to vector<2x8x1xf32>
    %129 = vector.broadcast %128 : vector<2x8x1xf32> to vector<2x8x8xf32>
    %130 = arith.subf %126, %129 : vector<2x8x8xf32>
    %131 = math.exp %130 : vector<2x8x8xf32>
    %cst_57 = arith.constant dense<0.000000e+00> : vector<2x8xf32>
    %132 = vector.multi_reduction <add>, %131, %cst_57 [2] : vector<2x8x8xf32> to vector<2x8xf32>
    %133 = vector.shape_cast %132 : vector<2x8xf32> to vector<2x8x1xf32>
    %134 = vector.broadcast %133 : vector<2x8x1xf32> to vector<2x8x8xf32>
    %135 = arith.divf %131, %134 : vector<2x8x8xf32>
    %136 = arith.truncf %135 : vector<2x8x8xf32> to vector<2x8x8xbf16>
    %137 = vector.extract_strided_slice %36 {offsets = [0, 0, 80], sizes = [2, 8, 16], strides = [1, 1, 1]} : vector<2x8x128xbf16> to vector<2x8x16xbf16>
    "tpu.trace_start"() <{level = 10 : i32, message = "bqk,bkd->bqd"}> : () -> ()
    %cst_58 = arith.constant dense<0.000000e+00> : vector<2x8x16xf32>
    %138 = tpu.matmul %136, %137, %cst_58 {dimension_numbers = #tpu.dot_dimension_numbers<[2], [1], [1], [2], [0, 0, 0, 1, 1, 2], [0], [0]>} : vector<2x8x8xbf16>, vector<2x8x16xbf16>, vector<2x8x16xf32> -> vector<2x8x16xf32>
    "tpu.trace_stop"() : () -> ()
    %139 = vector.extract_strided_slice %30 {offsets = [0, 0, 96], sizes = [2, 8, 16], strides = [1, 1, 1]} : vector<2x8x128xbf16> to vector<2x8x16xbf16>
    %140 = vector.extract_strided_slice %33 {offsets = [0, 0, 96], sizes = [2, 8, 16], strides = [1, 1, 1]} : vector<2x8x128xbf16> to vector<2x8x16xbf16>
    "tpu.trace_start"() <{level = 10 : i32, message = "bqd,bkd->bqk"}> : () -> ()
    %cst_59 = arith.constant dense<0.000000e+00> : vector<2x8x8xf32>
    %141 = tpu.matmul %139, %140, %cst_59 {dimension_numbers = #tpu.dot_dimension_numbers<[2], [2], [1], [1], [0, 0, 0, 1, 1, 1], [0], [0]>} : vector<2x8x16xbf16>, vector<2x8x16xbf16>, vector<2x8x8xf32> -> vector<2x8x8xf32>
    "tpu.trace_stop"() : () -> ()
    %142 = vector.broadcast %1 : vector<2x1x8xf32> to vector<2x8x8xf32>
    %143 = arith.addf %141, %142 : vector<2x8x8xf32>
    %cst_60 = arith.constant dense<0xFF800000> : vector<2x8xf32>
    %144 = vector.multi_reduction <maximumf>, %143, %cst_60 [2] : vector<2x8x8xf32> to vector<2x8xf32>
    %145 = vector.shape_cast %144 : vector<2x8xf32> to vector<2x8x1xf32>
    %146 = vector.broadcast %145 : vector<2x8x1xf32> to vector<2x8x8xf32>
    %147 = arith.subf %143, %146 : vector<2x8x8xf32>
    %148 = math.exp %147 : vector<2x8x8xf32>
    %cst_61 = arith.constant dense<0.000000e+00> : vector<2x8xf32>
    %149 = vector.multi_reduction <add>, %148, %cst_61 [2] : vector<2x8x8xf32> to vector<2x8xf32>
    %150 = vector.shape_cast %149 : vector<2x8xf32> to vector<2x8x1xf32>
    %151 = vector.broadcast %150 : vector<2x8x1xf32> to vector<2x8x8xf32>
    %152 = arith.divf %148, %151 : vector<2x8x8xf32>
    %153 = arith.truncf %152 : vector<2x8x8xf32> to vector<2x8x8xbf16>
    %154 = vector.extract_strided_slice %36 {offsets = [0, 0, 96], sizes = [2, 8, 16], strides = [1, 1, 1]} : vector<2x8x128xbf16> to vector<2x8x16xbf16>
    "tpu.trace_start"() <{level = 10 : i32, message = "bqk,bkd->bqd"}> : () -> ()
    %cst_62 = arith.constant dense<0.000000e+00> : vector<2x8x16xf32>
    %155 = tpu.matmul %153, %154, %cst_62 {dimension_numbers = #tpu.dot_dimension_numbers<[2], [1], [1], [2], [0, 0, 0, 1, 1, 2], [0], [0]>} : vector<2x8x8xbf16>, vector<2x8x16xbf16>, vector<2x8x16xf32> -> vector<2x8x16xf32>
    "tpu.trace_stop"() : () -> ()
    %156 = vector.extract_strided_slice %30 {offsets = [0, 0, 112], sizes = [2, 8, 16], strides = [1, 1, 1]} : vector<2x8x128xbf16> to vector<2x8x16xbf16>
    %157 = vector.extract_strided_slice %33 {offsets = [0, 0, 112], sizes = [2, 8, 16], strides = [1, 1, 1]} : vector<2x8x128xbf16> to vector<2x8x16xbf16>
    "tpu.trace_start"() <{level = 10 : i32, message = "bqd,bkd->bqk"}> : () -> ()
    %cst_63 = arith.constant dense<0.000000e+00> : vector<2x8x8xf32>
    %158 = tpu.matmul %156, %157, %cst_63 {dimension_numbers = #tpu.dot_dimension_numbers<[2], [2], [1], [1], [0, 0, 0, 1, 1, 1], [0], [0]>} : vector<2x8x16xbf16>, vector<2x8x16xbf16>, vector<2x8x8xf32> -> vector<2x8x8xf32>
    "tpu.trace_stop"() : () -> ()
    %159 = vector.broadcast %1 : vector<2x1x8xf32> to vector<2x8x8xf32>
    %160 = arith.addf %158, %159 : vector<2x8x8xf32>
    %cst_64 = arith.constant dense<0xFF800000> : vector<2x8xf32>
    %161 = vector.multi_reduction <maximumf>, %160, %cst_64 [2] : vector<2x8x8xf32> to vector<2x8xf32>
    %162 = vector.shape_cast %161 : vector<2x8xf32> to vector<2x8x1xf32>
    %163 = vector.broadcast %162 : vector<2x8x1xf32> to vector<2x8x8xf32>
    %164 = arith.subf %160, %163 : vector<2x8x8xf32>
    %165 = math.exp %164 : vector<2x8x8xf32>
    %cst_65 = arith.constant dense<0.000000e+00> : vector<2x8xf32>
    %166 = vector.multi_reduction <add>, %165, %cst_65 [2] : vector<2x8x8xf32> to vector<2x8xf32>
    %167 = vector.shape_cast %166 : vector<2x8xf32> to vector<2x8x1xf32>
    %168 = vector.broadcast %167 : vector<2x8x1xf32> to vector<2x8x8xf32>
    %169 = arith.divf %165, %168 : vector<2x8x8xf32>
    %170 = arith.truncf %169 : vector<2x8x8xf32> to vector<2x8x8xbf16>
    %171 = vector.extract_strided_slice %36 {offsets = [0, 0, 112], sizes = [2, 8, 16], strides = [1, 1, 1]} : vector<2x8x128xbf16> to vector<2x8x16xbf16>
    "tpu.trace_start"() <{level = 10 : i32, message = "bqk,bkd->bqd"}> : () -> ()
    %cst_66 = arith.constant dense<0.000000e+00> : vector<2x8x16xf32>
    %172 = tpu.matmul %170, %171, %cst_66 {dimension_numbers = #tpu.dot_dimension_numbers<[2], [1], [1], [2], [0, 0, 0, 1, 1, 2], [0], [0]>} : vector<2x8x8xbf16>, vector<2x8x16xbf16>, vector<2x8x16xf32> -> vector<2x8x16xf32>
    "tpu.trace_stop"() : () -> ()
    %173 = tpu.concatenate %53, %70, %87, %104, %121, %138, %155, %172 in 2 : vector<2x8x16xf32>, vector<2x8x16xf32>, vector<2x8x16xf32>, vector<2x8x16xf32>, vector<2x8x16xf32>, vector<2x8x16xf32>, vector<2x8x16xf32>, vector<2x8x16xf32> -> vector<2x8x128xf32>
    %174 = vector.shape_cast %173 : vector<2x8x128xf32> to vector<16x128xf32>
    %175 = arith.truncf %174 : vector<16x128xf32> to vector<16x128xbf16>
    %cst_67 = arith.constant dense<0.000000e+00> : vector<16x128xf32>
    %176 = tpu.matmul %175, %9, %cst_67 {dimension_numbers = #tpu.dot_dimension_numbers<[1], [0], [0], [1], [0, 0, 1, 1], [], []>} : vector<16x128xbf16>, vector<128x128xbf16>, vector<16x128xf32> -> vector<16x128xf32>
    %177 = vector.broadcast %11 : vector<1x128xf32> to vector<16x128xf32>
    %178 = arith.addf %176, %177 : vector<16x128xf32>
    %179 = arith.addf %3, %178 : vector<16x128xf32>
    %180 = vector.shape_cast %179 : vector<16x128xf32> to vector<2x8x128xf32>
    %cst_68 = arith.constant dense<0.000000e+00> : vector<2x8xf32>
    %181 = vector.multi_reduction <add>, %180, %cst_68 [2] : vector<2x8x128xf32> to vector<2x8xf32>
    %182 = vector.shape_cast %181 : vector<2x8xf32> to vector<2x8x1xf32>
    %cst_69 = arith.constant dense<0.000000e+00> : vector<2x1xf32>
    %183 = vector.multi_reduction <add>, %182, %cst_69 [1] : vector<2x8x1xf32> to vector<2x1xf32>
    %184 = vector.shape_cast %183 : vector<2x1xf32> to vector<2x1x1xf32>
    %cst_70 = arith.constant 9.765625E-4 : f32
    %185 = vector.broadcast %cst_70 : f32 to vector<2x1x1xf32>
    %186 = arith.mulf %184, %185 : vector<2x1x1xf32>
    %187 = vector.broadcast %186 : vector<2x1x1xf32> to vector<2x8x128xf32>
    %188 = arith.subf %180, %187 : vector<2x8x128xf32>
    %189 = arith.mulf %188, %188 : vector<2x8x128xf32>
    %cst_71 = arith.constant dense<0.000000e+00> : vector<2x8xf32>
    %190 = vector.multi_reduction <add>, %189, %cst_71 [2] : vector<2x8x128xf32> to vector<2x8xf32>
    %191 = vector.shape_cast %190 : vector<2x8xf32> to vector<2x8x1xf32>
    %cst_72 = arith.constant dense<0.000000e+00> : vector<2x1xf32>
    %192 = vector.multi_reduction <add>, %191, %cst_72 [1] : vector<2x8x1xf32> to vector<2x1xf32>
    %193 = vector.shape_cast %192 : vector<2x1xf32> to vector<2x1x1xf32>
    %cst_73 = arith.constant 9.765625E-4 : f32
    %194 = vector.broadcast %cst_73 : f32 to vector<2x1x1xf32>
    %195 = arith.mulf %193, %194 : vector<2x1x1xf32>
    %cst_74 = arith.constant 9.99999997E-7 : f32
    %196 = vector.broadcast %cst_74 : f32 to vector<2x1x1xf32>
    %197 = arith.addf %195, %196 : vector<2x1x1xf32>
    %198 = math.rsqrt %197 : vector<2x1x1xf32>
    %199 = vector.broadcast %198 : vector<2x1x1xf32> to vector<2x8x128xf32>
    %200 = arith.mulf %188, %199 : vector<2x8x128xf32>
    %201 = vector.shape_cast %13 : vector<8x128xf32> to vector<1x8x128xf32>
    %202 = vector.broadcast %201 : vector<1x8x128xf32> to vector<2x8x128xf32>
    %203 = arith.mulf %200, %202 : vector<2x8x128xf32>
    %204 = vector.shape_cast %15 : vector<8x128xf32> to vector<1x8x128xf32>
    %205 = vector.broadcast %204 : vector<1x8x128xf32> to vector<2x8x128xf32>
    %206 = arith.addf %203, %205 : vector<2x8x128xf32>
    %207 = vector.shape_cast %206 : vector<2x8x128xf32> to vector<16x128xf32>
    %208 = arith.truncf %207 : vector<16x128xf32> to vector<16x128xbf16>
    %cst_75 = arith.constant dense<0.000000e+00> : vector<16x512xf32>
    %209 = tpu.matmul %208, %17, %cst_75 {dimension_numbers = #tpu.dot_dimension_numbers<[1], [0], [0], [1], [0, 0, 1, 1], [], []>} : vector<16x128xbf16>, vector<128x512xbf16>, vector<16x512xf32> -> vector<16x512xf32>
    %210 = vector.broadcast %19 : vector<1x512xf32> to vector<16x512xf32>
    %211 = arith.addf %209, %210 : vector<16x512xf32>
    %cst_76 = arith.constant 0.000000e+00 : f32
    %212 = vector.broadcast %cst_76 : f32 to vector<16x512xf32>
    %213 = arith.maximumf %211, %212 : vector<16x512xf32>
    %214 = arith.truncf %213 : vector<16x512xf32> to vector<16x512xbf16>
    %cst_77 = arith.constant dense<0.000000e+00> : vector<16x128xf32>
    %215 = tpu.matmul %214, %21, %cst_77 {dimension_numbers = #tpu.dot_dimension_numbers<[1], [0], [0], [1], [0, 0, 1, 1], [], []>} : vector<16x512xbf16>, vector<512x128xbf16>, vector<16x128xf32> -> vector<16x128xf32>
    %216 = vector.broadcast %23 : vector<1x128xf32> to vector<16x128xf32>
    %217 = arith.addf %215, %216 : vector<16x128xf32>
    %218 = arith.addf %217, %207 : vector<16x128xf32>
    %219 = vector.shape_cast %218 : vector<16x128xf32> to vector<2x8x128xf32>
    %cst_78 = arith.constant dense<0.000000e+00> : vector<2x8xf32>
    %220 = vector.multi_reduction <add>, %219, %cst_78 [2] : vector<2x8x128xf32> to vector<2x8xf32>
    %221 = vector.shape_cast %220 : vector<2x8xf32> to vector<2x8x1xf32>
    %cst_79 = arith.constant dense<0.000000e+00> : vector<2x1xf32>
    %222 = vector.multi_reduction <add>, %221, %cst_79 [1] : vector<2x8x1xf32> to vector<2x1xf32>
    %223 = vector.shape_cast %222 : vector<2x1xf32> to vector<2x1x1xf32>
    %cst_80 = arith.constant 9.765625E-4 : f32
    %224 = vector.broadcast %cst_80 : f32 to vector<2x1x1xf32>
    %225 = arith.mulf %223, %224 : vector<2x1x1xf32>
    %226 = vector.broadcast %225 : vector<2x1x1xf32> to vector<2x8x128xf32>
    %227 = arith.subf %219, %226 : vector<2x8x128xf32>
    %228 = arith.mulf %227, %227 : vector<2x8x128xf32>
    %cst_81 = arith.constant dense<0.000000e+00> : vector<2x8xf32>
    %229 = vector.multi_reduction <add>, %228, %cst_81 [2] : vector<2x8x128xf32> to vector<2x8xf32>
    %230 = vector.shape_cast %229 : vector<2x8xf32> to vector<2x8x1xf32>
    %cst_82 = arith.constant dense<0.000000e+00> : vector<2x1xf32>
    %231 = vector.multi_reduction <add>, %230, %cst_82 [1] : vector<2x8x1xf32> to vector<2x1xf32>
    %232 = vector.shape_cast %231 : vector<2x1xf32> to vector<2x1x1xf32>
    %cst_83 = arith.constant 9.765625E-4 : f32
    %233 = vector.broadcast %cst_83 : f32 to vector<2x1x1xf32>
    %234 = arith.mulf %232, %233 : vector<2x1x1xf32>
    %cst_84 = arith.constant 9.99999997E-7 : f32
    %235 = vector.broadcast %cst_84 : f32 to vector<2x1x1xf32>
    %236 = arith.addf %234, %235 : vector<2x1x1xf32>
    %237 = math.rsqrt %236 : vector<2x1x1xf32>
    %238 = vector.broadcast %237 : vector<2x1x1xf32> to vector<2x8x128xf32>
    %239 = arith.mulf %227, %238 : vector<2x8x128xf32>
    %240 = vector.shape_cast %13 : vector<8x128xf32> to vector<1x8x128xf32>
    %241 = vector.broadcast %240 : vector<1x8x128xf32> to vector<2x8x128xf32>
    %242 = arith.mulf %239, %241 : vector<2x8x128xf32>
    %243 = vector.shape_cast %15 : vector<8x128xf32> to vector<1x8x128xf32>
    %244 = vector.broadcast %243 : vector<1x8x128xf32> to vector<2x8x128xf32>
    %245 = arith.addf %242, %244 : vector<2x8x128xf32>
    %246 = vector.shape_cast %245 : vector<2x8x128xf32> to vector<16x128xf32>
    %c1 = arith.constant 1 : index
    %c0_85 = arith.constant 0 : index
    %c0_86 = arith.constant 0 : index
    %247 = vector.load %arg3[%c1, %c0_85, %c0_86] : memref<2x128x384xbf16, #tpu.memory_space<vmem>>, vector<1x128x384xbf16>
    %248 = vector.shape_cast %247 : vector<1x128x384xbf16> to vector<128x384xbf16>
    %c1_87 = arith.constant 1 : index
    %c0_88 = arith.constant 0 : index
    %c0_89 = arith.constant 0 : index
    %249 = vector.load %arg4[%c1_87, %c0_88, %c0_89] : memref<2x1x384xf32, #tpu.memory_space<vmem>>, vector<1x1x384xf32>
    %250 = vector.shape_cast %249 : vector<1x1x384xf32> to vector<1x384xf32>
    %c1_90 = arith.constant 1 : index
    %c0_91 = arith.constant 0 : index
    %c0_92 = arith.constant 0 : index
    %251 = vector.load %arg5[%c1_90, %c0_91, %c0_92] : memref<2x128x128xbf16, #tpu.memory_space<vmem>>, vector<1x128x128xbf16>
    %252 = vector.shape_cast %251 : vector<1x128x128xbf16> to vector<128x128xbf16>
    %c1_93 = arith.constant 1 : index
    %c0_94 = arith.constant 0 : index
    %c0_95 = arith.constant 0 : index
    %253 = vector.load %arg6[%c1_93, %c0_94, %c0_95] : memref<2x1x128xf32, #tpu.memory_space<vmem>>, vector<1x1x128xf32>
    %254 = vector.shape_cast %253 : vector<1x1x128xf32> to vector<1x128xf32>
    %c1_96 = arith.constant 1 : index
    %c0_97 = arith.constant 0 : index
    %c0_98 = arith.constant 0 : index
    %255 = vector.load %arg7[%c1_96, %c0_97, %c0_98] : memref<2x8x128xf32, #tpu.memory_space<vmem>>, vector<1x8x128xf32>
    %256 = vector.shape_cast %255 : vector<1x8x128xf32> to vector<8x128xf32>
    %c1_99 = arith.constant 1 : index
    %c0_100 = arith.constant 0 : index
    %c0_101 = arith.constant 0 : index
    %257 = vector.load %arg8[%c1_99, %c0_100, %c0_101] : memref<2x8x128xf32, #tpu.memory_space<vmem>>, vector<1x8x128xf32>
    %258 = vector.shape_cast %257 : vector<1x8x128xf32> to vector<8x128xf32>
    %c1_102 = arith.constant 1 : index
    %c0_103 = arith.constant 0 : index
    %c0_104 = arith.constant 0 : index
    %259 = vector.load %arg9[%c1_102, %c0_103, %c0_104] : memref<2x128x512xbf16, #tpu.memory_space<vmem>>, vector<1x128x512xbf16>
    %260 = vector.shape_cast %259 : vector<1x128x512xbf16> to vector<128x512xbf16>
    %c1_105 = arith.constant 1 : index
    %c0_106 = arith.constant 0 : index
    %c0_107 = arith.constant 0 : index
    %261 = vector.load %arg10[%c1_105, %c0_106, %c0_107] : memref<2x1x512xf32, #tpu.memory_space<vmem>>, vector<1x1x512xf32>
    %262 = vector.shape_cast %261 : vector<1x1x512xf32> to vector<1x512xf32>
    %c1_108 = arith.constant 1 : index
    %c0_109 = arith.constant 0 : index
    %c0_110 = arith.constant 0 : index
    %263 = vector.load %arg11[%c1_108, %c0_109, %c0_110] : memref<2x512x128xbf16, #tpu.memory_space<vmem>>, vector<1x512x128xbf16>
    %264 = vector.shape_cast %263 : vector<1x512x128xbf16> to vector<512x128xbf16>
    %c1_111 = arith.constant 1 : index
    %c0_112 = arith.constant 0 : index
    %c0_113 = arith.constant 0 : index
    %265 = vector.load %arg12[%c1_111, %c0_112, %c0_113] : memref<2x1x128xf32, #tpu.memory_space<vmem>>, vector<1x1x128xf32>
    %266 = vector.shape_cast %265 : vector<1x1x128xf32> to vector<1x128xf32>
    %267 = arith.truncf %246 : vector<16x128xf32> to vector<16x128xbf16>
    %cst_114 = arith.constant dense<0.000000e+00> : vector<16x384xf32>
    %268 = tpu.matmul %267, %248, %cst_114 {dimension_numbers = #tpu.dot_dimension_numbers<[1], [0], [0], [1], [0, 0, 1, 1], [], []>} : vector<16x128xbf16>, vector<128x384xbf16>, vector<16x384xf32> -> vector<16x384xf32>
    %269 = vector.broadcast %250 : vector<1x384xf32> to vector<16x384xf32>
    %270 = arith.addf %268, %269 : vector<16x384xf32>
    %271 = vector.extract_strided_slice %270 {offsets = [0, 0], sizes = [16, 128], strides = [1, 1]} : vector<16x384xf32> to vector<16x128xf32>
    %272 = arith.truncf %271 : vector<16x128xf32> to vector<16x128xbf16>
    %273 = vector.shape_cast %272 : vector<16x128xbf16> to vector<2x8x128xbf16>
    %274 = vector.extract_strided_slice %270 {offsets = [0, 128], sizes = [16, 128], strides = [1, 1]} : vector<16x384xf32> to vector<16x128xf32>
    %275 = arith.truncf %274 : vector<16x128xf32> to vector<16x128xbf16>
    %276 = vector.shape_cast %275 : vector<16x128xbf16> to vector<2x8x128xbf16>
    %277 = vector.extract_strided_slice %270 {offsets = [0, 256], sizes = [16, 128], strides = [1, 1]} : vector<16x384xf32> to vector<16x128xf32>
    %278 = arith.truncf %277 : vector<16x128xf32> to vector<16x128xbf16>
    %279 = vector.shape_cast %278 : vector<16x128xbf16> to vector<2x8x128xbf16>
    %280 = vector.extract_strided_slice %273 {offsets = [0, 0, 0], sizes = [2, 8, 16], strides = [1, 1, 1]} : vector<2x8x128xbf16> to vector<2x8x16xbf16>
    %281 = vector.extract_strided_slice %276 {offsets = [0, 0, 0], sizes = [2, 8, 16], strides = [1, 1, 1]} : vector<2x8x128xbf16> to vector<2x8x16xbf16>
    "tpu.trace_start"() <{level = 10 : i32, message = "bqd,bkd->bqk"}> : () -> ()
    %cst_115 = arith.constant dense<0.000000e+00> : vector<2x8x8xf32>
    %282 = tpu.matmul %280, %281, %cst_115 {dimension_numbers = #tpu.dot_dimension_numbers<[2], [2], [1], [1], [0, 0, 0, 1, 1, 1], [0], [0]>} : vector<2x8x16xbf16>, vector<2x8x16xbf16>, vector<2x8x8xf32> -> vector<2x8x8xf32>
    "tpu.trace_stop"() : () -> ()
    %283 = vector.broadcast %1 : vector<2x1x8xf32> to vector<2x8x8xf32>
    %284 = arith.addf %282, %283 : vector<2x8x8xf32>
    %cst_116 = arith.constant dense<0xFF800000> : vector<2x8xf32>
    %285 = vector.multi_reduction <maximumf>, %284, %cst_116 [2] : vector<2x8x8xf32> to vector<2x8xf32>
    %286 = vector.shape_cast %285 : vector<2x8xf32> to vector<2x8x1xf32>
    %287 = vector.broadcast %286 : vector<2x8x1xf32> to vector<2x8x8xf32>
    %288 = arith.subf %284, %287 : vector<2x8x8xf32>
    %289 = math.exp %288 : vector<2x8x8xf32>
    %cst_117 = arith.constant dense<0.000000e+00> : vector<2x8xf32>
    %290 = vector.multi_reduction <add>, %289, %cst_117 [2] : vector<2x8x8xf32> to vector<2x8xf32>
    %291 = vector.shape_cast %290 : vector<2x8xf32> to vector<2x8x1xf32>
    %292 = vector.broadcast %291 : vector<2x8x1xf32> to vector<2x8x8xf32>
    %293 = arith.divf %289, %292 : vector<2x8x8xf32>
    %294 = arith.truncf %293 : vector<2x8x8xf32> to vector<2x8x8xbf16>
    %295 = vector.extract_strided_slice %279 {offsets = [0, 0, 0], sizes = [2, 8, 16], strides = [1, 1, 1]} : vector<2x8x128xbf16> to vector<2x8x16xbf16>
    "tpu.trace_start"() <{level = 10 : i32, message = "bqk,bkd->bqd"}> : () -> ()
    %cst_118 = arith.constant dense<0.000000e+00> : vector<2x8x16xf32>
    %296 = tpu.matmul %294, %295, %cst_118 {dimension_numbers = #tpu.dot_dimension_numbers<[2], [1], [1], [2], [0, 0, 0, 1, 1, 2], [0], [0]>} : vector<2x8x8xbf16>, vector<2x8x16xbf16>, vector<2x8x16xf32> -> vector<2x8x16xf32>
    "tpu.trace_stop"() : () -> ()
    %297 = vector.extract_strided_slice %273 {offsets = [0, 0, 16], sizes = [2, 8, 16], strides = [1, 1, 1]} : vector<2x8x128xbf16> to vector<2x8x16xbf16>
    %298 = vector.extract_strided_slice %276 {offsets = [0, 0, 16], sizes = [2, 8, 16], strides = [1, 1, 1]} : vector<2x8x128xbf16> to vector<2x8x16xbf16>
    "tpu.trace_start"() <{level = 10 : i32, message = "bqd,bkd->bqk"}> : () -> ()
    %cst_119 = arith.constant dense<0.000000e+00> : vector<2x8x8xf32>
    %299 = tpu.matmul %297, %298, %cst_119 {dimension_numbers = #tpu.dot_dimension_numbers<[2], [2], [1], [1], [0, 0, 0, 1, 1, 1], [0], [0]>} : vector<2x8x16xbf16>, vector<2x8x16xbf16>, vector<2x8x8xf32> -> vector<2x8x8xf32>
    "tpu.trace_stop"() : () -> ()
    %300 = vector.broadcast %1 : vector<2x1x8xf32> to vector<2x8x8xf32>
    %301 = arith.addf %299, %300 : vector<2x8x8xf32>
    %cst_120 = arith.constant dense<0xFF800000> : vector<2x8xf32>
    %302 = vector.multi_reduction <maximumf>, %301, %cst_120 [2] : vector<2x8x8xf32> to vector<2x8xf32>
    %303 = vector.shape_cast %302 : vector<2x8xf32> to vector<2x8x1xf32>
    %304 = vector.broadcast %303 : vector<2x8x1xf32> to vector<2x8x8xf32>
    %305 = arith.subf %301, %304 : vector<2x8x8xf32>
    %306 = math.exp %305 : vector<2x8x8xf32>
    %cst_121 = arith.constant dense<0.000000e+00> : vector<2x8xf32>
    %307 = vector.multi_reduction <add>, %306, %cst_121 [2] : vector<2x8x8xf32> to vector<2x8xf32>
    %308 = vector.shape_cast %307 : vector<2x8xf32> to vector<2x8x1xf32>
    %309 = vector.broadcast %308 : vector<2x8x1xf32> to vector<2x8x8xf32>
    %310 = arith.divf %306, %309 : vector<2x8x8xf32>
    %311 = arith.truncf %310 : vector<2x8x8xf32> to vector<2x8x8xbf16>
    %312 = vector.extract_strided_slice %279 {offsets = [0, 0, 16], sizes = [2, 8, 16], strides = [1, 1, 1]} : vector<2x8x128xbf16> to vector<2x8x16xbf16>
    "tpu.trace_start"() <{level = 10 : i32, message = "bqk,bkd->bqd"}> : () -> ()
    %cst_122 = arith.constant dense<0.000000e+00> : vector<2x8x16xf32>
    %313 = tpu.matmul %311, %312, %cst_122 {dimension_numbers = #tpu.dot_dimension_numbers<[2], [1], [1], [2], [0, 0, 0, 1, 1, 2], [0], [0]>} : vector<2x8x8xbf16>, vector<2x8x16xbf16>, vector<2x8x16xf32> -> vector<2x8x16xf32>
    "tpu.trace_stop"() : () -> ()
    %314 = vector.extract_strided_slice %273 {offsets = [0, 0, 32], sizes = [2, 8, 16], strides = [1, 1, 1]} : vector<2x8x128xbf16> to vector<2x8x16xbf16>
    %315 = vector.extract_strided_slice %276 {offsets = [0, 0, 32], sizes = [2, 8, 16], strides = [1, 1, 1]} : vector<2x8x128xbf16> to vector<2x8x16xbf16>
    "tpu.trace_start"() <{level = 10 : i32, message = "bqd,bkd->bqk"}> : () -> ()
    %cst_123 = arith.constant dense<0.000000e+00> : vector<2x8x8xf32>
    %316 = tpu.matmul %314, %315, %cst_123 {dimension_numbers = #tpu.dot_dimension_numbers<[2], [2], [1], [1], [0, 0, 0, 1, 1, 1], [0], [0]>} : vector<2x8x16xbf16>, vector<2x8x16xbf16>, vector<2x8x8xf32> -> vector<2x8x8xf32>
    "tpu.trace_stop"() : () -> ()
    %317 = vector.broadcast %1 : vector<2x1x8xf32> to vector<2x8x8xf32>
    %318 = arith.addf %316, %317 : vector<2x8x8xf32>
    %cst_124 = arith.constant dense<0xFF800000> : vector<2x8xf32>
    %319 = vector.multi_reduction <maximumf>, %318, %cst_124 [2] : vector<2x8x8xf32> to vector<2x8xf32>
    %320 = vector.shape_cast %319 : vector<2x8xf32> to vector<2x8x1xf32>
    %321 = vector.broadcast %320 : vector<2x8x1xf32> to vector<2x8x8xf32>
    %322 = arith.subf %318, %321 : vector<2x8x8xf32>
    %323 = math.exp %322 : vector<2x8x8xf32>
    %cst_125 = arith.constant dense<0.000000e+00> : vector<2x8xf32>
    %324 = vector.multi_reduction <add>, %323, %cst_125 [2] : vector<2x8x8xf32> to vector<2x8xf32>
    %325 = vector.shape_cast %324 : vector<2x8xf32> to vector<2x8x1xf32>
    %326 = vector.broadcast %325 : vector<2x8x1xf32> to vector<2x8x8xf32>
    %327 = arith.divf %323, %326 : vector<2x8x8xf32>
    %328 = arith.truncf %327 : vector<2x8x8xf32> to vector<2x8x8xbf16>
    %329 = vector.extract_strided_slice %279 {offsets = [0, 0, 32], sizes = [2, 8, 16], strides = [1, 1, 1]} : vector<2x8x128xbf16> to vector<2x8x16xbf16>
    "tpu.trace_start"() <{level = 10 : i32, message = "bqk,bkd->bqd"}> : () -> ()
    %cst_126 = arith.constant dense<0.000000e+00> : vector<2x8x16xf32>
    %330 = tpu.matmul %328, %329, %cst_126 {dimension_numbers = #tpu.dot_dimension_numbers<[2], [1], [1], [2], [0, 0, 0, 1, 1, 2], [0], [0]>} : vector<2x8x8xbf16>, vector<2x8x16xbf16>, vector<2x8x16xf32> -> vector<2x8x16xf32>
    "tpu.trace_stop"() : () -> ()
    %331 = vector.extract_strided_slice %273 {offsets = [0, 0, 48], sizes = [2, 8, 16], strides = [1, 1, 1]} : vector<2x8x128xbf16> to vector<2x8x16xbf16>
    %332 = vector.extract_strided_slice %276 {offsets = [0, 0, 48], sizes = [2, 8, 16], strides = [1, 1, 1]} : vector<2x8x128xbf16> to vector<2x8x16xbf16>
    "tpu.trace_start"() <{level = 10 : i32, message = "bqd,bkd->bqk"}> : () -> ()
    %cst_127 = arith.constant dense<0.000000e+00> : vector<2x8x8xf32>
    %333 = tpu.matmul %331, %332, %cst_127 {dimension_numbers = #tpu.dot_dimension_numbers<[2], [2], [1], [1], [0, 0, 0, 1, 1, 1], [0], [0]>} : vector<2x8x16xbf16>, vector<2x8x16xbf16>, vector<2x8x8xf32> -> vector<2x8x8xf32>
    "tpu.trace_stop"() : () -> ()
    %334 = vector.broadcast %1 : vector<2x1x8xf32> to vector<2x8x8xf32>
    %335 = arith.addf %333, %334 : vector<2x8x8xf32>
    %cst_128 = arith.constant dense<0xFF800000> : vector<2x8xf32>
    %336 = vector.multi_reduction <maximumf>, %335, %cst_128 [2] : vector<2x8x8xf32> to vector<2x8xf32>
    %337 = vector.shape_cast %336 : vector<2x8xf32> to vector<2x8x1xf32>
    %338 = vector.broadcast %337 : vector<2x8x1xf32> to vector<2x8x8xf32>
    %339 = arith.subf %335, %338 : vector<2x8x8xf32>
    %340 = math.exp %339 : vector<2x8x8xf32>
    %cst_129 = arith.constant dense<0.000000e+00> : vector<2x8xf32>
    %341 = vector.multi_reduction <add>, %340, %cst_129 [2] : vector<2x8x8xf32> to vector<2x8xf32>
    %342 = vector.shape_cast %341 : vector<2x8xf32> to vector<2x8x1xf32>
    %343 = vector.broadcast %342 : vector<2x8x1xf32> to vector<2x8x8xf32>
    %344 = arith.divf %340, %343 : vector<2x8x8xf32>
    %345 = arith.truncf %344 : vector<2x8x8xf32> to vector<2x8x8xbf16>
    %346 = vector.extract_strided_slice %279 {offsets = [0, 0, 48], sizes = [2, 8, 16], strides = [1, 1, 1]} : vector<2x8x128xbf16> to vector<2x8x16xbf16>
    "tpu.trace_start"() <{level = 10 : i32, message = "bqk,bkd->bqd"}> : () -> ()
    %cst_130 = arith.constant dense<0.000000e+00> : vector<2x8x16xf32>
    %347 = tpu.matmul %345, %346, %cst_130 {dimension_numbers = #tpu.dot_dimension_numbers<[2], [1], [1], [2], [0, 0, 0, 1, 1, 2], [0], [0]>} : vector<2x8x8xbf16>, vector<2x8x16xbf16>, vector<2x8x16xf32> -> vector<2x8x16xf32>
    "tpu.trace_stop"() : () -> ()
    %348 = vector.extract_strided_slice %273 {offsets = [0, 0, 64], sizes = [2, 8, 16], strides = [1, 1, 1]} : vector<2x8x128xbf16> to vector<2x8x16xbf16>
    %349 = vector.extract_strided_slice %276 {offsets = [0, 0, 64], sizes = [2, 8, 16], strides = [1, 1, 1]} : vector<2x8x128xbf16> to vector<2x8x16xbf16>
    "tpu.trace_start"() <{level = 10 : i32, message = "bqd,bkd->bqk"}> : () -> ()
    %cst_131 = arith.constant dense<0.000000e+00> : vector<2x8x8xf32>
    %350 = tpu.matmul %348, %349, %cst_131 {dimension_numbers = #tpu.dot_dimension_numbers<[2], [2], [1], [1], [0, 0, 0, 1, 1, 1], [0], [0]>} : vector<2x8x16xbf16>, vector<2x8x16xbf16>, vector<2x8x8xf32> -> vector<2x8x8xf32>
    "tpu.trace_stop"() : () -> ()
    %351 = vector.broadcast %1 : vector<2x1x8xf32> to vector<2x8x8xf32>
    %352 = arith.addf %350, %351 : vector<2x8x8xf32>
    %cst_132 = arith.constant dense<0xFF800000> : vector<2x8xf32>
    %353 = vector.multi_reduction <maximumf>, %352, %cst_132 [2] : vector<2x8x8xf32> to vector<2x8xf32>
    %354 = vector.shape_cast %353 : vector<2x8xf32> to vector<2x8x1xf32>
    %355 = vector.broadcast %354 : vector<2x8x1xf32> to vector<2x8x8xf32>
    %356 = arith.subf %352, %355 : vector<2x8x8xf32>
    %357 = math.exp %356 : vector<2x8x8xf32>
    %cst_133 = arith.constant dense<0.000000e+00> : vector<2x8xf32>
    %358 = vector.multi_reduction <add>, %357, %cst_133 [2] : vector<2x8x8xf32> to vector<2x8xf32>
    %359 = vector.shape_cast %358 : vector<2x8xf32> to vector<2x8x1xf32>
    %360 = vector.broadcast %359 : vector<2x8x1xf32> to vector<2x8x8xf32>
    %361 = arith.divf %357, %360 : vector<2x8x8xf32>
    %362 = arith.truncf %361 : vector<2x8x8xf32> to vector<2x8x8xbf16>
    %363 = vector.extract_strided_slice %279 {offsets = [0, 0, 64], sizes = [2, 8, 16], strides = [1, 1, 1]} : vector<2x8x128xbf16> to vector<2x8x16xbf16>
    "tpu.trace_start"() <{level = 10 : i32, message = "bqk,bkd->bqd"}> : () -> ()
    %cst_134 = arith.constant dense<0.000000e+00> : vector<2x8x16xf32>
    %364 = tpu.matmul %362, %363, %cst_134 {dimension_numbers = #tpu.dot_dimension_numbers<[2], [1], [1], [2], [0, 0, 0, 1, 1, 2], [0], [0]>} : vector<2x8x8xbf16>, vector<2x8x16xbf16>, vector<2x8x16xf32> -> vector<2x8x16xf32>
    "tpu.trace_stop"() : () -> ()
    %365 = vector.extract_strided_slice %273 {offsets = [0, 0, 80], sizes = [2, 8, 16], strides = [1, 1, 1]} : vector<2x8x128xbf16> to vector<2x8x16xbf16>
    %366 = vector.extract_strided_slice %276 {offsets = [0, 0, 80], sizes = [2, 8, 16], strides = [1, 1, 1]} : vector<2x8x128xbf16> to vector<2x8x16xbf16>
    "tpu.trace_start"() <{level = 10 : i32, message = "bqd,bkd->bqk"}> : () -> ()
    %cst_135 = arith.constant dense<0.000000e+00> : vector<2x8x8xf32>
    %367 = tpu.matmul %365, %366, %cst_135 {dimension_numbers = #tpu.dot_dimension_numbers<[2], [2], [1], [1], [0, 0, 0, 1, 1, 1], [0], [0]>} : vector<2x8x16xbf16>, vector<2x8x16xbf16>, vector<2x8x8xf32> -> vector<2x8x8xf32>
    "tpu.trace_stop"() : () -> ()
    %368 = vector.broadcast %1 : vector<2x1x8xf32> to vector<2x8x8xf32>
    %369 = arith.addf %367, %368 : vector<2x8x8xf32>
    %cst_136 = arith.constant dense<0xFF800000> : vector<2x8xf32>
    %370 = vector.multi_reduction <maximumf>, %369, %cst_136 [2] : vector<2x8x8xf32> to vector<2x8xf32>
    %371 = vector.shape_cast %370 : vector<2x8xf32> to vector<2x8x1xf32>
    %372 = vector.broadcast %371 : vector<2x8x1xf32> to vector<2x8x8xf32>
    %373 = arith.subf %369, %372 : vector<2x8x8xf32>
    %374 = math.exp %373 : vector<2x8x8xf32>
    %cst_137 = arith.constant dense<0.000000e+00> : vector<2x8xf32>
    %375 = vector.multi_reduction <add>, %374, %cst_137 [2] : vector<2x8x8xf32> to vector<2x8xf32>
    %376 = vector.shape_cast %375 : vector<2x8xf32> to vector<2x8x1xf32>
    %377 = vector.broadcast %376 : vector<2x8x1xf32> to vector<2x8x8xf32>
    %378 = arith.divf %374, %377 : vector<2x8x8xf32>
    %379 = arith.truncf %378 : vector<2x8x8xf32> to vector<2x8x8xbf16>
    %380 = vector.extract_strided_slice %279 {offsets = [0, 0, 80], sizes = [2, 8, 16], strides = [1, 1, 1]} : vector<2x8x128xbf16> to vector<2x8x16xbf16>
    "tpu.trace_start"() <{level = 10 : i32, message = "bqk,bkd->bqd"}> : () -> ()
    %cst_138 = arith.constant dense<0.000000e+00> : vector<2x8x16xf32>
    %381 = tpu.matmul %379, %380, %cst_138 {dimension_numbers = #tpu.dot_dimension_numbers<[2], [1], [1], [2], [0, 0, 0, 1, 1, 2], [0], [0]>} : vector<2x8x8xbf16>, vector<2x8x16xbf16>, vector<2x8x16xf32> -> vector<2x8x16xf32>
    "tpu.trace_stop"() : () -> ()
    %382 = vector.extract_strided_slice %273 {offsets = [0, 0, 96], sizes = [2, 8, 16], strides = [1, 1, 1]} : vector<2x8x128xbf16> to vector<2x8x16xbf16>
    %383 = vector.extract_strided_slice %276 {offsets = [0, 0, 96], sizes = [2, 8, 16], strides = [1, 1, 1]} : vector<2x8x128xbf16> to vector<2x8x16xbf16>
    "tpu.trace_start"() <{level = 10 : i32, message = "bqd,bkd->bqk"}> : () -> ()
    %cst_139 = arith.constant dense<0.000000e+00> : vector<2x8x8xf32>
    %384 = tpu.matmul %382, %383, %cst_139 {dimension_numbers = #tpu.dot_dimension_numbers<[2], [2], [1], [1], [0, 0, 0, 1, 1, 1], [0], [0]>} : vector<2x8x16xbf16>, vector<2x8x16xbf16>, vector<2x8x8xf32> -> vector<2x8x8xf32>
    "tpu.trace_stop"() : () -> ()
    %385 = vector.broadcast %1 : vector<2x1x8xf32> to vector<2x8x8xf32>
    %386 = arith.addf %384, %385 : vector<2x8x8xf32>
    %cst_140 = arith.constant dense<0xFF800000> : vector<2x8xf32>
    %387 = vector.multi_reduction <maximumf>, %386, %cst_140 [2] : vector<2x8x8xf32> to vector<2x8xf32>
    %388 = vector.shape_cast %387 : vector<2x8xf32> to vector<2x8x1xf32>
    %389 = vector.broadcast %388 : vector<2x8x1xf32> to vector<2x8x8xf32>
    %390 = arith.subf %386, %389 : vector<2x8x8xf32>
    %391 = math.exp %390 : vector<2x8x8xf32>
    %cst_141 = arith.constant dense<0.000000e+00> : vector<2x8xf32>
    %392 = vector.multi_reduction <add>, %391, %cst_141 [2] : vector<2x8x8xf32> to vector<2x8xf32>
    %393 = vector.shape_cast %392 : vector<2x8xf32> to vector<2x8x1xf32>
    %394 = vector.broadcast %393 : vector<2x8x1xf32> to vector<2x8x8xf32>
    %395 = arith.divf %391, %394 : vector<2x8x8xf32>
    %396 = arith.truncf %395 : vector<2x8x8xf32> to vector<2x8x8xbf16>
    %397 = vector.extract_strided_slice %279 {offsets = [0, 0, 96], sizes = [2, 8, 16], strides = [1, 1, 1]} : vector<2x8x128xbf16> to vector<2x8x16xbf16>
    "tpu.trace_start"() <{level = 10 : i32, message = "bqk,bkd->bqd"}> : () -> ()
    %cst_142 = arith.constant dense<0.000000e+00> : vector<2x8x16xf32>
    %398 = tpu.matmul %396, %397, %cst_142 {dimension_numbers = #tpu.dot_dimension_numbers<[2], [1], [1], [2], [0, 0, 0, 1, 1, 2], [0], [0]>} : vector<2x8x8xbf16>, vector<2x8x16xbf16>, vector<2x8x16xf32> -> vector<2x8x16xf32>
    "tpu.trace_stop"() : () -> ()
    %399 = vector.extract_strided_slice %273 {offsets = [0, 0, 112], sizes = [2, 8, 16], strides = [1, 1, 1]} : vector<2x8x128xbf16> to vector<2x8x16xbf16>
    %400 = vector.extract_strided_slice %276 {offsets = [0, 0, 112], sizes = [2, 8, 16], strides = [1, 1, 1]} : vector<2x8x128xbf16> to vector<2x8x16xbf16>
    "tpu.trace_start"() <{level = 10 : i32, message = "bqd,bkd->bqk"}> : () -> ()
    %cst_143 = arith.constant dense<0.000000e+00> : vector<2x8x8xf32>
    %401 = tpu.matmul %399, %400, %cst_143 {dimension_numbers = #tpu.dot_dimension_numbers<[2], [2], [1], [1], [0, 0, 0, 1, 1, 1], [0], [0]>} : vector<2x8x16xbf16>, vector<2x8x16xbf16>, vector<2x8x8xf32> -> vector<2x8x8xf32>
    "tpu.trace_stop"() : () -> ()
    %402 = vector.broadcast %1 : vector<2x1x8xf32> to vector<2x8x8xf32>
    %403 = arith.addf %401, %402 : vector<2x8x8xf32>
    %cst_144 = arith.constant dense<0xFF800000> : vector<2x8xf32>
    %404 = vector.multi_reduction <maximumf>, %403, %cst_144 [2] : vector<2x8x8xf32> to vector<2x8xf32>
    %405 = vector.shape_cast %404 : vector<2x8xf32> to vector<2x8x1xf32>
    %406 = vector.broadcast %405 : vector<2x8x1xf32> to vector<2x8x8xf32>
    %407 = arith.subf %403, %406 : vector<2x8x8xf32>
    %408 = math.exp %407 : vector<2x8x8xf32>
    %cst_145 = arith.constant dense<0.000000e+00> : vector<2x8xf32>
    %409 = vector.multi_reduction <add>, %408, %cst_145 [2] : vector<2x8x8xf32> to vector<2x8xf32>
    %410 = vector.shape_cast %409 : vector<2x8xf32> to vector<2x8x1xf32>
    %411 = vector.broadcast %410 : vector<2x8x1xf32> to vector<2x8x8xf32>
    %412 = arith.divf %408, %411 : vector<2x8x8xf32>
    %413 = arith.truncf %412 : vector<2x8x8xf32> to vector<2x8x8xbf16>
    %414 = vector.extract_strided_slice %279 {offsets = [0, 0, 112], sizes = [2, 8, 16], strides = [1, 1, 1]} : vector<2x8x128xbf16> to vector<2x8x16xbf16>
    "tpu.trace_start"() <{level = 10 : i32, message = "bqk,bkd->bqd"}> : () -> ()
    %cst_146 = arith.constant dense<0.000000e+00> : vector<2x8x16xf32>
    %415 = tpu.matmul %413, %414, %cst_146 {dimension_numbers = #tpu.dot_dimension_numbers<[2], [1], [1], [2], [0, 0, 0, 1, 1, 2], [0], [0]>} : vector<2x8x8xbf16>, vector<2x8x16xbf16>, vector<2x8x16xf32> -> vector<2x8x16xf32>
    "tpu.trace_stop"() : () -> ()
    %416 = tpu.concatenate %296, %313, %330, %347, %364, %381, %398, %415 in 2 : vector<2x8x16xf32>, vector<2x8x16xf32>, vector<2x8x16xf32>, vector<2x8x16xf32>, vector<2x8x16xf32>, vector<2x8x16xf32>, vector<2x8x16xf32>, vector<2x8x16xf32> -> vector<2x8x128xf32>
    %417 = vector.shape_cast %416 : vector<2x8x128xf32> to vector<16x128xf32>
    %418 = arith.truncf %417 : vector<16x128xf32> to vector<16x128xbf16>
    %cst_147 = arith.constant dense<0.000000e+00> : vector<16x128xf32>
    %419 = tpu.matmul %418, %252, %cst_147 {dimension_numbers = #tpu.dot_dimension_numbers<[1], [0], [0], [1], [0, 0, 1, 1], [], []>} : vector<16x128xbf16>, vector<128x128xbf16>, vector<16x128xf32> -> vector<16x128xf32>
    %420 = vector.broadcast %254 : vector<1x128xf32> to vector<16x128xf32>
    %421 = arith.addf %419, %420 : vector<16x128xf32>
    %422 = arith.addf %246, %421 : vector<16x128xf32>
    %423 = vector.shape_cast %422 : vector<16x128xf32> to vector<2x8x128xf32>
    %cst_148 = arith.constant dense<0.000000e+00> : vector<2x8xf32>
    %424 = vector.multi_reduction <add>, %423, %cst_148 [2] : vector<2x8x128xf32> to vector<2x8xf32>
    %425 = vector.shape_cast %424 : vector<2x8xf32> to vector<2x8x1xf32>
    %cst_149 = arith.constant dense<0.000000e+00> : vector<2x1xf32>
    %426 = vector.multi_reduction <add>, %425, %cst_149 [1] : vector<2x8x1xf32> to vector<2x1xf32>
    %427 = vector.shape_cast %426 : vector<2x1xf32> to vector<2x1x1xf32>
    %cst_150 = arith.constant 9.765625E-4 : f32
    %428 = vector.broadcast %cst_150 : f32 to vector<2x1x1xf32>
    %429 = arith.mulf %427, %428 : vector<2x1x1xf32>
    %430 = vector.broadcast %429 : vector<2x1x1xf32> to vector<2x8x128xf32>
    %431 = arith.subf %423, %430 : vector<2x8x128xf32>
    %432 = arith.mulf %431, %431 : vector<2x8x128xf32>
    %cst_151 = arith.constant dense<0.000000e+00> : vector<2x8xf32>
    %433 = vector.multi_reduction <add>, %432, %cst_151 [2] : vector<2x8x128xf32> to vector<2x8xf32>
    %434 = vector.shape_cast %433 : vector<2x8xf32> to vector<2x8x1xf32>
    %cst_152 = arith.constant dense<0.000000e+00> : vector<2x1xf32>
    %435 = vector.multi_reduction <add>, %434, %cst_152 [1] : vector<2x8x1xf32> to vector<2x1xf32>
    %436 = vector.shape_cast %435 : vector<2x1xf32> to vector<2x1x1xf32>
    %cst_153 = arith.constant 9.765625E-4 : f32
    %437 = vector.broadcast %cst_153 : f32 to vector<2x1x1xf32>
    %438 = arith.mulf %436, %437 : vector<2x1x1xf32>
    %cst_154 = arith.constant 9.99999997E-7 : f32
    %439 = vector.broadcast %cst_154 : f32 to vector<2x1x1xf32>
    %440 = arith.addf %438, %439 : vector<2x1x1xf32>
    %441 = math.rsqrt %440 : vector<2x1x1xf32>
    %442 = vector.broadcast %441 : vector<2x1x1xf32> to vector<2x8x128xf32>
    %443 = arith.mulf %431, %442 : vector<2x8x128xf32>
    %444 = vector.shape_cast %256 : vector<8x128xf32> to vector<1x8x128xf32>
    %445 = vector.broadcast %444 : vector<1x8x128xf32> to vector<2x8x128xf32>
    %446 = arith.mulf %443, %445 : vector<2x8x128xf32>
    %447 = vector.shape_cast %258 : vector<8x128xf32> to vector<1x8x128xf32>
    %448 = vector.broadcast %447 : vector<1x8x128xf32> to vector<2x8x128xf32>
    %449 = arith.addf %446, %448 : vector<2x8x128xf32>
    %450 = vector.shape_cast %449 : vector<2x8x128xf32> to vector<16x128xf32>
    %451 = arith.truncf %450 : vector<16x128xf32> to vector<16x128xbf16>
    %cst_155 = arith.constant dense<0.000000e+00> : vector<16x512xf32>
    %452 = tpu.matmul %451, %260, %cst_155 {dimension_numbers = #tpu.dot_dimension_numbers<[1], [0], [0], [1], [0, 0, 1, 1], [], []>} : vector<16x128xbf16>, vector<128x512xbf16>, vector<16x512xf32> -> vector<16x512xf32>
    %453 = vector.broadcast %262 : vector<1x512xf32> to vector<16x512xf32>
    %454 = arith.addf %452, %453 : vector<16x512xf32>
    %cst_156 = arith.constant 0.000000e+00 : f32
    %455 = vector.broadcast %cst_156 : f32 to vector<16x512xf32>
    %456 = arith.maximumf %454, %455 : vector<16x512xf32>
    %457 = arith.truncf %456 : vector<16x512xf32> to vector<16x512xbf16>
    %cst_157 = arith.constant dense<0.000000e+00> : vector<16x128xf32>
    %458 = tpu.matmul %457, %264, %cst_157 {dimension_numbers = #tpu.dot_dimension_numbers<[1], [0], [0], [1], [0, 0, 1, 1], [], []>} : vector<16x512xbf16>, vector<512x128xbf16>, vector<16x128xf32> -> vector<16x128xf32>
    %459 = vector.broadcast %266 : vector<1x128xf32> to vector<16x128xf32>
    %460 = arith.addf %458, %459 : vector<16x128xf32>
    %461 = arith.addf %460, %450 : vector<16x128xf32>
    %462 = vector.shape_cast %461 : vector<16x128xf32> to vector<2x8x128xf32>
    %cst_158 = arith.constant dense<0.000000e+00> : vector<2x8xf32>
    %463 = vector.multi_reduction <add>, %462, %cst_158 [2] : vector<2x8x128xf32> to vector<2x8xf32>
    %464 = vector.shape_cast %463 : vector<2x8xf32> to vector<2x8x1xf32>
    %cst_159 = arith.constant dense<0.000000e+00> : vector<2x1xf32>
    %465 = vector.multi_reduction <add>, %464, %cst_159 [1] : vector<2x8x1xf32> to vector<2x1xf32>
    %466 = vector.shape_cast %465 : vector<2x1xf32> to vector<2x1x1xf32>
    %cst_160 = arith.constant 9.765625E-4 : f32
    %467 = vector.broadcast %cst_160 : f32 to vector<2x1x1xf32>
    %468 = arith.mulf %466, %467 : vector<2x1x1xf32>
    %469 = vector.broadcast %468 : vector<2x1x1xf32> to vector<2x8x128xf32>
    %470 = arith.subf %462, %469 : vector<2x8x128xf32>
    %471 = arith.mulf %470, %470 : vector<2x8x128xf32>
    %cst_161 = arith.constant dense<0.000000e+00> : vector<2x8xf32>
    %472 = vector.multi_reduction <add>, %471, %cst_161 [2] : vector<2x8x128xf32> to vector<2x8xf32>
    %473 = vector.shape_cast %472 : vector<2x8xf32> to vector<2x8x1xf32>
    %cst_162 = arith.constant dense<0.000000e+00> : vector<2x1xf32>
    %474 = vector.multi_reduction <add>, %473, %cst_162 [1] : vector<2x8x1xf32> to vector<2x1xf32>
    %475 = vector.shape_cast %474 : vector<2x1xf32> to vector<2x1x1xf32>
    %cst_163 = arith.constant 9.765625E-4 : f32
    %476 = vector.broadcast %cst_163 : f32 to vector<2x1x1xf32>
    %477 = arith.mulf %475, %476 : vector<2x1x1xf32>
    %cst_164 = arith.constant 9.99999997E-7 : f32
    %478 = vector.broadcast %cst_164 : f32 to vector<2x1x1xf32>
    %479 = arith.addf %477, %478 : vector<2x1x1xf32>
    %480 = math.rsqrt %479 : vector<2x1x1xf32>
    %481 = vector.broadcast %480 : vector<2x1x1xf32> to vector<2x8x128xf32>
    %482 = arith.mulf %470, %481 : vector<2x8x128xf32>
    %483 = vector.shape_cast %256 : vector<8x128xf32> to vector<1x8x128xf32>
    %484 = vector.broadcast %483 : vector<1x8x128xf32> to vector<2x8x128xf32>
    %485 = arith.mulf %482, %484 : vector<2x8x128xf32>
    %486 = vector.shape_cast %258 : vector<8x128xf32> to vector<1x8x128xf32>
    %487 = vector.broadcast %486 : vector<1x8x128xf32> to vector<2x8x128xf32>
    %488 = arith.addf %485, %487 : vector<2x8x128xf32>
    %489 = vector.shape_cast %488 : vector<2x8x128xf32> to vector<16x128xf32>
    %490 = vector.shape_cast %489 : vector<16x128xf32> to vector<2x8x128xf32>
    %c0_165 = arith.constant 0 : index
    %c0_166 = arith.constant 0 : index
    %c0_167 = arith.constant 0 : index
    %491 = vector.load %arg13[%c0_165, %c0_166, %c0_167] : memref<2x8x128xf32, #tpu.memory_space<vmem>>, vector<2x8x128xf32>
    tpu.vector_store %arg13[%c0_165, %c0_166, %c0_167], %490 {strides = array<i32>} : memref<2x8x128xf32, #tpu.memory_space<vmem>>, vector<2x8x128xf32>,
    return
  }
  func.func @transform_0(%arg0: i32) -> (i32, i32, i32) {
    %c0_i32 = arith.constant 0 : i32
    %c0_i32_0 = arith.constant 0 : i32
    %c0_i32_1 = arith.constant 0 : i32
    return %arg0, %c0_i32, %c0_i32_0 : i32, i32, i32
  }
  func.func @transform_1(%arg0: i32) -> (i32, i32, i32) {
    %c0_i32 = arith.constant 0 : i32
    %c0_i32_0 = arith.constant 0 : i32
    %c0_i32_1 = arith.constant 0 : i32
    return %arg0, %c0_i32, %c0_i32_0 : i32, i32, i32
  }
  func.func @transform_2(%arg0: i32) -> (i32, i32, i32) {
    %c0_i32 = arith.constant 0 : i32
    %c0_i32_0 = arith.constant 0 : i32
    %c0_i32_1 = arith.constant 0 : i32
    %c0_i32_2 = arith.constant 0 : i32
    return %c0_i32, %c0_i32_0, %c0_i32_1 : i32, i32, i32
  }
  func.func @transform_3(%arg0: i32) -> (i32, i32, i32) {
    %c0_i32 = arith.constant 0 : i32
    %c0_i32_0 = arith.constant 0 : i32
    %c0_i32_1 = arith.constant 0 : i32
    %c0_i32_2 = arith.constant 0 : i32
    return %c0_i32, %c0_i32_0, %c0_i32_1 : i32, i32, i32
  }
  func.func @transform_4(%arg0: i32) -> (i32, i32, i32) {
    %c0_i32 = arith.constant 0 : i32
    %c0_i32_0 = arith.constant 0 : i32
    %c0_i32_1 = arith.constant 0 : i32
    %c0_i32_2 = arith.constant 0 : i32
    return %c0_i32, %c0_i32_0, %c0_i32_1 : i32, i32, i32
  }
  func.func @transform_5(%arg0: i32) -> (i32, i32, i32) {
    %c0_i32 = arith.constant 0 : i32
    %c0_i32_0 = arith.constant 0 : i32
    %c0_i32_1 = arith.constant 0 : i32
    %c0_i32_2 = arith.constant 0 : i32
    return %c0_i32, %c0_i32_0, %c0_i32_1 : i32, i32, i32
  }
  func.func @transform_6(%arg0: i32) -> (i32, i32, i32) {
    %c0_i32 = arith.constant 0 : i32
    %c0_i32_0 = arith.constant 0 : i32
    %c0_i32_1 = arith.constant 0 : i32
    %c0_i32_2 = arith.constant 0 : i32
    return %c0_i32, %c0_i32_0, %c0_i32_1 : i32, i32, i32
  }
  func.func @transform_7(%arg0: i32) -> (i32, i32, i32) {
    %c0_i32 = arith.constant 0 : i32
    %c0_i32_0 = arith.constant 0 : i32
    %c0_i32_1 = arith.constant 0 : i32
    %c0_i32_2 = arith.constant 0 : i32
    return %c0_i32, %c0_i32_0, %c0_i32_1 : i32, i32, i32
  }
  func.func @transform_8(%arg0: i32) -> (i32, i32, i32) {
    %c0_i32 = arith.constant 0 : i32
    %c0_i32_0 = arith.constant 0 : i32
    %c0_i32_1 = arith.constant 0 : i32
    %c0_i32_2 = arith.constant 0 : i32
    return %c0_i32, %c0_i32_0, %c0_i32_1 : i32, i32, i32
  }
  func.func @transform_9(%arg0: i32) -> (i32, i32, i32) {
    %c0_i32 = arith.constant 0 : i32
    %c0_i32_0 = arith.constant 0 : i32
    %c0_i32_1 = arith.constant 0 : i32
    %c0_i32_2 = arith.constant 0 : i32
    return %c0_i32, %c0_i32_0, %c0_i32_1 : i32, i32, i32
  }
  func.func @transform_10(%arg0: i32) -> (i32, i32, i32) {
    %c0_i32 = arith.constant 0 : i32
    %c0_i32_0 = arith.constant 0 : i32
    %c0_i32_1 = arith.constant 0 : i32
    %c0_i32_2 = arith.constant 0 : i32
    return %c0_i32, %c0_i32_0, %c0_i32_1 : i32, i32, i32
  }
  func.func @transform_11(%arg0: i32) -> (i32, i32, i32) {
    %c0_i32 = arith.constant 0 : i32
    %c0_i32_0 = arith.constant 0 : i32
    %c0_i32_1 = arith.constant 0 : i32
    %c0_i32_2 = arith.constant 0 : i32
    return %c0_i32, %c0_i32_0, %c0_i32_1 : i32, i32, i32
  }
  func.func @transform_12(%arg0: i32) -> (i32, i32, i32) {
    %c0_i32 = arith.constant 0 : i32
    %c0_i32_0 = arith.constant 0 : i32
    %c0_i32_1 = arith.constant 0 : i32
    return %arg0, %c0_i32, %c0_i32_0 : i32, i32, i32
  }
}

module attributes {stable_mosaic.version = 11 : i64} {
  func.func @encoder_stack_kernel(%arg0: i32, %arg1: memref<2x8x128xf32, #tpu.memory_space<vmem>>, %arg2: memref<2x1x128xf32, #tpu.memory_space<vmem>>, %arg3: memref<2x128x384xbf16, #tpu.memory_space<vmem>>, %arg4: memref<2x1x384xf32, #tpu.memory_space<vmem>>, %arg5: memref<2x128x128xbf16, #tpu.memory_space<vmem>>, %arg6: memref<2x1x128xf32, #tpu.memory_space<vmem>>, %arg7: memref<2x8x128xf32, #tpu.memory_space<vmem>>, %arg8: memref<2x8x128xf32, #tpu.memory_space<vmem>>, %arg9: memref<2x128x512xbf16, #tpu.memory_space<vmem>>, %arg10: memref<2x1x512xf32, #tpu.memory_space<vmem>>, %arg11: memref<2x512x128xbf16, #tpu.memory_space<vmem>>, %arg12: memref<2x1x128xf32, #tpu.memory_space<vmem>>, %arg13: memref<2x8x128xf32, #tpu.memory_space<vmem>>) attributes {dimension_semantics = [#tpu.dimension_semantics<parallel>], iteration_bounds = array<i64: 1>, scalar_prefetch = 0 : i64, scratch_operands = 0 : i64, tpu.core_type = #tpu.core_type<tc>, window_params = [{transform_indices = @transform_0, window_bounds = array<i64: 2, 8, 128>}, {transform_indices = @transform_1, window_bounds = array<i64: 2, 1, 128>}, {pipeline_mode = #tpu.pipeline_mode<synchronous>, transform_indices = @transform_2, window_bounds = array<i64: 2, 128, 384>}, {pipeline_mode = #tpu.pipeline_mode<synchronous>, transform_indices = @transform_3, window_bounds = array<i64: 2, 1, 384>}, {pipeline_mode = #tpu.pipeline_mode<synchronous>, transform_indices = @transform_4, window_bounds = array<i64: 2, 128, 128>}, {pipeline_mode = #tpu.pipeline_mode<synchronous>, transform_indices = @transform_5, window_bounds = array<i64: 2, 1, 128>}, {pipeline_mode = #tpu.pipeline_mode<synchronous>, transform_indices = @transform_6, window_bounds = array<i64: 2, 8, 128>}, {pipeline_mode = #tpu.pipeline_mode<synchronous>, transform_indices = @transform_7, window_bounds = array<i64: 2, 8, 128>}, {pipeline_mode = #tpu.pipeline_mode<synchronous>, transform_indices = @transform_8, window_bounds = array<i64: 2, 128, 512>}, {pipeline_mode = #tpu.pipeline_mode<synchronous>, transform_indices = @transform_9, window_bounds = array<i64: 2, 1, 512>}, {pipeline_mode = #tpu.pipeline_mode<synchronous>, transform_indices = @transform_10, window_bounds = array<i64: 2, 512, 128>}, {pipeline_mode = #tpu.pipeline_mode<synchronous>, transform_indices = @transform_11, window_bounds = array<i64: 2, 1, 128>}, {transform_indices = @transform_12, window_bounds = array<i64: 2, 8, 128>}]} {
    %c0 = arith.constant 0 : index
    %c0_0 = arith.constant 0 : index
    %c0_1 = arith.constant 0 : index
    %0 = vector.load %arg2[%c0, %c0_0, %c0_1] : memref<2x1x128xf32, #tpu.memory_space<vmem>>, vector<2x1x128xf32>
    %1 = vector.extract_strided_slice %0 {offsets = [0, 0, 0], sizes = [2, 1, 8], strides = [1, 1, 1]} : vector<2x1x128xf32> to vector<2x1x8xf32>
    %c0_2 = arith.constant 0 : index
    %c0_3 = arith.constant 0 : index
    %c0_4 = arith.constant 0 : index
    %2 = vector.load %arg1[%c0_2, %c0_3, %c0_4] : memref<2x8x128xf32, #tpu.memory_space<vmem>>, vector<2x8x128xf32>
    %3 = vector.shape_cast %2 : vector<2x8x128xf32> to vector<16x128xf32>
    %c0_5 = arith.constant 0 : index
    %c0_6 = arith.constant 0 : index
    %c0_7 = arith.constant 0 : index
    %4 = vector.load %arg3[%c0_5, %c0_6, %c0_7] : memref<2x128x384xbf16, #tpu.memory_space<vmem>>, vector<1x128x384xbf16>
    %5 = vector.shape_cast %4 : vector<1x128x384xbf16> to vector<128x384xbf16>
    %c0_8 = arith.constant 0 : index
    %c0_9 = arith.constant 0 : index
    %c0_10 = arith.constant 0 : index
    %6 = vector.load %arg4[%c0_8, %c0_9, %c0_10] : memref<2x1x384xf32, #tpu.memory_space<vmem>>, vector<1x1x384xf32>
    %7 = vector.shape_cast %6 : vector<1x1x384xf32> to vector<1x384xf32>
    %c0_11 = arith.constant 0 : index
    %c0_12 = arith.constant 0 : index
    %c0_13 = arith.constant 0 : index
    %8 = vector.load %arg5[%c0_11, %c0_12, %c0_13] : memref<2x128x128xbf16, #tpu.memory_space<vmem>>, vector<1x128x128xbf16>
    %9 = vector.shape_cast %8 : vector<1x128x128xbf16> to vector<128x128xbf16>
    %c0_14 = arith.constant 0 : index
    %c0_15 = arith.constant 0 : index
    %c0_16 = arith.constant 0 : index
    %10 = vector.load %arg6[%c0_14, %c0_15, %c0_16] : memref<2x1x128xf32, #tpu.memory_space<vmem>>, vector<1x1x128xf32>
    %11 = vector.shape_cast %10 : vector<1x1x128xf32> to vector<1x128xf32>
    %c0_17 = arith.constant 0 : index
    %c0_18 = arith.constant 0 : index
    %c0_19 = arith.constant 0 : index
    %12 = vector.load %arg7[%c0_17, %c0_18, %c0_19] : memref<2x8x128xf32, #tpu.memory_space<vmem>>, vector<1x8x128xf32>
    %13 = vector.shape_cast %12 : vector<1x8x128xf32> to vector<8x128xf32>
    %c0_20 = arith.constant 0 : index
    %c0_21 = arith.constant 0 : index
    %c0_22 = arith.constant 0 : index
    %14 = vector.load %arg8[%c0_20, %c0_21, %c0_22] : memref<2x8x128xf32, #tpu.memory_space<vmem>>, vector<1x8x128xf32>
    %15 = vector.shape_cast %14 : vector<1x8x128xf32> to vector<8x128xf32>
    %c0_23 = arith.constant 0 : index
    %c0_24 = arith.constant 0 : index
    %c0_25 = arith.constant 0 : index
    %16 = vector.load %arg9[%c0_23, %c0_24, %c0_25] : memref<2x128x512xbf16, #tpu.memory_space<vmem>>, vector<1x128x512xbf16>
    %17 = vector.shape_cast %16 : vector<1x128x512xbf16> to vector<128x512xbf16>
    %c0_26 = arith.constant 0 : index
    %c0_27 = arith.constant 0 : index
    %c0_28 = arith.constant 0 : index
    %18 = vector.load %arg10[%c0_26, %c0_27, %c0_28] : memref<2x1x512xf32, #tpu.memory_space<vmem>>, vector<1x1x512xf32>
    %19 = vector.shape_cast %18 : vector<1x1x512xf32> to vector<1x512xf32>
    %c0_29 = arith.constant 0 : index
    %c0_30 = arith.constant 0 : index
    %c0_31 = arith.constant 0 : index
    %20 = vector.load %arg11[%c0_29, %c0_30, %c0_31] : memref<2x512x128xbf16, #tpu.memory_space<vmem>>, vector<1x512x128xbf16>
    %21 = vector.shape_cast %20 : vector<1x512x128xbf16> to vector<512x128xbf16>
    %c0_32 = arith.constant 0 : index
    %c0_33 = arith.constant 0 : index
    %c0_34 = arith.constant 0 : index
    %22 = vector.load %arg12[%c0_32, %c0_33, %c0_34] : memref<2x1x128xf32, #tpu.memory_space<vmem>>, vector<1x1x128xf32>
    %23 = vector.shape_cast %22 : vector<1x1x128xf32> to vector<1x128xf32>
    %24 = arith.truncf %3 : vector<16x128xf32> to vector<16x128xbf16>
    %cst = arith.constant dense<0.000000e+00> : vector<16x384xf32>
    %25 = tpu.matmul %24, %5, %cst {dimension_numbers = #tpu.dot_dimension_numbers<[1], [0], [0], [1], [0, 0, 1, 1], [], []>} : vector<16x128xbf16>, vector<128x384xbf16>, vector<16x384xf32> -> vector<16x384xf32>
    %26 = vector.broadcast %7 : vector<1x384xf32> to vector<16x384xf32>
    %27 = arith.addf %25, %26 : vector<16x384xf32>
    %28 = vector.extract_strided_slice %27 {offsets = [0, 0], sizes = [16, 128], strides = [1, 1]} : vector<16x384xf32> to vector<16x128xf32>
    %29 = arith.truncf %28 : vector<16x128xf32> to vector<16x128xbf16>
    %30 = vector.shape_cast %29 : vector<16x128xbf16> to vector<2x8x128xbf16>
    %31 = vector.extract_strided_slice %27 {offsets = [0, 128], sizes = [16, 128], strides = [1, 1]} : vector<16x384xf32> to vector<16x128xf32>
    %32 = arith.truncf %31 : vector<16x128xf32> to vector<16x128xbf16>
    %33 = vector.shape_cast %32 : vector<16x128xbf16> to vector<2x8x128xbf16>
    %34 = vector.extract_strided_slice %27 {offsets = [0, 256], sizes = [16, 128], strides = [1, 1]} : vector<16x384xf32> to vector<16x128xf32>
    %35 = arith.truncf %34 : vector<16x128xf32> to vector<16x128xbf16>
    %36 = vector.shape_cast %35 : vector<16x128xbf16> to vector<2x8x128xbf16>
    %37 = vector.extract_strided_slice %30 {offsets = [0, 0, 0], sizes = [2, 8, 16], strides = [1, 1, 1]} : vector<2x8x128xbf16> to vector<2x8x16xbf16>
    %38 = vector.extract_strided_slice %33 {offsets = [0, 0, 0], sizes = [2, 8, 16], strides = [1, 1, 1]} : vector<2x8x128xbf16> to vector<2x8x16xbf16>
    "tpu.trace_start"() <{level = 10 : i32, message = "bqd,bkd->bqk"}> : () -> ()
    %cst_35 = arith.constant dense<0.000000e+00> : vector<2x8x8xf32>
    %39 = tpu.matmul %37, %38, %cst_35 {dimension_numbers = #tpu.dot_dimension_numbers<[2], [2], [1], [1], [0, 0, 0, 1, 1, 1], [0], [0]>} : vector<2x8x16xbf16>, vector<2x8x16xbf16>, vector<2x8x8xf32> -> vector<2x8x8xf32>
    "tpu.trace_stop"() : () -> ()
    %40 = vector.broadcast %1 : vector<2x1x8xf32> to vector<2x8x8xf32>
    %41 = arith.addf %39, %40 : vector<2x8x8xf32>
    %cst_36 = arith.constant dense<0xFF800000> : vector<2x8xf32>
    %42 = vector.multi_reduction <maximumf>, %41, %cst_36 [2] : vector<2x8x8xf32> to vector<2x8xf32>
    %43 = vector.shape_cast %42 : vector<2x8xf32> to vector<2x8x1xf32>
    %44 = vector.broadcast %43 : vector<2x8x1xf32> to vector<2x8x8xf32>
    %45 = arith.subf %41, %44 : vector<2x8x8xf32>
    %46 = math.exp %45 : vector<2x8x8xf32>
    %cst_37 = arith.constant dense<0.000000e+00> : vector<2x8xf32>
    %47 = vector.multi_reduction <add>, %46, %cst_37 [2] : vector<2x8x8xf32> to vector<2x8xf32>
    %48 = vector.shape_cast %47 : vector<2x8xf32> to vector<2x8x1xf32>
    %49 = vector.broadcast %48 : vector<2x8x1xf32> to vector<2x8x8xf32>
    %50 = arith.divf %46, %49 : vector<2x8x8xf32>
    %51 = arith.truncf %50 : vector<2x8x8xf32> to vector<2x8x8xbf16>
    %52 = vector.extract_strided_slice %36 {offsets = [0, 0, 0], sizes = [2, 8, 16], strides = [1, 1, 1]} : vector<2x8x128xbf16> to vector<2x8x16xbf16>
    "tpu.trace_start"() <{level = 10 : i32, message = "bqk,bkd->bqd"}> : () -> ()
    %cst_38 = arith.constant dense<0.000000e+00> : vector<2x8x16xf32>
    %53 = tpu.matmul %51, %52, %cst_38 {dimension_numbers = #tpu.dot_dimension_numbers<[2], [1], [1], [2], [0, 0, 0, 1, 1, 2], [0], [0]>} : vector<2x8x8xbf16>, vector<2x8x16xbf16>, vector<2x8x16xf32> -> vector<2x8x16xf32>
    "tpu.trace_stop"() : () -> ()
    %54 = vector.extract_strided_slice %30 {offsets = [0, 0, 16], sizes = [2, 8, 16], strides = [1, 1, 1]} : vector<2x8x128xbf16> to vector<2x8x16xbf16>
    %55 = vector.extract_strided_slice %33 {offsets = [0, 0, 16], sizes = [2, 8, 16], strides = [1, 1, 1]} : vector<2x8x128xbf16> to vector<2x8x16xbf16>
    "tpu.trace_start"() <{level = 10 : i32, message = "bqd,bkd->bqk"}> : () -> ()
    %cst_39 = arith.constant dense<0.000000e+00> : vector<2x8x8xf32>
    %56 = tpu.matmul %54, %55, %cst_39 {dimension_numbers = #tpu.dot_dimension_numbers<[2], [2], [1], [1], [0, 0, 0, 1, 1, 1], [0], [0]>} : vector<2x8x16xbf16>, vector<2x8x16xbf16>, vector<2x8x8xf32> -> vector<2x8x8xf32>
    "tpu.trace_stop"() : () -> ()
    %57 = vector.broadcast %1 : vector<2x1x8xf32> to vector<2x8x8xf32>
    %58 = arith.addf %56, %57 : vector<2x8x8xf32>
    %cst_40 = arith.constant dense<0xFF800000> : vector<2x8xf32>
    %59 = vector.multi_reduction <maximumf>, %58, %cst_40 [2] : vector<2x8x8xf32> to vector<2x8xf32>
    %60 = vector.shape_cast %59 : vector<2x8xf32> to vector<2x8x1xf32>
    %61 = vector.broadcast %60 : vector<2x8x1xf32> to vector<2x8x8xf32>
    %62 = arith.subf %58, %61 : vector<2x8x8xf32>
    %63 = math.exp %62 : vector<2x8x8xf32>
    %cst_41 = arith.constant dense<0.000000e+00> : vector<2x8xf32>
    %64 = vector.multi_reduction <add>, %63, %cst_41 [2] : vector<2x8x8xf32> to vector<2x8xf32>
    %65 = vector.shape_cast %64 : vector<2x8xf32> to vector<2x8x1xf32>
    %66 = vector.broadcast %65 : vector<2x8x1xf32> to vector<2x8x8xf32>
    %67 = arith.divf %63, %66 : vector<2x8x8xf32>
    %68 = arith.truncf %67 : vector<2x8x8xf32> to vector<2x8x8xbf16>
    %69 = vector.extract_strided_slice %36 {offsets = [0, 0, 16], sizes = [2, 8, 16], strides = [1, 1, 1]} : vector<2x8x128xbf16> to vector<2x8x16xbf16>
    "tpu.trace_start"() <{level = 10 : i32, message = "bqk,bkd->bqd"}> : () -> ()
    %cst_42 = arith.constant dense<0.000000e+00> : vector<2x8x16xf32>
    %70 = tpu.matmul %68, %69, %cst_42 {dimension_numbers = #tpu.dot_dimension_numbers<[2], [1], [1], [2], [0, 0, 0, 1, 1, 2], [0], [0]>} : vector<2x8x8xbf16>, vector<2x8x16xbf16>, vector<2x8x16xf32> -> vector<2x8x16xf32>
    "tpu.trace_stop"() : () -> ()
    %71 = vector.extract_strided_slice %30 {offsets = [0, 0, 32], sizes = [2, 8, 16], strides = [1, 1, 1]} : vector<2x8x128xbf16> to vector<2x8x16xbf16>
    %72 = vector.extract_strided_slice %33 {offsets = [0, 0, 32], sizes = [2, 8, 16], strides = [1, 1, 1]} : vector<2x8x128xbf16> to vector<2x8x16xbf16>
    "tpu.trace_start"() <{level = 10 : i32, message = "bqd,bkd->bqk"}> : () -> ()
    %cst_43 = arith.constant dense<0.000000e+00> : vector<2x8x8xf32>
    %73 = tpu.matmul %71, %72, %cst_43 {dimension_numbers = #tpu.dot_dimension_numbers<[2], [2], [1], [1], [0, 0, 0, 1, 1, 1], [0], [0]>} : vector<2x8x16xbf16>, vector<2x8x16xbf16>, vector<2x8x8xf32> -> vector<2x8x8xf32>
    "tpu.trace_stop"() : () -> ()
    %74 = vector.broadcast %1 : vector<2x1x8xf32> to vector<2x8x8xf32>
    %75 = arith.addf %73, %74 : vector<2x8x8xf32>
    %cst_44 = arith.constant dense<0xFF800000> : vector<2x8xf32>
    %76 = vector.multi_reduction <maximumf>, %75, %cst_44 [2] : vector<2x8x8xf32> to vector<2x8xf32>
    %77 = vector.shape_cast %76 : vector<2x8xf32> to vector<2x8x1xf32>
    %78 = vector.broadcast %77 : vector<2x8x1xf32> to vector<2x8x8xf32>
    %79 = arith.subf %75, %78 : vector<2x8x8xf32>
    %80 = math.exp %79 : vector<2x8x8xf32>
    %cst_45 = arith.constant dense<0.000000e+00> : vector<2x8xf32>
    %81 = vector.multi_reduction <add>, %80, %cst_45 [2] : vector<2x8x8xf32> to vector<2x8xf32>
    %82 = vector.shape_cast %81 : vector<2x8xf32> to vector<2x8x1xf32>
    %83 = vector.broadcast %82 : vector<2x8x1xf32> to vector<2x8x8xf32>
    %84 = arith.divf %80, %83 : vector<2x8x8xf32>
    %85 = arith.truncf %84 : vector<2x8x8xf32> to vector<2x8x8xbf16>
    %86 = vector.extract_strided_slice %36 {offsets = [0, 0, 32], sizes = [2, 8, 16], strides = [1, 1, 1]} : vector<2x8x128xbf16> to vector<2x8x16xbf16>
    "tpu.trace_start"() <{level = 10 : i32, message = "bqk,bkd->bqd"}> : () -> ()
    %cst_46 = arith.constant dense<0.000000e+00> : vector<2x8x16xf32>
    %87 = tpu.matmul %85, %86, %cst_46 {dimension_numbers = #tpu.dot_dimension_numbers<[2], [1], [1], [2], [0, 0, 0, 1, 1, 2], [0], [0]>} : vector<2x8x8xbf16>, vector<2x8x16xbf16>, vector<2x8x16xf32> -> vector<2x8x16xf32>
    "tpu.trace_stop"() : () -> ()
    %88 = vector.extract_strided_slice %30 {offsets = [0, 0, 48], sizes = [2, 8, 16], strides = [1, 1, 1]} : vector<2x8x128xbf16> to vector<2x8x16xbf16>
    %89 = vector.extract_strided_slice %33 {offsets = [0, 0, 48], sizes = [2, 8, 16], strides = [1, 1, 1]} : vector<2x8x128xbf16> to vector<2x8x16xbf16>
    "tpu.trace_start"() <{level = 10 : i32, message = "bqd,bkd->bqk"}> : () -> ()
    %cst_47 = arith.constant dense<0.000000e+00> : vector<2x8x8xf32>
    %90 = tpu.matmul %88, %89, %cst_47 {dimension_numbers = #tpu.dot_dimension_numbers<[2], [2], [1], [1], [0, 0, 0, 1, 1, 1], [0], [0]>} : vector<2x8x16xbf16>, vector<2x8x16xbf16>, vector<2x8x8xf32> -> vector<2x8x8xf32>
    "tpu.trace_stop"() : () -> ()
    %91 = vector.broadcast %1 : vector<2x1x8xf32> to vector<2x8x8xf32>
    %92 = arith.addf %90, %91 : vector<2x8x8xf32>
    %cst_48 = arith.constant dense<0xFF800000> : vector<2x8xf32>
    %93 = vector.multi_reduction <maximumf>, %92, %cst_48 [2] : vector<2x8x8xf32> to vector<2x8xf32>
    %94 = vector.shape_cast %93 : vector<2x8xf32> to vector<2x8x1xf32>
    %95 = vector.broadcast %94 : vector<2x8x1xf32> to vector<2x8x8xf32>
    %96 = arith.subf %92, %95 : vector<2x8x8xf32>
    %97 = math.exp %96 : vector<2x8x8xf32>
    %cst_49 = arith.constant dense<0.000000e+00> : vector<2x8xf32>
    %98 = vector.multi_reduction <add>, %97, %cst_49 [2] : vector<2x8x8xf32> to vector<2x8xf32>
    %99 = vector.shape_cast %98 : vector<2x8xf32> to vector<2x8x1xf32>
    %100 = vector.broadcast %99 : vector<2x8x1xf32> to vector<2x8x8xf32>
    %101 = arith.divf %97, %100 : vector<2x8x8xf32>
    %102 = arith.truncf %101 : vector<2x8x8xf32> to vector<2x8x8xbf16>
    %103 = vector.extract_strided_slice %36 {offsets = [0, 0, 48], sizes = [2, 8, 16], strides = [1, 1, 1]} : vector<2x8x128xbf16> to vector<2x8x16xbf16>
    "tpu.trace_start"() <{level = 10 : i32, message = "bqk,bkd->bqd"}> : () -> ()
    %cst_50 = arith.constant dense<0.000000e+00> : vector<2x8x16xf32>
    %104 = tpu.matmul %102, %103, %cst_50 {dimension_numbers = #tpu.dot_dimension_numbers<[2], [1], [1], [2], [0, 0, 0, 1, 1, 2], [0], [0]>} : vector<2x8x8xbf16>, vector<2x8x16xbf16>, vector<2x8x16xf32> -> vector<2x8x16xf32>
    "tpu.trace_stop"() : () -> ()
    %105 = vector.extract_strided_slice %30 {offsets = [0, 0, 64], sizes = [2, 8, 16], strides = [1, 1, 1]} : vector<2x8x128xbf16> to vector<2x8x16xbf16>
    %106 = vector.extract_strided_slice %33 {offsets = [0, 0, 64], sizes = [2, 8, 16], strides = [1, 1, 1]} : vector<2x8x128xbf16> to vector<2x8x16xbf16>
    "tpu.trace_start"() <{level = 10 : i32, message = "bqd,bkd->bqk"}> : () -> ()
    %cst_51 = arith.constant dense<0.000000e+00> : vector<2x8x8xf32>
    %107 = tpu.matmul %105, %106, %cst_51 {dimension_numbers = #tpu.dot_dimension_numbers<[2], [2], [1], [1], [0, 0, 0, 1, 1, 1], [0], [0]>} : vector<2x8x16xbf16>, vector<2x8x16xbf16>, vector<2x8x8xf32> -> vector<2x8x8xf32>
    "tpu.trace_stop"() : () -> ()
    %108 = vector.broadcast %1 : vector<2x1x8xf32> to vector<2x8x8xf32>
    %109 = arith.addf %107, %108 : vector<2x8x8xf32>
    %cst_52 = arith.constant dense<0xFF800000> : vector<2x8xf32>
    %110 = vector.multi_reduction <maximumf>, %109, %cst_52 [2] : vector<2x8x8xf32> to vector<2x8xf32>
    %111 = vector.shape_cast %110 : vector<2x8xf32> to vector<2x8x1xf32>
    %112 = vector.broadcast %111 : vector<2x8x1xf32> to vector<2x8x8xf32>
    %113 = arith.subf %109, %112 : vector<2x8x8xf32>
    %114 = math.exp %113 : vector<2x8x8xf32>
    %cst_53 = arith.constant dense<0.000000e+00> : vector<2x8xf32>
    %115 = vector.multi_reduction <add>, %114, %cst_53 [2] : vector<2x8x8xf32> to vector<2x8xf32>
    %116 = vector.shape_cast %115 : vector<2x8xf32> to vector<2x8x1xf32>
    %117 = vector.broadcast %116 : vector<2x8x1xf32> to vector<2x8x8xf32>
    %118 = arith.divf %114, %117 : vector<2x8x8xf32>
    %119 = arith.truncf %118 : vector<2x8x8xf32> to vector<2x8x8xbf16>
    %120 = vector.extract_strided_slice %36 {offsets = [0, 0, 64], sizes = [2, 8, 16], strides = [1, 1, 1]} : vector<2x8x128xbf16> to vector<2x8x16xbf16>
    "tpu.trace_start"() <{level = 10 : i32, message = "bqk,bkd->bqd"}> : () -> ()
    %cst_54 = arith.constant dense<0.000000e+00> : vector<2x8x16xf32>
    %121 = tpu.matmul %119, %120, %cst_54 {dimension_numbers = #tpu.dot_dimension_numbers<[2], [1], [1], [2], [0, 0, 0, 1, 1, 2], [0], [0]>} : vector<2x8x8xbf16>, vector<2x8x16xbf16>, vector<2x8x16xf32> -> vector<2x8x16xf32>
    "tpu.trace_stop"() : () -> ()
    %122 = vector.extract_strided_slice %30 {offsets = [0, 0, 80], sizes = [2, 8, 16], strides = [1, 1, 1]} : vector<2x8x128xbf16> to vector<2x8x16xbf16>
    %123 = vector.extract_strided_slice %33 {offsets = [0, 0, 80], sizes = [2, 8, 16], strides = [1, 1, 1]} : vector<2x8x128xbf16> to vector<2x8x16xbf16>
    "tpu.trace_start"() <{level = 10 : i32, message = "bqd,bkd->bqk"}> : () -> ()
    %cst_55 = arith.constant dense<0.000000e+00> : vector<2x8x8xf32>
    %124 = tpu.matmul %122, %123, %cst_55 {dimension_numbers = #tpu.dot_dimension_numbers<[2], [2], [1], [1], [0, 0, 0, 1, 1, 1], [0], [0]>} : vector<2x8x16xbf16>, vector<2x8x16xbf16>, vector<2x8x8xf32> -> vector<2x8x8xf32>
    "tpu.trace_stop"() : () -> ()
    %125 = vector.broadcast %1 : vector<2x1x8xf32> to vector<2x8x8xf32>
    %126 = arith.addf %124, %125 : vector<2x8x8xf32>
    %cst_56 = arith.constant dense<0xFF800000> : vector<2x8xf32>
    %127 = vector.multi_reduction <maximumf>, %126, %cst_56 [2] : vector<2x8x8xf32> to vector<2x8xf32>
    %128 = vector.shape_cast %127 : vector<2x8xf32> to vector<2x8x1xf32>
    %129 = vector.broadcast %128 : vector<2x8x1xf32> to vector<2x8x8xf32>
    %130 = arith.subf %126, %129 : vector<2x8x8xf32>
    %131 = math.exp %130 : vector<2x8x8xf32>
    %cst_57 = arith.constant dense<0.000000e+00> : vector<2x8xf32>
    %132 = vector.multi_reduction <add>, %131, %cst_57 [2] : vector<2x8x8xf32> to vector<2x8xf32>
    %133 = vector.shape_cast %132 : vector<2x8xf32> to vector<2x8x1xf32>
    %134 = vector.broadcast %133 : vector<2x8x1xf32> to vector<2x8x8xf32>
    %135 = arith.divf %131, %134 : vector<2x8x8xf32>
    %136 = arith.truncf %135 : vector<2x8x8xf32> to vector<2x8x8xbf16>
    %137 = vector.extract_strided_slice %36 {offsets = [0, 0, 80], sizes = [2, 8, 16], strides = [1, 1, 1]} : vector<2x8x128xbf16> to vector<2x8x16xbf16>
    "tpu.trace_start"() <{level = 10 : i32, message = "bqk,bkd->bqd"}> : () -> ()
    %cst_58 = arith.constant dense<0.000000e+00> : vector<2x8x16xf32>
    %138 = tpu.matmul %136, %137, %cst_58 {dimension_numbers = #tpu.dot_dimension_numbers<[2], [1], [1], [2], [0, 0, 0, 1, 1, 2], [0], [0]>} : vector<2x8x8xbf16>, vector<2x8x16xbf16>, vector<2x8x16xf32> -> vector<2x8x16xf32>
    "tpu.trace_stop"() : () -> ()
    %139 = vector.extract_strided_slice %30 {offsets = [0, 0, 96], sizes = [2, 8, 16], strides = [1, 1, 1]} : vector<2x8x128xbf16> to vector<2x8x16xbf16>
    %140 = vector.extract_strided_slice %33 {offsets = [0, 0, 96], sizes = [2, 8, 16], strides = [1, 1, 1]} : vector<2x8x128xbf16> to vector<2x8x16xbf16>
    "tpu.trace_start"() <{level = 10 : i32, message = "bqd,bkd->bqk"}> : () -> ()
    %cst_59 = arith.constant dense<0.000000e+00> : vector<2x8x8xf32>
    %141 = tpu.matmul %139, %140, %cst_59 {dimension_numbers = #tpu.dot_dimension_numbers<[2], [2], [1], [1], [0, 0, 0, 1, 1, 1], [0], [0]>} : vector<2x8x16xbf16>, vector<2x8x16xbf16>, vector<2x8x8xf32> -> vector<2x8x8xf32>
    "tpu.trace_stop"() : () -> ()
    %142 = vector.broadcast %1 : vector<2x1x8xf32> to vector<2x8x8xf32>
    %143 = arith.addf %141, %142 : vector<2x8x8xf32>
    %cst_60 = arith.constant dense<0xFF800000> : vector<2x8xf32>
    %144 = vector.multi_reduction <maximumf>, %143, %cst_60 [2] : vector<2x8x8xf32> to vector<2x8xf32>
    %145 = vector.shape_cast %144 : vector<2x8xf32> to vector<2x8x1xf32>
    %146 = vector.broadcast %145 : vector<2x8x1xf32> to vector<2x8x8xf32>
    %147 = arith.subf %143, %146 : vector<2x8x8xf32>
    %148 = math.exp %147 : vector<2x8x8xf32>
    %cst_61 = arith.constant dense<0.000000e+00> : vector<2x8xf32>
    %149 = vector.multi_reduction <add>, %148, %cst_61 [2] : vector<2x8x8xf32> to vector<2x8xf32>
    %150 = vector.shape_cast %149 : vector<2x8xf32> to vector<2x8x1xf32>
    %151 = vector.broadcast %150 : vector<2x8x1xf32> to vector<2x8x8xf32>
    %152 = arith.divf %148, %151 : vector<2x8x8xf32>
    %153 = arith.truncf %152 : vector<2x8x8xf32> to vector<2x8x8xbf16>
    %154 = vector.extract_strided_slice %36 {offsets = [0, 0, 96], sizes = [2, 8, 16], strides = [1, 1, 1]} : vector<2x8x128xbf16> to vector<2x8x16xbf16>
    "tpu.trace_start"() <{level = 10 : i32, message = "bqk,bkd->bqd"}> : () -> ()
    %cst_62 = arith.constant dense<0.000000e+00> : vector<2x8x16xf32>
    %155 = tpu.matmul %153, %154, %cst_62 {dimension_numbers = #tpu.dot_dimension_numbers<[2], [1], [1], [2], [0, 0, 0, 1, 1, 2], [0], [0]>} : vector<2x8x8xbf16>, vector<2x8x16xbf16>, vector<2x8x16xf32> -> vector<2x8x16xf32>
    "tpu.trace_stop"() : () -> ()
    %156 = vector.extract_strided_slice %30 {offsets = [0, 0, 112], sizes = [2, 8, 16], strides = [1, 1, 1]} : vector<2x8x128xbf16> to vector<2x8x16xbf16>
    %157 = vector.extract_strided_slice %33 {offsets = [0, 0, 112], sizes = [2, 8, 16], strides = [1, 1, 1]} : vector<2x8x128xbf16> to vector<2x8x16xbf16>
    "tpu.trace_start"() <{level = 10 : i32, message = "bqd,bkd->bqk"}> : () -> ()
    %cst_63 = arith.constant dense<0.000000e+00> : vector<2x8x8xf32>
    %158 = tpu.matmul %156, %157, %cst_63 {dimension_numbers = #tpu.dot_dimension_numbers<[2], [2], [1], [1], [0, 0, 0, 1, 1, 1], [0], [0]>} : vector<2x8x16xbf16>, vector<2x8x16xbf16>, vector<2x8x8xf32> -> vector<2x8x8xf32>
    "tpu.trace_stop"() : () -> ()
    %159 = vector.broadcast %1 : vector<2x1x8xf32> to vector<2x8x8xf32>
    %160 = arith.addf %158, %159 : vector<2x8x8xf32>
    %cst_64 = arith.constant dense<0xFF800000> : vector<2x8xf32>
    %161 = vector.multi_reduction <maximumf>, %160, %cst_64 [2] : vector<2x8x8xf32> to vector<2x8xf32>
    %162 = vector.shape_cast %161 : vector<2x8xf32> to vector<2x8x1xf32>
    %163 = vector.broadcast %162 : vector<2x8x1xf32> to vector<2x8x8xf32>
    %164 = arith.subf %160, %163 : vector<2x8x8xf32>
    %165 = math.exp %164 : vector<2x8x8xf32>
    %cst_65 = arith.constant dense<0.000000e+00> : vector<2x8xf32>
    %166 = vector.multi_reduction <add>, %165, %cst_65 [2] : vector<2x8x8xf32> to vector<2x8xf32>
    %167 = vector.shape_cast %166 : vector<2x8xf32> to vector<2x8x1xf32>
    %168 = vector.broadcast %167 : vector<2x8x1xf32> to vector<2x8x8xf32>
    %169 = arith.divf %165, %168 : vector<2x8x8xf32>
    %170 = arith.truncf %169 : vector<2x8x8xf32> to vector<2x8x8xbf16>
    %171 = vector.extract_strided_slice %36 {offsets = [0, 0, 112], sizes = [2, 8, 16], strides = [1, 1, 1]} : vector<2x8x128xbf16> to vector<2x8x16xbf16>
    "tpu.trace_start"() <{level = 10 : i32, message = "bqk,bkd->bqd"}> : () -> ()
    %cst_66 = arith.constant dense<0.000000e+00> : vector<2x8x16xf32>
    %172 = tpu.matmul %170, %171, %cst_66 {dimension_numbers = #tpu.dot_dimension_numbers<[2], [1], [1], [2], [0, 0, 0, 1, 1, 2], [0], [0]>} : vector<2x8x8xbf16>, vector<2x8x16xbf16>, vector<2x8x16xf32> -> vector<2x8x16xf32>
    "tpu.trace_stop"() : () -> ()
    %173 = tpu.concatenate %53, %70, %87, %104, %121, %138, %155, %172 in 2 : vector<2x8x16xf32>, vector<2x8x16xf32>, vector<2x8x16xf32>, vector<2x8x16xf32>, vector<2x8x16xf32>, vector<2x8x16xf32>, vector<2x8x16xf32>, vector<2x8x16xf32> -> vector<2x8x128xf32>
    %174 = vector.shape_cast %173 : vector<2x8x128xf32> to vector<16x128xf32>
    %175 = arith.truncf %174 : vector<16x128xf32> to vector<16x128xbf16>
    %cst_67 = arith.constant dense<0.000000e+00> : vector<16x128xf32>
    %176 = tpu.matmul %175, %9, %cst_67 {dimension_numbers = #tpu.dot_dimension_numbers<[1], [0], [0], [1], [0, 0, 1, 1], [], []>} : vector<16x128xbf16>, vector<128x128xbf16>, vector<16x128xf32> -> vector<16x128xf32>
    %177 = vector.broadcast %11 : vector<1x128xf32> to vector<16x128xf32>
    %178 = arith.addf %176, %177 : vector<16x128xf32>
    %179 = arith.addf %3, %178 : vector<16x128xf32>
    %180 = vector.shape_cast %179 : vector<16x128xf32> to vector<2x8x128xf32>
    %cst_68 = arith.constant dense<0.000000e+00> : vector<2x8xf32>
    %181 = vector.multi_reduction <add>, %180, %cst_68 [2] : vector<2x8x128xf32> to vector<2x8xf32>
    %182 = vector.shape_cast %181 : vector<2x8xf32> to vector<2x8x1xf32>
    %cst_69 = arith.constant dense<0.000000e+00> : vector<2x1xf32>
    %183 = vector.multi_reduction <add>, %182, %cst_69 [1] : vector<2x8x1xf32> to vector<2x1xf32>
    %184 = vector.shape_cast %183 : vector<2x1xf32> to vector<2x1x1xf32>
    %cst_70 = arith.constant 9.765625E-4 : f32
    %185 = vector.broadcast %cst_70 : f32 to vector<2x1x1xf32>
    %186 = arith.mulf %184, %185 : vector<2x1x1xf32>
    %187 = vector.broadcast %186 : vector<2x1x1xf32> to vector<2x8x128xf32>
    %188 = arith.subf %180, %187 : vector<2x8x128xf32>
    %189 = arith.mulf %188, %188 : vector<2x8x128xf32>
    %cst_71 = arith.constant dense<0.000000e+00> : vector<2x8xf32>
    %190 = vector.multi_reduction <add>, %189, %cst_71 [2] : vector<2x8x128xf32> to vector<2x8xf32>
    %191 = vector.shape_cast %190 : vector<2x8xf32> to vector<2x8x1xf32>
    %cst_72 = arith.constant dense<0.000000e+00> : vector<2x1xf32>
    %192 = vector.multi_reduction <add>, %191, %cst_72 [1] : vector<2x8x1xf32> to vector<2x1xf32>
    %193 = vector.shape_cast %192 : vector<2x1xf32> to vector<2x1x1xf32>
    %cst_73 = arith.constant 9.765625E-4 : f32
    %194 = vector.broadcast %cst_73 : f32 to vector<2x1x1xf32>
    %195 = arith.mulf %193, %194 : vector<2x1x1xf32>
    %cst_74 = arith.constant 9.99999997E-7 : f32
    %196 = vector.broadcast %cst_74 : f32 to vector<2x1x1xf32>
    %197 = arith.addf %195, %196 : vector<2x1x1xf32>
    %198 = math.rsqrt %197 : vector<2x1x1xf32>
    %199 = vector.broadcast %198 : vector<2x1x1xf32> to vector<2x8x128xf32>
    %200 = arith.mulf %188, %199 : vector<2x8x128xf32>
    %201 = vector.shape_cast %13 : vector<8x128xf32> to vector<1x8x128xf32>
    %202 = vector.broadcast %201 : vector<1x8x128xf32> to vector<2x8x128xf32>
    %203 = arith.mulf %200, %202 : vector<2x8x128xf32>
    %204 = vector.shape_cast %15 : vector<8x128xf32> to vector<1x8x128xf32>
    %205 = vector.broadcast %204 : vector<1x8x128xf32> to vector<2x8x128xf32>
    %206 = arith.addf %203, %205 : vector<2x8x128xf32>
    %207 = vector.shape_cast %206 : vector<2x8x128xf32> to vector<16x128xf32>
    %208 = arith.truncf %207 : vector<16x128xf32> to vector<16x128xbf16>
    %cst_75 = arith.constant dense<0.000000e+00> : vector<16x512xf32>
    %209 = tpu.matmul %208, %17, %cst_75 {dimension_numbers = #tpu.dot_dimension_numbers<[1], [0], [0], [1], [0, 0, 1, 1], [], []>} : vector<16x128xbf16>, vector<128x512xbf16>, vector<16x512xf32> -> vector<16x512xf32>
    %210 = vector.broadcast %19 : vector<1x512xf32> to vector<16x512xf32>
    %211 = arith.addf %209, %210 : vector<16x512xf32>
    %cst_76 = arith.constant 0.000000e+00 : f32
    %212 = vector.broadcast %cst_76 : f32 to vector<16x512xf32>
    %213 = arith.maximumf %211, %212 : vector<16x512xf32>
    %214 = arith.truncf %213 : vector<16x512xf32> to vector<16x512xbf16>
    %cst_77 = arith.constant dense<0.000000e+00> : vector<16x128xf32>
    %215 = tpu.matmul %214, %21, %cst_77 {dimension_numbers = #tpu.dot_dimension_numbers<[1], [0], [0], [1], [0, 0, 1, 1], [], []>} : vector<16x512xbf16>, vector<512x128xbf16>, vector<16x128xf32> -> vector<16x128xf32>
    %216 = vector.broadcast %23 : vector<1x128xf32> to vector<16x128xf32>
    %217 = arith.addf %215, %216 : vector<16x128xf32>
    %218 = arith.addf %217, %207 : vector<16x128xf32>
    %219 = vector.shape_cast %218 : vector<16x128xf32> to vector<2x8x128xf32>
    %cst_78 = arith.constant dense<0.000000e+00> : vector<2x8xf32>
    %220 = vector.multi_reduction <add>, %219, %cst_78 [2] : vector<2x8x128xf32> to vector<2x8xf32>
    %221 = vector.shape_cast %220 : vector<2x8xf32> to vector<2x8x1xf32>
    %cst_79 = arith.constant dense<0.000000e+00> : vector<2x1xf32>
    %222 = vector.multi_reduction <add>, %221, %cst_79 [1] : vector<2x8x1xf32> to vector<2x1xf32>
    %223 = vector.shape_cast %222 : vector<2x1xf32> to vector<2x1x1xf32>
    %cst_80 = arith.constant 9.765625E-4 : f32
    %224 = vector.broadcast %cst_80 : f32 to vector<2x1x1xf32>
    %225 = arith.mulf %223, %224 : vector<2x1x1xf32>
    %226 = vector.broadcast %225 : vector<2x1x1xf32> to vector<2x8x128xf32>
    %227 = arith.subf %219, %226 : vector<2x8x128xf32>
    %228 = arith.mulf %227, %227 : vector<2x8x128xf32>
    %cst_81 = arith.constant dense<0.000000e+00> : vector<2x8xf32>
    %229 = vector.multi_reduction <add>, %228, %cst_81 [2] : vector<2x8x128xf32> to vector<2x8xf32>
    %230 = vector.shape_cast %229 : vector<2x8xf32> to vector<2x8x1xf32>
    %cst_82 = arith.constant dense<0.000000e+00> : vector<2x1xf32>
    %231 = vector.multi_reduction <add>, %230, %cst_82 [1] : vector<2x8x1xf32> to vector<2x1xf32>
    %232 = vector.shape_cast %231 : vector<2x1xf32> to vector<2x1x1xf32>
    %cst_83 = arith.constant 9.765625E-4 : f32
    %233 = vector.broadcast %cst_83 : f32 to vector<2x1x1xf32>
    %234 = arith.mulf %232, %233 : vector<2x1x1xf32>
    %cst_84 = arith.constant 9.99999997E-7 : f32
    %235 = vector.broadcast %cst_84 : f32 to vector<2x1x1xf32>
    %236 = arith.addf %234, %235 : vector<2x1x1xf32>
    %237 = math.rsqrt %236 : vector<2x1x1xf32>
    %238 = vector.broadcast %237 : vector<2x1x1xf32> to vector<2x8x128xf32>
    %239 = arith.mulf %227, %238 : vector<2x8x128xf32>
    %240 = vector.shape_cast %13 : vector<8x128xf32> to vector<1x8x128xf32>
    %241 = vector.broadcast %240 : vector<1x8x128xf32> to vector<2x8x128xf32>
    %242 = arith.mulf %239, %241 : vector<2x8x128xf32>
    %243 = vector.shape_cast %15 : vector<8x128xf32> to vector<1x8x128xf32>
    %244 = vector.broadcast %243 : vector<1x8x128xf32> to vector<2x8x128xf32>
    %245 = arith.addf %242, %244 : vector<2x8x128xf32>
    %246 = vector.shape_cast %245 : vector<2x8x128xf32> to vector<16x128xf32>
    %c1 = arith.constant 1 : index
    %c0_85 = arith.constant 0 : index
    %c0_86 = arith.constant 0 : index
    %247 = vector.load %arg3[%c1, %c0_85, %c0_86] : memref<2x128x384xbf16, #tpu.memory_space<vmem>>, vector<1x128x384xbf16>
    %248 = vector.shape_cast %247 : vector<1x128x384xbf16> to vector<128x384xbf16>
    %c1_87 = arith.constant 1 : index
    %c0_88 = arith.constant 0 : index
    %c0_89 = arith.constant 0 : index
    %249 = vector.load %arg4[%c1_87, %c0_88, %c0_89] : memref<2x1x384xf32, #tpu.memory_space<vmem>>, vector<1x1x384xf32>
    %250 = vector.shape_cast %249 : vector<1x1x384xf32> to vector<1x384xf32>
    %c1_90 = arith.constant 1 : index
    %c0_91 = arith.constant 0 : index
    %c0_92 = arith.constant 0 : index
    %251 = vector.load %arg5[%c1_90, %c0_91, %c0_92] : memref<2x128x128xbf16, #tpu.memory_space<vmem>>, vector<1x128x128xbf16>
    %252 = vector.shape_cast %251 : vector<1x128x128xbf16> to vector<128x128xbf16>
    %c1_93 = arith.constant 1 : index
    %c0_94 = arith.constant 0 : index
    %c0_95 = arith.constant 0 : index
    %253 = vector.load %arg6[%c1_93, %c0_94, %c0_95] : memref<2x1x128xf32, #tpu.memory_space<vmem>>, vector<1x1x128xf32>
    %254 = vector.shape_cast %253 : vector<1x1x128xf32> to vector<1x128xf32>
    %c1_96 = arith.constant 1 : index
    %c0_97 = arith.constant 0 : index
    %c0_98 = arith.constant 0 : index
    %255 = vector.load %arg7[%c1_96, %c0_97, %c0_98] : memref<2x8x128xf32, #tpu.memory_space<vmem>>, vector<1x8x128xf32>
    %256 = vector.shape_cast %255 : vector<1x8x128xf32> to vector<8x128xf32>
    %c1_99 = arith.constant 1 : index
    %c0_100 = arith.constant 0 : index
    %c0_101 = arith.constant 0 : index
    %257 = vector.load %arg8[%c1_99, %c0_100, %c0_101] : memref<2x8x128xf32, #tpu.memory_space<vmem>>, vector<1x8x128xf32>
    %258 = vector.shape_cast %257 : vector<1x8x128xf32> to vector<8x128xf32>
    %c1_102 = arith.constant 1 : index
    %c0_103 = arith.constant 0 : index
    %c0_104 = arith.constant 0 : index
    %259 = vector.load %arg9[%c1_102, %c0_103, %c0_104] : memref<2x128x512xbf16, #tpu.memory_space<vmem>>, vector<1x128x512xbf16>
    %260 = vector.shape_cast %259 : vector<1x128x512xbf16> to vector<128x512xbf16>
    %c1_105 = arith.constant 1 : index
    %c0_106 = arith.constant 0 : index
    %c0_107 = arith.constant 0 : index
    %261 = vector.load %arg10[%c1_105, %c0_106, %c0_107] : memref<2x1x512xf32, #tpu.memory_space<vmem>>, vector<1x1x512xf32>
    %262 = vector.shape_cast %261 : vector<1x1x512xf32> to vector<1x512xf32>
    %c1_108 = arith.constant 1 : index
    %c0_109 = arith.constant 0 : index
    %c0_110 = arith.constant 0 : index
    %263 = vector.load %arg11[%c1_108, %c0_109, %c0_110] : memref<2x512x128xbf16, #tpu.memory_space<vmem>>, vector<1x512x128xbf16>
    %264 = vector.shape_cast %263 : vector<1x512x128xbf16> to vector<512x128xbf16>
    %c1_111 = arith.constant 1 : index
    %c0_112 = arith.constant 0 : index
    %c0_113 = arith.constant 0 : index
    %265 = vector.load %arg12[%c1_111, %c0_112, %c0_113] : memref<2x1x128xf32, #tpu.memory_space<vmem>>, vector<1x1x128xf32>
    %266 = vector.shape_cast %265 : vector<1x1x128xf32> to vector<1x128xf32>
    %267 = arith.truncf %246 : vector<16x128xf32> to vector<16x128xbf16>
    %cst_114 = arith.constant dense<0.000000e+00> : vector<16x384xf32>
    %268 = tpu.matmul %267, %248, %cst_114 {dimension_numbers = #tpu.dot_dimension_numbers<[1], [0], [0], [1], [0, 0, 1, 1], [], []>} : vector<16x128xbf16>, vector<128x384xbf16>, vector<16x384xf32> -> vector<16x384xf32>
    %269 = vector.broadcast %250 : vector<1x384xf32> to vector<16x384xf32>
    %270 = arith.addf %268, %269 : vector<16x384xf32>
    %271 = vector.extract_strided_slice %270 {offsets = [0, 0], sizes = [16, 128], strides = [1, 1]} : vector<16x384xf32> to vector<16x128xf32>
    %272 = arith.truncf %271 : vector<16x128xf32> to vector<16x128xbf16>
    %273 = vector.shape_cast %272 : vector<16x128xbf16> to vector<2x8x128xbf16>
    %274 = vector.extract_strided_slice %270 {offsets = [0, 128], sizes = [16, 128], strides = [1, 1]} : vector<16x384xf32> to vector<16x128xf32>
    %275 = arith.truncf %274 : vector<16x128xf32> to vector<16x128xbf16>
    %276 = vector.shape_cast %275 : vector<16x128xbf16> to vector<2x8x128xbf16>
    %277 = vector.extract_strided_slice %270 {offsets = [0, 256], sizes = [16, 128], strides = [1, 1]} : vector<16x384xf32> to vector<16x128xf32>
    %278 = arith.truncf %277 : vector<16x128xf32> to vector<16x128xbf16>
    %279 = vector.shape_cast %278 : vector<16x128xbf16> to vector<2x8x128xbf16>
    %280 = vector.extract_strided_slice %273 {offsets = [0, 0, 0], sizes = [2, 8, 16], strides = [1, 1, 1]} : vector<2x8x128xbf16> to vector<2x8x16xbf16>
    %281 = vector.extract_strided_slice %276 {offsets = [0, 0, 0], sizes = [2, 8, 16], strides = [1, 1, 1]} : vector<2x8x128xbf16> to vector<2x8x16xbf16>
    "tpu.trace_start"() <{level = 10 : i32, message = "bqd,bkd->bqk"}> : () -> ()
    %cst_115 = arith.constant dense<0.000000e+00> : vector<2x8x8xf32>
    %282 = tpu.matmul %280, %281, %cst_115 {dimension_numbers = #tpu.dot_dimension_numbers<[2], [2], [1], [1], [0, 0, 0, 1, 1, 1], [0], [0]>} : vector<2x8x16xbf16>, vector<2x8x16xbf16>, vector<2x8x8xf32> -> vector<2x8x8xf32>
    "tpu.trace_stop"() : () -> ()
    %283 = vector.broadcast %1 : vector<2x1x8xf32> to vector<2x8x8xf32>
    %284 = arith.addf %282, %283 : vector<2x8x8xf32>
    %cst_116 = arith.constant dense<0xFF800000> : vector<2x8xf32>
    %285 = vector.multi_reduction <maximumf>, %284, %cst_116 [2] : vector<2x8x8xf32> to vector<2x8xf32>
    %286 = vector.shape_cast %285 : vector<2x8xf32> to vector<2x8x1xf32>
    %287 = vector.broadcast %286 : vector<2x8x1xf32> to vector<2x8x8xf32>
    %288 = arith.subf %284, %287 : vector<2x8x8xf32>
    %289 = math.exp %288 : vector<2x8x8xf32>
    %cst_117 = arith.constant dense<0.000000e+00> : vector<2x8xf32>
    %290 = vector.multi_reduction <add>, %289, %cst_117 [2] : vector<2x8x8xf32> to vector<2x8xf32>
    %291 = vector.shape_cast %290 : vector<2x8xf32> to vector<2x8x1xf32>
    %292 = vector.broadcast %291 : vector<2x8x1xf32> to vector<2x8x8xf32>
    %293 = arith.divf %289, %292 : vector<2x8x8xf32>
    %294 = arith.truncf %293 : vector<2x8x8xf32> to vector<2x8x8xbf16>
    %295 = vector.extract_strided_slice %279 {offsets = [0, 0, 0], sizes = [2, 8, 16], strides = [1, 1, 1]} : vector<2x8x128xbf16> to vector<2x8x16xbf16>
    "tpu.trace_start"() <{level = 10 : i32, message = "bqk,bkd->bqd"}> : () -> ()
    %cst_118 = arith.constant dense<0.000000e+00> : vector<2x8x16xf32>
    %296 = tpu.matmul %294, %295, %cst_118 {dimension_numbers = #tpu.dot_dimension_numbers<[2], [1], [1], [2], [0, 0, 0, 1, 1, 2], [0], [0]>} : vector<2x8x8xbf16>, vector<2x8x16xbf16>, vector<2x8x16xf32> -> vector<2x8x16xf32>
    "tpu.trace_stop"() : () -> ()
    %297 = vector.extract_strided_slice %273 {offsets = [0, 0, 16], sizes = [2, 8, 16], strides = [1, 1, 1]} : vector<2x8x128xbf16> to vector<2x8x16xbf16>
    %298 = vector.extract_strided_slice %276 {offsets = [0, 0, 16], sizes = [2, 8, 16], strides = [1, 1, 1]} : vector<2x8x128xbf16> to vector<2x8x16xbf16>
    "tpu.trace_start"() <{level = 10 : i32, message = "bqd,bkd->bqk"}> : () -> ()
    %cst_119 = arith.constant dense<0.000000e+00> : vector<2x8x8xf32>
    %299 = tpu.matmul %297, %298, %cst_119 {dimension_numbers = #tpu.dot_dimension_numbers<[2], [2], [1], [1], [0, 0, 0, 1, 1, 1], [0], [0]>} : vector<2x8x16xbf16>, vector<2x8x16xbf16>, vector<2x8x8xf32> -> vector<2x8x8xf32>
    "tpu.trace_stop"() : () -> ()
    %300 = vector.broadcast %1 : vector<2x1x8xf32> to vector<2x8x8xf32>
    %301 = arith.addf %299, %300 : vector<2x8x8xf32>
    %cst_120 = arith.constant dense<0xFF800000> : vector<2x8xf32>
    %302 = vector.multi_reduction <maximumf>, %301, %cst_120 [2] : vector<2x8x8xf32> to vector<2x8xf32>
    %303 = vector.shape_cast %302 : vector<2x8xf32> to vector<2x8x1xf32>
    %304 = vector.broadcast %303 : vector<2x8x1xf32> to vector<2x8x8xf32>
    %305 = arith.subf %301, %304 : vector<2x8x8xf32>
    %306 = math.exp %305 : vector<2x8x8xf32>
    %cst_121 = arith.constant dense<0.000000e+00> : vector<2x8xf32>
    %307 = vector.multi_reduction <add>, %306, %cst_121 [2] : vector<2x8x8xf32> to vector<2x8xf32>
    %308 = vector.shape_cast %307 : vector<2x8xf32> to vector<2x8x1xf32>
    %309 = vector.broadcast %308 : vector<2x8x1xf32> to vector<2x8x8xf32>
    %310 = arith.divf %306, %309 : vector<2x8x8xf32>
    %311 = arith.truncf %310 : vector<2x8x8xf32> to vector<2x8x8xbf16>
    %312 = vector.extract_strided_slice %279 {offsets = [0, 0, 16], sizes = [2, 8, 16], strides = [1, 1, 1]} : vector<2x8x128xbf16> to vector<2x8x16xbf16>
    "tpu.trace_start"() <{level = 10 : i32, message = "bqk,bkd->bqd"}> : () -> ()
    %cst_122 = arith.constant dense<0.000000e+00> : vector<2x8x16xf32>
    %313 = tpu.matmul %311, %312, %cst_122 {dimension_numbers = #tpu.dot_dimension_numbers<[2], [1], [1], [2], [0, 0, 0, 1, 1, 2], [0], [0]>} : vector<2x8x8xbf16>, vector<2x8x16xbf16>, vector<2x8x16xf32> -> vector<2x8x16xf32>
    "tpu.trace_stop"() : () -> ()
    %314 = vector.extract_strided_slice %273 {offsets = [0, 0, 32], sizes = [2, 8, 16], strides = [1, 1, 1]} : vector<2x8x128xbf16> to vector<2x8x16xbf16>
    %315 = vector.extract_strided_slice %276 {offsets = [0, 0, 32], sizes = [2, 8, 16], strides = [1, 1, 1]} : vector<2x8x128xbf16> to vector<2x8x16xbf16>
    "tpu.trace_start"() <{level = 10 : i32, message = "bqd,bkd->bqk"}> : () -> ()
    %cst_123 = arith.constant dense<0.000000e+00> : vector<2x8x8xf32>
    %316 = tpu.matmul %314, %315, %cst_123 {dimension_numbers = #tpu.dot_dimension_numbers<[2], [2], [1], [1], [0, 0, 0, 1, 1, 1], [0], [0]>} : vector<2x8x16xbf16>, vector<2x8x16xbf16>, vector<2x8x8xf32> -> vector<2x8x8xf32>
    "tpu.trace_stop"() : () -> ()
    %317 = vector.broadcast %1 : vector<2x1x8xf32> to vector<2x8x8xf32>
    %318 = arith.addf %316, %317 : vector<2x8x8xf32>
    %cst_124 = arith.constant dense<0xFF800000> : vector<2x8xf32>
    %319 = vector.multi_reduction <maximumf>, %318, %cst_124 [2] : vector<2x8x8xf32> to vector<2x8xf32>
    %320 = vector.shape_cast %319 : vector<2x8xf32> to vector<2x8x1xf32>
    %321 = vector.broadcast %320 : vector<2x8x1xf32> to vector<2x8x8xf32>
    %322 = arith.subf %318, %321 : vector<2x8x8xf32>
    %323 = math.exp %322 : vector<2x8x8xf32>
    %cst_125 = arith.constant dense<0.000000e+00> : vector<2x8xf32>
    %324 = vector.multi_reduction <add>, %323, %cst_125 [2] : vector<2x8x8xf32> to vector<2x8xf32>
    %325 = vector.shape_cast %324 : vector<2x8xf32> to vector<2x8x1xf32>
    %326 = vector.broadcast %325 : vector<2x8x1xf32> to vector<2x8x8xf32>
    %327 = arith.divf %323, %326 : vector<2x8x8xf32>
    %328 = arith.truncf %327 : vector<2x8x8xf32> to vector<2x8x8xbf16>
    %329 = vector.extract_strided_slice %279 {offsets = [0, 0, 32], sizes = [2, 8, 16], strides = [1, 1, 1]} : vector<2x8x128xbf16> to vector<2x8x16xbf16>
    "tpu.trace_start"() <{level = 10 : i32, message = "bqk,bkd->bqd"}> : () -> ()
    %cst_126 = arith.constant dense<0.000000e+00> : vector<2x8x16xf32>
    %330 = tpu.matmul %328, %329, %cst_126 {dimension_numbers = #tpu.dot_dimension_numbers<[2], [1], [1], [2], [0, 0, 0, 1, 1, 2], [0], [0]>} : vector<2x8x8xbf16>, vector<2x8x16xbf16>, vector<2x8x16xf32> -> vector<2x8x16xf32>
    "tpu.trace_stop"() : () -> ()
    %331 = vector.extract_strided_slice %273 {offsets = [0, 0, 48], sizes = [2, 8, 16], strides = [1, 1, 1]} : vector<2x8x128xbf16> to vector<2x8x16xbf16>
    %332 = vector.extract_strided_slice %276 {offsets = [0, 0, 48], sizes = [2, 8, 16], strides = [1, 1, 1]} : vector<2x8x128xbf16> to vector<2x8x16xbf16>
    "tpu.trace_start"() <{level = 10 : i32, message = "bqd,bkd->bqk"}> : () -> ()
    %cst_127 = arith.constant dense<0.000000e+00> : vector<2x8x8xf32>
    %333 = tpu.matmul %331, %332, %cst_127 {dimension_numbers = #tpu.dot_dimension_numbers<[2], [2], [1], [1], [0, 0, 0, 1, 1, 1], [0], [0]>} : vector<2x8x16xbf16>, vector<2x8x16xbf16>, vector<2x8x8xf32> -> vector<2x8x8xf32>
    "tpu.trace_stop"() : () -> ()
    %334 = vector.broadcast %1 : vector<2x1x8xf32> to vector<2x8x8xf32>
    %335 = arith.addf %333, %334 : vector<2x8x8xf32>
    %cst_128 = arith.constant dense<0xFF800000> : vector<2x8xf32>
    %336 = vector.multi_reduction <maximumf>, %335, %cst_128 [2] : vector<2x8x8xf32> to vector<2x8xf32>
    %337 = vector.shape_cast %336 : vector<2x8xf32> to vector<2x8x1xf32>
    %338 = vector.broadcast %337 : vector<2x8x1xf32> to vector<2x8x8xf32>
    %339 = arith.subf %335, %338 : vector<2x8x8xf32>
    %340 = math.exp %339 : vector<2x8x8xf32>
    %cst_129 = arith.constant dense<0.000000e+00> : vector<2x8xf32>
    %341 = vector.multi_reduction <add>, %340, %cst_129 [2] : vector<2x8x8xf32> to vector<2x8xf32>
    %342 = vector.shape_cast %341 : vector<2x8xf32> to vector<2x8x1xf32>
    %343 = vector.broadcast %342 : vector<2x8x1xf32> to vector<2x8x8xf32>
    %344 = arith.divf %340, %343 : vector<2x8x8xf32>
    %345 = arith.truncf %344 : vector<2x8x8xf32> to vector<2x8x8xbf16>
    %346 = vector.extract_strided_slice %279 {offsets = [0, 0, 48], sizes = [2, 8, 16], strides = [1, 1, 1]} : vector<2x8x128xbf16> to vector<2x8x16xbf16>
    "tpu.trace_start"() <{level = 10 : i32, message = "bqk,bkd->bqd"}> : () -> ()
    %cst_130 = arith.constant dense<0.000000e+00> : vector<2x8x16xf32>
    %347 = tpu.matmul %345, %346, %cst_130 {dimension_numbers = #tpu.dot_dimension_numbers<[2], [1], [1], [2], [0, 0, 0, 1, 1, 2], [0], [0]>} : vector<2x8x8xbf16>, vector<2x8x16xbf16>, vector<2x8x16xf32> -> vector<2x8x16xf32>
    "tpu.trace_stop"() : () -> ()
    %348 = vector.extract_strided_slice %273 {offsets = [0, 0, 64], sizes = [2, 8, 16], strides = [1, 1, 1]} : vector<2x8x128xbf16> to vector<2x8x16xbf16>
    %349 = vector.extract_strided_slice %276 {offsets = [0, 0, 64], sizes = [2, 8, 16], strides = [1, 1, 1]} : vector<2x8x128xbf16> to vector<2x8x16xbf16>
    "tpu.trace_start"() <{level = 10 : i32, message = "bqd,bkd->bqk"}> : () -> ()
    %cst_131 = arith.constant dense<0.000000e+00> : vector<2x8x8xf32>
    %350 = tpu.matmul %348, %349, %cst_131 {dimension_numbers = #tpu.dot_dimension_numbers<[2], [2], [1], [1], [0, 0, 0, 1, 1, 1], [0], [0]>} : vector<2x8x16xbf16>, vector<2x8x16xbf16>, vector<2x8x8xf32> -> vector<2x8x8xf32>
    "tpu.trace_stop"() : () -> ()
    %351 = vector.broadcast %1 : vector<2x1x8xf32> to vector<2x8x8xf32>
    %352 = arith.addf %350, %351 : vector<2x8x8xf32>
    %cst_132 = arith.constant dense<0xFF800000> : vector<2x8xf32>
    %353 = vector.multi_reduction <maximumf>, %352, %cst_132 [2] : vector<2x8x8xf32> to vector<2x8xf32>
    %354 = vector.shape_cast %353 : vector<2x8xf32> to vector<2x8x1xf32>
    %355 = vector.broadcast %354 : vector<2x8x1xf32> to vector<2x8x8xf32>
    %356 = arith.subf %352, %355 : vector<2x8x8xf32>
    %357 = math.exp %356 : vector<2x8x8xf32>
    %cst_133 = arith.constant dense<0.000000e+00> : vector<2x8xf32>
    %358 = vector.multi_reduction <add>, %357, %cst_133 [2] : vector<2x8x8xf32> to vector<2x8xf32>
    %359 = vector.shape_cast %358 : vector<2x8xf32> to vector<2x8x1xf32>
    %360 = vector.broadcast %359 : vector<2x8x1xf32> to vector<2x8x8xf32>
    %361 = arith.divf %357, %360 : vector<2x8x8xf32>
    %362 = arith.truncf %361 : vector<2x8x8xf32> to vector<2x8x8xbf16>
    %363 = vector.extract_strided_slice %279 {offsets = [0, 0, 64], sizes = [2, 8, 16], strides = [1, 1, 1]} : vector<2x8x128xbf16> to vector<2x8x16xbf16>
    "tpu.trace_start"() <{level = 10 : i32, message = "bqk,bkd->bqd"}> : () -> ()
    %cst_134 = arith.constant dense<0.000000e+00> : vector<2x8x16xf32>
    %364 = tpu.matmul %362, %363, %cst_134 {dimension_numbers = #tpu.dot_dimension_numbers<[2], [1], [1], [2], [0, 0, 0, 1, 1, 2], [0], [0]>} : vector<2x8x8xbf16>, vector<2x8x16xbf16>, vector<2x8x16xf32> -> vector<2x8x16xf32>
    "tpu.trace_stop"() : () -> ()
    %365 = vector.extract_strided_slice %273 {offsets = [0, 0, 80], sizes = [2, 8, 16], strides = [1, 1, 1]} : vector<2x8x128xbf16> to vector<2x8x16xbf16>
    %366 = vector.extract_strided_slice %276 {offsets = [0, 0, 80], sizes = [2, 8, 16], strides = [1, 1, 1]} : vector<2x8x128xbf16> to vector<2x8x16xbf16>
    "tpu.trace_start"() <{level = 10 : i32, message = "bqd,bkd->bqk"}> : () -> ()
    %cst_135 = arith.constant dense<0.000000e+00> : vector<2x8x8xf32>
    %367 = tpu.matmul %365, %366, %cst_135 {dimension_numbers = #tpu.dot_dimension_numbers<[2], [2], [1], [1], [0, 0, 0, 1, 1, 1], [0], [0]>} : vector<2x8x16xbf16>, vector<2x8x16xbf16>, vector<2x8x8xf32> -> vector<2x8x8xf32>
    "tpu.trace_stop"() : () -> ()
    %368 = vector.broadcast %1 : vector<2x1x8xf32> to vector<2x8x8xf32>
    %369 = arith.addf %367, %368 : vector<2x8x8xf32>
    %cst_136 = arith.constant dense<0xFF800000> : vector<2x8xf32>
    %370 = vector.multi_reduction <maximumf>, %369, %cst_136 [2] : vector<2x8x8xf32> to vector<2x8xf32>
    %371 = vector.shape_cast %370 : vector<2x8xf32> to vector<2x8x1xf32>
    %372 = vector.broadcast %371 : vector<2x8x1xf32> to vector<2x8x8xf32>
    %373 = arith.subf %369, %372 : vector<2x8x8xf32>
    %374 = math.exp %373 : vector<2x8x8xf32>
    %cst_137 = arith.constant dense<0.000000e+00> : vector<2x8xf32>
    %375 = vector.multi_reduction <add>, %374, %cst_137 [2] : vector<2x8x8xf32> to vector<2x8xf32>
    %376 = vector.shape_cast %375 : vector<2x8xf32> to vector<2x8x1xf32>
    %377 = vector.broadcast %376 : vector<2x8x1xf32> to vector<2x8x8xf32>
    %378 = arith.divf %374, %377 : vector<2x8x8xf32>
    %379 = arith.truncf %378 : vector<2x8x8xf32> to vector<2x8x8xbf16>
    %380 = vector.extract_strided_slice %279 {offsets = [0, 0, 80], sizes = [2, 8, 16], strides = [1, 1, 1]} : vector<2x8x128xbf16> to vector<2x8x16xbf16>
    "tpu.trace_start"() <{level = 10 : i32, message = "bqk,bkd->bqd"}> : () -> ()
    %cst_138 = arith.constant dense<0.000000e+00> : vector<2x8x16xf32>
    %381 = tpu.matmul %379, %380, %cst_138 {dimension_numbers = #tpu.dot_dimension_numbers<[2], [1], [1], [2], [0, 0, 0, 1, 1, 2], [0], [0]>} : vector<2x8x8xbf16>, vector<2x8x16xbf16>, vector<2x8x16xf32> -> vector<2x8x16xf32>
    "tpu.trace_stop"() : () -> ()
    %382 = vector.extract_strided_slice %273 {offsets = [0, 0, 96], sizes = [2, 8, 16], strides = [1, 1, 1]} : vector<2x8x128xbf16> to vector<2x8x16xbf16>
    %383 = vector.extract_strided_slice %276 {offsets = [0, 0, 96], sizes = [2, 8, 16], strides = [1, 1, 1]} : vector<2x8x128xbf16> to vector<2x8x16xbf16>
    "tpu.trace_start"() <{level = 10 : i32, message = "bqd,bkd->bqk"}> : () -> ()
    %cst_139 = arith.constant dense<0.000000e+00> : vector<2x8x8xf32>
    %384 = tpu.matmul %382, %383, %cst_139 {dimension_numbers = #tpu.dot_dimension_numbers<[2], [2], [1], [1], [0, 0, 0, 1, 1, 1], [0], [0]>} : vector<2x8x16xbf16>, vector<2x8x16xbf16>, vector<2x8x8xf32> -> vector<2x8x8xf32>
    "tpu.trace_stop"() : () -> ()
    %385 = vector.broadcast %1 : vector<2x1x8xf32> to vector<2x8x8xf32>
    %386 = arith.addf %384, %385 : vector<2x8x8xf32>
    %cst_140 = arith.constant dense<0xFF800000> : vector<2x8xf32>
    %387 = vector.multi_reduction <maximumf>, %386, %cst_140 [2] : vector<2x8x8xf32> to vector<2x8xf32>
    %388 = vector.shape_cast %387 : vector<2x8xf32> to vector<2x8x1xf32>
    %389 = vector.broadcast %388 : vector<2x8x1xf32> to vector<2x8x8xf32>
    %390 = arith.subf %386, %389 : vector<2x8x8xf32>
    %391 = math.exp %390 : vector<2x8x8xf32>
    %cst_141 = arith.constant dense<0.000000e+00> : vector<2x8xf32>
    %392 = vector.multi_reduction <add>, %391, %cst_141 [2] : vector<2x8x8xf32> to vector<2x8xf32>
    %393 = vector.shape_cast %392 : vector<2x8xf32> to vector<2x8x1xf32>
    %394 = vector.broadcast %393 : vector<2x8x1xf32> to vector<2x8x8xf32>
    %395 = arith.divf %391, %394 : vector<2x8x8xf32>
    %396 = arith.truncf %395 : vector<2x8x8xf32> to vector<2x8x8xbf16>
    %397 = vector.extract_strided_slice %279 {offsets = [0, 0, 96], sizes = [2, 8, 16], strides = [1, 1, 1]} : vector<2x8x128xbf16> to vector<2x8x16xbf16>
    "tpu.trace_start"() <{level = 10 : i32, message = "bqk,bkd->bqd"}> : () -> ()
    %cst_142 = arith.constant dense<0.000000e+00> : vector<2x8x16xf32>
    %398 = tpu.matmul %396, %397, %cst_142 {dimension_numbers = #tpu.dot_dimension_numbers<[2], [1], [1], [2], [0, 0, 0, 1, 1, 2], [0], [0]>} : vector<2x8x8xbf16>, vector<2x8x16xbf16>, vector<2x8x16xf32> -> vector<2x8x16xf32>
    "tpu.trace_stop"() : () -> ()
    %399 = vector.extract_strided_slice %273 {offsets = [0, 0, 112], sizes = [2, 8, 16], strides = [1, 1, 1]} : vector<2x8x128xbf16> to vector<2x8x16xbf16>
    %400 = vector.extract_strided_slice %276 {offsets = [0, 0, 112], sizes = [2, 8, 16], strides = [1, 1, 1]} : vector<2x8x128xbf16> to vector<2x8x16xbf16>
    "tpu.trace_start"() <{level = 10 : i32, message = "bqd,bkd->bqk"}> : () -> ()
    %cst_143 = arith.constant dense<0.000000e+00> : vector<2x8x8xf32>
    %401 = tpu.matmul %399, %400, %cst_143 {dimension_numbers = #tpu.dot_dimension_numbers<[2], [2], [1], [1], [0, 0, 0, 1, 1, 1], [0], [0]>} : vector<2x8x16xbf16>, vector<2x8x16xbf16>, vector<2x8x8xf32> -> vector<2x8x8xf32>
    "tpu.trace_stop"() : () -> ()
    %402 = vector.broadcast %1 : vector<2x1x8xf32> to vector<2x8x8xf32>
    %403 = arith.addf %401, %402 : vector<2x8x8xf32>
    %cst_144 = arith.constant dense<0xFF800000> : vector<2x8xf32>
    %404 = vector.multi_reduction <maximumf>, %403, %cst_144 [2] : vector<2x8x8xf32> to vector<2x8xf32>
    %405 = vector.shape_cast %404 : vector<2x8xf32> to vector<2x8x1xf32>
    %406 = vector.broadcast %405 : vector<2x8x1xf32> to vector<2x8x8xf32>
    %407 = arith.subf %403, %406 : vector<2x8x8xf32>
    %408 = math.exp %407 : vector<2x8x8xf32>
    %cst_145 = arith.constant dense<0.000000e+00> : vector<2x8xf32>
    %409 = vector.multi_reduction <add>, %408, %cst_145 [2] : vector<2x8x8xf32> to vector<2x8xf32>
    %410 = vector.shape_cast %409 : vector<2x8xf32> to vector<2x8x1xf32>
    %411 = vector.broadcast %410 : vector<2x8x1xf32> to vector<2x8x8xf32>
    %412 = arith.divf %408, %411 : vector<2x8x8xf32>
    %413 = arith.truncf %412 : vector<2x8x8xf32> to vector<2x8x8xbf16>
    %414 = vector.extract_strided_slice %279 {offsets = [0, 0, 112], sizes = [2, 8, 16], strides = [1, 1, 1]} : vector<2x8x128xbf16> to vector<2x8x16xbf16>
    "tpu.trace_start"() <{level = 10 : i32, message = "bqk,bkd->bqd"}> : () -> ()
    %cst_146 = arith.constant dense<0.000000e+00> : vector<2x8x16xf32>
    %415 = tpu.matmul %413, %414, %cst_146 {dimension_numbers = #tpu.dot_dimension_numbers<[2], [1], [1], [2], [0, 0, 0, 1, 1, 2], [0], [0]>} : vector<2x8x8xbf16>, vector<2x8x16xbf16>, vector<2x8x16xf32> -> vector<2x8x16xf32>
    "tpu.trace_stop"() : () -> ()
    %416 = tpu.concatenate %296, %313, %330, %347, %364, %381, %398, %415 in 2 : vector<2x8x16xf32>, vector<2x8x16xf32>, vector<2x8x16xf32>, vector<2x8x16xf32>, vector<2x8x16xf32>, vector<2x8x16xf32>, vector<2x8x16xf32>, vector<2x8x16xf32> -> vector<2x8x128xf32>
    %417 = vector.shape_cast %416 : vector<2x8x128xf32> to vector<16x128xf32>
    %418 = arith.truncf %417 : vector<16x128xf32> to vector<16x128xbf16>
    %cst_147 = arith.constant dense<0.000000e+00> : vector<16x128xf32>
    %419 = tpu.matmul %418, %252, %cst_147 {dimension_numbers = #tpu.dot_dimension_numbers<[1], [0], [0], [1], [0, 0, 1, 1], [], []>} : vector<16x128xbf16>, vector<128x128xbf16>, vector<16x128xf32> -> vector<16x128xf32>
    %420 = vector.broadcast %254 : vector<1x128xf32> to vector<16x128xf32>
    %421 = arith.addf %419, %420 : vector<16x128xf32>
    %422 = arith.addf %246, %421 : vector<16x128xf32>
    %423 = vector.shape_cast %422 : vector<16x128xf32> to vector<2x8x128xf32>
    %cst_148 = arith.constant dense<0.000000e+00> : vector<2x8xf32>
    %424 = vector.multi_reduction <add>, %423, %cst_148 [2] : vector<2x8x128xf32> to vector<2x8xf32>
    %425 = vector.shape_cast %424 : vector<2x8xf32> to vector<2x8x1xf32>
    %cst_149 = arith.constant dense<0.000000e+00> : vector<2x1xf32>
    %426 = vector.multi_reduction <add>, %425, %cst_149 [1] : vector<2x8x1xf32> to vector<2x1xf32>
    %427 = vector.shape_cast %426 : vector<2x1xf32> to vector<2x1x1xf32>
    %cst_150 = arith.constant 9.765625E-4 : f32
    %428 = vector.broadcast %cst_150 : f32 to vector<2x1x1xf32>
    %429 = arith.mulf %427, %428 : vector<2x1x1xf32>
    %430 = vector.broadcast %429 : vector<2x1x1xf32> to vector<2x8x128xf32>
    %431 = arith.subf %423, %430 : vector<2x8x128xf32>
    %432 = arith.mulf %431, %431 : vector<2x8x128xf32>
    %cst_151 = arith.constant dense<0.000000e+00> : vector<2x8xf32>
    %433 = vector.multi_reduction <add>, %432, %cst_151 [2] : vector<2x8x128xf32> to vector<2x8xf32>
    %434 = vector.shape_cast %433 : vector<2x8xf32> to vector<2x8x1xf32>
    %cst_152 = arith.constant dense<0.000000e+00> : vector<2x1xf32>
    %435 = vector.multi_reduction <add>, %434, %cst_152 [1] : vector<2x8x1xf32> to vector<2x1xf32>
    %436 = vector.shape_cast %435 : vector<2x1xf32> to vector<2x1x1xf32>
    %cst_153 = arith.constant 9.765625E-4 : f32
    %437 = vector.broadcast %cst_153 : f32 to vector<2x1x1xf32>
    %438 = arith.mulf %436, %437 : vector<2x1x1xf32>
    %cst_154 = arith.constant 9.99999997E-7 : f32
    %439 = vector.broadcast %cst_154 : f32 to vector<2x1x1xf32>
    %440 = arith.addf %438, %439 : vector<2x1x1xf32>
    %441 = math.rsqrt %440 : vector<2x1x1xf32>
    %442 = vector.broadcast %441 : vector<2x1x1xf32> to vector<2x8x128xf32>
    %443 = arith.mulf %431, %442 : vector<2x8x128xf32>
    %444 = vector.shape_cast %256 : vector<8x128xf32> to vector<1x8x128xf32>
    %445 = vector.broadcast %444 : vector<1x8x128xf32> to vector<2x8x128xf32>
    %446 = arith.mulf %443, %445 : vector<2x8x128xf32>
    %447 = vector.shape_cast %258 : vector<8x128xf32> to vector<1x8x128xf32>
    %448 = vector.broadcast %447 : vector<1x8x128xf32> to vector<2x8x128xf32>
    %449 = arith.addf %446, %448 : vector<2x8x128xf32>
    %450 = vector.shape_cast %449 : vector<2x8x128xf32> to vector<16x128xf32>
    %451 = arith.truncf %450 : vector<16x128xf32> to vector<16x128xbf16>
    %cst_155 = arith.constant dense<0.000000e+00> : vector<16x512xf32>
    %452 = tpu.matmul %451, %260, %cst_155 {dimension_numbers = #tpu.dot_dimension_numbers<[1], [0], [0], [1], [0, 0, 1, 1], [], []>} : vector<16x128xbf16>, vector<128x512xbf16>, vector<16x512xf32> -> vector<16x512xf32>
    %453 = vector.broadcast %262 : vector<1x512xf32> to vector<16x512xf32>
    %454 = arith.addf %452, %453 : vector<16x512xf32>
    %cst_156 = arith.constant 0.000000e+00 : f32
    %455 = vector.broadcast %cst_156 : f32 to vector<16x512xf32>
    %456 = arith.maximumf %454, %455 : vector<16x512xf32>
    %457 = arith.truncf %456 : vector<16x512xf32> to vector<16x512xbf16>
    %cst_157 = arith.constant dense<0.000000e+00> : vector<16x128xf32>
    %458 = tpu.matmul %457, %264, %cst_157 {dimension_numbers = #tpu.dot_dimension_numbers<[1], [0], [0], [1], [0, 0, 1, 1], [], []>} : vector<16x512xbf16>, vector<512x128xbf16>, vector<16x128xf32> -> vector<16x128xf32>
    %459 = vector.broadcast %266 : vector<1x128xf32> to vector<16x128xf32>
    %460 = arith.addf %458, %459 : vector<16x128xf32>
    %461 = arith.addf %460, %450 : vector<16x128xf32>
    %462 = vector.shape_cast %461 : vector<16x128xf32> to vector<2x8x128xf32>
    %cst_158 = arith.constant dense<0.000000e+00> : vector<2x8xf32>
    %463 = vector.multi_reduction <add>, %462, %cst_158 [2] : vector<2x8x128xf32> to vector<2x8xf32>
    %464 = vector.shape_cast %463 : vector<2x8xf32> to vector<2x8x1xf32>
    %cst_159 = arith.constant dense<0.000000e+00> : vector<2x1xf32>
    %465 = vector.multi_reduction <add>, %464, %cst_159 [1] : vector<2x8x1xf32> to vector<2x1xf32>
    %466 = vector.shape_cast %465 : vector<2x1xf32> to vector<2x1x1xf32>
    %cst_160 = arith.constant 9.765625E-4 : f32
    %467 = vector.broadcast %cst_160 : f32 to vector<2x1x1xf32>
    %468 = arith.mulf %466, %467 : vector<2x1x1xf32>
    %469 = vector.broadcast %468 : vector<2x1x1xf32> to vector<2x8x128xf32>
    %470 = arith.subf %462, %469 : vector<2x8x128xf32>
    %471 = arith.mulf %470, %470 : vector<2x8x128xf32>
    %cst_161 = arith.constant dense<0.000000e+00> : vector<2x8xf32>
    %472 = vector.multi_reduction <add>, %471, %cst_161 [2] : vector<2x8x128xf32> to vector<2x8xf32>
    %473 = vector.shape_cast %472 : vector<2x8xf32> to vector<2x8x1xf32>
    %cst_162 = arith.constant dense<0.000000e+00> : vector<2x1xf32>
    %474 = vector.multi_reduction <add>, %473, %cst_162 [1] : vector<2x8x1xf32> to vector<2x1xf32>
    %475 = vector.shape_cast %474 : vector<2x1xf32> to vector<2x1x1xf32>
    %cst_163 = arith.constant 9.765625E-4 : f32
    %476 = vector.broadcast %cst_163 : f32 to vector<2x1x1xf32>
    %477 = arith.mulf %475, %476 : vector<2x1x1xf32>
    %cst_164 = arith.constant 9.99999997E-7 : f32
    %478 = vector.broadcast %cst_164 : f32 to vector<2x1x1xf32>
    %479 = arith.addf %477, %478 : vector<2x1x1xf32>
    %480 = math.rsqrt %479 : vector<2x1x1xf32>
    %481 = vector.broadcast %480 : vector<2x1x1xf32> to vector<2x8x128xf32>
    %482 = arith.mulf %470, %481 : vector<2x8x128xf32>
    %483 = vector.shape_cast %256 : vector<8x128xf32> to vector<1x8x128xf32>
    %484 = vector.broadcast %483 : vector<1x8x128xf32> to vector<2x8x128xf32>
    %485 = arith.mulf %482, %484 : vector<2x8x128xf32>
    %486 = vector.shape_cast %258 : vector<8x128xf32> to vector<1x8x128xf32>
    %487 = vector.broadcast %486 : vector<1x8x128xf32> to vector<2x8x128xf32>
    %488 = arith.addf %485, %487 : vector<2x8x128xf32>
    %489 = vector.shape_cast %488 : vector<2x8x128xf32> to vector<16x128xf32>
    %490 = vector.shape_cast %489 : vector<16x128xf32> to vector<2x8x128xf32>
    %c0_165 = arith.constant 0 : index
    %c0_166 = arith.constant 0 : index
    %c0_167 = arith.constant 0 : index
    %491 = vector.load %arg13[%c0_165, %c0_166, %c0_167] : memref<2x8x128xf32, #tpu.memory_space<vmem>>, vector<2x8x128xf32>
    tpu.vector_store %arg13[%c0_165, %c0_166, %c0_167], %490 {strides = array<i32>} : memref<2x8x128xf32, #tpu.memory_space<vmem>>, vector<2x8x128xf32>,
    return
  }
  func.func @transform_0(%arg0: i32) -> (i32, i32, i32) {
    %c0_i32 = arith.constant 0 : i32
    %c0_i32_0 = arith.constant 0 : i32
    %c0_i32_1 = arith.constant 0 : i32
    return %arg0, %c0_i32, %c0_i32_0 : i32, i32, i32
  }
  func.func @transform_1(%arg0: i32) -> (i32, i32, i32) {
    %c0_i32 = arith.constant 0 : i32
    %c0_i32_0 = arith.constant 0 : i32
    %c0_i32_1 = arith.constant 0 : i32
    return %arg0, %c0_i32, %c0_i32_0 : i32, i32, i32
  }
  func.func @transform_2(%arg0: i32) -> (i32, i32, i32) {
    %c0_i32 = arith.constant 0 : i32
    %c0_i32_0 = arith.constant 0 : i32
    %c0_i32_1 = arith.constant 0 : i32
    %c0_i32_2 = arith.constant 0 : i32
    return %c0_i32, %c0_i32_0, %c0_i32_1 : i32, i32, i32
  }
  func.func @transform_3(%arg0: i32) -> (i32, i32, i32) {
    %c0_i32 = arith.constant 0 : i32
    %c0_i32_0 = arith.constant 0 : i32
    %c0_i32_1 = arith.constant 0 : i32
    %c0_i32_2 = arith.constant 0 : i32
    return %c0_i32, %c0_i32_0, %c0_i32_1 : i32, i32, i32
  }
  func.func @transform_4(%arg0: i32) -> (i32, i32, i32) {
    %c0_i32 = arith.constant 0 : i32
    %c0_i32_0 = arith.constant 0 : i32
    %c0_i32_1 = arith.constant 0 : i32
    %c0_i32_2 = arith.constant 0 : i32
    return %c0_i32, %c0_i32_0, %c0_i32_1 : i32, i32, i32
  }
  func.func @transform_5(%arg0: i32) -> (i32, i32, i32) {
    %c0_i32 = arith.constant 0 : i32
    %c0_i32_0 = arith.constant 0 : i32
    %c0_i32_1 = arith.constant 0 : i32
    %c0_i32_2 = arith.constant 0 : i32
    return %c0_i32, %c0_i32_0, %c0_i32_1 : i32, i32, i32
  }
  func.func @transform_6(%arg0: i32) -> (i32, i32, i32) {
    %c0_i32 = arith.constant 0 : i32
    %c0_i32_0 = arith.constant 0 : i32
    %c0_i32_1 = arith.constant 0 : i32
    %c0_i32_2 = arith.constant 0 : i32
    return %c0_i32, %c0_i32_0, %c0_i32_1 : i32, i32, i32
  }
  func.func @transform_7(%arg0: i32) -> (i32, i32, i32) {
    %c0_i32 = arith.constant 0 : i32
    %c0_i32_0 = arith.constant 0 : i32
    %c0_i32_1 = arith.constant 0 : i32
    %c0_i32_2 = arith.constant 0 : i32
    return %c0_i32, %c0_i32_0, %c0_i32_1 : i32, i32, i32
  }
  func.func @transform_8(%arg0: i32) -> (i32, i32, i32) {
    %c0_i32 = arith.constant 0 : i32
    %c0_i32_0 = arith.constant 0 : i32
    %c0_i32_1 = arith.constant 0 : i32
    %c0_i32_2 = arith.constant 0 : i32
    return %c0_i32, %c0_i32_0, %c0_i32_1 : i32, i32, i32
  }
  func.func @transform_9(%arg0: i32) -> (i32, i32, i32) {
    %c0_i32 = arith.constant 0 : i32
    %c0_i32_0 = arith.constant 0 : i32
    %c0_i32_1 = arith.constant 0 : i32
    %c0_i32_2 = arith.constant 0 : i32
    return %c0_i32, %c0_i32_0, %c0_i32_1 : i32, i32, i32
  }
  func.func @transform_10(%arg0: i32) -> (i32, i32, i32) {
    %c0_i32 = arith.constant 0 : i32
    %c0_i32_0 = arith.constant 0 : i32
    %c0_i32_1 = arith.constant 0 : i32
    %c0_i32_2 = arith.constant 0 : i32
    return %c0_i32, %c0_i32_0, %c0_i32_1 : i32, i32, i32
  }
  func.func @transform_11(%arg0: i32) -> (i32, i32, i32) {
    %c0_i32 = arith.constant 0 : i32
    %c0_i32_0 = arith.constant 0 : i32
    %c0_i32_1 = arith.constant 0 : i32
    %c0_i32_2 = arith.constant 0 : i32
    return %c0_i32, %c0_i32_0, %c0_i32_1 : i32, i32, i32
  }
  func.func @transform_12(%arg0: i32) -> (i32, i32, i32) {
    %c0_i32 = arith.constant 0 : i32
    %c0_i32_0 = arith.constant 0 : i32
    %c0_i32_1 = arith.constant 0 : i32
    return %arg0, %c0_i32, %c0_i32_0 : i32, i32, i32
  }
}

</mosaic_0001>

<bundles_post_ra>
// kernel: tpu_custom_call.1
= control target key start
LH: loop header
LB: loop body
LE: loop exit
PB: predicated region body
PF: predicated region fallthrough
CT: control target
= control target key end

     0   :  { %17 = vsyncpa [#allocation3], 0  ;;  %s9057_s0 = inlined_call_operand.hbm [shape: f32[2,8,128], index: 0, kind: input, shape index: {}]   ;;  %s9058_s1 = inlined_call_operand.vmem [shape: f32[2,1,128], index: 1, kind: input, shape index: {}]   ;;  %s9059_s2 = inlined_call_operand.hbm [shape: bf16[2,128,384], index: 2, kind: input, shape index: {}]   ;;  %s9060_s3 = inlined_call_operand.hbm [shape: f32[2,1,384], index: 3, kind: input, shape index: {}]   ;;  %s9061_s4 = inlined_call_operand.hbm [shape: bf16[2,128,128], index: 4, kind: input, shape index: {}]   ;;  %s9062_s5 = inlined_call_operand.hbm [shape: f32[2,1,128], index: 5, kind: input, shape index: {}]   ;;  %s9063_s6 = inlined_call_operand.vmem [shape: f32[2,8,128], index: 6, kind: input, shape index: {}]   ;;  %s9064_s7 = inlined_call_operand.hbm [shape: f32[2,8,128], index: 7, kind: input, shape index: {}]   ;;  %s9065_s8 = inlined_call_operand.hbm [shape: bf16[2,128,512], index: 8, kind: input, shape index: {}]   ;;  %s9066_s9 = inlined_call_operand.vmem [shape: f32[2,1,512], index: 9, kind: input, shape index: {}]   ;;  %s9067_s10 = inlined_call_operand.hbm [shape: bf16[2,512,128], index: 10, kind: input, shape index: {}]   ;;  %s9068_s11 = inlined_call_operand.vmem [shape: f32[2,1,128], index: 11, kind: input, shape index: {}]   ;;  %s9069_s12 = inlined_call_operand.hbm [shape: f32[2,8,128], index: 12, kind: output, shape index: {}]  }
   0x1   :  { %18 = vsyncpa [#allocation6], 0 }
   0x2   :  { %19 = vsyncpa [#allocation9], 0 }
   0x3   :  { %20 = vsyncpa [#allocation12], 0 }
   0x4   :  { %21 = vsyncpa [#allocation15], 0 }
   0x5   :  { %22 = vsyncpa [#allocation4], 0  ;;  %s7864_s21 = smov [#allocation5]   ;;  %s7654_s25 = scalar_lea.hbm %s9059_s2, 6144 }
   0x6   :  { %s42_s22 = sshll.u32 %s7864_s21, 4  ;;  %p7655_p0 = scmp.ne.s32.totalorder %s9059_s2, %s7654_s25  ;;  %s43_s22 = int_to_ptr.vmem [resolvable:$true] %s42_s22 }
   0x7   :  { %p7658_p1 = scmp.lt.u32.totalorder %s7654_s25, %s9059_s2 }
   0x9   :  { %p7660_p2 = pnand %p7658_p1, %p7655_p0 }
   0xb   :  { %7663 = shalt.err (!%p7660_p2)
}
   0xc   :  { %s7664_s30 = scalar_lea.vmem %s43_s22, 6144  ;;  %p7669_p4 = scmp.lt.s32.totalorder %s43_s22, %s43_s22 }
   0xd   :  { %p7665_p3 = scmp.ne.s32.totalorder %s43_s22, %s7664_s30  ;;  %p7670_p5 = scmp.lt.s32.totalorder %s7664_s30, %s7664_s30 }
   0xf   :  { %p7671_p6 = por %p7670_p5, %p7669_p4 }
  0x11   :  { %p7672_p7 = pnand %p7671_p6, %p7665_p3 }
  0x13   :  { %7675 = shalt.err (!%p7672_p7)
}
  0x14   :  { %s7865_s13 = smov 192   ;;  %s7866_s14 = smov 12  }
  0x15   :  { %48 = dma.hbm_to_vmem [thread:$0]  %s9059_s2, 6144, %s43_s22, [#allocation6], %s7865_s13, %s7865_s13, %s7866_s14  }
  0x16   :  { %s7867_s17 = smov [#allocation8]   ;;  %s7676_s21 = scalar_lea.hbm %s9061_s4, 2048 }
  0x17   :  { %s66_s18 = sshll.u32 %s7867_s17, 4  ;;  %p7677_p8 = scmp.ne.s32.totalorder %s9061_s4, %s7676_s21  ;;  %s67_s18 = int_to_ptr.vmem [resolvable:$true] %s66_s18 }
  0x18   :  { %p7680_p9 = scmp.lt.u32.totalorder %s7676_s21, %s9061_s4 }
  0x1a   :  { %p7682_p10 = pnand %p7680_p9, %p7677_p8 }
  0x1c   :  { %7685 = shalt.err (!%p7682_p10)
}
  0x1d   :  { %s7686_s27 = scalar_lea.vmem %s67_s18, 2048  ;;  %p7691_p12 = scmp.lt.s32.totalorder %s67_s18, %s67_s18 }
  0x1e   :  { %p7687_p11 = scmp.ne.s32.totalorder %s67_s18, %s7686_s27  ;;  %p7692_p13 = scmp.lt.s32.totalorder %s7686_s27, %s7686_s27 }
  0x20   :  { %p7693_p0 = por %p7692_p13, %p7691_p12 }
  0x22   :  { %p7694_p1 = pnand %p7693_p0, %p7687_p11 }
  0x24   :  { %7697 = shalt.err (!%p7694_p1)
}
  0x25   :  { %s7868_s2 = smov 64   ;;  %s7869_s22 = smov 4  }
  0x26   :  { %72 = dma.hbm_to_vmem [thread:$0]  %s9061_s4, 2048, %s67_s18, [#allocation9], %s7868_s2, %s7868_s2, %s7869_s22  }
  0x27   :  { %s7870_s30 = smov [#allocation11]   ;;  %s7871_s14 = smov [#allocation2]  }
  0x28   :  { %s92_s13 = sshll.u32 %s7870_s30, 4  ;;  %s28_s15 = sshll.u32 %s7871_s14, 4  ;;  %s93_s13 = int_to_ptr.vmem [resolvable:$true] %s92_s13  ;;  %s7983_s15 = int_to_ptr.vmem [resolvable:$true] %s28_s15 }
  0x29   :  { %s7698_s19 = scalar_lea.hbm %s9064_s7, 256 }
  0x2a   :  { %p7699_p2 = scmp.ne.s32.totalorder %s9064_s7, %s7698_s19  ;;  %p7702_p3 = scmp.lt.u32.totalorder %s7698_s19, %s9064_s7 }
  0x2c   :  { %p7704_p4 = pnand %p7702_p3, %p7699_p2 }
  0x2e   :  { %7707 = shalt.err (!%p7704_p4)
}
  0x2f   :  { %s7708_s4 = scalar_lea.vmem %s93_s13, 256  ;;  %p7713_p6 = scmp.lt.s32.totalorder %s93_s13, %s93_s13 }
  0x30   :  { %p7709_p5 = scmp.ne.s32.totalorder %s93_s13, %s7708_s4  ;;  %p7714_p7 = scmp.lt.s32.totalorder %s7708_s4, %s7708_s4 }
  0x32   :  { %p7715_p8 = por %p7714_p7, %p7713_p6 }
  0x34   :  { %p7716_p9 = pnand %p7715_p8, %p7709_p5 }
  0x36   :  { %7719 = shalt.err (!%p7716_p9)
}
  0x37   :  { %s7872_s18 = smov 128   ;;  %s7873_s25 = smov 8  }
  0x38   :  { %98 = dma.hbm_to_vmem [thread:$0]  %s9064_s7, 256, %s93_s13, [#allocation12], %s7872_s18, %s7872_s18, %s7873_s25  }
  0x39   :  { %s7720_s30 = scalar_lea.hbm %s9057_s0, 256 }
  0x3a   :  { %p7721_p10 = scmp.ne.s32.totalorder %s9057_s0, %s7720_s30  ;;  %p7724_p11 = scmp.lt.u32.totalorder %s7720_s30, %s9057_s0 }
  0x3c   :  { %p7726_p12 = pnand %p7724_p11, %p7721_p10 }
  0x3e   :  { %7729 = shalt.err (!%p7726_p12)
}
  0x3f   :  { %s7730_s20 = scalar_lea.vmem %s7983_s15, 256  ;;  %p7735_p0 = scmp.lt.s32.totalorder %s7983_s15, %s7983_s15 }
  0x40   :  { %p7731_p13 = scmp.ne.s32.totalorder %s7983_s15, %s7730_s20  ;;  %p7736_p1 = scmp.lt.s32.totalorder %s7730_s20, %s7730_s20 }
  0x42   :  { %p7737_p2 = por %p7736_p1, %p7735_p0 }
  0x44   :  { %p7738_p3 = pnand %p7737_p2, %p7731_p13 }
  0x46   :  { %7741 = shalt.err (!%p7738_p3)
}
  0x47   :  { %34 = dma.hbm_to_vmem [thread:$0]  %s9057_s0, 256, %s7983_s15, [#allocation3], %s7872_s18, %s7872_s18, %s7873_s25  }
  0x48   :  { %s7874_s21 = smov [#allocation7]   ;;  %s7742_s26 = scalar_lea.hbm %s9060_s3, 96 }
  0x49   :  { %s54_s23 = sshll.u32 %s7874_s21, 4  ;;  %p7743_p4 = scmp.ne.s32.totalorder %s9060_s3, %s7742_s26  ;;  %s55_s23 = int_to_ptr.vmem [resolvable:$true] %s54_s23 }
  0x4a   :  { %p7746_p5 = scmp.lt.u32.totalorder %s7742_s26, %s9060_s3 }
  0x4c   :  { %p7748_p6 = pnand %p7746_p5, %p7743_p4 }
  0x4e   :  { %7751 = shalt.err (!%p7748_p6)
}
  0x4f   :  { %s7752_s14 = scalar_lea.vmem %s55_s23, 96  ;;  %p7757_p8 = scmp.lt.s32.totalorder %s55_s23, %s55_s23 }
  0x50   :  { %p7753_p7 = scmp.ne.s32.totalorder %s55_s23, %s7752_s14  ;;  %p7758_p9 = scmp.lt.s32.totalorder %s7752_s14, %s7752_s14 }
  0x52   :  { %p7759_p10 = por %p7758_p9, %p7757_p8 }
  0x54   :  { %p7760_p11 = pnand %p7759_p10, %p7753_p7 }
  0x56   :  { %7763 = shalt.err (!%p7760_p11)
}
  0x57   :  { %s7875_s0 = smov 48   ;;  %s7876_s15 = smov 3  }
  0x58   :  { %60 = dma.hbm_to_vmem [thread:$0]  %s9060_s3, 96, %s55_s23, [#allocation6], %s7875_s0, %s7875_s0, %s7876_s15  }
  0x59   :  { %s7877_s19 = smov [#allocation10]   ;;  %s7764_s21 = scalar_lea.hbm %s9062_s5, 32 }
  0x5a   :  { %s78_s20 = sshll.u32 %s7877_s19, 4  ;;  %p7765_p12 = scmp.ne.s32.totalorder %s9062_s5, %s7764_s21  ;;  %s79_s20 = int_to_ptr.vmem [resolvable:$true] %s78_s20 }
  0x5b   :  { %p7768_p13 = scmp.lt.u32.totalorder %s7764_s21, %s9062_s5 }
  0x5d   :  { %p7770_p0 = pnand %p7768_p13, %p7765_p12 }
  0x5f   :  { %7773 = shalt.err (!%p7770_p0)
}
  0x60   :  { %s7774_s28 = scalar_lea.vmem %s79_s20, 32  ;;  %p7779_p2 = scmp.lt.s32.totalorder %s79_s20, %s79_s20 }
  0x61   :  { %p7775_p1 = scmp.ne.s32.totalorder %s79_s20, %s7774_s28  ;;  %p7780_p3 = scmp.lt.s32.totalorder %s7774_s28, %s7774_s28 }
  0x63   :  { %p7781_p4 = por %p7780_p3, %p7779_p2 }
  0x65   :  { %p7782_p5 = pnand %p7781_p4, %p7775_p1 }
  0x67   :  { %7785 = shalt.err (!%p7782_p5)
}
  0x68   :  { %s7878_s3 = smov 16   ;;  %s7879_s23 = smov 1  }
  0x69   :  { %84 = dma.hbm_to_vmem [thread:$0]  %s9062_s5, 32, %s79_s20, [#allocation9], %s7878_s3, %s7878_s3, %s7879_s23  }
  0x6a   :  { %s7880_s14 = smov [#allocation13]   ;;  %s7881_s16 = smov [#allocation14]  }
  0x6b   :  { %s104_s15 = sshll.u32 %s7880_s14, 4  ;;  %s118_s17 = sshll.u32 %s7881_s16, 4  ;;  %s105_s15 = int_to_ptr.vmem [resolvable:$true] %s104_s15  ;;  %s119_s17 = int_to_ptr.vmem [resolvable:$true] %s118_s17 }
  0x6c   :  { %s7786_s13 = scalar_lea.hbm %s9065_s8, 8192 }
  0x6d   :  { %p7787_p6 = scmp.ne.s32.totalorder %s9065_s8, %s7786_s13  ;;  %p7790_p7 = scmp.lt.u32.totalorder %s7786_s13, %s9065_s8 }
  0x6f   :  { %p7792_p8 = pnand %p7790_p7, %p7787_p6 }
  0x71   :  { %7795 = shalt.err (!%p7792_p8)
}
  0x72   :  { %s7796_s5 = scalar_lea.vmem %s105_s15, 8192  ;;  %p7801_p10 = scmp.lt.s32.totalorder %s105_s15, %s105_s15 }
  0x73   :  { %p7797_p9 = scmp.ne.s32.totalorder %s105_s15, %s7796_s5  ;;  %p7802_p11 = scmp.lt.s32.totalorder %s7796_s5, %s7796_s5 }
  0x75   :  { %p7803_p12 = por %p7802_p11, %p7801_p10 }
  0x77   :  { %p7804_p13 = pnand %p7803_p12, %p7797_p9 }
  0x79   :  { %7807 = shalt.err (!%p7804_p13)
}
  0x7a   :  { %s7882_s20 = smov 256   ;;  %s7808_s30 = scalar_lea.hbm %s9067_s10, 8192 }
  0x7b   :  { %110 = dma.hbm_to_vmem [thread:$0]  %s9065_s8, 8192, %s105_s15, [#allocation12], %s7882_s20, %s7882_s20, %s7878_s3  }
  0x7c   :  { %p7809_p0 = scmp.ne.s32.totalorder %s9067_s10, %s7808_s30  ;;  %p7812_p1 = scmp.lt.u32.totalorder %s7808_s30, %s9067_s10 }
  0x7e   :  { %p7814_p2 = pnand %p7812_p1, %p7809_p0 }
  0x80   :  { %7817 = shalt.err (!%p7814_p2)
}
  0x81   :  { %s7818_s13 = scalar_lea.vmem %s119_s17, 8192  ;;  %p7823_p4 = scmp.lt.s32.totalorder %s119_s17, %s119_s17 }
  0x82   :  { %p7819_p3 = scmp.ne.s32.totalorder %s119_s17, %s7818_s13  ;;  %p7824_p5 = scmp.lt.s32.totalorder %s7818_s13, %s7818_s13 }
  0x84   :  { %p7825_p6 = por %p7824_p5, %p7823_p4 }
  0x86   :  { %p7826_p7 = pnand %p7825_p6, %p7819_p3 }
  0x88   :  { %7829 = shalt.err (!%p7826_p7)
}
  0x89   :  { %124 = dma.hbm_to_vmem [thread:$0]  %s9067_s10, 8192, %s119_s17, [#allocation15], %s7868_s2, %s7868_s2, %s7869_s22  }
  0x8a   :  { %7852 = dma.done.wait [#allocation3], 256  }
  0x8b   :  { %7853 = vsyncadd [#allocation3], 4294967040 }
  0x8c   :  { %7854 = dma.done.wait [#allocation6], 6240  }
  0x8d   :  { %7855 = vsyncadd [#allocation6], 4294961056 }
  0x8e   :  { %7856 = dma.done.wait [#allocation9], 2080  }
  0x8f   :  { %7857 = vsyncadd [#allocation9], 4294965216 }
  0x90   :  { %7858 = dma.done.wait [#allocation12], 8448  }
  0x91   :  { %7859 = vsyncadd [#allocation12], 4294958848 }
  0x92   :  { %7860 = dma.done.wait [#allocation15], 8192  }
  0x93   :  { %7861 = vsyncadd [#allocation15], 4294959104  ;;  %v7883_v0 = vmov 0   ;;  %v7884_v1 = vmov 0.0   ;;  %v7262_v2 = vld [vmem:[#allocation5 + $0x4] ss:$12 sps:$4 sm:$0xff]   ;;  %v308_v29 = vlaneseq }
  0x94   :  { %483 = vmatprep.mubr.bf16.mxu0 %v7883_v0  ;;  %6701 = vmatprep.subr.bf16.mxu1 %v7884_v1  ;;  %v7264_v3 = vld [vmem:[#allocation5] ss:$12 sps:$4 sm:$0xff]   ;;  %v7265_v4 = vld [vmem:[#allocation5 + $0x1c] ss:$12 sps:$4 sm:$0xff]   ;;  %v7267_v5 = vld [vmem:[#allocation5 + $0x18] ss:$12 sps:$4 sm:$0xff]  }
  0x95   :  { %451 = vmatprep.subr.bf16.mxu0 %v7262_v2  ;;  %v7268_v6 = vld [vmem:[#allocation5 + $0x34] ss:$12 sps:$4 sm:$0xff]   ;;  %v7270_v7 = vld [vmem:[#allocation5 + $0x30] ss:$12 sps:$4 sm:$0xff]   ;;  %v7271_v8 = vld [vmem:[#allocation5 + $0x4c] ss:$12 sps:$4 sm:$0xff]  }
  0x96   :  { %452 = vmatpush1.bf16.msra.mxu0 %v7264_v3  ;;  %v7273_v9 = vld [vmem:[#allocation5 + $0x48] ss:$12 sps:$4 sm:$0xff]   ;;  %v7274_v10 = vld [vmem:[#allocation5 + $0x64] ss:$12 sps:$4 sm:$0xff]   ;;  %v7287_v12 = vld [vmem:[#allocation5 + $0x20] ss:$12 sps:$4 sm:$0xff]  }
  0x97   :  { %453 = vmatprep.subr.bf16.mxu0 %v7265_v4  ;;  %v7286_v11 = vld [vmem:[#allocation5 + $0x8] ss:$12 sps:$4 sm:$0xff]   ;;  %v7276_v13 = vld [vmem:[#allocation5 + $0x60] ss:$12 sps:$4 sm:$0xff]   ;;  %v7288_v15 = vld [vmem:[#allocation5 + $0x38] ss:$12 sps:$4 sm:$0xff]  }
  0x98   :  { %6702 = vmatpush3.bf16.msra.mxu1 %v7286_v11  ;;  %v7277_v14 = vld [vmem:[#allocation5 + $0x7c] ss:$12 sps:$4 sm:$0xff]   ;;  %v7279_v16 = vld [vmem:[#allocation5 + $0x78] ss:$12 sps:$4 sm:$0xff]   ;;  %v7280_v17 = vld [vmem:[#allocation5 + $0x94] ss:$12 sps:$4 sm:$0xff]  }
  0x99   :  { %6703 = vmatprep.subr.bf16.mxu1 %v7884_v1  ;;  %v7289_v18 = vld [vmem:[#allocation5 + $0x50] ss:$12 sps:$4 sm:$0xff]   ;;  %v7283_v20 = vld [vmem:[#allocation5 + $0xac] ss:$12 sps:$4 sm:$0xff]   ;;  %v7290_v21 = vld [vmem:[#allocation5 + $0x68] ss:$12 sps:$4 sm:$0xff]  }
  0x9a   :  { %454 = vmatpush1.bf16.msra.mxu0 %v7267_v5  ;;  %v7282_v19 = vld [vmem:[#allocation5 + $0x90] ss:$12 sps:$4 sm:$0xff]   ;;  %v7285_v22 = vld [vmem:[#allocation5 + $0xa8] ss:$12 sps:$4 sm:$0xff]   ;;  %v7291_v25 = vld [vmem:[#allocation5 + $0x80] ss:$12 sps:$4 sm:$0xff]  }
  0x9b   :  { %455 = vmatprep.subr.bf16.mxu0 %v7268_v6  ;;  %v154_v23 = vld [vmem:[#allocation2] sm:$0xff]  ;;  %v155_v24 = vld [vmem:[#allocation2 + $0x8] sm:$0xff]  ;;  %vm7885_vm0 = vmmov 0   ;;  %v8093_v30 = vshrl.u32 %v308_v29, 7  ;;  %v188_v32 = vld [vmem:[#allocation7] sm:$0x7] }
  0x9c   :  { %6704 = vmatpush3.bf16.msra.mxu1 %v7287_v12  ;;  %v306_v26 = vpack.c.bf16 %v155_v24, %v154_v23  ;;  %v7292_v27 = vld [vmem:[#allocation5 + $0x98] ss:$12 sps:$4 sm:$0xff]   ;;  %v7293_v28 = vld [vmem:[#allocation5 + $0xb0] ss:$12 sps:$4 sm:$0xff]   ;;  %6717 = vmatprep.mubr.msk.bf16.mxu1 %vm7885_vm0, %v7884_v1  ;;  %vm565_vm1 = vcmask 130048   ;;  %vm686_vm2 = vcmask 1043456  }
  0x9d   :  { %6705 = vmatprep.subr.bf16.mxu1 %v7884_v1  ;;  %v8096_v31 = vsub.s32 1, %v8093_v30  ;;  %v8100_v34 = vsub.s32 0, %v8093_v30  ;;  %v8126_v50 = vsub.s32 2, %v8093_v30  ;;  %v8137_v60 = vld [vmem:[%s9058_s1] ss:$0 sm:$0xff]  ;;  %vm658_vm3 = vcmask 64512  }
  0x9e   :  { %456 = vmatpush1.bf16.msra.mxu0 %v7270_v7  ;;  %v8144_v5 = vld [vmem:[%s9058_s1 + $0x1] ss:$0 sm:$0xff]  ;;  %s7886_s24 = smov 112   ;;  %s7887_s4 = smov 96   ;;  %vm2374_vm4 = vcmask 261120   ;;  %vm2377_vm5 = vcmask 392192  }
  0x9f   :  { %457 = vmatprep.subr.bf16.mxu0 %v7271_v8  ;;  %v315_v33 = vrot.slane %v188_v32, %v8096_v31  ;;  %v311_v40 = vrot.slane %v188_v32, %v8100_v34  ;;  %v319_v51 = vrot.slane %v188_v32, %v8126_v50  ;;  %s7888_s26 = smov 80   ;;  %s7889_s5 = smov 32   ;;  %vm2380_vm6 = vcmask 523264  }
  0xa0   :  { %6706 = vmatpush3.bf16.msra.mxu1 %v7288_v15  ;;  %vm2383_vm7 = vcmask 654336   ;;  %vm2386_vm8 = vcmask 785408   ;;  %vm2389_vm9 = vcmask 916480  }
  0xa1   :  { %6707 = vmatprep.subr.bf16.mxu1 %v7884_v1 }
  0xa2   :  { %458 = vmatpush1.bf16.msra.mxu0 %v7273_v9 }
  0xa3   :  { %459 = vmatprep.subr.bf16.mxu0 %v7274_v10 }
  0xa4   :  { %6708 = vmatpush3.bf16.msra.mxu1 %v7289_v18 }
  0xa5   :  { %6709 = vmatprep.subr.bf16.mxu1 %v7884_v1 }
  0xa6   :  { %460 = vmatpush1.bf16.msra.mxu0 %v7276_v13 }
  0xa7   :  { %461 = vmatprep.subr.bf16.mxu0 %v7277_v14 }
  0xa8   :  { %6710 = vmatpush3.bf16.msra.mxu1 %v7290_v21 }
  0xa9   :  { %6711 = vmatprep.subr.bf16.mxu1 %v7884_v1 }
  0xaa   :  { %462 = vmatpush1.bf16.msra.mxu0 %v7279_v16 }
  0xab   :  { %463 = vmatprep.subr.bf16.mxu0 %v7280_v17 }
  0xac   :  { %6712 = vmatpush3.bf16.msra.mxu1 %v7291_v25 }
  0xad   :  { %6713 = vmatprep.subr.bf16.mxu1 %v7884_v1 }
  0xae   :  { %464 = vmatpush1.bf16.msra.mxu0 %v7282_v19 }
  0xaf   :  { %465 = vmatprep.subr.bf16.mxu0 %v7283_v20 }
  0xb0   :  { %6714 = vmatpush3.bf16.msra.mxu1 %v7292_v27 }
  0xb1   :  { %6715 = vmatprep.subr.bf16.mxu1 %v7884_v1 }
  0xb2   :  { %466 = vmatpush1.bf16.msra.mxu0 %v7285_v22 }
  0xb3   :  { %6745 = vmatprep.subr.bf16.mxu0 %v7884_v1 }
  0xb4   :  { %6716 = vmatpush3.bf16.msra.mxu1 %v7293_v28 }
  0xb5   :  { %484 = vmatmul.mubr.bf16.vlgmr.msra.gmra.mrb[0].mxu0 %v306_v26  ;;  %6721 = vmatprep.subr.bf16.mxu1 %v7884_v1 }
  0xb6   :  { %6747 = vmatprep.mubr.msk.bf16.mxu0 %vm7885_vm0, %v7884_v1 }
  0xb7   :  { %6718 = vmatmul.mubr.bf16.vlgmr.msra.gmra.mrb[0].mxu1 %v306_v26 }
  0xb8   :  { %6723 = vmatprep.mubr.msk.bf16.mxu1 %vm7885_vm0, %v7884_v1 }
 0x188   :  { %v485_v35 = vpop.f32.mrb[0].mxu0 }
 0x189   :  { %v487_v36 = vpop.f32.mrb[1].mxu0  ;;  %v486_v44 = vadd.f32 %v485_v35, %v311_v40 }
 0x18a   :  { %v488_v37 = vadd.f32 %v487_v36, %v315_v33  ;;  %v489_v38 = vpop.f32.mrb[2].mxu0  ;;  %v528_v52 = vpop.f32.mrb[0].mxu1 }
 0x18b   :  { %v491_v39 = vpop.f32.mrb[3].mxu0  ;;  %v8110_v46 = vpack.c.bf16 %v486_v44, %v486_v44  ;;  %v490_v48 = vadd.f32 %v489_v38, %v311_v40  ;;  %v529_v53 = vadd.f32 %v528_v52, %v319_v51  ;;  %v6719_v54 = vpop.f32.mrb[1].mxu1 }
 0x18c   :  { %v8103_v41 = vpack.c.bf16 %v488_v37, %v488_v37  ;;  %v492_v42 = vadd.f32 %v491_v39, %v315_v33  ;;  %v531_v55 = vpop.f32.mrb[2].mxu1 }
 0x18d   :  { %v8119_v49 = vpack.c.bf16 %v490_v48, %v490_v48  ;;  %v8129_v56 = vpack.c.bf16 %v529_v53, %v529_v53  ;;  %v532_v57 = vadd.f32 %v531_v55, %v319_v51  ;;  %v6720_v58 = vpop.f32.mrb[3].mxu1 }
 0x18e   :  { %v570_v43 = vsel %vm565_vm1, %v8103_v41, 0  ;;  %v8108_v45 = vpack.c.bf16 %v492_v42, %v492_v42 }
 0x18f   :  { %6722 = vmatpush3.bf16.xpose.msra.mxu1 %v570_v43  ;;  %v688_v59 = vsel %vm686_vm2, %v8129_v56, 0  ;;  %v8160_v26 = vpack.c.bf16 %v532_v57, %v532_v57 }
 0x190   :  { %6727 = vmatprep.subr.bf16.mxu1 %v7884_v1  ;;  %v616_v47 = vsel %vm565_vm1, %v8108_v45, 0 }
 0x191   :  { %v734_v29 = vsel %vm686_vm2, %v8160_v26, 0 }
 0x196   :  { %6724 = vmatmul.mubr.msk.bf16.vlgmr.msra.gmra.mrb[4].mxu1 %vm565_vm1, %v8110_v46 }
 0x197   :  { %6728 = vmatpush3.bf16.xpose.msra.mxu1 %v616_v47  ;;  %6729 = vmatprep.mubr.msk.bf16.mxu1 %vm7885_vm0, %v7884_v1 }
 0x198   :  { %6733 = vmatprep.subr.bf16.mxu1 %v7884_v1 }
 0x19e   :  { %6730 = vmatmul.mubr.msk.bf16.vlgmr.msra.gmra.mrb[8].mxu1 %vm565_vm1, %v8119_v49 }
 0x19f   :  { %6735 = vmatprep.mubr.msk.bf16.mxu1 %vm7885_vm0, %v7884_v1  ;;  %6734 = vmatpush3.bf16.msra.mxu1 %v688_v59 }
 0x1a0   :  { %6739 = vmatprep.subr.bf16.mxu1 %v7884_v1 }
 0x269   :  { %v606_v61 = vpop.f32.mrb[4].mxu1 }
 0x26a   :  { %v607_v62 = vadd.f32 %v8137_v60, %v606_v61  ;;  %v6725_v63 = vpop.f32.mrb[5].mxu1 }
 0x26b   :  { %v609_v2 = vpop.f32.mrb[6].mxu1 }
 0x26c   :  { %v6726_v3 = vpop.f32.mrb[7].mxu1  ;;  %v659_v4 = vsel %vm658_vm3, %v607_v62, -inf }
 0x26d   :  { %660 = vmax.xlane.f32.xlu0 %v659_v4 }
 0x271   :  { %v652_v6 = vpop.f32.mrb[8].mxu1 }
 0x272   :  { %v653_v7 = vadd.f32 %v8144_v5, %v652_v6  ;;  %v6731_v8 = vpop.f32.mrb[9].mxu1 }
 0x273   :  { %v655_v9 = vpop.f32.mrb[10].mxu1 }
 0x274   :  { %v6732_v10 = vpop.f32.mrb[11].mxu1  ;;  %v662_v11 = vsel %vm658_vm3, %v653_v7, -inf }
 0x275   :  { %663 = vmax.xlane.f32.xlu0 %v662_v11 }
 0x28b   :  { %778 = vrot.lane.b32.xlu0 %v8103_v41, %s7886_s24 }
 0x2fa   :  { %v661_v12 = vpop.xlane.xlu0 %660 }
 0x2fb   :  { %v665_v13 = vsub.f32 %v607_v62, %v661_v12 }
 0x2fd   :  { %v667_v14 = vmul.f32 1.442695, %v665_v13 }
 0x2ff   :  { %7502 = vpow2.f32 %v667_v14 }
 0x302   :  { %v664_v15 = vpop.xlane.xlu0 %663 }
 0x303   :  { %v666_v20 = vsub.f32 %v653_v7, %v664_v15 }
 0x305   :  { %v669_v21 = vmul.f32 1.442695, %v666_v20 }
 0x306   :  { %v779_v16 = vpop.permute.xlu0 %778 }
 0x307   :  { %v784_v17 = vsel %vm565_vm1, %v779_v16, 0  ;;  %7504 = vpow2.f32 %v669_v21 }
 0x308   :  { %6746 = vmatpush3.bf16.xpose.msra.mxu0 %v784_v17 }
 0x309   :  { %v7503_v18 = vpop.eup %7502  ;;  %6757 = vmatprep.subr.bf16.mxu0 %v7884_v1 }
 0x30a   :  { %v671_v19 = vsel %vm658_vm3, %v7503_v18, 0.0 }
 0x30b   :  { %672 = vadd.xlane.f32.xlu1 %v671_v19 }
 0x311   :  { %v7505_v22 = vpop.eup %7504 }
 0x312   :  { %v674_v23 = vsel %vm658_vm3, %v7505_v22, 0.0 }
 0x31c   :  { %828 = vrot.lane.b32.xlu1 %v8108_v45, %s7886_s24 }
 0x340   :  { %675 = vadd.xlane.f32.xlu1 %v674_v23 }
 0x351   :  { %776 = vrot.lane.b32.xlu1 %v8110_v46, %s7886_s24 }
 0x355   :  { %826 = vrot.lane.b32.xlu1 %v8119_v49, %s7886_s24 }
 0x398   :  { %v673_v24 = vpop.xlane.xlu1 %672 }
 0x399   :  { %7506 = vrcp.f32 %v673_v24 }
 0x39c   :  { %v829_v32 = vpop.permute.xlu1 %828 }
 0x39d   :  { %v834_v39 = vsel %vm565_vm1, %v829_v32, 0 }
 0x3a3   :  { %v7507_v25 = vpop.eup %7506 }
 0x3a4   :  { %v678_v27 = vmul.f32 %v7507_v25, %v7503_v18 }
 0x3a6   :  { %v681_v28 = vpack.c.bf16 %v678_v27, %v678_v27 }
 0x3a8   :  { %6736 = vmatmul.mubr.msk.bf16.vlgmr.msra.gmra.mrb[12].mxu1 %vm658_vm3, %v681_v28 }
 0x3a9   :  { %6740 = vmatpush3.bf16.msra.mxu1 %v734_v29  ;;  %6741 = vmatprep.mubr.msk.bf16.mxu1 %vm7885_vm0, %v7884_v1 }
 0x3aa   :  { %6751 = vmatprep.subr.bf16.mxu1 %v7884_v1 }
 0x3cd   :  { %v676_v33 = vpop.xlane.xlu1 %675 }
 0x3ce   :  { %7508 = vrcp.f32 %v676_v33 }
 0x3d1   :  { %v777_v35 = vpop.permute.xlu1 %776 }
 0x3d2   :  { %6748 = vmatmul.mubr.msk.bf16.vlgmr.msra.gmra.mrb[4].mxu0 %vm565_vm1, %v777_v35 }
 0x3d3   :  { %6759 = vmatprep.mubr.msk.bf16.mxu0 %vm7885_vm0, %v7884_v1 }
 0x3d5   :  { %v827_v40 = vpop.permute.xlu1 %826 }
 0x3d8   :  { %v7509_v36 = vpop.eup %7508 }
 0x3d9   :  { %v680_v37 = vmul.f32 %v7509_v36, %v7505_v22 }
 0x3db   :  { %v682_v38 = vpack.c.bf16 %v680_v37, %v680_v37 }
 0x3dd   :  { %6742 = vmatmul.mubr.msk.bf16.vlgmr.msra.gmra.mrb[16].mxu1 %vm658_vm3, %v682_v38 }
 0x3de   :  { %6752 = vmatpush3.bf16.xpose.msra.mxu1 %v834_v39  ;;  %6753 = vmatprep.mubr.msk.bf16.mxu1 %vm7885_vm0, %v7884_v1 }
 0x3df   :  { %6763 = vmatprep.subr.bf16.mxu1 %v7884_v1 }
 0x3e5   :  { %6754 = vmatmul.mubr.msk.bf16.vlgmr.msra.gmra.mrb[20].mxu1 %vm565_vm1, %v827_v40 }
 0x3e6   :  { %6765 = vmatprep.mubr.msk.bf16.mxu1 %vm7885_vm0, %v7884_v1 }
 0x47b   :  { %v8179_v42 = vpop.f32.mrb[12].mxu1 }
 0x47c   :  { %v6737_v43 = vpop.f32.mrb[13].mxu1 }
 0x47d   :  { %v727_v44 = vpop.f32.mrb[14].mxu1 }
 0x47e   :  { %v6738_v47 = vpop.f32.mrb[15].mxu1 }
 0x4a5   :  { %v820_v48 = vpop.f32.mrb[4].mxu0 }
 0x4a6   :  { %v821_v51 = vadd.f32 %v8137_v60, %v820_v48  ;;  %v6749_v52 = vpop.f32.mrb[5].mxu0 }
 0x4a7   :  { %v823_v53 = vpop.f32.mrb[6].mxu0 }
 0x4a8   :  { %v6750_v54 = vpop.f32.mrb[7].mxu0  ;;  %v876_v55 = vsel %vm658_vm3, %v821_v51, -inf }
 0x4a9   :  { %877 = vmax.xlane.f32.xlu0 %v876_v55 }
 0x4b0   :  { %v8183_v57 = vpop.f32.mrb[16].mxu1 }
 0x4b1   :  { %v6743_v58 = vpop.f32.mrb[17].mxu1 }
 0x4b2   :  { %v773_v59 = vpop.f32.mrb[18].mxu1 }
 0x4b3   :  { %v6744_v61 = vpop.f32.mrb[19].mxu1 }
 0x4b8   :  { %v870_v62 = vpop.f32.mrb[20].mxu1 }
 0x4b9   :  { %v871_v63 = vadd.f32 %v8144_v5, %v870_v62  ;;  %v6755_v2 = vpop.f32.mrb[21].mxu1 }
 0x4ba   :  { %v873_v3 = vpop.f32.mrb[22].mxu1 }
 0x4bb   :  { %v6756_v4 = vpop.f32.mrb[23].mxu1  ;;  %v879_v6 = vsel %vm658_vm3, %v871_v63, -inf }
 0x4bc   :  { %880 = vmax.xlane.f32.xlu1 %v879_v6 }
 0x4cd   :  { %948 = vrot.lane.b32.xlu1 %v8160_v26, %s7886_s24 }
 0x4d1   :  { %998 = vrot.lane.b32.xlu1 %v8103_v41, %s7887_s4 }
 0x4d5   :  { %1048 = vrot.lane.b32.xlu1 %v8108_v45, %s7887_s4 }
 0x4d9   :  { %1046 = vrot.lane.b32.xlu1 %v8119_v49, %s7887_s4 }
 0x536   :  { %v878_v7 = vpop.xlane.xlu0 %877 }
 0x537   :  { %v882_v8 = vsub.f32 %v821_v51, %v878_v7 }
 0x539   :  { %v884_v9 = vmul.f32 1.442695, %v882_v8 }
 0x53b   :  { %7510 = vpow2.f32 %v884_v9 }
 0x545   :  { %v7511_v10 = vpop.eup %7510 }
 0x546   :  { %v888_v11 = vsel %vm658_vm3, %v7511_v10, 0.0 }
 0x547   :  { %889 = vadd.xlane.f32.xlu0 %v888_v11 }
 0x549   :  { %v881_v12 = vpop.xlane.xlu1 %880 }
 0x54a   :  { %v883_v13 = vsub.f32 %v871_v63, %v881_v12 }
 0x54c   :  { %v886_v14 = vmul.f32 1.442695, %v883_v13 }
 0x54d   :  { %v949_v15 = vpop.permute.xlu1 %948 }
 0x54e   :  { %7512 = vpow2.f32 %v886_v14  ;;  %v954_v16 = vsel %vm686_vm2, %v949_v15, 0 }
 0x54f   :  { %6764 = vmatpush3.bf16.msra.mxu1 %v954_v16 }
 0x550   :  { %6775 = vmatprep.subr.bf16.mxu1 %v7884_v1 }
 0x551   :  { %v999_v25 = vpop.permute.xlu1 %998 }
 0x552   :  { %v1004_v33 = vsel %vm565_vm1, %v999_v25, 0 }
 0x555   :  { %v1049_v32 = vpop.permute.xlu1 %1048 }
 0x556   :  { %v1054_v36 = vsel %vm565_vm1, %v1049_v32, 0 }
 0x558   :  { %v7513_v17 = vpop.eup %7512 }
 0x559   :  { %v891_v18 = vsel %vm658_vm3, %v7513_v17, 0.0  ;;  %v1047_v38 = vpop.permute.xlu1 %1046 }
 0x55a   :  { %892 = vadd.xlane.f32.xlu0 %v891_v18 }
 0x570   :  { %900 = vrot.lane.b32.xlu0 %v8129_v56, %s7886_s24 }
 0x574   :  { %996 = vrot.lane.b32.xlu0 %v8110_v46, %s7887_s4 }
 0x5d4   :  { %v890_v19 = vpop.xlane.xlu0 %889 }
 0x5d5   :  { %7514 = vrcp.f32 %v890_v19 }
 0x5df   :  { %v7515_v20 = vpop.eup %7514 }
 0x5e0   :  { %v895_v22 = vmul.f32 %v7515_v20, %v7511_v10 }
 0x5e2   :  { %v898_v27 = vpack.c.bf16 %v895_v22, %v895_v22 }
 0x5e7   :  { %v893_v21 = vpop.xlane.xlu0 %892 }
 0x5e8   :  { %7516 = vrcp.f32 %v893_v21 }
 0x5eb   :  { %v901_v23 = vpop.permute.xlu0 %900 }
 0x5ec   :  { %v906_v24 = vsel %vm686_vm2, %v901_v23, 0 }
 0x5ed   :  { %6758 = vmatpush3.bf16.msra.mxu0 %v906_v24 }
 0x5ee   :  { %6769 = vmatprep.subr.bf16.mxu0 %v7884_v1 }
 0x5ef   :  { %v997_v37 = vpop.permute.xlu0 %996 }
 0x5f0   :  { %6760 = vmatmul.mubr.msk.bf16.vlgmr.msra.gmra.mrb[8].mxu0 %vm658_vm3, %v898_v27 }
 0x5f1   :  { %6771 = vmatprep.mubr.msk.bf16.mxu0 %vm7885_vm0, %v7884_v1 }
 0x5f2   :  { %v7517_v28 = vpop.eup %7516 }
 0x5f3   :  { %v897_v29 = vmul.f32 %v7517_v28, %v7513_v17 }
 0x5f5   :  { %v899_v35 = vpack.c.bf16 %v897_v29, %v897_v29 }
 0x5f6   :  { %6770 = vmatpush3.bf16.xpose.msra.mxu0 %v1004_v33 }
 0x5f7   :  { %6766 = vmatmul.mubr.msk.bf16.vlgmr.msra.gmra.mrb[24].mxu1 %vm658_vm3, %v899_v35  ;;  %6781 = vmatprep.subr.bf16.mxu0 %v7884_v1 }
 0x5f8   :  { %6776 = vmatpush3.bf16.xpose.msra.mxu1 %v1054_v36  ;;  %6777 = vmatprep.mubr.msk.bf16.mxu1 %vm7885_vm0, %v7884_v1 }
 0x5f9   :  { %6787 = vmatprep.subr.bf16.mxu1 %v7884_v1 }
 0x5fd   :  { %6772 = vmatmul.mubr.msk.bf16.vlgmr.msra.gmra.mrb[12].mxu0 %vm565_vm1, %v997_v37 }
 0x5fe   :  { %6783 = vmatprep.mubr.msk.bf16.mxu0 %vm7885_vm0, %v7884_v1 }
 0x5ff   :  { %6778 = vmatmul.mubr.msk.bf16.vlgmr.msra.gmra.mrb[28].mxu1 %vm565_vm1, %v1047_v38 }
 0x600   :  { %6789 = vmatprep.mubr.msk.bf16.mxu1 %vm7885_vm0, %v7884_v1 }
 0x6c3   :  { %v8221_v39 = vpop.f32.mrb[8].mxu0 }
 0x6c4   :  { %v6761_v40 = vpop.f32.mrb[9].mxu0 }
 0x6c5   :  { %v945_v43 = vpop.f32.mrb[10].mxu0 }
 0x6c6   :  { %v6762_v44 = vpop.f32.mrb[11].mxu0 }
 0x6ca   :  { %v8223_v47 = vpop.f32.mrb[24].mxu1 }
 0x6cb   :  { %v7192_v48 = vpack.i.bf16 %v8223_v47, %v8221_v39  ;;  %v6767_v51 = vpop.f32.mrb[25].mxu1 }
 0x6cc   :  { %v993_v52 = vpop.f32.mrb[26].mxu1 }
 0x6cd   :  { %v6768_v53 = vpop.f32.mrb[27].mxu1 }
 0x6d0   :  { %v1040_v54 = vpop.f32.mrb[12].mxu0 }
 0x6d1   :  { %v1041_v55 = vadd.f32 %v8137_v60, %v1040_v54  ;;  %v6773_v58 = vpop.f32.mrb[13].mxu0 }
 0x6d2   :  { %v1043_v59 = vpop.f32.mrb[14].mxu0  ;;  %v1090_v61 = vpop.f32.mrb[28].mxu1 }
 0x6d3   :  { %v1091_v62 = vadd.f32 %v8144_v5, %v1090_v61  ;;  %v6774_v63 = vpop.f32.mrb[15].mxu0  ;;  %v6779_v2 = vpop.f32.mrb[29].mxu1  ;;  %v1096_v3 = vsel %vm658_vm3, %v1041_v55, -inf }
 0x6d4   :  { %v1093_v4 = vpop.f32.mrb[30].mxu1  ;;  %1097 = vmax.xlane.f32.xlu0 %v1096_v3 }
 0x6d5   :  { %v6780_v6 = vpop.f32.mrb[31].mxu1  ;;  %v1099_v7 = vsel %vm658_vm3, %v1091_v62, -inf }
 0x6d6   :  { %1100 = vmax.xlane.f32.xlu1 %v1099_v7 }
 0x6e7   :  { %1168 = vrot.lane.b32.xlu1 %v8160_v26, %s7887_s4 }
 0x6eb   :  { %1218 = vrot.lane.b32.xlu1 %v8103_v41, %s7888_s26 }
 0x6ef   :  { %1268 = vrot.lane.b32.xlu1 %v8108_v45, %s7888_s26 }
 0x6f3   :  { %1266 = vrot.lane.b32.xlu1 %v8119_v49, %s7888_s26 }
 0x761   :  { %v1098_v8 = vpop.xlane.xlu0 %1097 }
 0x762   :  { %v1102_v9 = vsub.f32 %v1041_v55, %v1098_v8 }
 0x763   :  { %v1101_v10 = vpop.xlane.xlu1 %1100 }
 0x764   :  { %v1104_v11 = vmul.f32 1.442695, %v1102_v9  ;;  %v1103_v12 = vsub.f32 %v1091_v62, %v1101_v10 }
 0x766   :  { %7518 = vpow2.f32 %v1104_v11  ;;  %v1106_v13 = vmul.f32 1.442695, %v1103_v12 }
 0x767   :  { %v1169_v14 = vpop.permute.xlu1 %1168 }
 0x768   :  { %7520 = vpow2.f32 %v1106_v13  ;;  %v1174_v15 = vsel %vm686_vm2, %v1169_v14, 0 }
 0x769   :  { %6788 = vmatpush3.bf16.msra.mxu1 %v1174_v15 }
 0x76a   :  { %6799 = vmatprep.subr.bf16.mxu1 %v7884_v1 }
 0x76b   :  { %v1219_v25 = vpop.permute.xlu1 %1218 }
 0x76c   :  { %v1224_v35 = vsel %vm565_vm1, %v1219_v25, 0 }
 0x76f   :  { %v1269_v33 = vpop.permute.xlu1 %1268 }
 0x770   :  { %v7519_v16 = vpop.eup %7518  ;;  %v1274_v37 = vsel %vm565_vm1, %v1269_v33, 0 }
 0x771   :  { %v1108_v17 = vsel %vm658_vm3, %v7519_v16, 0.0 }
 0x772   :  { %v7521_v18 = vpop.eup %7520  ;;  %1109 = vadd.xlane.f32.xlu0 %v1108_v17 }
 0x773   :  { %v1111_v19 = vsel %vm658_vm3, %v7521_v18, 0.0  ;;  %v1267_v40 = vpop.permute.xlu1 %1266 }
 0x776   :  { %1112 = vadd.xlane.f32.xlu0 %v1111_v19 }
 0x78c   :  { %1120 = vrot.lane.b32.xlu0 %v8129_v56, %s7887_s4 }
 0x790   :  { %1216 = vrot.lane.b32.xlu0 %v8110_v46, %s7888_s26 }
 0x7ff   :  { %v1110_v20 = vpop.xlane.xlu0 %1109 }
 0x800   :  { %7522 = vrcp.f32 %v1110_v20 }
 0x803   :  { %v1113_v21 = vpop.xlane.xlu0 %1112 }
 0x804   :  { %7524 = vrcp.f32 %v1113_v21 }
 0x807   :  { %v1121_v22 = vpop.permute.xlu0 %1120 }
 0x808   :  { %v1126_v23 = vsel %vm686_vm2, %v1121_v22, 0 }
 0x809   :  { %6782 = vmatpush3.bf16.msra.mxu0 %v1126_v23 }
 0x80a   :  { %v7523_v24 = vpop.eup %7522  ;;  %6793 = vmatprep.subr.bf16.mxu0 %v7884_v1 }
 0x80b   :  { %v1115_v27 = vmul.f32 %v7523_v24, %v7519_v16  ;;  %v1217_v38 = vpop.permute.xlu0 %1216 }
 0x80d   :  { %v1118_v28 = vpack.c.bf16 %v1115_v27, %v1115_v27 }
 0x80e   :  { %v7525_v29 = vpop.eup %7524 }
 0x80f   :  { %6784 = vmatmul.mubr.msk.bf16.vlgmr.msra.gmra.mrb[16].mxu0 %vm658_vm3, %v1118_v28  ;;  %v1117_v32 = vmul.f32 %v7525_v29, %v7521_v18 }
 0x810   :  { %6795 = vmatprep.mubr.msk.bf16.mxu0 %vm7885_vm0, %v7884_v1 }
 0x811   :  { %v1119_v36 = vpack.c.bf16 %v1117_v32, %v1117_v32 }
 0x812   :  { %6794 = vmatpush3.bf16.xpose.msra.mxu0 %v1224_v35 }
 0x813   :  { %6790 = vmatmul.mubr.msk.bf16.vlgmr.msra.gmra.mrb[32].mxu1 %vm658_vm3, %v1119_v36  ;;  %6805 = vmatprep.subr.bf16.mxu0 %v7884_v1 }
 0x814   :  { %6800 = vmatpush3.bf16.xpose.msra.mxu1 %v1274_v37  ;;  %6801 = vmatprep.mubr.msk.bf16.mxu1 %vm7885_vm0, %v7884_v1 }
 0x815   :  { %6811 = vmatprep.subr.bf16.mxu1 %v7884_v1 }
 0x819   :  { %6796 = vmatmul.mubr.msk.bf16.vlgmr.msra.gmra.mrb[20].mxu0 %vm565_vm1, %v1217_v38 }
 0x81a   :  { %6807 = vmatprep.mubr.msk.bf16.mxu0 %vm7885_vm0, %v7884_v1 }
 0x81b   :  { %6802 = vmatmul.mubr.msk.bf16.vlgmr.msra.gmra.mrb[36].mxu1 %vm565_vm1, %v1267_v40 }
 0x81c   :  { %6813 = vmatprep.mubr.msk.bf16.mxu1 %vm7885_vm0, %v7884_v1 }
 0x8e2   :  { %v8265_v43 = vpop.f32.mrb[16].mxu0 }
 0x8e3   :  { %v6785_v44 = vpop.f32.mrb[17].mxu0 }
 0x8e4   :  { %v1165_v51 = vpop.f32.mrb[18].mxu0 }
 0x8e5   :  { %v6786_v52 = vpop.f32.mrb[19].mxu0 }
 0x8e6   :  { %v8267_v53 = vpop.f32.mrb[32].mxu1 }
 0x8e7   :  { %v7197_v54 = vpack.i.bf16 %v8267_v53, %v8265_v43  ;;  %v6791_v55 = vpop.f32.mrb[33].mxu1 }
 0x8e8   :  { %v1213_v58 = vpop.f32.mrb[34].mxu1 }
 0x8e9   :  { %v6792_v59 = vpop.f32.mrb[35].mxu1 }
 0x8ec   :  { %v1260_v61 = vpop.f32.mrb[20].mxu0 }
 0x8ed   :  { %v1261_v62 = vadd.f32 %v8137_v60, %v1260_v61  ;;  %v6797_v63 = vpop.f32.mrb[21].mxu0 }
 0x8ee   :  { %v1263_v2 = vpop.f32.mrb[22].mxu0  ;;  %v1310_v3 = vpop.f32.mrb[36].mxu1 }
 0x8ef   :  { %v1311_v4 = vadd.f32 %v8144_v5, %v1310_v3  ;;  %v6798_v6 = vpop.f32.mrb[23].mxu0  ;;  %v6803_v7 = vpop.f32.mrb[37].mxu1  ;;  %v1316_v8 = vsel %vm658_vm3, %v1261_v62, -inf }
 0x8f0   :  { %v1313_v9 = vpop.f32.mrb[38].mxu1  ;;  %1317 = vmax.xlane.f32.xlu0 %v1316_v8 }
 0x8f1   :  { %v6804_v10 = vpop.f32.mrb[39].mxu1  ;;  %v1319_v11 = vsel %vm658_vm3, %v1311_v4, -inf }
 0x8f2   :  { %1320 = vmax.xlane.f32.xlu1 %v1319_v11 }
 0x903   :  { %1388 = vrot.lane.b32.xlu1 %v8160_v26, %s7888_s26 }
 0x907   :  { %1438 = vrot.lane.b32.xlu1 %v8103_v41, %s7868_s2 }
 0x90b   :  { %1488 = vrot.lane.b32.xlu1 %v8108_v45, %s7868_s2 }
 0x90f   :  { %1486 = vrot.lane.b32.xlu1 %v8119_v49, %s7868_s2 }
 0x97d   :  { %v1318_v12 = vpop.xlane.xlu0 %1317 }
 0x97e   :  { %v1322_v13 = vsub.f32 %v1261_v62, %v1318_v12 }
 0x97f   :  { %v1321_v14 = vpop.xlane.xlu1 %1320 }
 0x980   :  { %v1324_v15 = vmul.f32 1.442695, %v1322_v13  ;;  %v1323_v16 = vsub.f32 %v1311_v4, %v1321_v14 }
 0x982   :  { %7526 = vpow2.f32 %v1324_v15  ;;  %v1326_v17 = vmul.f32 1.442695, %v1323_v16 }
 0x983   :  { %v1389_v18 = vpop.permute.xlu1 %1388 }
 0x984   :  { %7528 = vpow2.f32 %v1326_v17  ;;  %v1394_v19 = vsel %vm686_vm2, %v1389_v18, 0 }
 0x985   :  { %6812 = vmatpush3.bf16.msra.mxu1 %v1394_v19 }
 0x986   :  { %6823 = vmatprep.subr.bf16.mxu1 %v7884_v1 }
 0x987   :  { %v1439_v32 = vpop.permute.xlu1 %1438 }
 0x988   :  { %v1444_v40 = vsel %vm565_vm1, %v1439_v32, 0 }
 0x98b   :  { %v1489_v38 = vpop.permute.xlu1 %1488 }
 0x98c   :  { %v7527_v20 = vpop.eup %7526  ;;  %v1494_v51 = vsel %vm565_vm1, %v1489_v38, 0 }
 0x98d   :  { %v1328_v21 = vsel %vm658_vm3, %v7527_v20, 0.0 }
 0x98e   :  { %v7529_v22 = vpop.eup %7528  ;;  %1329 = vadd.xlane.f32.xlu0 %v1328_v21 }
 0x98f   :  { %v1331_v23 = vsel %vm658_vm3, %v7529_v22, 0.0  ;;  %v1487_v55 = vpop.permute.xlu1 %1486 }
 0x992   :  { %1332 = vadd.xlane.f32.xlu0 %v1331_v23 }
 0x9a8   :  { %1340 = vrot.lane.b32.xlu0 %v8129_v56, %s7888_s26 }
 0x9ac   :  { %1436 = vrot.lane.b32.xlu0 %v8110_v46, %s7868_s2 }
 0xa1b   :  { %v1330_v24 = vpop.xlane.xlu0 %1329 }
 0xa1c   :  { %7530 = vrcp.f32 %v1330_v24 }
 0xa1f   :  { %v1333_v25 = vpop.xlane.xlu0 %1332 }
 0xa20   :  { %7532 = vrcp.f32 %v1333_v25 }
 0xa23   :  { %v1341_v27 = vpop.permute.xlu0 %1340 }
 0xa24   :  { %v1346_v28 = vsel %vm686_vm2, %v1341_v27, 0 }
 0xa25   :  { %6806 = vmatpush3.bf16.msra.mxu0 %v1346_v28 }
 0xa26   :  { %v7531_v29 = vpop.eup %7530  ;;  %6817 = vmatprep.subr.bf16.mxu0 %v7884_v1 }
 0xa27   :  { %v1335_v33 = vmul.f32 %v7531_v29, %v7527_v20  ;;  %v1437_v52 = vpop.permute.xlu0 %1436 }
 0xa29   :  { %v1338_v35 = vpack.c.bf16 %v1335_v33, %v1335_v33 }
 0xa2a   :  { %v7533_v36 = vpop.eup %7532 }
 0xa2b   :  { %6808 = vmatmul.mubr.msk.bf16.vlgmr.msra.gmra.mrb[24].mxu0 %vm658_vm3, %v1338_v35  ;;  %v1337_v37 = vmul.f32 %v7533_v36, %v7529_v22 }
 0xa2c   :  { %6819 = vmatprep.mubr.msk.bf16.mxu0 %vm7885_vm0, %v7884_v1 }
 0xa2d   :  { %v1339_v44 = vpack.c.bf16 %v1337_v37, %v1337_v37 }
 0xa2e   :  { %6818 = vmatpush3.bf16.xpose.msra.mxu0 %v1444_v40 }
 0xa2f   :  { %6814 = vmatmul.mubr.msk.bf16.vlgmr.msra.gmra.mrb[40].mxu1 %vm658_vm3, %v1339_v44  ;;  %6829 = vmatprep.subr.bf16.mxu0 %v7884_v1 }
 0xa30   :  { %6824 = vmatpush3.bf16.xpose.msra.mxu1 %v1494_v51  ;;  %6825 = vmatprep.mubr.msk.bf16.mxu1 %vm7885_vm0, %v7884_v1 }
 0xa31   :  { %6835 = vmatprep.subr.bf16.mxu1 %v7884_v1 }
 0xa35   :  { %6820 = vmatmul.mubr.msk.bf16.vlgmr.msra.gmra.mrb[28].mxu0 %vm565_vm1, %v1437_v52 }
 0xa36   :  { %6831 = vmatprep.mubr.msk.bf16.mxu0 %vm7885_vm0, %v7884_v1 }
 0xa37   :  { %6826 = vmatmul.mubr.msk.bf16.vlgmr.msra.gmra.mrb[44].mxu1 %vm565_vm1, %v1487_v55 }
 0xa38   :  { %6837 = vmatprep.mubr.msk.bf16.mxu1 %vm7885_vm0, %v7884_v1 }
 0xafe   :  { %v8309_v58 = vpop.f32.mrb[24].mxu0 }
 0xaff   :  { %v6809_v59 = vpop.f32.mrb[25].mxu0 }
 0xb00   :  { %v1385_v61 = vpop.f32.mrb[26].mxu0 }
 0xb01   :  { %v6810_v62 = vpop.f32.mrb[27].mxu0 }
 0xb02   :  { %v8311_v63 = vpop.f32.mrb[40].mxu1 }
 0xb03   :  { %v7202_v2 = vpack.i.bf16 %v8311_v63, %v8309_v58  ;;  %v6815_v3 = vpop.f32.mrb[41].mxu1 }
 0xb04   :  { %v1433_v4 = vpop.f32.mrb[42].mxu1 }
 0xb05   :  { %v6816_v6 = vpop.f32.mrb[43].mxu1 }
 0xb08   :  { %v1480_v7 = vpop.f32.mrb[28].mxu0 }
 0xb09   :  { %v1481_v8 = vadd.f32 %v8137_v60, %v1480_v7  ;;  %v6821_v9 = vpop.f32.mrb[29].mxu0 }
 0xb0a   :  { %v1483_v10 = vpop.f32.mrb[30].mxu0  ;;  %v1530_v11 = vpop.f32.mrb[44].mxu1 }
 0xb0b   :  { %v1531_v12 = vadd.f32 %v8144_v5, %v1530_v11  ;;  %v6822_v13 = vpop.f32.mrb[31].mxu0  ;;  %v6827_v14 = vpop.f32.mrb[45].mxu1  ;;  %v1536_v15 = vsel %vm658_vm3, %v1481_v8, -inf }
 0xb0c   :  { %v1533_v16 = vpop.f32.mrb[46].mxu1  ;;  %1537 = vmax.xlane.f32.xlu0 %v1536_v15 }
 0xb0d   :  { %v6828_v17 = vpop.f32.mrb[47].mxu1  ;;  %v1539_v18 = vsel %vm658_vm3, %v1531_v12, -inf }
 0xb0e   :  { %1540 = vmax.xlane.f32.xlu1 %v1539_v18 }
 0xb1f   :  { %1608 = vrot.lane.b32.xlu1 %v8160_v26, %s7868_s2 }
 0xb23   :  { %1658 = vrot.lane.b32.xlu1 %v8103_v41, %s7875_s0 }
 0xb27   :  { %1708 = vrot.lane.b32.xlu1 %v8108_v45, %s7875_s0 }
 0xb2b   :  { %1706 = vrot.lane.b32.xlu1 %v8119_v49, %s7875_s0 }
 0xb99   :  { %v1538_v19 = vpop.xlane.xlu0 %1537 }
 0xb9a   :  { %v1542_v20 = vsub.f32 %v1481_v8, %v1538_v19 }
 0xb9b   :  { %v1541_v21 = vpop.xlane.xlu1 %1540 }
 0xb9c   :  { %v1544_v22 = vmul.f32 1.442695, %v1542_v20  ;;  %v1543_v23 = vsub.f32 %v1531_v12, %v1541_v21 }
 0xb9e   :  { %7534 = vpow2.f32 %v1544_v22  ;;  %v1546_v24 = vmul.f32 1.442695, %v1543_v23 }
 0xb9f   :  { %v1609_v25 = vpop.permute.xlu1 %1608 }
 0xba0   :  { %7536 = vpow2.f32 %v1546_v24  ;;  %v1614_v27 = vsel %vm686_vm2, %v1609_v25, 0 }
 0xba1   :  { %6836 = vmatpush3.bf16.msra.mxu1 %v1614_v27 }
 0xba2   :  { %6847 = vmatprep.subr.bf16.mxu1 %v7884_v1 }
 0xba3   :  { %v1659_v44 = vpop.permute.xlu1 %1658 }
 0xba4   :  { %v1664_v62 = vsel %vm565_vm1, %v1659_v44, 0 }
 0xba7   :  { %v1709_v61 = vpop.permute.xlu1 %1708 }
 0xba8   :  { %v7535_v28 = vpop.eup %7534  ;;  %v1714_v4 = vsel %vm565_vm1, %v1709_v61, 0 }
 0xba9   :  { %v1548_v29 = vsel %vm658_vm3, %v7535_v28, 0.0 }
 0xbaa   :  { %v7537_v32 = vpop.eup %7536  ;;  %1549 = vadd.xlane.f32.xlu0 %v1548_v29 }
 0xbab   :  { %v1551_v33 = vsel %vm658_vm3, %v7537_v32, 0.0  ;;  %v1707_v7 = vpop.permute.xlu1 %1706 }
 0xbae   :  { %1552 = vadd.xlane.f32.xlu0 %v1551_v33 }
 0xbc4   :  { %1560 = vrot.lane.b32.xlu0 %v8129_v56, %s7868_s2 }
 0xbc8   :  { %1656 = vrot.lane.b32.xlu0 %v8110_v46, %s7875_s0 }
 0xc37   :  { %v1550_v35 = vpop.xlane.xlu0 %1549 }
 0xc38   :  { %7538 = vrcp.f32 %v1550_v35 }
 0xc3b   :  { %v1553_v36 = vpop.xlane.xlu0 %1552 }
 0xc3c   :  { %7540 = vrcp.f32 %v1553_v36 }
 0xc3f   :  { %v1561_v37 = vpop.permute.xlu0 %1560 }
 0xc40   :  { %v1566_v38 = vsel %vm686_vm2, %v1561_v37, 0 }
 0xc41   :  { %6830 = vmatpush3.bf16.msra.mxu0 %v1566_v38 }
 0xc42   :  { %v7539_v40 = vpop.eup %7538  ;;  %6841 = vmatprep.subr.bf16.mxu0 %v7884_v1 }
 0xc43   :  { %v1555_v51 = vmul.f32 %v7539_v40, %v7535_v28  ;;  %v1657_v6 = vpop.permute.xlu0 %1656 }
 0xc45   :  { %v1558_v52 = vpack.c.bf16 %v1555_v51, %v1555_v51 }
 0xc46   :  { %v7541_v55 = vpop.eup %7540 }
 0xc47   :  { %6832 = vmatmul.mubr.msk.bf16.vlgmr.msra.gmra.mrb[32].mxu0 %vm658_vm3, %v1558_v52  ;;  %v1557_v59 = vmul.f32 %v7541_v55, %v7537_v32 }
 0xc48   :  { %6843 = vmatprep.mubr.msk.bf16.mxu0 %vm7885_vm0, %v7884_v1 }
 0xc49   :  { %v1559_v3 = vpack.c.bf16 %v1557_v59, %v1557_v59 }
 0xc4a   :  { %6842 = vmatpush3.bf16.xpose.msra.mxu0 %v1664_v62 }
 0xc4b   :  { %6838 = vmatmul.mubr.msk.bf16.vlgmr.msra.gmra.mrb[48].mxu1 %vm658_vm3, %v1559_v3  ;;  %6853 = vmatprep.subr.bf16.mxu0 %v7884_v1 }
 0xc4c   :  { %6848 = vmatpush3.bf16.xpose.msra.mxu1 %v1714_v4  ;;  %6849 = vmatprep.mubr.msk.bf16.mxu1 %vm7885_vm0, %v7884_v1 }
 0xc4d   :  { %6859 = vmatprep.subr.bf16.mxu1 %v7884_v1 }
 0xc51   :  { %6844 = vmatmul.mubr.msk.bf16.vlgmr.msra.gmra.mrb[36].mxu0 %vm565_vm1, %v1657_v6 }
 0xc52   :  { %6855 = vmatprep.mubr.msk.bf16.mxu0 %vm7885_vm0, %v7884_v1 }
 0xc53   :  { %6850 = vmatmul.mubr.msk.bf16.vlgmr.msra.gmra.mrb[52].mxu1 %vm565_vm1, %v1707_v7 }
 0xc54   :  { %6861 = vmatprep.mubr.msk.bf16.mxu1 %vm7885_vm0, %v7884_v1 }
 0xd1a   :  { %v8353_v8 = vpop.f32.mrb[32].mxu0 }
 0xd1b   :  { %v6833_v9 = vpop.f32.mrb[33].mxu0 }
 0xd1c   :  { %v1605_v10 = vpop.f32.mrb[34].mxu0 }
 0xd1d   :  { %v6834_v11 = vpop.f32.mrb[35].mxu0 }
 0xd1e   :  { %v8355_v12 = vpop.f32.mrb[48].mxu1 }
 0xd1f   :  { %v7207_v13 = vpack.i.bf16 %v8355_v12, %v8353_v8  ;;  %v6839_v14 = vpop.f32.mrb[49].mxu1 }
 0xd20   :  { %v1653_v15 = vpop.f32.mrb[50].mxu1 }
 0xd21   :  { %v6840_v16 = vpop.f32.mrb[51].mxu1 }
 0xd24   :  { %v1700_v17 = vpop.f32.mrb[36].mxu0 }
 0xd25   :  { %v1701_v18 = vadd.f32 %v8137_v60, %v1700_v17  ;;  %v6845_v19 = vpop.f32.mrb[37].mxu0 }
 0xd26   :  { %v1703_v20 = vpop.f32.mrb[38].mxu0  ;;  %v1750_v21 = vpop.f32.mrb[52].mxu1 }
 0xd27   :  { %v1751_v22 = vadd.f32 %v8144_v5, %v1750_v21  ;;  %v6846_v23 = vpop.f32.mrb[39].mxu0  ;;  %v6851_v24 = vpop.f32.mrb[53].mxu1  ;;  %v1756_v25 = vsel %vm658_vm3, %v1701_v18, -inf }
 0xd28   :  { %v1753_v27 = vpop.f32.mrb[54].mxu1  ;;  %1757 = vmax.xlane.f32.xlu0 %v1756_v25 }
 0xd29   :  { %v6852_v28 = vpop.f32.mrb[55].mxu1  ;;  %v1759_v29 = vsel %vm658_vm3, %v1751_v22, -inf }
 0xd2a   :  { %1760 = vmax.xlane.f32.xlu1 %v1759_v29 }
 0xd3b   :  { %1828 = vrot.lane.b32.xlu1 %v8160_v26, %s7875_s0 }
 0xd3f   :  { %1878 = vrot.lane.b32.xlu1 %v8103_v41, %s7889_s5 }
 0xd43   :  { %1928 = vrot.lane.b32.xlu1 %v8108_v45, %s7889_s5 }
 0xd47   :  { %1926 = vrot.lane.b32.xlu1 %v8119_v49, %s7889_s5 }
 0xdb5   :  { %v1758_v32 = vpop.xlane.xlu0 %1757 }
 0xdb6   :  { %v1762_v33 = vsub.f32 %v1701_v18, %v1758_v32 }
 0xdb7   :  { %v1761_v35 = vpop.xlane.xlu1 %1760 }
 0xdb8   :  { %v1764_v36 = vmul.f32 1.442695, %v1762_v33  ;;  %v1763_v37 = vsub.f32 %v1751_v22, %v1761_v35 }
 0xdba   :  { %7542 = vpow2.f32 %v1764_v36  ;;  %v1766_v38 = vmul.f32 1.442695, %v1763_v37 }
 0xdbb   :  { %v1829_v40 = vpop.permute.xlu1 %1828 }
 0xdbc   :  { %7544 = vpow2.f32 %v1766_v38  ;;  %v1834_v44 = vsel %vm686_vm2, %v1829_v40, 0 }
 0xdbd   :  { %6860 = vmatpush3.bf16.msra.mxu1 %v1834_v44 }
 0xdbe   :  { %6871 = vmatprep.subr.bf16.mxu1 %v7884_v1 }
 0xdbf   :  { %v1879_v7 = vpop.permute.xlu1 %1878 }
 0xdc0   :  { %v1884_v16 = vsel %vm565_vm1, %v1879_v7, 0 }
 0xdc3   :  { %v1929_v15 = vpop.permute.xlu1 %1928 }
 0xdc4   :  { %v7543_v51 = vpop.eup %7542  ;;  %v1934_v18 = vsel %vm565_vm1, %v1929_v15, 0 }
 0xdc5   :  { %v1768_v52 = vsel %vm658_vm3, %v7543_v51, 0.0 }
 0xdc6   :  { %v7545_v55 = vpop.eup %7544  ;;  %1769 = vadd.xlane.f32.xlu0 %v1768_v52 }
 0xdc7   :  { %v1771_v59 = vsel %vm658_vm3, %v7545_v55, 0.0  ;;  %v1927_v20 = vpop.permute.xlu1 %1926 }
 0xdca   :  { %1772 = vadd.xlane.f32.xlu0 %v1771_v59 }
 0xde0   :  { %1780 = vrot.lane.b32.xlu0 %v8129_v56, %s7875_s0 }
 0xde4   :  { %1876 = vrot.lane.b32.xlu0 %v8110_v46, %s7889_s5 }
 0xe53   :  { %v1770_v61 = vpop.xlane.xlu0 %1769 }
 0xe54   :  { %7546 = vrcp.f32 %v1770_v61 }
 0xe57   :  { %v1773_v62 = vpop.xlane.xlu0 %1772 }
 0xe58   :  { %7548 = vrcp.f32 %v1773_v62 }
 0xe5b   :  { %v1781_v3 = vpop.permute.xlu0 %1780 }
 0xe5c   :  { %v1786_v4 = vsel %vm686_vm2, %v1781_v3, 0 }
 0xe5d   :  { %6854 = vmatpush3.bf16.msra.mxu0 %v1786_v4 }
 0xe5e   :  { %v7547_v6 = vpop.eup %7546  ;;  %6865 = vmatprep.subr.bf16.mxu0 %v7884_v1 }
 0xe5f   :  { %v1775_v9 = vmul.f32 %v7547_v6, %v7543_v51  ;;  %v1877_v19 = vpop.permute.xlu0 %1876 }
 0xe61   :  { %v1778_v10 = vpack.c.bf16 %v1775_v9, %v1775_v9 }
 0xe62   :  { %v7549_v11 = vpop.eup %7548 }
 0xe63   :  { %6856 = vmatmul.mubr.msk.bf16.vlgmr.msra.gmra.mrb[40].mxu0 %vm658_vm3, %v1778_v10  ;;  %v1777_v14 = vmul.f32 %v7549_v11, %v7545_v55 }
 0xe64   :  { %6867 = vmatprep.mubr.msk.bf16.mxu0 %vm7885_vm0, %v7884_v1 }
 0xe65   :  { %v1779_v17 = vpack.c.bf16 %v1777_v14, %v1777_v14 }
 0xe66   :  { %6866 = vmatpush3.bf16.xpose.msra.mxu0 %v1884_v16 }
 0xe67   :  { %6862 = vmatmul.mubr.msk.bf16.vlgmr.msra.gmra.mrb[56].mxu1 %vm658_vm3, %v1779_v17  ;;  %6877 = vmatprep.subr.bf16.mxu0 %v7884_v1 }
 0xe68   :  { %6872 = vmatpush3.bf16.xpose.msra.mxu1 %v1934_v18  ;;  %6873 = vmatprep.mubr.msk.bf16.mxu1 %vm7885_vm0, %v7884_v1 }
 0xe69   :  { %6883 = vmatprep.subr.bf16.mxu1 %v7884_v1 }
 0xe6d   :  { %6868 = vmatmul.mubr.msk.bf16.vlgmr.msra.gmra.mrb[44].mxu0 %vm565_vm1, %v1877_v19 }
 0xe6e   :  { %6879 = vmatprep.mubr.msk.bf16.mxu0 %vm7885_vm0, %v7884_v1 }
 0xe6f   :  { %6874 = vmatmul.mubr.msk.bf16.vlgmr.msra.gmra.mrb[60].mxu1 %vm565_vm1, %v1927_v20 }
 0xe70   :  { %6885 = vmatprep.mubr.msk.bf16.mxu1 %vm7885_vm0, %v7884_v1 }
 0xf36   :  { %v8397_v21 = vpop.f32.mrb[40].mxu0 }
 0xf37   :  { %v6857_v22 = vpop.f32.mrb[41].mxu0 }
 0xf38   :  { %v1825_v23 = vpop.f32.mrb[42].mxu0 }
 0xf39   :  { %v6858_v24 = vpop.f32.mrb[43].mxu0 }
 0xf3a   :  { %v8399_v25 = vpop.f32.mrb[56].mxu1 }
 0xf3b   :  { %v7212_v27 = vpack.i.bf16 %v8399_v25, %v8397_v21  ;;  %v6863_v28 = vpop.f32.mrb[57].mxu1  ;;  %v7294_v21 = vld [vmem:[#allocation8] sm:$0xff]   ;;  %v7295_v25 = vld [vmem:[#allocation8 + $0x8] sm:$0xff]  }
 0xf3c   :  { %v1873_v29 = vpop.f32.mrb[58].mxu1 }
 0xf3d   :  { %v6864_v32 = vpop.f32.mrb[59].mxu1 }
 0xf40   :  { %v1920_v33 = vpop.f32.mrb[44].mxu0 }
 0xf41   :  { %v1921_v35 = vadd.f32 %v8137_v60, %v1920_v33  ;;  %v6869_v36 = vpop.f32.mrb[45].mxu0 }
 0xf42   :  { %v1923_v37 = vpop.f32.mrb[46].mxu0  ;;  %v1970_v38 = vpop.f32.mrb[60].mxu1 }
 0xf43   :  { %v1971_v40 = vadd.f32 %v8144_v5, %v1970_v38  ;;  %v6870_v44 = vpop.f32.mrb[47].mxu0  ;;  %v6875_v51 = vpop.f32.mrb[61].mxu1  ;;  %v1976_v52 = vsel %vm658_vm3, %v1921_v35, -inf }
 0xf44   :  { %v1973_v55 = vpop.f32.mrb[62].mxu1  ;;  %1977 = vmax.xlane.f32.xlu0 %v1976_v52 }
 0xf45   :  { %v6876_v59 = vpop.f32.mrb[63].mxu1  ;;  %v1979_v61 = vsel %vm658_vm3, %v1971_v40, -inf }
 0xf46   :  { %1980 = vmax.xlane.f32.xlu1 %v1979_v61  ;;  %v7646_v61 = vld [vmem:[%s9058_s1] ss:$0 sm:$0xff] }
 0xf57   :  { %2048 = vrot.lane.b32.xlu1 %v8160_v26, %s7889_s5 }
 0xf5b   :  { %2098 = vrot.lane.b32.xlu1 %v8103_v41, %s7878_s3 }
 0xf5f   :  { %2148 = vrot.lane.b32.xlu1 %v8108_v45, %s7878_s3 }
 0xf63   :  { %2146 = vrot.lane.b32.xlu1 %v8119_v49, %s7878_s3 }
 0xfd1   :  { %v1978_v60 = vpop.xlane.xlu0 %1977 }
 0xfd2   :  { %v1982_v5 = vsub.f32 %v1921_v35, %v1978_v60 }
 0xfd3   :  { %v1981_v62 = vpop.xlane.xlu1 %1980 }
 0xfd4   :  { %v1984_v3 = vmul.f32 1.442695, %v1982_v5  ;;  %v1983_v4 = vsub.f32 %v1971_v40, %v1981_v62 }
 0xfd6   :  { %7550 = vpow2.f32 %v1984_v3  ;;  %v1986_v6 = vmul.f32 1.442695, %v1983_v4  ;;  %v7647_v4 = vld [vmem:[%s9058_s1 + $0x1] ss:$0 sm:$0xff] }
 0xfd7   :  { %v2049_v7 = vpop.permute.xlu1 %2048 }
 0xfd8   :  { %7552 = vpow2.f32 %v1986_v6  ;;  %v2054_v9 = vsel %vm686_vm2, %v2049_v7, 0 }
 0xfd9   :  { %6884 = vmatpush3.bf16.msra.mxu1 %v2054_v9 }
 0xfda   :  { %6895 = vmatprep.subr.bf16.mxu1 %v7884_v1 }
 0xfdb   :  { %v2099_v18 = vpop.permute.xlu1 %2098 }
 0xfdf   :  { %v2149_v24 = vpop.permute.xlu1 %2148 }
 0xfe0   :  { %v7551_v41 = vpop.eup %7550  ;;  %v2154_v29 = vsel %vm565_vm1, %v2149_v24, 0  ;;  %v7299_v24 = vld [vmem:[#allocation8 + $0x28] sm:$0xff]  }
 0xfe1   :  { %v1988_v45 = vsel %vm658_vm3, %v7551_v41, 0.0 }
 0xfe2   :  { %v7553_v10 = vpop.eup %7552  ;;  %1989 = vadd.xlane.f32.xlu0 %v1988_v45 }
 0xfe3   :  { %v1991_v49 = vsel %vm658_vm3, %v7553_v10, 0.0  ;;  %v2147_v33 = vpop.permute.xlu1 %2146 }
 0xfe6   :  { %1992 = vadd.xlane.f32.xlu0 %v1991_v49 }
 0xffc   :  { %2000 = vrot.lane.b32.xlu0 %v8129_v56, %s7889_s5 }
0x1000   :  { %2096 = vrot.lane.b32.xlu0 %v8110_v46, %s7878_s3  ;;  %v2104_v46 = vsel %vm565_vm1, %v2099_v18, 0 }
0x106f   :  { %v1990_v11 = vpop.xlane.xlu0 %1989 }
0x1070   :  { %7554 = vrcp.f32 %v1990_v11 }
0x1073   :  { %v1993_v14 = vpop.xlane.xlu0 %1992 }
0x1074   :  { %7556 = vrcp.f32 %v1993_v14 }
0x1077   :  { %v2001_v15 = vpop.permute.xlu0 %2000 }
0x1078   :  { %v2006_v16 = vsel %vm686_vm2, %v2001_v15, 0 }
0x1079   :  { %6878 = vmatpush3.bf16.msra.mxu0 %v2006_v16 }
0x107a   :  { %v7555_v17 = vpop.eup %7554  ;;  %6889 = vmatprep.subr.bf16.mxu0 %v7884_v1 }
0x107b   :  { %v1995_v19 = vmul.f32 %v7555_v17, %v7551_v41  ;;  %v2097_v32 = vpop.permute.xlu0 %2096 }
0x107d   :  { %v1998_v20 = vpack.c.bf16 %v1995_v19, %v1995_v19 }
0x107e   :  { %v7557_v22 = vpop.eup %7556 }
0x107f   :  { %6880 = vmatmul.mubr.msk.bf16.vlgmr.msra.gmra.mrb[48].mxu0 %vm658_vm3, %v1998_v20  ;;  %v1997_v23 = vmul.f32 %v7557_v22, %v7553_v10  ;;  %v7297_v22 = vld [vmem:[#allocation8 + $0x18] sm:$0xff]  }
0x1080   :  { %6891 = vmatprep.mubr.msk.bf16.mxu0 %vm7885_vm0, %v7884_v1 }
0x1081   :  { %v1999_v28 = vpack.c.bf16 %v1997_v23, %v1997_v23  ;;  %v7298_v23 = vld [vmem:[#allocation8 + $0x20] sm:$0xff]  }
0x1082   :  { %6890 = vmatpush3.bf16.xpose.msra.mxu0 %v2104_v46  ;;  %v7300_v46 = vld [vmem:[#allocation8 + $0x30] sm:$0xff]  }
0x1083   :  { %6886 = vmatmul.mubr.msk.bf16.vlgmr.msra.gmra.mrb[64].mxu1 %vm658_vm3, %v1999_v28  ;;  %6901 = vmatprep.subr.bf16.mxu0 %v7884_v1  ;;  %v7301_v28 = vld [vmem:[#allocation8 + $0x38] sm:$0xff]  }
0x1084   :  { %6896 = vmatpush3.bf16.xpose.msra.mxu1 %v2154_v29  ;;  %6897 = vmatprep.mubr.msk.bf16.mxu1 %vm7885_vm0, %v7884_v1 }
0x1085   :  { %6907 = vmatprep.subr.bf16.mxu1 %v7884_v1 }
0x1089   :  { %6892 = vmatmul.mubr.msk.bf16.vlgmr.msra.gmra.mrb[52].mxu0 %vm565_vm1, %v2097_v32 }
0x108a   :  { %6903 = vmatprep.mubr.msk.bf16.mxu0 %vm7885_vm0, %v7884_v1 }
0x108b   :  { %6898 = vmatmul.mubr.msk.bf16.vlgmr.msra.gmra.mrb[68].mxu1 %vm565_vm1, %v2147_v33 }
0x108c   :  { %6909 = vmatprep.mubr.msk.bf16.mxu1 %vm7885_vm0, %v7884_v1 }
0x1152   :  { %v2042_v35 = vpop.f32.mrb[48].mxu0 }
0x1153   :  { %v6881_v36 = vpop.f32.mrb[49].mxu0 }
0x1154   :  { %v2045_v37 = vpop.f32.mrb[50].mxu0 }
0x1155   :  { %v6882_v38 = vpop.f32.mrb[51].mxu0 }
0x1156   :  { %v2090_v40 = vpop.f32.mrb[64].mxu1 }
0x1157   :  { %v7217_v44 = vpack.i.bf16 %v2090_v40, %v2042_v35  ;;  %v6887_v51 = vpop.f32.mrb[65].mxu1 }
0x1158   :  { %v2093_v52 = vpop.f32.mrb[66].mxu1 }
0x1159   :  { %v6888_v55 = vpop.f32.mrb[67].mxu1 }
0x115c   :  { %v2140_v59 = vpop.f32.mrb[52].mxu0 }
0x115d   :  { %v2141_v60 = vadd.f32 %v7646_v61, %v2140_v59  ;;  %v6893_v5 = vpop.f32.mrb[53].mxu0 }
0x115e   :  { %v2143_v62 = vpop.f32.mrb[54].mxu0  ;;  %v2190_v3 = vpop.f32.mrb[68].mxu1 }
0x115f   :  { %v2191_v6 = vadd.f32 %v7647_v4, %v2190_v3  ;;  %v6894_v7 = vpop.f32.mrb[55].mxu0  ;;  %v6899_v9 = vpop.f32.mrb[69].mxu1  ;;  %v2196_v41 = vsel %vm658_vm3, %v2141_v60, -inf }
0x1160   :  { %v2193_v45 = vpop.f32.mrb[70].mxu1  ;;  %2197 = vmax.xlane.f32.xlu0 %v2196_v41 }
0x1161   :  { %v6900_v10 = vpop.f32.mrb[71].mxu1  ;;  %v2199_v49 = vsel %vm658_vm3, %v2191_v6, -inf }
0x1162   :  { %2200 = vmax.xlane.f32.xlu1 %v2199_v49 }
0x1173   :  { %2268 = vrot.lane.b32.xlu1 %v8160_v26, %s7878_s3 }
0x1177   :  { %7193 = vrot.lane.b32.xlu1 %v7192_v48, %s7878_s3 }
0x117b   :  { %7198 = vrot.lane.b32.xlu1 %v7197_v54, %s7889_s5 }
0x117f   :  { %7208 = vrot.lane.b32.xlu1 %v7207_v13, %s7868_s2 }
0x1183   :  { %7218 = vrot.lane.b32.xlu1 %v7217_v44, %s7887_s4 }
0x11ed   :  { %v2198_v11 = vpop.xlane.xlu0 %2197 }
0x11ee   :  { %v2202_v14 = vsub.f32 %v2141_v60, %v2198_v11 }
0x11ef   :  { %v2201_v26 = vpop.xlane.xlu1 %2200 }
0x11f0   :  { %v2204_v15 = vmul.f32 1.442695, %v2202_v14  ;;  %v2203_v16 = vsub.f32 %v2191_v6, %v2201_v26 }
0x11f2   :  { %7558 = vpow2.f32 %v2204_v15  ;;  %v2206_v39 = vmul.f32 1.442695, %v2203_v16 }
0x11f3   :  { %v2269_v47 = vpop.permute.xlu1 %2268 }
0x11f4   :  { %7560 = vpow2.f32 %v2206_v39  ;;  %v2274_v48 = vsel %vm686_vm2, %v2269_v47, 0 }
0x11f5   :  { %6908 = vmatpush3.bf16.msra.mxu1 %v2274_v48 }
0x11f7   :  { %v7194_v51 = vpop.permute.xlu1 %7193 }
0x11f8   :  { %v7196_v59 = vunpack.i.h.bf16 %v7194_v51  ;;  %v7195_v61 = vunpack.i.l.bf16 %v7194_v51 }
0x11fa   :  { %v2373_v7 = vsel %vm565_vm1, %v8183_v57, %v7196_v59  ;;  %v2372_v9 = vsel %vm565_vm1, %v8179_v42, %v7195_v61 }
0x11fb   :  { %v7199_v52 = vpop.permute.xlu1 %7198 }
0x11fc   :  { %v7559_v43 = vpop.eup %7558  ;;  %v7201_v60 = vunpack.i.h.bf16 %v7199_v52  ;;  %v7200_v5 = vunpack.i.l.bf16 %v7199_v52 }
0x11fd   :  { %v2208_v53 = vsel %vm658_vm3, %v7559_v43, 0.0 }
0x11fe   :  { %v7561_v54 = vpop.eup %7560  ;;  %2209 = vadd.xlane.f32.xlu0 %v2208_v53  ;;  %v2375_v41 = vsel %vm2374_vm4, %v2372_v9, %v7200_v5  ;;  %v2376_v45 = vsel %vm2374_vm4, %v2373_v7, %v7201_v60  ;;  %v7302_v7 = vld [vmem:[#allocation13] ss:$16 sps:$4 sm:$0xff]   ;;  %v7305_v9 = vld [vmem:[#allocation13 + $0x8] ss:$16 sps:$4 sm:$0xff]  }
0x11ff   :  { %v2211_v8 = vsel %vm658_vm3, %v7561_v54, 0.0  ;;  %v7209_v62 = vpop.permute.xlu1 %7208 }
0x1200   :  { %v7211_v26 = vunpack.i.h.bf16 %v7209_v62  ;;  %v7210_v15 = vunpack.i.l.bf16 %v7209_v62 }
0x1202   :  { %2212 = vadd.xlane.f32.xlu0 %v2211_v8 }
0x1203   :  { %v7219_v16 = vpop.permute.xlu1 %7218 }
0x1204   :  { %v7221_v48 = vunpack.i.h.bf16 %v7219_v16 }
0x1218   :  { %2220 = vrot.lane.b32.xlu0 %v8129_v56, %s7878_s3 }
0x121c   :  { %7203 = vrot.lane.b32.xlu0 %v7202_v2, %s7875_s0 }
0x1220   :  { %7213 = vrot.lane.b32.xlu0 %v7212_v27, %s7888_s26  ;;  %v7296_v27 = vld [vmem:[#allocation8 + $0x10] sm:$0xff]  }
0x128b   :  { %v2210_v12 = vpop.xlane.xlu0 %2209 }
0x128c   :  { %7562 = vrcp.f32 %v2210_v12 }
0x128f   :  { %v2213_v13 = vpop.xlane.xlu0 %2212 }
0x1290   :  { %7564 = vrcp.f32 %v2213_v13 }
0x1293   :  { %v2221_v17 = vpop.permute.xlu0 %2220 }
0x1294   :  { %v2226_v18 = vsel %vm686_vm2, %v2221_v17, 0 }
0x1295   :  { %6902 = vmatpush3.bf16.msra.mxu0 %v2226_v18 }
0x1296   :  { %v7563_v19 = vpop.eup %7562  ;;  %6913 = vmatprep.subr.bf16.mxu0 %v7884_v1 }
0x1297   :  { %v2215_v56 = vmul.f32 %v7563_v19, %v7559_v43  ;;  %v7204_v55 = vpop.permute.xlu0 %7203  ;;  %v7220_v43 = vunpack.i.l.bf16 %v7219_v16  ;;  %v7322_v16 = vld [vmem:[#allocation13 + $0x64] ss:$16 sps:$4 sm:$0xff]  }
0x1298   :  { %v7206_v3 = vunpack.i.h.bf16 %v7204_v55  ;;  %v7205_v4 = vunpack.i.l.bf16 %v7204_v55 }
0x1299   :  { %v2218_v20 = vpack.c.bf16 %v2215_v56, %v2215_v56  ;;  %v6224_v56 = vld [vmem:[#allocation10] ss:$0 sm:$0xff] }
0x129a   :  { %v7565_v58 = vpop.eup %7564  ;;  %v2379_v10 = vsel %vm2377_vm5, %v2376_v45, %v7206_v3  ;;  %v2378_v49 = vsel %vm2377_vm5, %v2375_v41, %v7205_v4  ;;  %v7304_v4 = vld [vmem:[#allocation13 + $0x4] ss:$16 sps:$4 sm:$0xff]   ;;  %v7313_v45 = vld [vmem:[#allocation13 + $0x2c] ss:$16 sps:$4 sm:$0xff]  }
0x129b   :  { %6904 = vmatmul.mubr.msk.bf16.vlgmr.msra.gmra.mrb[56].mxu0 %vm658_vm3, %v2218_v20  ;;  %v2217_v63 = vmul.f32 %v7565_v58, %v7561_v54  ;;  %v7214_v6 = vpop.permute.xlu0 %7213  ;;  %v2381_v57 = vsel %vm2380_vm6, %v2378_v49, %v7210_v15  ;;  %v2382_v39 = vsel %vm2380_vm6, %v2379_v10, %v7211_v26  ;;  %2722 = vmatprep.subr.bf16.mxu1 %v7304_v4  ;;  %v7310_v41 = vld [vmem:[#allocation13 + $0x24] ss:$16 sps:$4 sm:$0xff]   ;;  %v7308_v10 = vld [vmem:[#allocation13 + $0x20] ss:$16 sps:$4 sm:$0xff]   ;;  %v7311_v49 = vld [vmem:[#allocation13 + $0x28] ss:$16 sps:$4 sm:$0xff]  }
0x129c   :  { %6929 = vmatprep.mubr.msk.bf16.mxu0 %vm7885_vm0, %v7884_v1  ;;  %6914 = vmatpush3.bf16.msra.mxu0 %v7294_v21  ;;  %v7216_v11 = vunpack.i.h.bf16 %v7214_v6  ;;  %v7215_v14 = vunpack.i.l.bf16 %v7214_v6  ;;  %v7307_v6 = vld [vmem:[#allocation13 + $0xc] ss:$16 sps:$4 sm:$0xff]   ;;  %v7314_v26 = vld [vmem:[#allocation13 + $0x40] ss:$16 sps:$4 sm:$0xff]   ;;  %v7317_v15 = vld [vmem:[#allocation13 + $0x48] ss:$16 sps:$4 sm:$0xff]  }
0x129d   :  { %v2219_v2 = vpack.c.bf16 %v2217_v63, %v2217_v63  ;;  %6915 = vmatprep.subr.bf16.mxu0 %v7884_v1 }
0x129e   :  { %v2384_v42 = vsel %vm2383_vm7, %v2381_v57, %v7215_v14  ;;  %v2385_v47 = vsel %vm2383_vm7, %v2382_v39, %v7216_v11  ;;  %v7316_v11 = vld [vmem:[#allocation13 + $0x44] ss:$16 sps:$4 sm:$0xff]   ;;  %v7319_v14 = vld [vmem:[#allocation13 + $0x4c] ss:$16 sps:$4 sm:$0xff]   ;;  %v7320_v39 = vld [vmem:[#allocation13 + $0x60] ss:$16 sps:$4 sm:$0xff]  }
0x129f   :  { %6910 = vmatmul.mubr.msk.bf16.vlgmr.msra.gmra.mrb[72].mxu1 %vm658_vm3, %v2219_v2  ;;  %v2387_v12 = vsel %vm2386_vm8, %v2384_v42, %v7220_v43  ;;  %v2388_v13 = vsel %vm2386_vm8, %v2385_v47, %v7221_v48  ;;  %v7325_v57 = vld [vmem:[#allocation13 + $0x6c] ss:$16 sps:$4 sm:$0xff]   ;;  %v7323_v42 = vld [vmem:[#allocation13 + $0x68] ss:$16 sps:$4 sm:$0xff]   ;;  %v7328_v47 = vld [vmem:[#allocation13 + $0x84] ss:$16 sps:$4 sm:$0xff]  }
0x12a0   :  { %2754 = vmatprep.mubr.bf16.mxu1 %v7883_v0  ;;  %6916 = vmatpush3.bf16.msra.mxu0 %v7295_v25  ;;  %v7326_v48 = vld [vmem:[#allocation13 + $0x80] ss:$16 sps:$4 sm:$0xff]   ;;  %v7329_v43 = vld [vmem:[#allocation13 + $0x88] ss:$16 sps:$4 sm:$0xff]  }
0x12a1   :  { %6917 = vmatprep.subr.bf16.mxu0 %v7884_v1  ;;  %2723 = vmatpush1.bf16.msra.mxu1 %v7302_v7  ;;  %v8525_v7 = vld [vmem:[#allocation11] sm:$0xff] }
0x12a2   :  { %2724 = vmatprep.subr.bf16.mxu1 %v7310_v41 }
0x12a4   :  { %6918 = vmatpush3.bf16.msra.mxu0 %v7296_v27  ;;  %v7648_v27 = vld [vmem:[#allocation2] sm:$0xff] }
0x12a5   :  { %6919 = vmatprep.subr.bf16.mxu0 %v7884_v1  ;;  %2725 = vmatpush1.bf16.msra.mxu1 %v7308_v10  ;;  %v7353_v10 = vld [vmem:[#allocation14 + $0x80] sm:$0xff]  }
0x12a6   :  { %2726 = vmatprep.subr.bf16.mxu1 %v7316_v11  ;;  %v7354_v11 = vld [vmem:[#allocation14 + $0x48] sm:$0xff]  }
0x12a8   :  { %6920 = vmatpush3.bf16.msra.mxu0 %v7297_v22 }
0x12a9   :  { %6921 = vmatprep.subr.bf16.mxu0 %v7884_v1  ;;  %2727 = vmatpush1.bf16.msra.mxu1 %v7314_v26  ;;  %v7357_v26 = vld [vmem:[#allocation14 + $0x88] sm:$0xff]  }
0x12aa   :  { %2728 = vmatprep.subr.bf16.mxu1 %v7322_v16  ;;  %v7359_v16 = vld [vmem:[#allocation14 + $0xd0] sm:$0xff]  }
0x12ac   :  { %6922 = vmatpush3.bf16.msra.mxu0 %v7298_v23  ;;  %v7649_v23 = vld [vmem:[#allocation2 + $0x8] sm:$0xff] }
0x12ad   :  { %6923 = vmatprep.subr.bf16.mxu0 %v7884_v1  ;;  %2729 = vmatpush1.bf16.msra.mxu1 %v7320_v39  ;;  %v7361_v39 = vld [vmem:[#allocation14 + $0x90] sm:$0xff]  }
0x12ae   :  { %2730 = vmatprep.subr.bf16.mxu1 %v7328_v47  ;;  %v7363_v47 = vld [vmem:[#allocation14 + $0xd8] sm:$0xff]  }
0x12b0   :  { %6924 = vmatpush3.bf16.msra.mxu0 %v7299_v24 }
0x12b1   :  { %6925 = vmatprep.subr.bf16.mxu0 %v7884_v1  ;;  %2731 = vmatpush1.bf16.msra.mxu1 %v7326_v48  ;;  %v7364_v48 = vld [vmem:[#allocation14 + $0x18] sm:$0xff]  }
0x12b4   :  { %6926 = vmatpush3.bf16.msra.mxu0 %v7300_v46 }
0x12b5   :  { %6927 = vmatprep.subr.bf16.mxu0 %v7884_v1 }
0x12b8   :  { %6928 = vmatpush3.bf16.msra.mxu0 %v7301_v28 }
0x12b9   :  { %2765 = vmatprep.subr.bf16.mxu0 %v7307_v6 }
0x136e   :  { %v2262_v29 = vpop.f32.mrb[56].mxu0 }
0x136f   :  { %v6905_v32 = vpop.f32.mrb[57].mxu0 }
0x1370   :  { %v2265_v33 = vpop.f32.mrb[58].mxu0 }
0x1371   :  { %v6906_v35 = vpop.f32.mrb[59].mxu0 }
0x1372   :  { %v2310_v36 = vpop.f32.mrb[72].mxu1 }
0x1373   :  { %v7222_v37 = vpack.i.bf16 %v2310_v36, %v2262_v29  ;;  %v6911_v38 = vpop.f32.mrb[73].mxu1 }
0x1374   :  { %v2313_v40 = vpop.f32.mrb[74].mxu1 }
0x1375   :  { %v6912_v44 = vpop.f32.mrb[75].mxu1  ;;  %7223 = vrot.lane.b32.xlu0 %v7222_v37, %s7886_s24 }
0x13e7   :  { %v7224_v53 = vpop.permute.xlu0 %7223 }
0x13e8   :  { %v7226_v54 = vunpack.i.h.bf16 %v7224_v53  ;;  %v7225_v8 = vunpack.i.l.bf16 %v7224_v53  ;;  %v7331_v53 = vld [vmem:[#allocation13 + $0x8c] ss:$16 sps:$4 sm:$0xff]  }
0x13ea   :  { %v2391_v17 = vsel %vm2389_vm9, %v2388_v13, %v7226_v54  ;;  %v2390_v18 = vsel %vm2389_vm9, %v2387_v12, %v7225_v8  ;;  %v7334_v54 = vld [vmem:[#allocation13 + $0xa4] ss:$16 sps:$4 sm:$0xff]   ;;  %v7337_v8 = vld [vmem:[#allocation13 + $0xac] ss:$16 sps:$4 sm:$0xff]   ;;  %v7332_v12 = vld [vmem:[#allocation13 + $0xa0] ss:$16 sps:$4 sm:$0xff]  }
0x13eb   :  { %v2392_v19 = vpack.c.bf16 %v2391_v17, %v2390_v18  ;;  %v7335_v13 = vld [vmem:[#allocation13 + $0xa8] ss:$16 sps:$4 sm:$0xff]   ;;  %2732 = vmatprep.subr.bf16.mxu1 %v7334_v54  ;;  %v7340_v17 = vld [vmem:[#allocation13 + $0xc4] ss:$16 sps:$4 sm:$0xff]   ;;  %v7343_v18 = vld [vmem:[#allocation13 + $0xcc] ss:$16 sps:$4 sm:$0xff]  }
0x13ec   :  { %2733 = vmatpush1.bf16.msra.mxu1 %v7332_v12  ;;  %v7367_v54 = vld [vmem:[#allocation14 + $0xe0] sm:$0xff]  }
0x13ed   :  { %6930 = vmatmul.mubr.bf16.vlgmr.msra.gmra.mrb[60].mxu0 %v2392_v19  ;;  %v7338_v19 = vld [vmem:[#allocation13 + $0xc0] ss:$16 sps:$4 sm:$0xff]   ;;  %2734 = vmatprep.subr.bf16.mxu1 %v7340_v17  ;;  %v7371_v17 = vld [vmem:[#allocation14 + $0xe8] sm:$0xff]  }
0x13ee   :  { %2797 = vmatprep.mubr.bf16.mxu0 %v7883_v0  ;;  %2766 = vmatpush1.bf16.msra.mxu0 %v7305_v9  ;;  %v7369_v12 = vld [vmem:[#allocation14 + $0xa0] sm:$0xff]  }
0x13ef   :  { %2767 = vmatprep.subr.bf16.mxu0 %v7313_v45 }
0x13f0   :  { %2735 = vmatpush1.bf16.msra.mxu1 %v7338_v19  ;;  %v7373_v19 = vld [vmem:[#allocation14 + $0xa8] sm:$0xff]  }
0x13f2   :  { %2768 = vmatpush1.bf16.msra.mxu0 %v7311_v49 }
0x13f3   :  { %2769 = vmatprep.subr.bf16.mxu0 %v7319_v14  ;;  %v7355_v14 = vld [vmem:[#allocation14 + $0xc8] sm:$0xff]  }
0x13f6   :  { %2770 = vmatpush1.bf16.msra.mxu0 %v7317_v15  ;;  %v7358_v15 = vld [vmem:[#allocation14 + $0x50] sm:$0xff]  }
0x13f7   :  { %2771 = vmatprep.subr.bf16.mxu0 %v7325_v57  ;;  %v7360_v57 = vld [vmem:[#allocation14 + $0x10] sm:$0xff]  }
0x13fa   :  { %2772 = vmatpush1.bf16.msra.mxu0 %v7323_v42  ;;  %v7362_v42 = vld [vmem:[#allocation14 + $0x58] sm:$0xff]  }
0x13fb   :  { %2773 = vmatprep.subr.bf16.mxu0 %v7331_v53  ;;  %v7366_v53 = vld [vmem:[#allocation14 + $0x60] sm:$0xff]  }
0x13fe   :  { %2774 = vmatpush1.bf16.msra.mxu0 %v7329_v43  ;;  %v7365_v43 = vld [vmem:[#allocation14 + $0x98] sm:$0xff]  }
0x13ff   :  { %2775 = vmatprep.subr.bf16.mxu0 %v7337_v8  ;;  %v7368_v8 = vld [vmem:[#allocation14 + $0x20] sm:$0xff]  }
0x1402   :  { %2776 = vmatpush1.bf16.msra.mxu0 %v7335_v13  ;;  %v7370_v13 = vld [vmem:[#allocation14 + $0x68] sm:$0xff]  }
0x1403   :  { %2777 = vmatprep.subr.bf16.mxu0 %v7343_v18  ;;  %v7372_v18 = vld [vmem:[#allocation14 + $0x28] sm:$0xff]  }
0x14c0   :  { %v2481_v20 = vpop.f32.mrb[60].mxu0 }
0x14c1   :  { %v2482_v58 = vadd.f32 %v6224_v56, %v2481_v20  ;;  %v6931_v63 = vpop.f32.mrb[61].mxu0  ;;  %v7346_v20 = vld [vmem:[#allocation13 + $0xe4] ss:$16 sps:$4 sm:$0xff]  }
0x14c2   :  { %v2484_v2 = vpop.f32.mrb[62].mxu0  ;;  %v7344_v63 = vld [vmem:[#allocation13 + $0xe0] ss:$16 sps:$4 sm:$0xff]   ;;  %2736 = vmatprep.subr.bf16.mxu1 %v7346_v20 }
0x14c3   :  { %v2485_v21 = vadd.f32 %v6224_v56, %v2484_v2  ;;  %v6932_v25 = vpop.f32.mrb[63].mxu0  ;;  %v2488_v22 = vadd.f32 %v7648_v27, %v2482_v58  ;;  %v7341_v56 = vld [vmem:[#allocation13 + $0xc8] ss:$16 sps:$4 sm:$0xff]   ;;  %v7349_v58 = vld [vmem:[#allocation13 + $0xec] ss:$16 sps:$4 sm:$0xff]   ;;  %2737 = vmatpush1.bf16.msra.mxu1 %v7344_v63  ;;  %v7375_v20 = vld [vmem:[#allocation14 + $0xf0] sm:$0xff]  }
0x14c4   :  { %2778 = vmatpush1.bf16.msra.mxu0 %v7341_v56  ;;  %v7347_v2 = vld [vmem:[#allocation13 + $0xe8] ss:$16 sps:$4 sm:$0xff]   ;;  %v7351_v25 = vld [vmem:[#allocation14 + $0xc0] sm:$0xff]   ;;  %v7374_v56 = vld [vmem:[#allocation14 + $0x70] sm:$0xff]  }
0x14c5   :  { %2490 = vadd.xlane.f32.xlu1 %v2488_v22  ;;  %v2489_v24 = vadd.f32 %v7649_v23, %v2485_v21  ;;  %2779 = vmatprep.subr.bf16.mxu0 %v7349_v58  ;;  %v7350_v21 = vld [vmem:[#allocation14 + $0x40] sm:$0xff]   ;;  %v7376_v58 = vld [vmem:[#allocation14 + $0x30] sm:$0xff]  }
0x14c6   :  { %6531 = vmatprep.subr.bf16.mxu1 %v7350_v21  ;;  %v7377_v63 = vld [vmem:[#allocation14 + $0xb0] sm:$0xff]   ;;  %v7379_v21 = vld [vmem:[#allocation14 + $0xf8] sm:$0xff]  }
0x14c7   :  { %2492 = vadd.xlane.f32.xlu0 %v2489_v24 }
0x14c8   :  { %2780 = vmatpush1.bf16.msra.mxu0 %v7347_v2  ;;  %v7378_v2 = vld [vmem:[#allocation14 + $0x78] sm:$0xff]  }
0x14c9   :  { %6553 = vmatprep.subr.bf16.mxu0 %v7351_v25  ;;  %v7380_v25 = vld [vmem:[#allocation14 + $0x38] sm:$0xff]  }
0x1552   :  { %v2491_v46 = vpop.xlane.xlu1 %2490 }
0x1553   :  { %v2494_v28 = vrot.slane %v2491_v46, 4 }
0x1554   :  { %v2493_v29 = vpop.xlane.xlu0 %2492 }
0x1555   :  { %v2495_v32 = vadd.f32 %v2494_v28, %v2491_v46  ;;  %v2500_v33 = vrot.slane %v2493_v29, 4 }
0x1557   :  { %v2496_v35 = vrot.slane %v2495_v32, 2  ;;  %v2501_v36 = vadd.f32 %v2500_v33, %v2493_v29 }
0x1559   :  { %v2497_v37 = vadd.f32 %v2496_v35, %v2495_v32  ;;  %v2502_v38 = vrot.slane %v2501_v36, 2 }
0x155b   :  { %v2498_v40 = vrot.slane %v2497_v37, 1  ;;  %v2503_v44 = vadd.f32 %v2502_v38, %v2501_v36 }
0x155d   :  { %v2499_v51 = vadd.f32 %v2498_v40, %v2497_v37  ;;  %v2504_v52 = vrot.slane %v2503_v44, 1 }
0x155f   :  { %v2505_v55 = vadd.f32 %v2504_v52, %v2503_v44  ;;  %v2506_v59 = vmul.f32 0.0009765625, %v2499_v51 }
0x1561   :  { %v8509_v61 = vsub.f32 %v2488_v22, %v2506_v59  ;;  %v2507_v60 = vmul.f32 0.0009765625, %v2505_v55 }
0x1563   :  { %v2510_v5 = vmul.f32 %v8509_v61, %v8509_v61  ;;  %v8513_v62 = vsub.f32 %v2489_v24, %v2507_v60 }
0x1565   :  { %2512 = vadd.xlane.f32.xlu0 %v2510_v5  ;;  %v2511_v3 = vmul.f32 %v8513_v62, %v8513_v62  ;;  %v8521_v5 = vld [vmem:[%s9063_s6] sm:$0xff] }
0x1569   :  { %2514 = vadd.xlane.f32.xlu0 %v2511_v3 }
0x15f2   :  { %v2513_v27 = vpop.xlane.xlu0 %2512 }
0x15f3   :  { %v2516_v22 = vrot.slane %v2513_v27, 4 }
0x15f5   :  { %v2517_v23 = vadd.f32 %v2516_v22, %v2513_v27  ;;  %v7381_v27 = vld [vmem:[#allocation14 + $0xb8] sm:$0xff]  }
0x15f6   :  { %v2515_v24 = vpop.xlane.xlu0 %2514  ;;  %v240_v22 = vld [vmem:[%s9066_s9] sm:$0xf] }
0x15f7   :  { %v2518_v46 = vrot.slane %v2517_v23, 2  ;;  %v2522_v28 = vrot.slane %v2515_v24, 4 }
0x15f9   :  { %v2519_v29 = vadd.f32 %v2518_v46, %v2517_v23  ;;  %v2523_v32 = vadd.f32 %v2522_v28, %v2515_v24  ;;  %v2556_v23 = vsub.s32 3, %v8093_v30  ;;  %v2545_v24 = vrot.slane %v240_v22, %v8100_v34 }
0x15fa   :  { %v2553_v46 = vrot.slane %v240_v22, %v8126_v50  ;;  %v2549_v28 = vrot.slane %v240_v22, %v8096_v31 }
0x15fb   :  { %v2520_v33 = vrot.slane %v2519_v29, 1  ;;  %v2524_v35 = vrot.slane %v2523_v32, 2 }
0x15fd   :  { %v2521_v36 = vadd.f32 %v2520_v33, %v2519_v29  ;;  %v2525_v37 = vadd.f32 %v2524_v35, %v2523_v32  ;;  %v2557_v29 = vrot.slane %v240_v22, %v2556_v23 }
0x15ff   :  { %v2528_v38 = vmul.f32 0.0009765625, %v2521_v36  ;;  %v2526_v40 = vrot.slane %v2525_v37, 1 }
0x1601   :  { %v2530_v44 = vadd.f32 1e-06, %v2528_v38  ;;  %v2527_v51 = vadd.f32 %v2526_v40, %v2525_v37 }
0x1603   :  { %7566 = vrsqrt.f32 %v2530_v44  ;;  %v2529_v52 = vmul.f32 0.0009765625, %v2527_v51 }
0x1605   :  { %v2531_v55 = vadd.f32 1e-06, %v2529_v52 }
0x1607   :  { %7568 = vrsqrt.f32 %v2531_v55 }
0x160d   :  { %v7567_v59 = vpop.eup %7566 }
0x160e   :  { %v2534_v60 = vmul.f32 %v7567_v59, %v8509_v61  ;;  %v7352_v61 = vld [vmem:[#allocation14] sm:$0xff]  }
0x1610   :  { %v2536_v6 = vmul.f32 %v2534_v60, %v8521_v5 }
0x1611   :  { %v7569_v3 = vpop.eup %7568 }
0x1612   :  { %v2535_v4 = vmul.f32 %v7569_v3, %v8513_v62  ;;  %v8529_v41 = vadd.f32 %v2536_v6, %v8525_v7  ;;  %v7356_v62 = vld [vmem:[#allocation14 + $0x8] sm:$0xff]  }
0x1614   :  { %v2537_v9 = vmul.f32 %v2535_v4, %v8521_v5 }
0x1616   :  { %v8532_v45 = vadd.f32 %v2537_v9, %v8525_v7 }
0x1618   :  { %v2540_v49 = vpack.c.bf16 %v8532_v45, %v8529_v41 }
0x161a   :  { %2755 = vmatmul.mubr.bf16.vlgmr.msra.gmra.mrb[76].mxu1 %v2540_v49  ;;  %2798 = vmatmul.mubr.bf16.vlgmr.msra.gmra.mrb[64].mxu0 %v2540_v49 }
0x161b   :  { %6532 = vmatpush3.bf16.msra.mxu1 %v7352_v61  ;;  %6554 = vmatpush3.bf16.msra.mxu0 %v7353_v10 }
0x161c   :  { %6533 = vmatprep.subr.bf16.mxu1 %v7354_v11  ;;  %6555 = vmatprep.subr.bf16.mxu0 %v7355_v14 }
0x161f   :  { %6534 = vmatpush3.bf16.msra.mxu1 %v7356_v62  ;;  %6556 = vmatpush3.bf16.msra.mxu0 %v7357_v26 }
0x1620   :  { %6535 = vmatprep.subr.bf16.mxu1 %v7358_v15  ;;  %6557 = vmatprep.subr.bf16.mxu0 %v7359_v16 }
0x1623   :  { %6536 = vmatpush3.bf16.msra.mxu1 %v7360_v57  ;;  %6558 = vmatpush3.bf16.msra.mxu0 %v7361_v39 }
0x1624   :  { %6537 = vmatprep.subr.bf16.mxu1 %v7362_v42  ;;  %6559 = vmatprep.subr.bf16.mxu0 %v7363_v47 }
0x1627   :  { %6538 = vmatpush3.bf16.msra.mxu1 %v7364_v48  ;;  %6560 = vmatpush3.bf16.msra.mxu0 %v7365_v43  ;;  %v6265_v48 = vld [vmem:[%s9068_s11] ss:$0 sm:$0xff] }
0x1628   :  { %6539 = vmatprep.subr.bf16.mxu1 %v7366_v53  ;;  %6561 = vmatprep.subr.bf16.mxu0 %v7367_v54 }
0x162b   :  { %6540 = vmatpush3.bf16.msra.mxu1 %v7368_v8  ;;  %6562 = vmatpush3.bf16.msra.mxu0 %v7369_v12 }
0x162c   :  { %6541 = vmatprep.subr.bf16.mxu1 %v7370_v13  ;;  %6563 = vmatprep.subr.bf16.mxu0 %v7371_v17 }
0x162f   :  { %6542 = vmatpush3.bf16.msra.mxu1 %v7372_v18  ;;  %6564 = vmatpush3.bf16.msra.mxu0 %v7373_v19 }
0x1630   :  { %6543 = vmatprep.subr.bf16.mxu1 %v7374_v56  ;;  %6565 = vmatprep.subr.bf16.mxu0 %v7375_v20 }
0x1633   :  { %6544 = vmatpush3.bf16.msra.mxu1 %v7376_v58  ;;  %6566 = vmatpush3.bf16.msra.mxu0 %v7377_v63 }
0x1634   :  { %6545 = vmatprep.subr.bf16.mxu1 %v7378_v2  ;;  %6567 = vmatprep.subr.bf16.mxu0 %v7379_v21 }
0x1637   :  { %6546 = vmatpush3.bf16.msra.mxu1 %v7380_v25  ;;  %6568 = vmatpush3.bf16.msra.mxu0 %v7381_v27 }
0x1638   :  { %6933 = vmatprep.subr.bf16.mxu0 %v7884_v1 }
0x16ed   :  { %v2756_v32 = vpop.f32.mrb[76].mxu1  ;;  %v2799_v33 = vpop.f32.mrb[64].mxu0 }
0x16ee   :  { %v2757_v35 = vadd.f32 %v2756_v32, %v2545_v24  ;;  %v2800_v36 = vadd.f32 %v2799_v33, %v2553_v46  ;;  %v2758_v37 = vpop.f32.mrb[77].mxu1  ;;  %v2801_v38 = vpop.f32.mrb[65].mxu0 }
0x16ef   :  { %v2759_v40 = vadd.f32 %v2758_v37, %v2549_v28  ;;  %v2802_v44 = vadd.f32 %v2801_v38, %v2557_v29  ;;  %v2760_v51 = vpop.f32.mrb[78].mxu1  ;;  %v2803_v52 = vpop.f32.mrb[66].mxu0 }
0x16f0   :  { %v2761_v55 = vadd.f32 %v2760_v51, %v2545_v24  ;;  %v2804_v59 = vadd.f32 %v2803_v52, %v2553_v46  ;;  %v2762_v60 = vpop.f32.mrb[79].mxu1  ;;  %v2805_v3 = vpop.f32.mrb[67].mxu0  ;;  %v2808_v9 = vmax.f32 %v2757_v35, 0.0  ;;  %v2810_v61 = vmax.f32 %v2800_v36, 0.0 }
0x16f1   :  { %v2763_v4 = vadd.f32 %v2762_v60, %v2549_v28  ;;  %v2806_v6 = vadd.f32 %v2805_v3, %v2557_v29  ;;  %v2809_v11 = vmax.f32 %v2759_v40, 0.0  ;;  %v2811_v14 = vmax.f32 %v2802_v44, 0.0  ;;  %v7384_v60 = vld [vmem:[#allocation5 + $0xc4] ss:$12 sps:$4 sm:$0xff]   ;;  %v7382_v3 = vld [vmem:[#allocation5 + $0xc0] ss:$12 sps:$4 sm:$0xff]  }
0x16f2   :  { %v2812_v10 = vmax.f32 %v2761_v55, 0.0  ;;  %v2814_v49 = vmax.f32 %v2804_v59, 0.0  ;;  %3457 = vmatprep.subr.bf16.mxu1 %v7384_v60 }
0x16f3   :  { %v2813_v62 = vmax.f32 %v2763_v4, 0.0  ;;  %v2815_v26 = vmax.f32 %v2806_v6, 0.0  ;;  %v7385_v4 = vld [vmem:[#allocation5 + $0xc8] ss:$12 sps:$4 sm:$0xff]  }
0x16f4   :  { %v2816_v15 = vpack.c.bf16 %v2812_v10, %v2808_v9  ;;  %v2818_v16 = vpack.c.bf16 %v2814_v49, %v2810_v61  ;;  %v7388_v6 = vld [vmem:[#allocation5 + $0xdc] ss:$12 sps:$4 sm:$0xff]   ;;  %v7386_v9 = vld [vmem:[#allocation5 + $0xd8] ss:$12 sps:$4 sm:$0xff]   ;;  %v7389_v61 = vld [vmem:[#allocation5 + $0xe0] ss:$12 sps:$4 sm:$0xff]  }
0x16f5   :  { %v2817_v57 = vpack.c.bf16 %v2813_v62, %v2809_v11  ;;  %v2819_v39 = vpack.c.bf16 %v2815_v26, %v2811_v14  ;;  %v7392_v10 = vld [vmem:[#allocation5 + $0xf4] ss:$12 sps:$4 sm:$0xff]   ;;  %v7390_v49 = vld [vmem:[#allocation5 + $0xf0] ss:$12 sps:$4 sm:$0xff]   ;;  %v7393_v11 = vld [vmem:[#allocation5 + $0xf8] ss:$12 sps:$4 sm:$0xff]  }
0x16f6   :  { %v7396_v14 = vld [vmem:[#allocation5 + $0x10c] ss:$12 sps:$4 sm:$0xff]   ;;  %v7394_v62 = vld [vmem:[#allocation5 + $0x108] ss:$12 sps:$4 sm:$0xff]   ;;  %v7397_v26 = vld [vmem:[#allocation5 + $0x110] ss:$12 sps:$4 sm:$0xff]  }
0x16f7   :  { %3050 = vmatprep.mubr.bf16.mxu1 %v2817_v57  ;;  %3091 = vmatprep.mubr.bf16.mxu0 %v2819_v39  ;;  %v7401_v57 = vld [vmem:[#allocation5 + $0x128] ss:$12 sps:$4 sm:$0xff]  }
0x16f8   :  { %3051 = vmatmul.mubr.bf16.vlgmr.msra.gmra.mrb[80].mxu1 %v2816_v15  ;;  %3092 = vmatmul.mubr.bf16.vlgmr.msra.gmra.mrb[68].mxu0 %v2818_v16  ;;  %v7400_v15 = vld [vmem:[#allocation5 + $0x124] ss:$12 sps:$4 sm:$0xff]   ;;  %v7398_v16 = vld [vmem:[#allocation5 + $0x120] ss:$12 sps:$4 sm:$0xff]   ;;  %v7404_v39 = vld [vmem:[#allocation5 + $0x13c] ss:$12 sps:$4 sm:$0xff]  }
0x16f9   :  { %3489 = vmatprep.mubr.bf16.mxu1 %v7883_v0  ;;  %6949 = vmatprep.mubr.msk.bf16.mxu0 %vm7885_vm0, %v7884_v1 }
0x16fa   :  { %3458 = vmatpush1.bf16.msra.mxu1 %v7382_v3  ;;  %6934 = vmatpush3.bf16.msra.mxu0 %v7385_v4 }
0x16fb   :  { %6935 = vmatprep.subr.bf16.mxu0 %v7884_v1  ;;  %3459 = vmatprep.subr.bf16.mxu1 %v7388_v6 }
0x16fe   :  { %3460 = vmatpush1.bf16.msra.mxu1 %v7386_v9  ;;  %6936 = vmatpush3.bf16.msra.mxu0 %v7389_v61 }
0x16ff   :  { %6937 = vmatprep.subr.bf16.mxu0 %v7884_v1  ;;  %3461 = vmatprep.subr.bf16.mxu1 %v7392_v10 }
0x1702   :  { %3462 = vmatpush1.bf16.msra.mxu1 %v7390_v49  ;;  %6938 = vmatpush3.bf16.msra.mxu0 %v7393_v11 }
0x1703   :  { %6939 = vmatprep.subr.bf16.mxu0 %v7884_v1  ;;  %3463 = vmatprep.subr.bf16.mxu1 %v7396_v14 }
0x1706   :  { %3464 = vmatpush1.bf16.msra.mxu1 %v7394_v62  ;;  %6940 = vmatpush3.bf16.msra.mxu0 %v7397_v26 }
0x1707   :  { %3465 = vmatprep.subr.bf16.mxu1 %v7400_v15  ;;  %6941 = vmatprep.subr.bf16.mxu0 %v7884_v1 }
0x170a   :  { %3466 = vmatpush1.bf16.msra.mxu1 %v7398_v16  ;;  %6942 = vmatpush3.bf16.msra.mxu0 %v7401_v57 }
0x170b   :  { %3467 = vmatprep.subr.bf16.mxu1 %v7404_v39  ;;  %6943 = vmatprep.subr.bf16.mxu0 %v7884_v1 }
0x17cb   :  { %v6547_v42 = vpop.f32.mrb[80].mxu1  ;;  %v6569_v47 = vpop.f32.mrb[68].mxu0 }
0x17cc   :  { %v6548_v43 = vpop.f32.mrb[81].mxu1  ;;  %v6570_v53 = vpop.f32.mrb[69].mxu0 }
0x17cd   :  { %v6549_v54 = vadd.f32 %v6548_v43, %v6547_v42  ;;  %v6571_v8 = vadd.f32 %v6570_v53, %v6569_v47  ;;  %v6550_v12 = vpop.f32.mrb[82].mxu1  ;;  %v6572_v13 = vpop.f32.mrb[70].mxu0  ;;  %v7402_v42 = vld [vmem:[#allocation5 + $0x138] ss:$12 sps:$4 sm:$0xff]   ;;  %v7405_v47 = vld [vmem:[#allocation5 + $0x140] ss:$12 sps:$4 sm:$0xff]  }
0x17ce   :  { %v6551_v17 = vpop.f32.mrb[83].mxu1  ;;  %v6573_v18 = vpop.f32.mrb[71].mxu0  ;;  %3468 = vmatpush1.bf16.msra.mxu1 %v7402_v42  ;;  %6944 = vmatpush3.bf16.msra.mxu0 %v7405_v47  ;;  %v7406_v43 = vld [vmem:[#allocation5 + $0x150] ss:$12 sps:$4 sm:$0xff]   ;;  %v7409_v53 = vld [vmem:[#allocation5 + $0x158] ss:$12 sps:$4 sm:$0xff]  }
0x17cf   :  { %v3053_v19 = vadd.f32 %v6549_v54, %v6265_v48  ;;  %v6552_v56 = vadd.f32 %v6551_v17, %v6550_v12  ;;  %v6574_v20 = vadd.f32 %v6573_v18, %v6572_v13  ;;  %6945 = vmatprep.subr.bf16.mxu0 %v7884_v1  ;;  %v7412_v54 = vld [vmem:[#allocation5 + $0x16c] ss:$12 sps:$4 sm:$0xff]   ;;  %v7413_v12 = vld [vmem:[#allocation5 + $0x170] ss:$12 sps:$4 sm:$0xff]  }
0x17d1   :  { %v3094_v58 = vadd.f32 %v6571_v8, %v3053_v19  ;;  %v3056_v63 = vadd.f32 %v6552_v56, %v6265_v48  ;;  %v7408_v48 = vld [vmem:[#allocation5 + $0x154] ss:$12 sps:$4 sm:$0xff]  }
0x17d2   :  { %3469 = vmatprep.subr.bf16.mxu1 %v7408_v48  ;;  %6946 = vmatpush3.bf16.msra.mxu0 %v7409_v53  ;;  %v7410_v8 = vld [vmem:[#allocation5 + $0x168] ss:$12 sps:$4 sm:$0xff]  }
0x17d3   :  { %v3097_v2 = vadd.f32 %v6574_v20, %v3056_v63  ;;  %v3100_v21 = vadd.f32 %v3094_v58, %v8529_v41  ;;  %3470 = vmatpush1.bf16.msra.mxu1 %v7406_v43  ;;  %6947 = vmatprep.subr.bf16.mxu0 %v7884_v1 }
0x17d4   :  { %3471 = vmatprep.subr.bf16.mxu1 %v7412_v54  ;;  %v8622_v54 = vld [vmem:[%s9058_s1] ss:$0 sm:$0xff] }
0x17d5   :  { %3102 = vadd.xlane.f32.xlu1 %v3100_v21  ;;  %v3101_v25 = vadd.f32 %v3097_v2, %v8532_v45 }
0x17d6   :  { %6948 = vmatpush3.bf16.msra.mxu0 %v7413_v12 }
0x17d7   :  { %3104 = vadd.xlane.f32.xlu0 %v3101_v25  ;;  %3472 = vmatpush1.bf16.msra.mxu1 %v7410_v8 }
0x17d8   :  { %6953 = vmatprep.subr.bf16.mxu1 %v7884_v1  ;;  %6977 = vmatprep.subr.bf16.mxu0 %v7884_v1 }
0x1862   :  { %v3103_v27 = vpop.xlane.xlu1 %3102 }
0x1863   :  { %v3106_v22 = vrot.slane %v3103_v27, 4 }
0x1864   :  { %v3105_v24 = vpop.xlane.xlu0 %3104 }
0x1865   :  { %v3107_v46 = vadd.f32 %v3106_v22, %v3103_v27  ;;  %v3112_v28 = vrot.slane %v3105_v24, 4 }
0x1867   :  { %v3108_v29 = vrot.slane %v3107_v46, 2  ;;  %v3113_v32 = vadd.f32 %v3112_v28, %v3105_v24 }
0x1869   :  { %v3109_v33 = vadd.f32 %v3108_v29, %v3107_v46  ;;  %v3114_v35 = vrot.slane %v3113_v32, 2 }
0x186b   :  { %v3110_v36 = vrot.slane %v3109_v33, 1  ;;  %v3115_v37 = vadd.f32 %v3114_v35, %v3113_v32 }
0x186d   :  { %v3111_v38 = vadd.f32 %v3110_v36, %v3109_v33  ;;  %v3116_v40 = vrot.slane %v3115_v37, 1 }
0x186f   :  { %v3117_v44 = vadd.f32 %v3116_v40, %v3115_v37  ;;  %v3118_v51 = vmul.f32 0.0009765625, %v3111_v38 }
0x1871   :  { %v8554_v41 = vsub.f32 %v3100_v21, %v3118_v51  ;;  %v3119_v52 = vmul.f32 0.0009765625, %v3117_v44 }
0x1873   :  { %v3122_v45 = vmul.f32 %v8554_v41, %v8554_v41  ;;  %v8558_v55 = vsub.f32 %v3101_v25, %v3119_v52 }
0x1875   :  { %3124 = vadd.xlane.f32.xlu1 %v3122_v45  ;;  %v3123_v59 = vmul.f32 %v8558_v55, %v8558_v55 }
0x1877   :  { %3126 = vadd.xlane.f32.xlu0 %v3123_v59 }
0x1902   :  { %v3125_v13 = vpop.xlane.xlu1 %3124 }
0x1903   :  { %v3128_v17 = vrot.slane %v3125_v13, 4 }
0x1904   :  { %v3127_v18 = vpop.xlane.xlu0 %3126 }
0x1905   :  { %v3129_v19 = vadd.f32 %v3128_v17, %v3125_v13  ;;  %v3134_v56 = vrot.slane %v3127_v18, 4 }
0x1907   :  { %v3130_v20 = vrot.slane %v3129_v19, 2  ;;  %v3135_v58 = vadd.f32 %v3134_v56, %v3127_v18  ;;  %v8629_v56 = vld [vmem:[%s9058_s1 + $0x1] ss:$0 sm:$0xff] }
0x1909   :  { %v3131_v63 = vadd.f32 %v3130_v20, %v3129_v19  ;;  %v3136_v2 = vrot.slane %v3135_v58, 2 }
0x190b   :  { %v3132_v21 = vrot.slane %v3131_v63, 1  ;;  %v3137_v25 = vadd.f32 %v3136_v2, %v3135_v58 }
0x190d   :  { %v3133_v27 = vadd.f32 %v3132_v21, %v3131_v63  ;;  %v3138_v22 = vrot.slane %v3137_v25, 1 }
0x190f   :  { %v3140_v24 = vmul.f32 0.0009765625, %v3133_v27  ;;  %v3139_v46 = vadd.f32 %v3138_v22, %v3137_v25 }
0x1911   :  { %v3142_v28 = vadd.f32 1e-06, %v3140_v24  ;;  %v3141_v29 = vmul.f32 0.0009765625, %v3139_v46 }
0x1913   :  { %7570 = vrsqrt.f32 %v3142_v28  ;;  %v3143_v32 = vadd.f32 1e-06, %v3141_v29 }
0x1915   :  { %7572 = vrsqrt.f32 %v3143_v32 }
0x191d   :  { %v7571_v33 = vpop.eup %7570 }
0x191e   :  { %v3146_v35 = vmul.f32 %v7571_v33, %v8554_v41  ;;  %v3186_v41 = vld [vmem:[#allocation7 + $0x3] sm:$0x7] }
0x191f   :  { %v7573_v36 = vpop.eup %7572  ;;  %v3325_v59 = vrot.slane %v3186_v41, %v8126_v50  ;;  %v3317_v49 = vrot.slane %v3186_v41, %v8100_v34 }
0x1920   :  { %v3147_v37 = vmul.f32 %v7573_v36, %v8558_v55  ;;  %v3148_v38 = vmul.f32 %v3146_v35, %v8521_v5 }
0x1922   :  { %v3149_v40 = vmul.f32 %v3147_v37, %v8521_v5  ;;  %v8576_v44 = vadd.f32 %v3148_v38, %v8525_v7  ;;  %v3321_v5 = vrot.slane %v3186_v41, %v8096_v31 }
0x1924   :  { %v8579_v51 = vadd.f32 %v3149_v40, %v8525_v7 }
0x1926   :  { %v3312_v52 = vpack.c.bf16 %v8579_v51, %v8576_v44 }
0x1928   :  { %3490 = vmatmul.mubr.bf16.vlgmr.msra.gmra.mrb[84].mxu1 %v3312_v52  ;;  %6950 = vmatmul.mubr.bf16.vlgmr.msra.gmra.mrb[72].mxu0 %v3312_v52 }
0x1929   :  { %6955 = vmatprep.mubr.msk.bf16.mxu1 %vm7885_vm0, %v7884_v1  ;;  %6979 = vmatprep.mubr.msk.bf16.mxu0 %vm7885_vm0, %v7884_v1 }
0x19fb   :  { %v3491_v45 = vpop.f32.mrb[84].mxu1  ;;  %v3534_v55 = vpop.f32.mrb[72].mxu0 }
0x19fc   :  { %v3493_v7 = vpop.f32.mrb[85].mxu1  ;;  %v6951_v60 = vpop.f32.mrb[73].mxu0  ;;  %v3492_v26 = vadd.f32 %v3491_v45, %v3317_v49  ;;  %v3535_v57 = vadd.f32 %v3534_v55, %v3325_v59 }
0x19fd   :  { %v3494_v3 = vadd.f32 %v3493_v7, %v3321_v5  ;;  %v3495_v4 = vpop.f32.mrb[86].mxu1  ;;  %v3537_v6 = vpop.f32.mrb[74].mxu0 }
0x19fe   :  { %v8589_v9 = vadd.f32 %v3537_v6, %v3325_v59  ;;  %v3497_v61 = vpop.f32.mrb[87].mxu1  ;;  %v6952_v10 = vpop.f32.mrb[75].mxu0  ;;  %v8599_v16 = vpack.c.bf16 %v3492_v26, %v3492_v26  ;;  %v3496_v42 = vadd.f32 %v3495_v4, %v3317_v49  ;;  %v8608_v47 = vpack.c.bf16 %v3535_v57, %v3535_v57 }
0x19ff   :  { %v8592_v11 = vpack.c.bf16 %v3494_v3, %v3494_v3  ;;  %v3498_v14 = vadd.f32 %v3497_v61, %v3321_v5 }
0x1a00   :  { %v8610_v48 = vpack.c.bf16 %v3496_v42, %v3496_v42  ;;  %v3679_v43 = vsel %vm686_vm2, %v8608_v47, 0  ;;  %v8647_v41 = vpack.c.bf16 %v8589_v9, %v8589_v9 }
0x1a01   :  { %v3563_v62 = vsel %vm565_vm1, %v8592_v11, 0  ;;  %v8597_v15 = vpack.c.bf16 %v3498_v14, %v3498_v14 }
0x1a02   :  { %6954 = vmatpush3.bf16.xpose.msra.mxu1 %v3563_v62  ;;  %v3725_v59 = vsel %vm686_vm2, %v8647_v41, 0 }
0x1a03   :  { %6959 = vmatprep.subr.bf16.mxu1 %v7884_v1  ;;  %v3609_v39 = vsel %vm565_vm1, %v8597_v15, 0 }
0x1a09   :  { %6956 = vmatmul.mubr.msk.bf16.vlgmr.msra.gmra.mrb[88].mxu1 %vm565_vm1, %v8599_v16 }
0x1a0a   :  { %6960 = vmatpush3.bf16.xpose.msra.mxu1 %v3609_v39  ;;  %6961 = vmatprep.mubr.msk.bf16.mxu1 %vm7885_vm0, %v7884_v1 }
0x1a0b   :  { %6965 = vmatprep.subr.bf16.mxu1 %v7884_v1 }
0x1a11   :  { %6962 = vmatmul.mubr.msk.bf16.vlgmr.msra.gmra.mrb[92].mxu1 %vm565_vm1, %v8610_v48 }
0x1a12   :  { %6966 = vmatpush3.bf16.msra.mxu1 %v3679_v43  ;;  %6967 = vmatprep.mubr.msk.bf16.mxu1 %vm7885_vm0, %v7884_v1 }
0x1a13   :  { %6971 = vmatprep.subr.bf16.mxu1 %v7884_v1 }
0x1adc   :  { %v3599_v53 = vpop.f32.mrb[88].mxu1 }
0x1add   :  { %v3600_v8 = vadd.f32 %v8622_v54, %v3599_v53  ;;  %v6957_v12 = vpop.f32.mrb[89].mxu1 }
0x1ade   :  { %v3602_v13 = vpop.f32.mrb[90].mxu1 }
0x1adf   :  { %v6958_v17 = vpop.f32.mrb[91].mxu1  ;;  %v3651_v18 = vsel %vm658_vm3, %v3600_v8, -inf }
0x1ae0   :  { %3652 = vmax.xlane.f32.xlu1 %v3651_v18 }
0x1ae4   :  { %v3645_v19 = vpop.f32.mrb[92].mxu1 }
0x1ae5   :  { %v3646_v20 = vadd.f32 %v8629_v56, %v3645_v19  ;;  %v6963_v58 = vpop.f32.mrb[93].mxu1 }
0x1ae6   :  { %v3648_v63 = vpop.f32.mrb[94].mxu1 }
0x1ae7   :  { %v6964_v2 = vpop.f32.mrb[95].mxu1  ;;  %v3654_v21 = vsel %vm658_vm3, %v3646_v20, -inf }
0x1ae8   :  { %3655 = vmax.xlane.f32.xlu0 %v3654_v21 }
0x1b6d   :  { %v3653_v25 = vpop.xlane.xlu1 %3652 }
0x1b6e   :  { %v3657_v27 = vsub.f32 %v3600_v8, %v3653_v25 }
0x1b70   :  { %v3659_v22 = vmul.f32 1.442695, %v3657_v27 }
0x1b72   :  { %7574 = vpow2.f32 %v3659_v22 }
0x1b75   :  { %v3656_v24 = vpop.xlane.xlu0 %3655 }
0x1b76   :  { %v3658_v46 = vsub.f32 %v3646_v20, %v3656_v24 }
0x1b78   :  { %v3661_v28 = vmul.f32 1.442695, %v3658_v46 }
0x1b7a   :  { %7576 = vpow2.f32 %v3661_v28 }
0x1b7c   :  { %v7575_v29 = vpop.eup %7574 }
0x1b7d   :  { %v3663_v32 = vsel %vm658_vm3, %v7575_v29, 0.0 }
0x1b7e   :  { %3664 = vadd.xlane.f32.xlu1 %v3663_v32 }
0x1b84   :  { %v7577_v33 = vpop.eup %7576 }
0x1b85   :  { %v3666_v35 = vsel %vm658_vm3, %v7577_v33, 0.0 }
0x1b86   :  { %3667 = vadd.xlane.f32.xlu0 %v3666_v35 }
0x1b8f   :  { %3769 = vrot.lane.b32.xlu1 %v8592_v11, %s7886_s24 }
0x1b93   :  { %3767 = vrot.lane.b32.xlu1 %v8599_v16, %s7886_s24 }
0x1b97   :  { %3817 = vrot.lane.b32.xlu1 %v8610_v48, %s7886_s24 }
0x1b9c   :  { %3819 = vrot.lane.b32.xlu0 %v8597_v15, %s7886_s24 }
0x1c0b   :  { %v3665_v36 = vpop.xlane.xlu1 %3664 }
0x1c0c   :  { %7578 = vrcp.f32 %v3665_v36 }
0x1c0f   :  { %v3770_v37 = vpop.permute.xlu1 %3769 }
0x1c10   :  { %v3775_v38 = vsel %vm565_vm1, %v3770_v37, 0 }
0x1c11   :  { %6978 = vmatpush3.bf16.xpose.msra.mxu0 %v3775_v38 }
0x1c12   :  { %6989 = vmatprep.subr.bf16.mxu0 %v7884_v1 }
0x1c13   :  { %v3668_v40 = vpop.xlane.xlu0 %3667  ;;  %v3768_v45 = vpop.permute.xlu1 %3767 }
0x1c14   :  { %7580 = vrcp.f32 %v3668_v40 }
0x1c16   :  { %v7579_v52 = vpop.eup %7578 }
0x1c17   :  { %v3670_v5 = vmul.f32 %v7579_v52, %v7575_v29  ;;  %v3820_v3 = vpop.permute.xlu0 %3819  ;;  %v3818_v9 = vpop.permute.xlu1 %3817 }
0x1c18   :  { %6980 = vmatmul.mubr.msk.bf16.vlgmr.msra.gmra.mrb[76].mxu0 %vm565_vm1, %v3768_v45  ;;  %v3825_v6 = vsel %vm565_vm1, %v3820_v3, 0 }
0x1c19   :  { %v3673_v55 = vpack.c.bf16 %v3670_v5, %v3670_v5  ;;  %6991 = vmatprep.mubr.msk.bf16.mxu0 %vm7885_vm0, %v7884_v1 }
0x1c1b   :  { %6968 = vmatmul.mubr.msk.bf16.vlgmr.msra.gmra.mrb[96].mxu1 %vm658_vm3, %v3673_v55 }
0x1c1c   :  { %6972 = vmatpush3.bf16.msra.mxu1 %v3725_v59  ;;  %6973 = vmatprep.mubr.msk.bf16.mxu1 %vm7885_vm0, %v7884_v1 }
0x1c1d   :  { %6983 = vmatprep.subr.bf16.mxu1 %v7884_v1 }
0x1c1e   :  { %v7581_v7 = vpop.eup %7580 }
0x1c1f   :  { %v3672_v60 = vmul.f32 %v7581_v7, %v7577_v33 }
0x1c21   :  { %v3674_v4 = vpack.c.bf16 %v3672_v60, %v3672_v60 }
0x1c23   :  { %6974 = vmatmul.mubr.msk.bf16.vlgmr.msra.gmra.mrb[100].mxu1 %vm658_vm3, %v3674_v4 }
0x1c24   :  { %6985 = vmatprep.mubr.msk.bf16.mxu1 %vm7885_vm0, %v7884_v1 }
0x1c25   :  { %6984 = vmatpush3.bf16.xpose.msra.mxu1 %v3825_v6 }
0x1c26   :  { %6995 = vmatprep.subr.bf16.mxu1 %v7884_v1 }
0x1c2c   :  { %6986 = vmatmul.mubr.msk.bf16.vlgmr.msra.gmra.mrb[104].mxu1 %vm565_vm1, %v3818_v9 }
0x1c2d   :  { %6997 = vmatprep.mubr.msk.bf16.mxu1 %vm7885_vm0, %v7884_v1 }
0x1ceb   :  { %v3811_v61 = vpop.f32.mrb[76].mxu0 }
0x1cec   :  { %v3812_v10 = vadd.f32 %v8622_v54, %v3811_v61  ;;  %v6981_v49 = vpop.f32.mrb[77].mxu0 }
0x1ced   :  { %v3814_v14 = vpop.f32.mrb[78].mxu0 }
0x1cee   :  { %v8667_v62 = vpop.f32.mrb[96].mxu1  ;;  %v6982_v26 = vpop.f32.mrb[79].mxu0  ;;  %v3867_v57 = vsel %vm658_vm3, %v3812_v10, -inf }
0x1cef   :  { %3868 = vmax.xlane.f32.xlu1 %v3867_v57  ;;  %v6969_v39 = vpop.f32.mrb[97].mxu1 }
0x1cf0   :  { %v3718_v42 = vpop.f32.mrb[98].mxu1 }
0x1cf1   :  { %v6970_v43 = vpop.f32.mrb[99].mxu1 }
0x1cf6   :  { %v8670_v53 = vpop.f32.mrb[100].mxu1 }
0x1cf7   :  { %v6975_v8 = vpop.f32.mrb[101].mxu1 }
0x1cf8   :  { %v3764_v12 = vpop.f32.mrb[102].mxu1 }
0x1cf9   :  { %v6976_v13 = vpop.f32.mrb[103].mxu1 }
0x1cff   :  { %v3861_v17 = vpop.f32.mrb[104].mxu1 }
0x1d00   :  { %v3862_v18 = vadd.f32 %v8629_v56, %v3861_v17  ;;  %v6987_v19 = vpop.f32.mrb[105].mxu1  ;;  %3891 = vrot.lane.b32.xlu1 %v8608_v47, %s7886_s24 }
0x1d01   :  { %v3864_v20 = vpop.f32.mrb[106].mxu1 }
0x1d02   :  { %v6988_v58 = vpop.f32.mrb[107].mxu1  ;;  %v3870_v63 = vsel %vm658_vm3, %v3862_v18, -inf }
0x1d03   :  { %3871 = vmax.xlane.f32.xlu0 %v3870_v63 }
0x1d04   :  { %3989 = vrot.lane.b32.xlu1 %v8592_v11, %s7887_s4 }
0x1d08   :  { %4039 = vrot.lane.b32.xlu1 %v8597_v15, %s7887_s4 }
0x1d0c   :  { %3987 = vrot.lane.b32.xlu1 %v8599_v16, %s7887_s4 }
0x1d7c   :  { %v3869_v2 = vpop.xlane.xlu1 %3868 }
0x1d7d   :  { %v3873_v21 = vsub.f32 %v3812_v10, %v3869_v2 }
0x1d7f   :  { %v3875_v25 = vmul.f32 1.442695, %v3873_v21 }
0x1d80   :  { %v3892_v27 = vpop.permute.xlu1 %3891 }
0x1d81   :  { %7582 = vpow2.f32 %v3875_v25  ;;  %v3897_v22 = vsel %vm686_vm2, %v3892_v27, 0 }
0x1d82   :  { %6990 = vmatpush3.bf16.msra.mxu0 %v3897_v22 }
0x1d83   :  { %7001 = vmatprep.subr.bf16.mxu0 %v7884_v1 }
0x1d84   :  { %v3990_v38 = vpop.permute.xlu1 %3989 }
0x1d85   :  { %v3995_v5 = vsel %vm565_vm1, %v3990_v38, 0 }
0x1d88   :  { %v4040_v45 = vpop.permute.xlu1 %4039 }
0x1d89   :  { %v4045_v9 = vsel %vm565_vm1, %v4040_v45, 0 }
0x1d8b   :  { %v7583_v24 = vpop.eup %7582 }
0x1d8c   :  { %v3879_v46 = vsel %vm658_vm3, %v7583_v24, 0.0  ;;  %v3988_v59 = vpop.permute.xlu1 %3987 }
0x1d8d   :  { %3880 = vadd.xlane.f32.xlu0 %v3879_v46 }
0x1d90   :  { %v3872_v28 = vpop.xlane.xlu0 %3871 }
0x1d91   :  { %v3874_v29 = vsub.f32 %v3862_v18, %v3872_v28 }
0x1d93   :  { %v3877_v32 = vmul.f32 1.442695, %v3874_v29 }
0x1d95   :  { %7584 = vpow2.f32 %v3877_v32 }
0x1d9f   :  { %v7585_v33 = vpop.eup %7584 }
0x1da0   :  { %v3882_v35 = vsel %vm658_vm3, %v7585_v33, 0.0 }
0x1da1   :  { %3883 = vadd.xlane.f32.xlu0 %v3882_v35 }
0x1db7   :  { %3939 = vrot.lane.b32.xlu0 %v8647_v41, %s7886_s24 }
0x1dbb   :  { %4037 = vrot.lane.b32.xlu0 %v8610_v48, %s7887_s4 }
0x1e1a   :  { %v3881_v36 = vpop.xlane.xlu0 %3880 }
0x1e1b   :  { %7586 = vrcp.f32 %v3881_v36 }
0x1e25   :  { %v7587_v37 = vpop.eup %7586 }
0x1e26   :  { %v3886_v40 = vmul.f32 %v7587_v37, %v7583_v24 }
0x1e28   :  { %v3889_v52 = vpack.c.bf16 %v3886_v40, %v3886_v40 }
0x1e2a   :  { %6992 = vmatmul.mubr.msk.bf16.vlgmr.msra.gmra.mrb[80].mxu0 %vm658_vm3, %v3889_v52 }
0x1e2b   :  { %7002 = vmatpush3.bf16.xpose.msra.mxu0 %v3995_v5  ;;  %7003 = vmatprep.mubr.msk.bf16.mxu0 %vm7885_vm0, %v7884_v1 }
0x1e2c   :  { %7013 = vmatprep.subr.bf16.mxu0 %v7884_v1 }
0x1e2e   :  { %v3884_v55 = vpop.xlane.xlu0 %3883 }
0x1e2f   :  { %7588 = vrcp.f32 %v3884_v55 }
0x1e32   :  { %v3940_v7 = vpop.permute.xlu0 %3939  ;;  %7004 = vmatmul.mubr.msk.bf16.vlgmr.msra.gmra.mrb[84].mxu0 %vm565_vm1, %v3988_v59 }
0x1e33   :  { %v3945_v60 = vsel %vm686_vm2, %v3940_v7, 0  ;;  %7015 = vmatprep.mubr.msk.bf16.mxu0 %vm7885_vm0, %v7884_v1 }
0x1e34   :  { %6996 = vmatpush3.bf16.msra.mxu1 %v3945_v60 }
0x1e35   :  { %7007 = vmatprep.subr.bf16.mxu1 %v7884_v1 }
0x1e36   :  { %v4038_v61 = vpop.permute.xlu0 %4037 }
0x1e39   :  { %v7589_v3 = vpop.eup %7588 }
0x1e3a   :  { %v3888_v4 = vmul.f32 %v7589_v3, %v7585_v33 }
0x1e3c   :  { %v3890_v6 = vpack.c.bf16 %v3888_v4, %v3888_v4 }
0x1e3e   :  { %6998 = vmatmul.mubr.msk.bf16.vlgmr.msra.gmra.mrb[108].mxu1 %vm658_vm3, %v3890_v6 }
0x1e3f   :  { %7008 = vmatpush3.bf16.xpose.msra.mxu1 %v4045_v9  ;;  %7009 = vmatprep.mubr.msk.bf16.mxu1 %vm7885_vm0, %v7884_v1 }
0x1e40   :  { %7019 = vmatprep.subr.bf16.mxu1 %v7884_v1 }
0x1e46   :  { %7010 = vmatmul.mubr.msk.bf16.vlgmr.msra.gmra.mrb[112].mxu1 %vm565_vm1, %v4038_v61 }
0x1e47   :  { %7021 = vmatprep.mubr.msk.bf16.mxu1 %vm7885_vm0, %v7884_v1 }
0x1efd   :  { %v8708_v10 = vpop.f32.mrb[80].mxu0 }
0x1efe   :  { %v6993_v49 = vpop.f32.mrb[81].mxu0 }
0x1eff   :  { %v3936_v14 = vpop.f32.mrb[82].mxu0 }
0x1f00   :  { %v6994_v26 = vpop.f32.mrb[83].mxu0 }
0x1f05   :  { %v4031_v57 = vpop.f32.mrb[84].mxu0 }
0x1f06   :  { %v4032_v39 = vadd.f32 %v8622_v54, %v4031_v57  ;;  %v7005_v42 = vpop.f32.mrb[85].mxu0 }
0x1f07   :  { %v4034_v43 = vpop.f32.mrb[86].mxu0 }
0x1f08   :  { %v7006_v8 = vpop.f32.mrb[87].mxu0  ;;  %v4087_v12 = vsel %vm658_vm3, %v4032_v39, -inf }
0x1f09   :  { %4088 = vmax.xlane.f32.xlu1 %v4087_v12 }
0x1f11   :  { %v8712_v13 = vpop.f32.mrb[108].mxu1 }
0x1f12   :  { %v7227_v17 = vpack.i.bf16 %v8712_v13, %v8708_v10  ;;  %v6999_v18 = vpop.f32.mrb[109].mxu1 }
0x1f13   :  { %v3984_v19 = vpop.f32.mrb[110].mxu1 }
0x1f14   :  { %v7000_v20 = vpop.f32.mrb[111].mxu1 }
0x1f19   :  { %v4081_v58 = vpop.f32.mrb[112].mxu1 }
0x1f1a   :  { %v4082_v63 = vadd.f32 %v8629_v56, %v4081_v58  ;;  %v7011_v2 = vpop.f32.mrb[113].mxu1  ;;  %4111 = vrot.lane.b32.xlu1 %v8608_v47, %s7887_s4 }
0x1f1b   :  { %v4084_v21 = vpop.f32.mrb[114].mxu1 }
0x1f1c   :  { %v7012_v25 = vpop.f32.mrb[115].mxu1  ;;  %v4090_v27 = vsel %vm658_vm3, %v4082_v63, -inf }
0x1f1d   :  { %4091 = vmax.xlane.f32.xlu0 %v4090_v27 }
0x1f1e   :  { %4209 = vrot.lane.b32.xlu1 %v8592_v11, %s7888_s26 }
0x1f22   :  { %4259 = vrot.lane.b32.xlu1 %v8597_v15, %s7888_s26 }
0x1f26   :  { %4207 = vrot.lane.b32.xlu1 %v8599_v16, %s7888_s26 }
0x1f96   :  { %v4089_v22 = vpop.xlane.xlu1 %4088 }
0x1f97   :  { %v4093_v24 = vsub.f32 %v4032_v39, %v4089_v22 }
0x1f99   :  { %v4095_v46 = vmul.f32 1.442695, %v4093_v24 }
0x1f9a   :  { %v4112_v28 = vpop.permute.xlu1 %4111 }
0x1f9b   :  { %7590 = vpow2.f32 %v4095_v46  ;;  %v4117_v29 = vsel %vm686_vm2, %v4112_v28, 0 }
0x1f9c   :  { %7014 = vmatpush3.bf16.msra.mxu0 %v4117_v29 }
0x1f9d   :  { %7025 = vmatprep.subr.bf16.mxu0 %v7884_v1 }
0x1f9e   :  { %v4210_v45 = vpop.permute.xlu1 %4209 }
0x1f9f   :  { %v4215_v7 = vsel %vm565_vm1, %v4210_v45, 0 }
0x1fa2   :  { %v4260_v60 = vpop.permute.xlu1 %4259 }
0x1fa3   :  { %v4265_v26 = vsel %vm565_vm1, %v4260_v60, 0 }
0x1fa5   :  { %v7591_v32 = vpop.eup %7590 }
0x1fa6   :  { %v4099_v33 = vsel %vm658_vm3, %v7591_v32, 0.0  ;;  %v4208_v4 = vpop.permute.xlu1 %4207 }
0x1fa7   :  { %4100 = vadd.xlane.f32.xlu0 %v4099_v33 }
0x1faa   :  { %v4092_v35 = vpop.xlane.xlu0 %4091 }
0x1fab   :  { %v4094_v36 = vsub.f32 %v4082_v63, %v4092_v35 }
0x1fad   :  { %v4097_v37 = vmul.f32 1.442695, %v4094_v36 }
0x1faf   :  { %7592 = vpow2.f32 %v4097_v37 }
0x1fb9   :  { %v7593_v38 = vpop.eup %7592 }
0x1fba   :  { %v4102_v40 = vsel %vm658_vm3, %v7593_v38, 0.0 }
0x1fbb   :  { %4103 = vadd.xlane.f32.xlu0 %v4102_v40 }
0x1fd1   :  { %4159 = vrot.lane.b32.xlu0 %v8647_v41, %s7887_s4 }
0x1fd5   :  { %4257 = vrot.lane.b32.xlu0 %v8610_v48, %s7888_s26 }
0x2034   :  { %v4101_v52 = vpop.xlane.xlu0 %4100 }
0x2035   :  { %7594 = vrcp.f32 %v4101_v52 }
0x203f   :  { %v7595_v5 = vpop.eup %7594 }
0x2040   :  { %v4106_v55 = vmul.f32 %v7595_v5, %v7591_v32 }
0x2042   :  { %v4109_v59 = vpack.c.bf16 %v4106_v55, %v4106_v55 }
0x2044   :  { %7016 = vmatmul.mubr.msk.bf16.vlgmr.msra.gmra.mrb[88].mxu0 %vm658_vm3, %v4109_v59 }
0x2045   :  { %7026 = vmatpush3.bf16.xpose.msra.mxu0 %v4215_v7  ;;  %7027 = vmatprep.mubr.msk.bf16.mxu0 %vm7885_vm0, %v7884_v1 }
0x2046   :  { %7037 = vmatprep.subr.bf16.mxu0 %v7884_v1 }
0x2048   :  { %v4104_v3 = vpop.xlane.xlu0 %4103 }
0x2049   :  { %7596 = vrcp.f32 %v4104_v3 }
0x204c   :  { %v4160_v6 = vpop.permute.xlu0 %4159  ;;  %7028 = vmatmul.mubr.msk.bf16.vlgmr.msra.gmra.mrb[92].mxu0 %vm565_vm1, %v4208_v4 }
0x204d   :  { %v4165_v9 = vsel %vm686_vm2, %v4160_v6, 0  ;;  %7039 = vmatprep.mubr.msk.bf16.mxu0 %vm7885_vm0, %v7884_v1 }
0x204e   :  { %7020 = vmatpush3.bf16.msra.mxu1 %v4165_v9 }
0x204f   :  { %7031 = vmatprep.subr.bf16.mxu1 %v7884_v1 }
0x2050   :  { %v4258_v57 = vpop.permute.xlu0 %4257 }
0x2053   :  { %v7597_v61 = vpop.eup %7596 }
0x2054   :  { %v4108_v49 = vmul.f32 %v7597_v61, %v7593_v38 }
0x2056   :  { %v4110_v14 = vpack.c.bf16 %v4108_v49, %v4108_v49 }
0x2058   :  { %7022 = vmatmul.mubr.msk.bf16.vlgmr.msra.gmra.mrb[116].mxu1 %vm658_vm3, %v4110_v14 }
0x2059   :  { %7032 = vmatpush3.bf16.xpose.msra.mxu1 %v4265_v26  ;;  %7033 = vmatprep.mubr.msk.bf16.mxu1 %vm7885_vm0, %v7884_v1 }
0x205a   :  { %7043 = vmatprep.subr.bf16.mxu1 %v7884_v1 }
0x2060   :  { %7034 = vmatmul.mubr.msk.bf16.vlgmr.msra.gmra.mrb[120].mxu1 %vm565_vm1, %v4258_v57 }
0x2061   :  { %7045 = vmatprep.mubr.msk.bf16.mxu1 %vm7885_vm0, %v7884_v1 }
0x2117   :  { %v8752_v39 = vpop.f32.mrb[88].mxu0 }
0x2118   :  { %v7017_v42 = vpop.f32.mrb[89].mxu0 }
0x2119   :  { %v4156_v43 = vpop.f32.mrb[90].mxu0 }
0x211a   :  { %v7018_v8 = vpop.f32.mrb[91].mxu0 }
0x211f   :  { %v4251_v12 = vpop.f32.mrb[92].mxu0 }
0x2120   :  { %v4252_v18 = vadd.f32 %v8622_v54, %v4251_v12  ;;  %v7029_v19 = vpop.f32.mrb[93].mxu0 }
0x2121   :  { %v4254_v20 = vpop.f32.mrb[94].mxu0 }
0x2122   :  { %v7030_v58 = vpop.f32.mrb[95].mxu0  ;;  %v4307_v63 = vsel %vm658_vm3, %v4252_v18, -inf }
0x2123   :  { %4308 = vmax.xlane.f32.xlu1 %v4307_v63 }
0x212b   :  { %v8756_v2 = vpop.f32.mrb[116].mxu1 }
0x212c   :  { %v7232_v21 = vpack.i.bf16 %v8756_v2, %v8752_v39  ;;  %v7023_v25 = vpop.f32.mrb[117].mxu1 }
0x212d   :  { %v4204_v27 = vpop.f32.mrb[118].mxu1 }
0x212e   :  { %v7024_v22 = vpop.f32.mrb[119].mxu1 }
0x2133   :  { %v4301_v24 = vpop.f32.mrb[120].mxu1 }
0x2134   :  { %v4302_v46 = vadd.f32 %v8629_v56, %v4301_v24  ;;  %v7035_v28 = vpop.f32.mrb[121].mxu1  ;;  %4331 = vrot.lane.b32.xlu1 %v8608_v47, %s7888_s26 }
0x2135   :  { %v4304_v29 = vpop.f32.mrb[122].mxu1 }
0x2136   :  { %v7036_v32 = vpop.f32.mrb[123].mxu1  ;;  %v4310_v33 = vsel %vm658_vm3, %v4302_v46, -inf }
0x2137   :  { %4311 = vmax.xlane.f32.xlu0 %v4310_v33 }
0x2138   :  { %4429 = vrot.lane.b32.xlu1 %v8592_v11, %s7868_s2 }
0x213c   :  { %4479 = vrot.lane.b32.xlu1 %v8597_v15, %s7868_s2 }
0x2140   :  { %4427 = vrot.lane.b32.xlu1 %v8599_v16, %s7868_s2 }
0x21b0   :  { %v4309_v35 = vpop.xlane.xlu1 %4308 }
0x21b1   :  { %v4313_v36 = vsub.f32 %v4252_v18, %v4309_v35 }
0x21b3   :  { %v4315_v37 = vmul.f32 1.442695, %v4313_v36 }
0x21b4   :  { %v4332_v38 = vpop.permute.xlu1 %4331 }
0x21b5   :  { %7598 = vpow2.f32 %v4315_v37  ;;  %v4337_v40 = vsel %vm686_vm2, %v4332_v38, 0 }
0x21b6   :  { %7038 = vmatpush3.bf16.msra.mxu0 %v4337_v40 }
0x21b7   :  { %7049 = vmatprep.subr.bf16.mxu0 %v7884_v1 }
0x21b8   :  { %v4430_v6 = vpop.permute.xlu1 %4429 }
0x21b9   :  { %v4435_v49 = vsel %vm565_vm1, %v4430_v6, 0 }
0x21bc   :  { %v4480_v14 = vpop.permute.xlu1 %4479 }
0x21bd   :  { %v4485_v19 = vsel %vm565_vm1, %v4480_v14, 0 }
0x21bf   :  { %v7599_v52 = vpop.eup %7598 }
0x21c0   :  { %v4319_v5 = vsel %vm658_vm3, %v7599_v52, 0.0  ;;  %v4428_v57 = vpop.permute.xlu1 %4427 }
0x21c1   :  { %4320 = vadd.xlane.f32.xlu0 %v4319_v5 }
0x21c4   :  { %v4312_v45 = vpop.xlane.xlu0 %4311 }
0x21c5   :  { %v4314_v55 = vsub.f32 %v4302_v46, %v4312_v45 }
0x21c7   :  { %v4317_v59 = vmul.f32 1.442695, %v4314_v55 }
0x21c9   :  { %7600 = vpow2.f32 %v4317_v59 }
0x21d3   :  { %v7601_v7 = vpop.eup %7600 }
0x21d4   :  { %v4322_v60 = vsel %vm658_vm3, %v7601_v7, 0.0 }
0x21d5   :  { %4323 = vadd.xlane.f32.xlu0 %v4322_v60 }
0x21eb   :  { %4379 = vrot.lane.b32.xlu0 %v8647_v41, %s7888_s26 }
0x21ef   :  { %4477 = vrot.lane.b32.xlu0 %v8610_v48, %s7868_s2 }
0x224e   :  { %v4321_v3 = vpop.xlane.xlu0 %4320 }
0x224f   :  { %7602 = vrcp.f32 %v4321_v3 }
0x2259   :  { %v7603_v4 = vpop.eup %7602 }
0x225a   :  { %v4326_v9 = vmul.f32 %v7603_v4, %v7599_v52 }
0x225c   :  { %v4329_v61 = vpack.c.bf16 %v4326_v9, %v4326_v9 }
0x225e   :  { %7040 = vmatmul.mubr.msk.bf16.vlgmr.msra.gmra.mrb[96].mxu0 %vm658_vm3, %v4329_v61 }
0x225f   :  { %7050 = vmatpush3.bf16.xpose.msra.mxu0 %v4435_v49  ;;  %7051 = vmatprep.mubr.msk.bf16.mxu0 %vm7885_vm0, %v7884_v1 }
0x2260   :  { %7061 = vmatprep.subr.bf16.mxu0 %v7884_v1 }
0x2262   :  { %v4324_v26 = vpop.xlane.xlu0 %4323 }
0x2263   :  { %7604 = vrcp.f32 %v4324_v26 }
0x2266   :  { %v4380_v42 = vpop.permute.xlu0 %4379  ;;  %7052 = vmatmul.mubr.msk.bf16.vlgmr.msra.gmra.mrb[100].mxu0 %vm565_vm1, %v4428_v57 }
0x2267   :  { %v4385_v43 = vsel %vm686_vm2, %v4380_v42, 0  ;;  %7063 = vmatprep.mubr.msk.bf16.mxu0 %vm7885_vm0, %v7884_v1 }
0x2268   :  { %7044 = vmatpush3.bf16.msra.mxu1 %v4385_v43 }
0x2269   :  { %7055 = vmatprep.subr.bf16.mxu1 %v7884_v1 }
0x226a   :  { %v4478_v20 = vpop.permute.xlu0 %4477 }
0x226d   :  { %v7605_v8 = vpop.eup %7604 }
0x226e   :  { %v4328_v12 = vmul.f32 %v7605_v8, %v7601_v7 }
0x2270   :  { %v4330_v18 = vpack.c.bf16 %v4328_v12, %v4328_v12 }
0x2272   :  { %7046 = vmatmul.mubr.msk.bf16.vlgmr.msra.gmra.mrb[124].mxu1 %vm658_vm3, %v4330_v18 }
0x2273   :  { %7056 = vmatpush3.bf16.xpose.msra.mxu1 %v4485_v19  ;;  %7057 = vmatprep.mubr.msk.bf16.mxu1 %vm7885_vm0, %v7884_v1 }
0x2274   :  { %7067 = vmatprep.subr.bf16.mxu1 %v7884_v1 }
0x227a   :  { %7058 = vmatmul.mubr.msk.bf16.vlgmr.msra.gmra.mrb[128].mxu1 %vm565_vm1, %v4478_v20 }
0x227b   :  { %7069 = vmatprep.mubr.msk.bf16.mxu1 %vm7885_vm0, %v7884_v1 }
0x2331   :  { %v8796_v58 = vpop.f32.mrb[96].mxu0 }
0x2332   :  { %v7041_v63 = vpop.f32.mrb[97].mxu0 }
0x2333   :  { %v4376_v25 = vpop.f32.mrb[98].mxu0 }
0x2334   :  { %v7042_v27 = vpop.f32.mrb[99].mxu0 }
0x2339   :  { %v4471_v22 = vpop.f32.mrb[100].mxu0 }
0x233a   :  { %v4472_v24 = vadd.f32 %v8622_v54, %v4471_v22  ;;  %v7053_v46 = vpop.f32.mrb[101].mxu0 }
0x233b   :  { %v4474_v28 = vpop.f32.mrb[102].mxu0 }
0x233c   :  { %v7054_v29 = vpop.f32.mrb[103].mxu0  ;;  %v4527_v32 = vsel %vm658_vm3, %v4472_v24, -inf }
0x233d   :  { %4528 = vmax.xlane.f32.xlu1 %v4527_v32 }
0x2345   :  { %v8800_v33 = vpop.f32.mrb[124].mxu1 }
0x2346   :  { %v7237_v35 = vpack.i.bf16 %v8800_v33, %v8796_v58  ;;  %v7047_v36 = vpop.f32.mrb[125].mxu1 }
0x2347   :  { %v4424_v37 = vpop.f32.mrb[126].mxu1 }
0x2348   :  { %v7048_v38 = vpop.f32.mrb[127].mxu1 }
0x234d   :  { %v4521_v40 = vpop.f32.mrb[128].mxu1 }
0x234e   :  { %v4522_v52 = vadd.f32 %v8629_v56, %v4521_v40  ;;  %v7059_v5 = vpop.f32.mrb[129].mxu1  ;;  %4551 = vrot.lane.b32.xlu1 %v8608_v47, %s7868_s2 }
0x234f   :  { %v4524_v45 = vpop.f32.mrb[130].mxu1 }
0x2350   :  { %v7060_v55 = vpop.f32.mrb[131].mxu1  ;;  %v4530_v59 = vsel %vm658_vm3, %v4522_v52, -inf }
0x2351   :  { %4531 = vmax.xlane.f32.xlu0 %v4530_v59 }
0x2352   :  { %4649 = vrot.lane.b32.xlu1 %v8592_v11, %s7875_s0 }
0x2356   :  { %4699 = vrot.lane.b32.xlu1 %v8597_v15, %s7875_s0 }
0x235a   :  { %4647 = vrot.lane.b32.xlu1 %v8599_v16, %s7875_s0 }
0x23ca   :  { %v4529_v7 = vpop.xlane.xlu1 %4528 }
0x23cb   :  { %v4533_v60 = vsub.f32 %v4472_v24, %v4529_v7 }
0x23cd   :  { %v4535_v3 = vmul.f32 1.442695, %v4533_v60 }
0x23ce   :  { %v4552_v4 = vpop.permute.xlu1 %4551 }
0x23cf   :  { %7606 = vpow2.f32 %v4535_v3  ;;  %v4557_v6 = vsel %vm686_vm2, %v4552_v4, 0 }
0x23d0   :  { %7062 = vmatpush3.bf16.msra.mxu0 %v4557_v6 }
0x23d1   :  { %7073 = vmatprep.subr.bf16.mxu0 %v7884_v1 }
0x23d2   :  { %v4650_v12 = vpop.permute.xlu1 %4649 }
0x23d3   :  { %v4655_v20 = vsel %vm565_vm1, %v4650_v12, 0 }
0x23d6   :  { %v4700_v63 = vpop.permute.xlu1 %4699 }
0x23d7   :  { %v4705_v32 = vsel %vm565_vm1, %v4700_v63, 0 }
0x23d9   :  { %v7607_v9 = vpop.eup %7606 }
0x23da   :  { %v4539_v61 = vsel %vm658_vm3, %v7607_v9, 0.0  ;;  %v4648_v27 = vpop.permute.xlu1 %4647 }
0x23db   :  { %4540 = vadd.xlane.f32.xlu0 %v4539_v61 }
0x23de   :  { %v4532_v49 = vpop.xlane.xlu0 %4531 }
0x23df   :  { %v4534_v14 = vsub.f32 %v4522_v52, %v4532_v49 }
0x23e1   :  { %v4537_v26 = vmul.f32 1.442695, %v4534_v14 }
0x23e3   :  { %7608 = vpow2.f32 %v4537_v26 }
0x23ed   :  { %v7609_v57 = vpop.eup %7608 }
0x23ee   :  { %v4542_v42 = vsel %vm658_vm3, %v7609_v57, 0.0 }
0x23ef   :  { %4543 = vadd.xlane.f32.xlu0 %v4542_v42 }
0x2405   :  { %4599 = vrot.lane.b32.xlu0 %v8647_v41, %s7868_s2 }
0x2409   :  { %4697 = vrot.lane.b32.xlu0 %v8610_v48, %s7875_s0 }
0x2468   :  { %v4541_v43 = vpop.xlane.xlu0 %4540 }
0x2469   :  { %7610 = vrcp.f32 %v4541_v43 }
0x2473   :  { %v7611_v8 = vpop.eup %7610 }
0x2474   :  { %v4546_v18 = vmul.f32 %v7611_v8, %v7607_v9 }
0x2476   :  { %v4549_v19 = vpack.c.bf16 %v4546_v18, %v4546_v18 }
0x2478   :  { %7064 = vmatmul.mubr.msk.bf16.vlgmr.msra.gmra.mrb[104].mxu0 %vm658_vm3, %v4549_v19 }
0x2479   :  { %7074 = vmatpush3.bf16.xpose.msra.mxu0 %v4655_v20  ;;  %7075 = vmatprep.mubr.msk.bf16.mxu0 %vm7885_vm0, %v7884_v1 }
0x247a   :  { %7085 = vmatprep.subr.bf16.mxu0 %v7884_v1 }
0x247c   :  { %v4544_v25 = vpop.xlane.xlu0 %4543 }
0x247d   :  { %7612 = vrcp.f32 %v4544_v25 }
0x2480   :  { %v4600_v22 = vpop.permute.xlu0 %4599  ;;  %7076 = vmatmul.mubr.msk.bf16.vlgmr.msra.gmra.mrb[108].mxu0 %vm565_vm1, %v4648_v27 }
0x2481   :  { %v4605_v24 = vsel %vm686_vm2, %v4600_v22, 0  ;;  %7087 = vmatprep.mubr.msk.bf16.mxu0 %vm7885_vm0, %v7884_v1 }
0x2482   :  { %7068 = vmatpush3.bf16.msra.mxu1 %v4605_v24 }
0x2483   :  { %7079 = vmatprep.subr.bf16.mxu1 %v7884_v1 }
0x2484   :  { %v4698_v36 = vpop.permute.xlu0 %4697 }
0x2487   :  { %v7613_v46 = vpop.eup %7612 }
0x2488   :  { %v4548_v28 = vmul.f32 %v7613_v46, %v7609_v57 }
0x248a   :  { %v4550_v29 = vpack.c.bf16 %v4548_v28, %v4548_v28 }
0x248c   :  { %7070 = vmatmul.mubr.msk.bf16.vlgmr.msra.gmra.mrb[132].mxu1 %vm658_vm3, %v4550_v29 }
0x248d   :  { %7080 = vmatpush3.bf16.xpose.msra.mxu1 %v4705_v32  ;;  %7081 = vmatprep.mubr.msk.bf16.mxu1 %vm7885_vm0, %v7884_v1 }
0x248e   :  { %7091 = vmatprep.subr.bf16.mxu1 %v7884_v1 }
0x2494   :  { %7082 = vmatmul.mubr.msk.bf16.vlgmr.msra.gmra.mrb[136].mxu1 %vm565_vm1, %v4698_v36 }
0x2495   :  { %7093 = vmatprep.mubr.msk.bf16.mxu1 %vm7885_vm0, %v7884_v1 }
0x254b   :  { %v8840_v37 = vpop.f32.mrb[104].mxu0 }
0x254c   :  { %v7065_v38 = vpop.f32.mrb[105].mxu0 }
0x254d   :  { %v4596_v40 = vpop.f32.mrb[106].mxu0 }
0x254e   :  { %v7066_v52 = vpop.f32.mrb[107].mxu0 }
0x2553   :  { %v4691_v5 = vpop.f32.mrb[108].mxu0 }
0x2554   :  { %v4692_v45 = vadd.f32 %v8622_v54, %v4691_v5  ;;  %v7077_v55 = vpop.f32.mrb[109].mxu0 }
0x2555   :  { %v4694_v59 = vpop.f32.mrb[110].mxu0 }
0x2556   :  { %v7078_v7 = vpop.f32.mrb[111].mxu0  ;;  %v4747_v60 = vsel %vm658_vm3, %v4692_v45, -inf }
0x2557   :  { %4748 = vmax.xlane.f32.xlu1 %v4747_v60 }
0x255f   :  { %v8844_v3 = vpop.f32.mrb[132].mxu1 }
0x2560   :  { %v7242_v4 = vpack.i.bf16 %v8844_v3, %v8840_v37  ;;  %v7071_v6 = vpop.f32.mrb[133].mxu1 }
0x2561   :  { %v4644_v9 = vpop.f32.mrb[134].mxu1 }
0x2562   :  { %v7072_v61 = vpop.f32.mrb[135].mxu1 }
0x2567   :  { %v4741_v49 = vpop.f32.mrb[136].mxu1 }
0x2568   :  { %v4742_v14 = vadd.f32 %v8629_v56, %v4741_v49  ;;  %v7083_v26 = vpop.f32.mrb[137].mxu1  ;;  %4771 = vrot.lane.b32.xlu1 %v8608_v47, %s7875_s0 }
0x2569   :  { %v4744_v57 = vpop.f32.mrb[138].mxu1 }
0x256a   :  { %v7084_v42 = vpop.f32.mrb[139].mxu1  ;;  %v4750_v43 = vsel %vm658_vm3, %v4742_v14, -inf }
0x256b   :  { %4751 = vmax.xlane.f32.xlu0 %v4750_v43 }
0x256c   :  { %4869 = vrot.lane.b32.xlu1 %v8592_v11, %s7889_s5 }
0x2570   :  { %4919 = vrot.lane.b32.xlu1 %v8597_v15, %s7889_s5 }
0x2574   :  { %4867 = vrot.lane.b32.xlu1 %v8599_v16, %s7889_s5 }
0x25e4   :  { %v4749_v8 = vpop.xlane.xlu1 %4748 }
0x25e5   :  { %v4753_v12 = vsub.f32 %v4692_v45, %v4749_v8 }
0x25e7   :  { %v4755_v18 = vmul.f32 1.442695, %v4753_v12 }
0x25e8   :  { %v4772_v19 = vpop.permute.xlu1 %4771 }
0x25e9   :  { %7614 = vpow2.f32 %v4755_v18  ;;  %v4777_v20 = vsel %vm686_vm2, %v4772_v19, 0 }
0x25ea   :  { %7086 = vmatpush3.bf16.msra.mxu0 %v4777_v20 }
0x25eb   :  { %7097 = vmatprep.subr.bf16.mxu0 %v7884_v1 }
0x25ec   :  { %v4870_v36 = vpop.permute.xlu1 %4869 }
0x25ed   :  { %v4875_v52 = vsel %vm565_vm1, %v4870_v36, 0 }
0x25f0   :  { %v4920_v5 = vpop.permute.xlu1 %4919 }
0x25f1   :  { %v4925_v61 = vsel %vm565_vm1, %v4920_v5, 0 }
0x25f3   :  { %v7615_v63 = vpop.eup %7614 }
0x25f4   :  { %v4759_v25 = vsel %vm658_vm3, %v7615_v63, 0.0  ;;  %v4868_v55 = vpop.permute.xlu1 %4867 }
0x25f5   :  { %4760 = vadd.xlane.f32.xlu0 %v4759_v25 }
0x25f8   :  { %v4752_v27 = vpop.xlane.xlu0 %4751 }
0x25f9   :  { %v4754_v22 = vsub.f32 %v4742_v14, %v4752_v27 }
0x25fb   :  { %v4757_v24 = vmul.f32 1.442695, %v4754_v22 }
0x25fd   :  { %7616 = vpow2.f32 %v4757_v24 }
0x2607   :  { %v7617_v46 = vpop.eup %7616 }
0x2608   :  { %v4762_v28 = vsel %vm658_vm3, %v7617_v46, 0.0 }
0x2609   :  { %4763 = vadd.xlane.f32.xlu0 %v4762_v28 }
0x261f   :  { %4819 = vrot.lane.b32.xlu0 %v8647_v41, %s7875_s0 }
0x2623   :  { %4917 = vrot.lane.b32.xlu0 %v8610_v48, %s7889_s5 }
0x2682   :  { %v4761_v29 = vpop.xlane.xlu0 %4760 }
0x2683   :  { %7618 = vrcp.f32 %v4761_v29 }
0x268d   :  { %v7619_v32 = vpop.eup %7618 }
0x268e   :  { %v4766_v38 = vmul.f32 %v7619_v32, %v7615_v63 }
0x2690   :  { %v4769_v40 = vpack.c.bf16 %v4766_v38, %v4766_v38 }
0x2692   :  { %7088 = vmatmul.mubr.msk.bf16.vlgmr.msra.gmra.mrb[112].mxu0 %vm658_vm3, %v4769_v40 }
0x2693   :  { %7098 = vmatpush3.bf16.xpose.msra.mxu0 %v4875_v52  ;;  %7099 = vmatprep.mubr.msk.bf16.mxu0 %vm7885_vm0, %v7884_v1 }
0x2694   :  { %7109 = vmatprep.subr.bf16.mxu0 %v7884_v1 }
0x2696   :  { %v4764_v45 = vpop.xlane.xlu0 %4763 }
0x2697   :  { %7620 = vrcp.f32 %v4764_v45 }
0x269a   :  { %v4820_v59 = vpop.permute.xlu0 %4819  ;;  %7100 = vmatmul.mubr.msk.bf16.vlgmr.msra.gmra.mrb[116].mxu0 %vm565_vm1, %v4868_v55 }
0x269b   :  { %v4825_v7 = vsel %vm686_vm2, %v4820_v59, 0  ;;  %7111 = vmatprep.mubr.msk.bf16.mxu0 %vm7885_vm0, %v7884_v1 }
0x269c   :  { %7092 = vmatpush3.bf16.msra.mxu1 %v4825_v7 }
0x269d   :  { %7103 = vmatprep.subr.bf16.mxu1 %v7884_v1 }
0x269e   :  { %v4918_v49 = vpop.permute.xlu0 %4917 }
0x26a1   :  { %v7621_v60 = vpop.eup %7620 }
0x26a2   :  { %v4768_v6 = vmul.f32 %v7621_v60, %v7617_v46 }
0x26a4   :  { %v4770_v9 = vpack.c.bf16 %v4768_v6, %v4768_v6 }
0x26a6   :  { %7094 = vmatmul.mubr.msk.bf16.vlgmr.msra.gmra.mrb[140].mxu1 %vm658_vm3, %v4770_v9 }
0x26a7   :  { %7104 = vmatpush3.bf16.xpose.msra.mxu1 %v4925_v61  ;;  %7105 = vmatprep.mubr.msk.bf16.mxu1 %vm7885_vm0, %v7884_v1 }
0x26a8   :  { %7115 = vmatprep.subr.bf16.mxu1 %v7884_v1 }
0x26ae   :  { %7106 = vmatmul.mubr.msk.bf16.vlgmr.msra.gmra.mrb[144].mxu1 %vm565_vm1, %v4918_v49 }
0x26af   :  { %7117 = vmatprep.mubr.msk.bf16.mxu1 %vm7885_vm0, %v7884_v1 }
0x2765   :  { %v8884_v14 = vpop.f32.mrb[112].mxu0 }
0x2766   :  { %v7089_v26 = vpop.f32.mrb[113].mxu0 }
0x2767   :  { %v4816_v57 = vpop.f32.mrb[114].mxu0 }
0x2768   :  { %v7090_v42 = vpop.f32.mrb[115].mxu0 }
0x276d   :  { %v4911_v43 = vpop.f32.mrb[116].mxu0 }
0x276e   :  { %v4912_v8 = vadd.f32 %v8622_v54, %v4911_v43  ;;  %v7101_v12 = vpop.f32.mrb[117].mxu0 }
0x276f   :  { %v4914_v18 = vpop.f32.mrb[118].mxu0 }
0x2770   :  { %v7102_v19 = vpop.f32.mrb[119].mxu0  ;;  %v4967_v20 = vsel %vm658_vm3, %v4912_v8, -inf }
0x2771   :  { %4968 = vmax.xlane.f32.xlu1 %v4967_v20 }
0x2779   :  { %v8888_v63 = vpop.f32.mrb[140].mxu1 }
0x277a   :  { %v7247_v25 = vpack.i.bf16 %v8888_v63, %v8884_v14  ;;  %v7095_v27 = vpop.f32.mrb[141].mxu1 }
0x277b   :  { %v4864_v22 = vpop.f32.mrb[142].mxu1 }
0x277c   :  { %v7096_v24 = vpop.f32.mrb[143].mxu1 }
0x2781   :  { %v4961_v46 = vpop.f32.mrb[144].mxu1 }
0x2782   :  { %v4962_v28 = vadd.f32 %v8629_v56, %v4961_v46  ;;  %v7107_v29 = vpop.f32.mrb[145].mxu1  ;;  %4991 = vrot.lane.b32.xlu1 %v8608_v47, %s7889_s5 }
0x2783   :  { %v4964_v54 = vpop.f32.mrb[146].mxu1 }
0x2784   :  { %v7108_v32 = vpop.f32.mrb[147].mxu1  ;;  %v4970_v36 = vsel %vm658_vm3, %v4962_v28, -inf  ;;  %v7652_v54 = vld [vmem:[%s9058_s1] ss:$0 sm:$0xff] }
0x2785   :  { %4971 = vmax.xlane.f32.xlu0 %v4970_v36 }
0x2786   :  { %5089 = vrot.lane.b32.xlu1 %v8592_v11, %s7878_s3 }
0x278a   :  { %5139 = vrot.lane.b32.xlu1 %v8597_v15, %s7878_s3 }
0x278e   :  { %5087 = vrot.lane.b32.xlu1 %v8599_v16, %s7878_s3 }
0x27fe   :  { %v4969_v38 = vpop.xlane.xlu1 %4968 }
0x27ff   :  { %v4973_v56 = vsub.f32 %v4912_v8, %v4969_v38 }
0x2801   :  { %v4975_v40 = vmul.f32 1.442695, %v4973_v56 }
0x2802   :  { %v4992_v52 = vpop.permute.xlu1 %4991 }
0x2803   :  { %7622 = vpow2.f32 %v4975_v40  ;;  %v4997_v5 = vsel %vm686_vm2, %v4992_v52, 0 }
0x2804   :  { %7110 = vmatpush3.bf16.msra.mxu0 %v4997_v5 }
0x2805   :  { %7121 = vmatprep.subr.bf16.mxu0 %v7884_v1 }
0x2806   :  { %v5090_v9 = vpop.permute.xlu1 %5089 }
0x2807   :  { %v5095_v26 = vsel %vm565_vm1, %v5090_v9, 0 }
0x280a   :  { %v5140_v57 = vpop.permute.xlu1 %5139 }
0x280b   :  { %v5145_v20 = vsel %vm565_vm1, %v5140_v57, 0 }
0x280d   :  { %v7623_v45 = vpop.eup %7622 }
0x280e   :  { %v4979_v55 = vsel %vm658_vm3, %v7623_v45, 0.0 }
0x280f   :  { %4980 = vadd.xlane.f32.xlu0 %v4979_v55 }
0x2812   :  { %v4972_v11 = vpop.xlane.xlu0 %4971 }
0x2813   :  { %v4974_v59 = vsub.f32 %v4962_v28, %v4972_v11 }
0x2815   :  { %v4977_v15 = vmul.f32 1.442695, %v4974_v59 }
0x2817   :  { %7624 = vpow2.f32 %v4977_v15  ;;  %v7653_v15 = vld [vmem:[%s9058_s1 + $0x1] ss:$0 sm:$0xff] }
0x2821   :  { %v7625_v7 = vpop.eup %7624 }
0x2822   :  { %v4982_v16 = vsel %vm658_vm3, %v7625_v7, 0.0 }
0x2823   :  { %4983 = vadd.xlane.f32.xlu0 %v4982_v16 }
0x2839   :  { %5039 = vrot.lane.b32.xlu0 %v8647_v41, %s7889_s5 }
0x283d   :  { %5137 = vrot.lane.b32.xlu0 %v8610_v48, %s7878_s3  ;;  %v5088_v48 = vpop.permute.xlu1 %5087 }
0x289c   :  { %v4981_v60 = vpop.xlane.xlu0 %4980 }
0x289d   :  { %7626 = vrcp.f32 %v4981_v60 }
0x28a7   :  { %v7627_v6 = vpop.eup %7626 }
0x28a8   :  { %v4986_v61 = vmul.f32 %v7627_v6, %v7623_v45 }
0x28aa   :  { %v4989_v49 = vpack.c.bf16 %v4986_v61, %v4986_v61 }
0x28ac   :  { %7112 = vmatmul.mubr.msk.bf16.vlgmr.msra.gmra.mrb[120].mxu0 %vm658_vm3, %v4989_v49 }
0x28ad   :  { %7122 = vmatpush3.bf16.xpose.msra.mxu0 %v5095_v26  ;;  %7123 = vmatprep.mubr.msk.bf16.mxu0 %vm7885_vm0, %v7884_v1 }
0x28ae   :  { %7133 = vmatprep.subr.bf16.mxu0 %v7884_v1 }
0x28b0   :  { %v4984_v42 = vpop.xlane.xlu0 %4983 }
0x28b1   :  { %7628 = vrcp.f32 %v4984_v42 }
0x28b4   :  { %v5040_v43 = vpop.permute.xlu0 %5039  ;;  %7124 = vmatmul.mubr.msk.bf16.vlgmr.msra.gmra.mrb[124].mxu0 %vm565_vm1, %v5088_v48  ;;  %v7414_v48 = vld [vmem:[#allocation8 + $0x40] sm:$0xff]  }
0x28b5   :  { %v5045_v8 = vsel %vm686_vm2, %v5040_v43, 0  ;;  %7135 = vmatprep.mubr.msk.bf16.mxu0 %vm7885_vm0, %v7884_v1  ;;  %v7415_v43 = vld [vmem:[#allocation8 + $0x48] sm:$0xff]  }
0x28b6   :  { %7116 = vmatpush3.bf16.msra.mxu1 %v5045_v8  ;;  %v7416_v8 = vld [vmem:[#allocation8 + $0x50] sm:$0xff]  }
0x28b7   :  { %7127 = vmatprep.subr.bf16.mxu1 %v7884_v1 }
0x28b8   :  { %v5138_v27 = vpop.permute.xlu0 %5137 }
0x28bb   :  { %v7629_v12 = vpop.eup %7628 }
0x28bc   :  { %v4988_v18 = vmul.f32 %v7629_v12, %v7625_v7  ;;  %v7417_v12 = vld [vmem:[#allocation8 + $0x58] sm:$0xff]  }
0x28be   :  { %v4990_v19 = vpack.c.bf16 %v4988_v18, %v4988_v18  ;;  %v7418_v18 = vld [vmem:[#allocation8 + $0x60] sm:$0xff]  }
0x28c0   :  { %7118 = vmatmul.mubr.msk.bf16.vlgmr.msra.gmra.mrb[148].mxu1 %vm658_vm3, %v4990_v19  ;;  %v7419_v19 = vld [vmem:[#allocation8 + $0x68] sm:$0xff]  }
0x28c1   :  { %7128 = vmatpush3.bf16.xpose.msra.mxu1 %v5145_v20  ;;  %7129 = vmatprep.mubr.msk.bf16.mxu1 %vm7885_vm0, %v7884_v1  ;;  %v7420_v20 = vld [vmem:[#allocation8 + $0x70] sm:$0xff]  }
0x28c2   :  { %7139 = vmatprep.subr.bf16.mxu1 %v7884_v1 }
0x28c8   :  { %7130 = vmatmul.mubr.msk.bf16.vlgmr.msra.gmra.mrb[152].mxu1 %vm565_vm1, %v5138_v27 }
0x28c9   :  { %7141 = vmatprep.mubr.msk.bf16.mxu1 %vm7885_vm0, %v7884_v1 }
0x297f   :  { %v5033_v22 = vpop.f32.mrb[120].mxu0 }
0x2980   :  { %v7113_v24 = vpop.f32.mrb[121].mxu0 }
0x2981   :  { %v5036_v46 = vpop.f32.mrb[122].mxu0 }
0x2982   :  { %v7114_v28 = vpop.f32.mrb[123].mxu0 }
0x2983   :  { %v7421_v28 = vld [vmem:[#allocation8 + $0x78] sm:$0xff]  }
0x2987   :  { %v5131_v29 = vpop.f32.mrb[124].mxu0 }
0x2988   :  { %v5132_v32 = vadd.f32 %v7652_v54, %v5131_v29  ;;  %v7125_v36 = vpop.f32.mrb[125].mxu0 }
0x2989   :  { %v5134_v38 = vpop.f32.mrb[126].mxu0 }
0x298a   :  { %v7126_v56 = vpop.f32.mrb[127].mxu0  ;;  %v5187_v40 = vsel %vm658_vm3, %v5132_v32, -inf }
0x298b   :  { %5188 = vmax.xlane.f32.xlu1 %v5187_v40 }
0x2993   :  { %v5081_v52 = vpop.f32.mrb[148].mxu1 }
0x2994   :  { %v7252_v5 = vpack.i.bf16 %v5081_v52, %v5033_v22  ;;  %v7119_v45 = vpop.f32.mrb[149].mxu1 }
0x2995   :  { %v5084_v55 = vpop.f32.mrb[150].mxu1 }
0x2996   :  { %v7120_v11 = vpop.f32.mrb[151].mxu1 }
0x299b   :  { %v5181_v59 = vpop.f32.mrb[152].mxu1 }
0x299c   :  { %v5182_v7 = vadd.f32 %v7653_v15, %v5181_v59  ;;  %v7131_v16 = vpop.f32.mrb[153].mxu1  ;;  %5211 = vrot.lane.b32.xlu1 %v8608_v47, %s7878_s3 }
0x299d   :  { %v5184_v60 = vpop.f32.mrb[154].mxu1 }
0x299e   :  { %v7132_v6 = vpop.f32.mrb[155].mxu1  ;;  %v5190_v9 = vsel %vm658_vm3, %v5182_v7, -inf }
0x299f   :  { %5191 = vmax.xlane.f32.xlu0 %v5190_v9 }
0x29a0   :  { %7228 = vrot.lane.b32.xlu1 %v7227_v17, %s7878_s3 }
0x29a4   :  { %7233 = vrot.lane.b32.xlu1 %v7232_v21, %s7889_s5 }
0x29a8   :  { %7238 = vrot.lane.b32.xlu1 %v7237_v35, %s7875_s0 }
0x29ac   :  { %7248 = vrot.lane.b32.xlu1 %v7247_v25, %s7888_s26 }
0x2a18   :  { %v5189_v47 = vpop.xlane.xlu1 %5188 }
0x2a19   :  { %v5193_v61 = vsub.f32 %v5132_v32, %v5189_v47 }
0x2a1b   :  { %v5195_v49 = vmul.f32 1.442695, %v5193_v61 }
0x2a1c   :  { %v5212_v10 = vpop.permute.xlu1 %5211 }
0x2a1d   :  { %7630 = vpow2.f32 %v5195_v49  ;;  %v5217_v13 = vsel %vm686_vm2, %v5212_v10, 0 }
0x2a1e   :  { %7134 = vmatpush3.bf16.msra.mxu0 %v5217_v13 }
0x2a1f   :  { %7145 = vmatprep.subr.bf16.mxu0 %v7884_v1 }
0x2a20   :  { %v7229_v56 = vpop.permute.xlu1 %7228 }
0x2a21   :  { %v7231_v45 = vunpack.i.h.bf16 %v7229_v56  ;;  %v7230_v55 = vunpack.i.l.bf16 %v7229_v56 }
0x2a23   :  { %v5364_v60 = vsel %vm565_vm1, %v8670_v53, %v7231_v45  ;;  %v5363_v6 = vsel %vm565_vm1, %v8667_v62, %v7230_v55 }
0x2a24   :  { %v7234_v40 = vpop.permute.xlu1 %7233 }
0x2a25   :  { %v7235_v11 = vunpack.i.l.bf16 %v7234_v40 }
0x2a27   :  { %v7631_v17 = vpop.eup %7630  ;;  %v5365_v47 = vsel %vm2374_vm4, %v5363_v6, %v7235_v11  ;;  %v7427_v11 = vld [vmem:[#allocation13 + $0x10c] ss:$16 sps:$4 sm:$0xff]   ;;  %v7431_v6 = vld [vmem:[#allocation13 + $0x128] ss:$16 sps:$4 sm:$0xff]  }
0x2a28   :  { %v5199_v39 = vsel %vm658_vm3, %v7631_v17, 0.0 }
0x2a29   :  { %5200 = vadd.xlane.f32.xlu0 %v5199_v39 }
0x2a2c   :  { %v5192_v2 = vpop.xlane.xlu0 %5191 }
0x2a2d   :  { %v5194_v21 = vsub.f32 %v5182_v7, %v5192_v2 }
0x2a2f   :  { %v5197_v58 = vmul.f32 1.442695, %v5194_v21 }
0x2a31   :  { %7632 = vpow2.f32 %v5197_v58 }
0x2a3b   :  { %v7633_v33 = vpop.eup %7632 }
0x2a3c   :  { %v5202_v35 = vsel %vm658_vm3, %v7633_v33, 0.0 }
0x2a3d   :  { %5203 = vadd.xlane.f32.xlu0 %v5202_v35 }
0x2a53   :  { %5259 = vrot.lane.b32.xlu0 %v8647_v41, %s7878_s3 }
0x2a57   :  { %7243 = vrot.lane.b32.xlu0 %v7242_v4, %s7868_s2 }
0x2a5b   :  { %7253 = vrot.lane.b32.xlu0 %v7252_v5, %s7887_s4  ;;  %v7239_v5 = vpop.permute.xlu1 %7238 }
0x2a5c   :  { %v7241_v59 = vunpack.i.h.bf16 %v7239_v5  ;;  %v7240_v15 = vunpack.i.l.bf16 %v7239_v5 }
0x2a5e   :  { %v5367_v10 = vsel %vm2377_vm5, %v5365_v47, %v7240_v15  ;;  %v7425_v15 = vld [vmem:[#allocation13 + $0x108] ss:$16 sps:$4 sm:$0xff]   ;;  %v7439_v47 = vld [vmem:[#allocation13 + $0x14c] ss:$16 sps:$4 sm:$0xff]  }
0x2a5f   :  { %v7249_v49 = vpop.permute.xlu1 %7248 }
0x2a60   :  { %v7251_v53 = vunpack.i.h.bf16 %v7249_v49  ;;  %v7250_v58 = vunpack.i.l.bf16 %v7249_v49  ;;  %v7437_v49 = vld [vmem:[#allocation13 + $0x148] ss:$16 sps:$4 sm:$0xff]  }
0x2ab6   :  { %v5201_v14 = vpop.xlane.xlu0 %5200 }
0x2ab7   :  { %7634 = vrcp.f32 %v5201_v14 }
0x2ac1   :  { %v7635_v63 = vpop.eup %7634 }
0x2ac2   :  { %v5206_v25 = vmul.f32 %v7635_v63, %v7631_v17 }
0x2ac4   :  { %v5209_v26 = vpack.c.bf16 %v5206_v25, %v5206_v25 }
0x2ac6   :  { %7136 = vmatmul.mubr.msk.bf16.vlgmr.msra.gmra.mrb[128].mxu0 %vm658_vm3, %v5209_v26 }
0x2ac7   :  { %7161 = vmatprep.mubr.msk.bf16.mxu0 %vm7885_vm0, %v7884_v1  ;;  %7146 = vmatpush3.bf16.msra.mxu0 %v7414_v48 }
0x2ac8   :  { %7147 = vmatprep.subr.bf16.mxu0 %v7884_v1 }
0x2aca   :  { %v5204_v57 = vpop.xlane.xlu0 %5203 }
0x2acb   :  { %7636 = vrcp.f32 %v5204_v57  ;;  %7148 = vmatpush3.bf16.msra.mxu0 %v7415_v43 }
0x2acc   :  { %7149 = vmatprep.subr.bf16.mxu0 %v7884_v1 }
0x2ace   :  { %v5260_v41 = vpop.permute.xlu0 %5259 }
0x2acf   :  { %v5265_v42 = vsel %vm686_vm2, %v5260_v41, 0  ;;  %7150 = vmatpush3.bf16.msra.mxu0 %v7416_v8 }
0x2ad0   :  { %7140 = vmatpush3.bf16.msra.mxu1 %v5265_v42  ;;  %7151 = vmatprep.subr.bf16.mxu0 %v7884_v1 }
0x2ad2   :  { %v7244_v52 = vpop.permute.xlu0 %7243 }
0x2ad3   :  { %7152 = vmatpush3.bf16.msra.mxu0 %v7417_v12  ;;  %v7246_v7 = vunpack.i.h.bf16 %v7244_v52  ;;  %v7245_v16 = vunpack.i.l.bf16 %v7244_v52 }
0x2ad4   :  { %7153 = vmatprep.subr.bf16.mxu0 %v7884_v1 }
0x2ad5   :  { %v7637_v37 = vpop.eup %7636  ;;  %v5369_v39 = vsel %vm2380_vm6, %v5367_v10, %v7245_v16  ;;  %v7433_v16 = vld [vmem:[#allocation13 + $0x12c] ss:$16 sps:$4 sm:$0xff]   ;;  %v7442_v10 = vld [vmem:[#allocation13 + $0x164] ss:$16 sps:$4 sm:$0xff]  }
0x2ad6   :  { %v5208_v3 = vmul.f32 %v7637_v37, %v7633_v33  ;;  %v7254_v9 = vpop.permute.xlu0 %7253  ;;  %v5371_v62 = vsel %vm2383_vm7, %v5369_v39, %v7250_v58  ;;  %v6363_v37 = vld [vmem:[#allocation10 + $0x1] ss:$0 sm:$0xff]  ;;  %v7443_v39 = vld [vmem:[#allocation13 + $0x168] ss:$16 sps:$4 sm:$0xff]  }
0x2ad7   :  { %7154 = vmatpush3.bf16.msra.mxu0 %v7418_v18  ;;  %v7256_v2 = vunpack.i.h.bf16 %v7254_v9  ;;  %v7255_v21 = vunpack.i.l.bf16 %v7254_v9  ;;  %v7436_v9 = vld [vmem:[#allocation13 + $0x144] ss:$16 sps:$4 sm:$0xff]   ;;  %v7451_v58 = vld [vmem:[#allocation13 + $0x18c] ss:$16 sps:$4 sm:$0xff]  }
0x2ad8   :  { %v5210_v4 = vpack.c.bf16 %v5208_v3, %v5208_v3  ;;  %7155 = vmatprep.subr.bf16.mxu0 %v7884_v1 }
0x2ad9   :  { %v5373_v25 = vsel %vm2386_vm8, %v5371_v62, %v7255_v21  ;;  %v7446_v21 = vld [vmem:[#allocation13 + $0x180] ss:$16 sps:$4 sm:$0xff]   ;;  %v7457_v62 = vld [vmem:[#allocation13 + $0x1ac] ss:$16 sps:$4 sm:$0xff]  }
0x2ada   :  { %7142 = vmatmul.mubr.msk.bf16.vlgmr.msra.gmra.mrb[156].mxu1 %vm658_vm3, %v5210_v4 }
0x2adb   :  { %5739 = vmatprep.mubr.bf16.mxu1 %v7883_v0  ;;  %7156 = vmatpush3.bf16.msra.mxu0 %v7419_v19 }
0x2adc   :  { %7157 = vmatprep.subr.bf16.mxu0 %v7884_v1 }
0x2adf   :  { %7158 = vmatpush3.bf16.msra.mxu0 %v7420_v20 }
0x2ae0   :  { %7159 = vmatprep.subr.bf16.mxu0 %v7884_v1  ;;  %v7236_v1 = vunpack.i.h.bf16 %v7234_v40 }
0x2ae2   :  { %v5366_v61 = vsel %vm2374_vm4, %v5364_v60, %v7236_v1  ;;  %v7424_v1 = vld [vmem:[#allocation13 + $0x104] ss:$16 sps:$4 sm:$0xff]   ;;  %v7428_v60 = vld [vmem:[#allocation13 + $0x120] ss:$16 sps:$4 sm:$0xff]  }
0x2ae3   :  { %7160 = vmatpush3.bf16.msra.mxu0 %v7421_v28  ;;  %v5368_v13 = vsel %vm2377_vm5, %v5366_v61, %v7241_v59  ;;  %v7422_v59 = vld [vmem:[#allocation13 + $0x100] ss:$16 sps:$4 sm:$0xff]   ;;  %5707 = vmatprep.subr.bf16.mxu1 %v7424_v1 }
0x2ae4   :  { %v5370_v17 = vsel %vm2380_vm6, %v5368_v13, %v7246_v7  ;;  %5750 = vmatprep.subr.bf16.mxu0 %v7427_v11  ;;  %5708 = vmatpush1.bf16.msra.mxu1 %v7422_v59  ;;  %v7430_v7 = vld [vmem:[#allocation13 + $0x124] ss:$16 sps:$4 sm:$0xff]   ;;  %v7434_v61 = vld [vmem:[#allocation13 + $0x140] ss:$16 sps:$4 sm:$0xff]   ;;  %v7445_v13 = vld [vmem:[#allocation13 + $0x16c] ss:$16 sps:$4 sm:$0xff]  }
0x2ae5   :  { %v5372_v35 = vsel %vm2383_vm7, %v5370_v17, %v7251_v53  ;;  %5709 = vmatprep.subr.bf16.mxu1 %v7430_v7  ;;  %v7440_v17 = vld [vmem:[#allocation13 + $0x160] ss:$16 sps:$4 sm:$0xff]   ;;  %v7449_v53 = vld [vmem:[#allocation13 + $0x188] ss:$16 sps:$4 sm:$0xff]  }
0x2ae6   :  { %v5374_v26 = vsel %vm2386_vm8, %v5372_v35, %v7256_v2  ;;  %v7448_v2 = vld [vmem:[#allocation13 + $0x184] ss:$16 sps:$4 sm:$0xff]   ;;  %v7452_v35 = vld [vmem:[#allocation13 + $0x1a0] ss:$16 sps:$4 sm:$0xff]   ;;  %v9014_v11 = vld [vmem:[#allocation11 + $0x8] sm:$0xff] }
0x2ae8   :  { %5710 = vmatpush1.bf16.msra.mxu1 %v7428_v60 }
0x2ae9   :  { %5711 = vmatprep.subr.bf16.mxu1 %v7436_v9  ;;  %v7475_v9 = vld [vmem:[#allocation14 + $0x1c8] sm:$0xff]  }
0x2aec   :  { %5712 = vmatpush1.bf16.msra.mxu1 %v7434_v61  ;;  %v7478_v61 = vld [vmem:[#allocation14 + $0x150] sm:$0xff]  }
0x2aed   :  { %5713 = vmatprep.subr.bf16.mxu1 %v7442_v10  ;;  %v7480_v10 = vld [vmem:[#allocation14 + $0x110] sm:$0xff]  }
0x2af0   :  { %5714 = vmatpush1.bf16.msra.mxu1 %v7440_v17  ;;  %v7482_v17 = vld [vmem:[#allocation14 + $0x158] sm:$0xff]  }
0x2af1   :  { %5715 = vmatprep.subr.bf16.mxu1 %v7448_v2  ;;  %v7484_v2 = vld [vmem:[#allocation14 + $0x118] sm:$0xff]  }
0x2af4   :  { %5716 = vmatpush1.bf16.msra.mxu1 %v7446_v21  ;;  %v7485_v21 = vld [vmem:[#allocation14 + $0x198] sm:$0xff]  }
0x2b99   :  { %v5253_v27 = vpop.f32.mrb[128].mxu0 }
0x2b9a   :  { %v7137_v22 = vpop.f32.mrb[129].mxu0 }
0x2b9b   :  { %v5256_v24 = vpop.f32.mrb[130].mxu0 }
0x2b9c   :  { %v7138_v46 = vpop.f32.mrb[131].mxu0 }
0x2bad   :  { %v5301_v29 = vpop.f32.mrb[156].mxu1 }
0x2bae   :  { %v7257_v54 = vpack.i.bf16 %v5301_v29, %v5253_v27  ;;  %v7143_v32 = vpop.f32.mrb[157].mxu1 }
0x2baf   :  { %v5304_v36 = vpop.f32.mrb[158].mxu1 }
0x2bb0   :  { %7258 = vrot.lane.b32.xlu1 %v7257_v54, %s7886_s24  ;;  %v7144_v38 = vpop.f32.mrb[159].mxu1 }
0x2c22   :  { %v7259_v33 = vpop.permute.xlu1 %7258 }
0x2c23   :  { %v7261_v14 = vunpack.i.h.bf16 %v7259_v33  ;;  %v7260_v63 = vunpack.i.l.bf16 %v7259_v33  ;;  %v7454_v33 = vld [vmem:[#allocation13 + $0x1a4] ss:$16 sps:$4 sm:$0xff]  }
0x2c24   :  { %5717 = vmatprep.subr.bf16.mxu1 %v7454_v33  ;;  %v7488_v33 = vld [vmem:[#allocation14 + $0x120] sm:$0xff]  }
0x2c25   :  { %v5376_v57 = vsel %vm2389_vm9, %v5374_v26, %v7261_v14  ;;  %v5375_v41 = vsel %vm2389_vm9, %v5373_v25, %v7260_v63  ;;  %v7455_v14 = vld [vmem:[#allocation13 + $0x1a8] ss:$16 sps:$4 sm:$0xff]   ;;  %v7460_v63 = vld [vmem:[#allocation13 + $0x1c4] ss:$16 sps:$4 sm:$0xff]   ;;  %v7463_v25 = vld [vmem:[#allocation13 + $0x1cc] ss:$16 sps:$4 sm:$0xff]   ;;  %5718 = vmatpush1.bf16.msra.mxu1 %v7452_v35 }
0x2c26   :  { %v5377_v42 = vpack.c.bf16 %v5376_v57, %v5375_v41  ;;  %v7458_v26 = vld [vmem:[#allocation13 + $0x1c0] ss:$16 sps:$4 sm:$0xff]   ;;  %v7461_v57 = vld [vmem:[#allocation13 + $0x1c8] ss:$16 sps:$4 sm:$0xff]   ;;  %5719 = vmatprep.subr.bf16.mxu1 %v7460_v63  ;;  %v7466_v41 = vld [vmem:[#allocation13 + $0x1e4] ss:$16 sps:$4 sm:$0xff]  }
0x2c27   :  { %v7490_v35 = vld [vmem:[#allocation14 + $0x168] sm:$0xff]  }
0x2c28   :  { %7162 = vmatmul.mubr.bf16.vlgmr.msra.gmra.mrb[132].mxu0 %v5377_v42  ;;  %v7469_v42 = vld [vmem:[#allocation13 + $0x1ec] ss:$16 sps:$4 sm:$0xff]  }
0x2c29   :  { %5782 = vmatprep.mubr.bf16.mxu0 %v7883_v0  ;;  %5751 = vmatpush1.bf16.msra.mxu0 %v7425_v15  ;;  %v7492_v63 = vld [vmem:[#allocation14 + $0x128] sm:$0xff]  }
0x2c2a   :  { %5752 = vmatprep.subr.bf16.mxu0 %v7433_v16  ;;  %5720 = vmatpush1.bf16.msra.mxu1 %v7458_v26  ;;  %v7473_v16 = vld [vmem:[#allocation14 + $0x180] sm:$0xff]   ;;  %v7494_v26 = vld [vmem:[#allocation14 + $0x170] sm:$0xff]  }
0x2c2b   :  { %5721 = vmatprep.subr.bf16.mxu1 %v7466_v41  ;;  %v7496_v41 = vld [vmem:[#allocation14 + $0x130] sm:$0xff]  }
0x2c2d   :  { %5753 = vmatpush1.bf16.msra.mxu0 %v7431_v6  ;;  %v7474_v6 = vld [vmem:[#allocation14 + $0x148] sm:$0xff]  }
0x2c2e   :  { %5754 = vmatprep.subr.bf16.mxu0 %v7439_v47  ;;  %v7477_v47 = vld [vmem:[#allocation14 + $0x188] sm:$0xff]  }
0x2c31   :  { %5755 = vmatpush1.bf16.msra.mxu0 %v7437_v49  ;;  %v7479_v49 = vld [vmem:[#allocation14 + $0x1d0] sm:$0xff]  }
0x2c32   :  { %5756 = vmatprep.subr.bf16.mxu0 %v7445_v13  ;;  %v7481_v13 = vld [vmem:[#allocation14 + $0x190] sm:$0xff]  }
0x2c35   :  { %5757 = vmatpush1.bf16.msra.mxu0 %v7443_v39  ;;  %v7483_v39 = vld [vmem:[#allocation14 + $0x1d8] sm:$0xff]  }
0x2c36   :  { %5758 = vmatprep.subr.bf16.mxu0 %v7451_v58  ;;  %v7487_v58 = vld [vmem:[#allocation14 + $0x1e0] sm:$0xff]  }
0x2c39   :  { %5759 = vmatpush1.bf16.msra.mxu0 %v7449_v53  ;;  %v7486_v53 = vld [vmem:[#allocation14 + $0x160] sm:$0xff]  }
0x2c3a   :  { %5760 = vmatprep.subr.bf16.mxu0 %v7457_v62  ;;  %v7489_v62 = vld [vmem:[#allocation14 + $0x1a0] sm:$0xff]  }
0x2c3d   :  { %5761 = vmatpush1.bf16.msra.mxu0 %v7455_v14  ;;  %v7491_v14 = vld [vmem:[#allocation14 + $0x1e8] sm:$0xff]  }
0x2c3e   :  { %5762 = vmatprep.subr.bf16.mxu0 %v7463_v25  ;;  %v7493_v25 = vld [vmem:[#allocation14 + $0x1a8] sm:$0xff]  }
0x2c41   :  { %5763 = vmatpush1.bf16.msra.mxu0 %v7461_v57  ;;  %v7495_v57 = vld [vmem:[#allocation14 + $0x1f0] sm:$0xff]  }
0x2c42   :  { %5764 = vmatprep.subr.bf16.mxu0 %v7469_v42  ;;  %v7497_v42 = vld [vmem:[#allocation14 + $0x1b0] sm:$0xff]  }
0x2cfb   :  { %v5466_v3 = vpop.f32.mrb[132].mxu0 }
0x2cfc   :  { %v5467_v4 = vadd.f32 %v6363_v37, %v5466_v3  ;;  %v7163_v48 = vpop.f32.mrb[133].mxu0  ;;  %v7467_v3 = vld [vmem:[#allocation13 + $0x1e8] ss:$16 sps:$4 sm:$0xff]  }
0x2cfd   :  { %v5469_v43 = vpop.f32.mrb[134].mxu0  ;;  %5765 = vmatpush1.bf16.msra.mxu0 %v7467_v3  ;;  %v7471_v48 = vld [vmem:[#allocation14 + $0x1c0] sm:$0xff]   ;;  %v7499_v3 = vld [vmem:[#allocation14 + $0x1f8] sm:$0xff]  }
0x2cfe   :  { %v5473_v8 = vadd.f32 %v5467_v4, %v8576_v44  ;;  %v5470_v12 = vadd.f32 %v6363_v37, %v5469_v43  ;;  %v7164_v18 = vpop.f32.mrb[135].mxu0  ;;  %v7464_v37 = vld [vmem:[#allocation13 + $0x1e0] ss:$16 sps:$4 sm:$0xff]   ;;  %6679 = vmatprep.subr.bf16.mxu0 %v7471_v48  ;;  %v7501_v48 = vld [vmem:[#allocation14 + $0x1b8] sm:$0xff]  }
0x2cff   :  { %5722 = vmatpush1.bf16.msra.mxu1 %v7464_v37  ;;  %v7470_v4 = vld [vmem:[#allocation14 + $0x140] sm:$0xff]   ;;  %v7498_v37 = vld [vmem:[#allocation14 + $0x178] sm:$0xff]  }
0x2d00   :  { %v5474_v19 = vadd.f32 %v5470_v12, %v8579_v51  ;;  %5475 = vadd.xlane.f32.xlu0 %v5473_v8  ;;  %6657 = vmatprep.subr.bf16.mxu1 %v7470_v4  ;;  %v7500_v4 = vld [vmem:[#allocation14 + $0x138] sm:$0xff]  }
0x2d02   :  { %5477 = vadd.xlane.f32.xlu1 %v5474_v19 }
0x2d8d   :  { %v5476_v20 = vpop.xlane.xlu0 %5475 }
0x2d8e   :  { %v5479_v27 = vrot.slane %v5476_v20, 4 }
0x2d8f   :  { %v5478_v22 = vpop.xlane.xlu1 %5477 }
0x2d90   :  { %v5480_v24 = vadd.f32 %v5479_v27, %v5476_v20  ;;  %v5485_v46 = vrot.slane %v5478_v22, 4 }
0x2d92   :  { %v5481_v28 = vrot.slane %v5480_v24, 2  ;;  %v5486_v0 = vadd.f32 %v5485_v46, %v5478_v22 }
0x2d94   :  { %v5482_v29 = vadd.f32 %v5481_v28, %v5480_v24  ;;  %v5487_v54 = vrot.slane %v5486_v0, 2 }
0x2d96   :  { %v5483_v32 = vrot.slane %v5482_v29, 1  ;;  %v5488_v36 = vadd.f32 %v5487_v54, %v5486_v0 }
0x2d98   :  { %v5484_v38 = vadd.f32 %v5483_v32, %v5482_v29  ;;  %v5489_v56 = vrot.slane %v5488_v36, 1 }
0x2d9a   :  { %v5491_v44 = vmul.f32 0.0009765625, %v5484_v38  ;;  %v5490_v40 = vadd.f32 %v5489_v56, %v5488_v36 }
0x2d9c   :  { %v5492_v52 = vmul.f32 0.0009765625, %v5490_v40  ;;  %v8998_v5 = vsub.f32 %v5473_v8, %v5491_v44 }
0x2d9e   :  { %v5495_v51 = vmul.f32 %v8998_v5, %v8998_v5  ;;  %v9002_v45 = vsub.f32 %v5474_v19, %v5492_v52  ;;  %v9010_v52 = vld [vmem:[%s9063_s6 + $0x8] sm:$0xff] }
0x2da0   :  { %5497 = vadd.xlane.f32.xlu0 %v5495_v51  ;;  %v5496_v55 = vmul.f32 %v9002_v45, %v9002_v45 }
0x2da4   :  { %5499 = vadd.xlane.f32.xlu0 %v5496_v55 }
0x2e2d   :  { %v5498_v43 = vpop.xlane.xlu0 %5497 }
0x2e2e   :  { %v5501_v8 = vrot.slane %v5498_v43, 4 }
0x2e30   :  { %v5502_v12 = vadd.f32 %v5501_v8, %v5498_v43  ;;  %v6299_v43 = vld [vmem:[%s9066_s9 + $0x4] sm:$0xf] }
0x2e31   :  { %v5500_v18 = vpop.xlane.xlu0 %5499  ;;  %v5530_v8 = vrot.slane %v6299_v43, %v8100_v34 }
0x2e32   :  { %v5503_v19 = vrot.slane %v5502_v12, 2  ;;  %v5507_v20 = vrot.slane %v5500_v18, 4 }
0x2e34   :  { %v5504_v27 = vadd.f32 %v5503_v19, %v5502_v12  ;;  %v5508_v22 = vadd.f32 %v5507_v20, %v5500_v18  ;;  %v5538_v12 = vrot.slane %v6299_v43, %v8126_v50  ;;  %v5534_v18 = vrot.slane %v6299_v43, %v8096_v31 }
0x2e35   :  { %v5542_v19 = vrot.slane %v6299_v43, %v2556_v23 }
0x2e36   :  { %v5505_v24 = vrot.slane %v5504_v27, 1  ;;  %v5509_v46 = vrot.slane %v5508_v22, 2 }
0x2e38   :  { %v5506_v28 = vadd.f32 %v5505_v24, %v5504_v27  ;;  %v5510_v0 = vadd.f32 %v5509_v46, %v5508_v22 }
0x2e3a   :  { %v5513_v29 = vmul.f32 0.0009765625, %v5506_v28  ;;  %v5511_v54 = vrot.slane %v5510_v0, 1 }
0x2e3c   :  { %v5515_v32 = vadd.f32 1e-06, %v5513_v29  ;;  %v5512_v36 = vadd.f32 %v5511_v54, %v5510_v0 }
0x2e3e   :  { %7638 = vrsqrt.f32 %v5515_v32  ;;  %v5514_v38 = vmul.f32 0.0009765625, %v5512_v36 }
0x2e40   :  { %v5516_v56 = vadd.f32 1e-06, %v5514_v38 }
0x2e42   :  { %7640 = vrsqrt.f32 %v5516_v56 }
0x2e48   :  { %v7639_v44 = vpop.eup %7638 }
0x2e49   :  { %v5519_v40 = vmul.f32 %v7639_v44, %v8998_v5  ;;  %v7472_v5 = vld [vmem:[#allocation14 + $0x100] sm:$0xff]  }
0x2e4b   :  { %v5521_v1 = vmul.f32 %v9010_v52, %v5519_v40 }
0x2e4c   :  { %v7641_v51 = vpop.eup %7640 }
0x2e4d   :  { %v5520_v55 = vmul.f32 %v7641_v51, %v9002_v45  ;;  %v9018_v15 = vadd.f32 %v5521_v1, %v9014_v11  ;;  %v7476_v45 = vld [vmem:[#allocation14 + $0x108] sm:$0xff]  }
0x2e4f   :  { %v5522_v59 = vmul.f32 %v9010_v52, %v5520_v55 }
0x2e51   :  { %v9021_v7 = vadd.f32 %v5522_v59, %v9014_v11 }
0x2e53   :  { %v5525_v60 = vpack.c.bf16 %v9021_v7, %v9018_v15 }
0x2e55   :  { %5740 = vmatmul.mubr.bf16.vlgmr.msra.gmra.mrb[160].mxu1 %v5525_v60  ;;  %5783 = vmatmul.mubr.bf16.vlgmr.msra.gmra.mrb[136].mxu0 %v5525_v60 }
0x2e56   :  { %6658 = vmatpush3.bf16.msra.mxu1 %v7472_v5  ;;  %6680 = vmatpush3.bf16.msra.mxu0 %v7473_v16 }
0x2e57   :  { %6659 = vmatprep.subr.bf16.mxu1 %v7474_v6  ;;  %6681 = vmatprep.subr.bf16.mxu0 %v7475_v9 }
0x2e5a   :  { %6660 = vmatpush3.bf16.msra.mxu1 %v7476_v45  ;;  %6682 = vmatpush3.bf16.msra.mxu0 %v7477_v47  ;;  %v6404_v47 = vld [vmem:[%s9068_s11 + $0x1] ss:$0 sm:$0xff]  ;;  %s7890_s11 = smov [#allocation16]  }
0x2e5b   :  { %6661 = vmatprep.subr.bf16.mxu1 %v7478_v61  ;;  %6683 = vmatprep.subr.bf16.mxu0 %v7479_v49  ;;  %s6144_s24 = sshll.u32 %s7890_s11, 4  ;;  %s6145_s24 = int_to_ptr.vmem [resolvable:$true] %s6144_s24 }
0x2e5c   :  { %s7830_s4 = scalar_lea.vmem %s6145_s24, 256  ;;  %p7835_p9 = scmp.lt.s32.totalorder %s6145_s24, %s6145_s24 }
0x2e5d   :  { %p7831_p8 = scmp.ne.s32.totalorder %s6145_s24, %s7830_s4  ;;  %p7836_p10 = scmp.lt.s32.totalorder %s7830_s4, %s7830_s4 }
0x2e5e   :  { %6662 = vmatpush3.bf16.msra.mxu1 %v7480_v10  ;;  %6684 = vmatpush3.bf16.msra.mxu0 %v7481_v13 }
0x2e5f   :  { %6663 = vmatprep.subr.bf16.mxu1 %v7482_v17  ;;  %6685 = vmatprep.subr.bf16.mxu0 %v7483_v39  ;;  %p7837_p11 = por %p7836_p10, %p7835_p9 }
0x2e61   :  { %p7838_p12 = pnand %p7837_p11, %p7831_p8 }
0x2e62   :  { %6664 = vmatpush3.bf16.msra.mxu1 %v7484_v2  ;;  %6686 = vmatpush3.bf16.msra.mxu0 %v7485_v21 }
0x2e63   :  { %6665 = vmatprep.subr.bf16.mxu1 %v7486_v53  ;;  %6687 = vmatprep.subr.bf16.mxu0 %v7487_v58 }
0x2e66   :  { %6666 = vmatpush3.bf16.msra.mxu1 %v7488_v33  ;;  %6688 = vmatpush3.bf16.msra.mxu0 %v7489_v62 }
0x2e67   :  { %6667 = vmatprep.subr.bf16.mxu1 %v7490_v35  ;;  %6689 = vmatprep.subr.bf16.mxu0 %v7491_v14 }
0x2e6a   :  { %6668 = vmatpush3.bf16.msra.mxu1 %v7492_v63  ;;  %6690 = vmatpush3.bf16.msra.mxu0 %v7493_v25 }
0x2e6b   :  { %6669 = vmatprep.subr.bf16.mxu1 %v7494_v26  ;;  %6691 = vmatprep.subr.bf16.mxu0 %v7495_v57 }
0x2e6e   :  { %6670 = vmatpush3.bf16.msra.mxu1 %v7496_v41  ;;  %6692 = vmatpush3.bf16.msra.mxu0 %v7497_v42 }
0x2e6f   :  { %6671 = vmatprep.subr.bf16.mxu1 %v7498_v37  ;;  %6693 = vmatprep.subr.bf16.mxu0 %v7499_v3 }
0x2e72   :  { %6672 = vmatpush3.bf16.msra.mxu1 %v7500_v4  ;;  %6694 = vmatpush3.bf16.msra.mxu0 %v7501_v48 }
0x2f28   :  { %v5741_v20 = vpop.f32.mrb[160].mxu1  ;;  %v5784_v27 = vpop.f32.mrb[136].mxu0 }
0x2f29   :  { %v5742_v22 = vadd.f32 %v5741_v20, %v5530_v8  ;;  %v5785_v24 = vadd.f32 %v5784_v27, %v5538_v12  ;;  %v5743_v46 = vpop.f32.mrb[161].mxu1  ;;  %v5786_v28 = vpop.f32.mrb[137].mxu0 }
0x2f2a   :  { %v5744_v0 = vadd.f32 %v5743_v46, %v5534_v18  ;;  %v5787_v29 = vadd.f32 %v5786_v28, %v5542_v19  ;;  %v5745_v54 = vpop.f32.mrb[162].mxu1  ;;  %v5788_v32 = vpop.f32.mrb[138].mxu0 }
0x2f2b   :  { %v5746_v36 = vadd.f32 %v5745_v54, %v5530_v8  ;;  %v5789_v38 = vadd.f32 %v5788_v32, %v5538_v12  ;;  %v5747_v34 = vpop.f32.mrb[163].mxu1  ;;  %v5790_v56 = vpop.f32.mrb[139].mxu0  ;;  %v5793_v31 = vmax.f32 %v5742_v22, 0.0  ;;  %v5795_v40 = vmax.f32 %v5785_v24, 0.0 }
0x2f2c   :  { %v5748_v50 = vadd.f32 %v5747_v34, %v5534_v18  ;;  %v5791_v44 = vadd.f32 %v5790_v56, %v5542_v19  ;;  %v5794_v51 = vmax.f32 %v5744_v0, 0.0  ;;  %v5796_v55 = vmax.f32 %v5787_v29, 0.0 }
0x2f2d   :  { %v5797_v30 = vmax.f32 %v5746_v36, 0.0  ;;  %v5799_v23 = vmax.f32 %v5789_v38, 0.0 }
0x2f2e   :  { %v5798_v1 = vmax.f32 %v5748_v50, 0.0  ;;  %v5800_v59 = vmax.f32 %v5791_v44, 0.0 }
0x2f2f   :  { %v5801_v5 = vpack.c.bf16 %v5797_v30, %v5793_v31  ;;  %v5803_v16 = vpack.c.bf16 %v5799_v23, %v5795_v40 }
0x2f30   :  { %v5802_v60 = vpack.c.bf16 %v5798_v1, %v5794_v51  ;;  %v5804_v6 = vpack.c.bf16 %v5800_v59, %v5796_v55 }
0x2f32   :  { %6035 = vmatprep.mubr.bf16.mxu1 %v5802_v60  ;;  %6076 = vmatprep.mubr.bf16.mxu0 %v5804_v6 }
0x2f33   :  { %6036 = vmatmul.mubr.bf16.vlgmr.msra.gmra.mrb[164].mxu1 %v5801_v5  ;;  %6077 = vmatmul.mubr.bf16.vlgmr.msra.gmra.mrb[140].mxu0 %v5803_v16 }
0x3006   :  { %v6673_v9 = vpop.f32.mrb[164].mxu1  ;;  %v6695_v45 = vpop.f32.mrb[140].mxu0 }
0x3007   :  { %v6674_v61 = vpop.f32.mrb[165].mxu1  ;;  %v6696_v49 = vpop.f32.mrb[141].mxu0 }
0x3008   :  { %v6675_v10 = vadd.f32 %v6674_v61, %v6673_v9  ;;  %v6697_v13 = vadd.f32 %v6696_v49, %v6695_v45  ;;  %v6676_v17 = vpop.f32.mrb[166].mxu1  ;;  %v6698_v39 = vpop.f32.mrb[142].mxu0 }
0x3009   :  { %v6677_v2 = vpop.f32.mrb[167].mxu1  ;;  %v6699_v21 = vpop.f32.mrb[143].mxu0 }
0x300a   :  { %v6038_v53 = vadd.f32 %v6675_v10, %v6404_v47  ;;  %v6678_v58 = vadd.f32 %v6677_v2, %v6676_v17  ;;  %v6700_v33 = vadd.f32 %v6699_v21, %v6698_v39 }
0x300c   :  { %v6079_v62 = vadd.f32 %v6697_v13, %v6038_v53  ;;  %v6041_v35 = vadd.f32 %v6678_v58, %v6404_v47 }
0x300e   :  { %v6082_v14 = vadd.f32 %v6700_v33, %v6041_v35  ;;  %v6085_v63 = vadd.f32 %v6079_v62, %v9018_v15 }
0x3010   :  { %6087 = vadd.xlane.f32.xlu0 %v6085_v63  ;;  %v6086_v25 = vadd.f32 %v6082_v14, %v9021_v7 }
0x3012   :  { %6089 = vadd.xlane.f32.xlu1 %v6086_v25 }
0x309d   :  { %v6088_v26 = vpop.xlane.xlu0 %6087 }
0x309e   :  { %v6091_v57 = vrot.slane %v6088_v26, 4 }
0x309f   :  { %v6090_v41 = vpop.xlane.xlu1 %6089 }
0x30a0   :  { %v6092_v42 = vadd.f32 %v6091_v57, %v6088_v26  ;;  %v6097_v37 = vrot.slane %v6090_v41, 4 }
0x30a2   :  { %v6093_v3 = vrot.slane %v6092_v42, 2  ;;  %v6098_v4 = vadd.f32 %v6097_v37, %v6090_v41 }
0x30a4   :  { %v6094_v48 = vadd.f32 %v6093_v3, %v6092_v42  ;;  %v6099_v43 = vrot.slane %v6098_v4, 2 }
0x30a6   :  { %v6095_v8 = vrot.slane %v6094_v48, 1  ;;  %v6100_v12 = vadd.f32 %v6099_v43, %v6098_v4 }
0x30a8   :  { %v6096_v18 = vadd.f32 %v6095_v8, %v6094_v48  ;;  %v6101_v19 = vrot.slane %v6100_v12, 1 }
0x30aa   :  { %v6103_v20 = vmul.f32 0.0009765625, %v6096_v18  ;;  %v6102_v27 = vadd.f32 %v6101_v19, %v6100_v12 }
0x30ac   :  { %v6104_v15 = vmul.f32 0.0009765625, %v6102_v27  ;;  %v6105_v22 = vsub.f32 %v6085_v63, %v6103_v20 }
0x30ae   :  { %v6107_v24 = vmul.f32 %v6105_v22, %v6105_v22  ;;  %v6106_v7 = vsub.f32 %v6086_v25, %v6104_v15 }
0x30b0   :  { %6109 = vadd.xlane.f32.xlu0 %v6107_v24  ;;  %v6108_v46 = vmul.f32 %v6106_v7, %v6106_v7 }
0x30b2   :  { %6111 = vadd.xlane.f32.xlu1 %v6108_v46 }
0x313d   :  { %v6110_v28 = vpop.xlane.xlu0 %6109 }
0x313e   :  { %v6113_v0 = vrot.slane %v6110_v28, 4 }
0x313f   :  { %v6112_v29 = vpop.xlane.xlu1 %6111 }
0x3140   :  { %v6114_v54 = vadd.f32 %v6113_v0, %v6110_v28  ;;  %v6119_v32 = vrot.slane %v6112_v29, 4 }
0x3142   :  { %v6115_v36 = vrot.slane %v6114_v54, 2  ;;  %v6120_v38 = vadd.f32 %v6119_v32, %v6112_v29 }
0x3144   :  { %v6116_v34 = vadd.f32 %v6115_v36, %v6114_v54  ;;  %v6121_v56 = vrot.slane %v6120_v38, 2 }
0x3146   :  { %v6117_v50 = vrot.slane %v6116_v34, 1  ;;  %v6122_v44 = vadd.f32 %v6121_v56, %v6120_v38 }
0x3148   :  { %v6118_v31 = vadd.f32 %v6117_v50, %v6116_v34  ;;  %v6123_v40 = vrot.slane %v6122_v44, 1 }
0x314a   :  { %v6125_v30 = vmul.f32 0.0009765625, %v6118_v31  ;;  %v6124_v23 = vadd.f32 %v6123_v40, %v6122_v44 }
0x314c   :  { %v6127_v51 = vadd.f32 1e-06, %v6125_v30  ;;  %v6126_v55 = vmul.f32 0.0009765625, %v6124_v23 }
0x314e   :  { %7642 = vrsqrt.f32 %v6127_v51  ;;  %v6128_v1 = vadd.f32 1e-06, %v6126_v55 }
0x3150   :  { %7644 = vrsqrt.f32 %v6128_v1 }
0x3158   :  { %v7643_v59 = vpop.eup %7642 }
0x3159   :  { %v6131_v5 = vmul.f32 %v7643_v59, %v6105_v22 }
0x315a   :  { %v7645_v16 = vpop.eup %7644 }
0x315b   :  { %v6132_v60 = vmul.f32 %v7645_v16, %v6106_v7  ;;  %v6133_v6 = vmul.f32 %v9010_v52, %v6131_v5 }
0x315d   :  { %v6134_v9 = vmul.f32 %v9010_v52, %v6132_v60  ;;  %v6135_v45 = vadd.f32 %v6133_v6, %v9014_v11 }
0x315f   :  { %v6136_v47 = vadd.f32 %v6134_v9, %v9014_v11  ;;  %6137 = vst [vmem:[#allocation16] sm:$0xff] %v6135_v45 }
0x3161   :  { %6138 = vst [vmem:[#allocation16 + $0x8] sm:$0xff] %v6136_v47 }
0x3162   :  { %7841 = shalt.err (!%p7838_p12)
}
0x3163   :  { %s7842_s27 = scalar_lea.hbm %s9069_s12, 256 }
0x3164   :  { %p7843_p13 = scmp.ne.s32.totalorder %s9069_s12, %s7842_s27  ;;  %p7846_p0 = scmp.lt.u32.totalorder %s7842_s27, %s9069_s12 }
0x3166   :  { %p7848_p1 = pnand %p7846_p0, %p7843_p13 }
0x3168   :  { %7851 = shalt.err (!%p7848_p1)
}
0x3169   :  { %6150 = dma.vmem_to_hbm [thread:$0]  %s6145_s24, 256, %s9069_s12, [#allocation4], %s7872_s18, %s7872_s18, %s7873_s25  }
0x316a   :  { %7862 = dma.done.wait [#allocation4], 256  }
0x316b   :  { %7863 = vsyncadd [#allocation4], 4294967040 }
0x316c   :  { %6154 = vsyncpa [#allocation3], 1 }
0x316d   :  { %6155 = vsyncpa [#allocation6], 1 }
0x316e   :  { %6156 = vsyncpa [#allocation9], 1 }
0x316f   :  { %6157 = vsyncpa [#allocation12], 1 }
0x3170   :  { %6158 = vsyncpa [#allocation15], 1 }
0x3171   :  { %6159 = vsyncpa [#allocation4], 1 }

// kernel: tpu_custom_call.1
= control target key start
LH: loop header
LB: loop body
LE: loop exit
PB: predicated region body
PF: predicated region fallthrough
CT: control target
= control target key end

     0   :  { %17 = vsyncpa [#allocation3], 0  ;;  %s9057_s0 = inlined_call_operand.hbm [shape: f32[2,8,128], index: 0, kind: input, shape index: {}]   ;;  %s9058_s1 = inlined_call_operand.vmem [shape: f32[2,1,128], index: 1, kind: input, shape index: {}]   ;;  %s9059_s2 = inlined_call_operand.hbm [shape: bf16[2,128,384], index: 2, kind: input, shape index: {}]   ;;  %s9060_s3 = inlined_call_operand.hbm [shape: f32[2,1,384], index: 3, kind: input, shape index: {}]   ;;  %s9061_s4 = inlined_call_operand.hbm [shape: bf16[2,128,128], index: 4, kind: input, shape index: {}]   ;;  %s9062_s5 = inlined_call_operand.hbm [shape: f32[2,1,128], index: 5, kind: input, shape index: {}]   ;;  %s9063_s6 = inlined_call_operand.vmem [shape: f32[2,8,128], index: 6, kind: input, shape index: {}]   ;;  %s9064_s7 = inlined_call_operand.hbm [shape: f32[2,8,128], index: 7, kind: input, shape index: {}]   ;;  %s9065_s8 = inlined_call_operand.hbm [shape: bf16[2,128,512], index: 8, kind: input, shape index: {}]   ;;  %s9066_s9 = inlined_call_operand.vmem [shape: f32[2,1,512], index: 9, kind: input, shape index: {}]   ;;  %s9067_s10 = inlined_call_operand.hbm [shape: bf16[2,512,128], index: 10, kind: input, shape index: {}]   ;;  %s9068_s11 = inlined_call_operand.vmem [shape: f32[2,1,128], index: 11, kind: input, shape index: {}]   ;;  %s9069_s12 = inlined_call_operand.hbm [shape: f32[2,8,128], index: 12, kind: output, shape index: {}]  }
   0x1   :  { %18 = vsyncpa [#allocation6], 0 }
   0x2   :  { %19 = vsyncpa [#allocation9], 0 }
   0x3   :  { %20 = vsyncpa [#allocation12], 0 }
   0x4   :  { %21 = vsyncpa [#allocation15], 0 }
   0x5   :  { %22 = vsyncpa [#allocation4], 0  ;;  %s7864_s21 = smov [#allocation5]   ;;  %s7654_s25 = scalar_lea.hbm %s9059_s2, 6144 }
   0x6   :  { %s42_s22 = sshll.u32 %s7864_s21, 4  ;;  %p7655_p0 = scmp.ne.s32.totalorder %s9059_s2, %s7654_s25  ;;  %s43_s22 = int_to_ptr.vmem [resolvable:$true] %s42_s22 }
   0x7   :  { %p7658_p1 = scmp.lt.u32.totalorder %s7654_s25, %s9059_s2 }
   0x9   :  { %p7660_p2 = pnand %p7658_p1, %p7655_p0 }
   0xb   :  { %7663 = shalt.err (!%p7660_p2)
}
   0xc   :  { %s7664_s30 = scalar_lea.vmem %s43_s22, 6144  ;;  %p7669_p4 = scmp.lt.s32.totalorder %s43_s22, %s43_s22 }
   0xd   :  { %p7665_p3 = scmp.ne.s32.totalorder %s43_s22, %s7664_s30  ;;  %p7670_p5 = scmp.lt.s32.totalorder %s7664_s30, %s7664_s30 }
   0xf   :  { %p7671_p6 = por %p7670_p5, %p7669_p4 }
  0x11   :  { %p7672_p7 = pnand %p7671_p6, %p7665_p3 }
  0x13   :  { %7675 = shalt.err (!%p7672_p7)
}
  0x14   :  { %s7865_s13 = smov 192   ;;  %s7866_s14 = smov 12  }
  0x15   :  { %48 = dma.hbm_to_vmem [thread:$0]  %s9059_s2, 6144, %s43_s22, [#allocation6], %s7865_s13, %s7865_s13, %s7866_s14  }
  0x16   :  { %s7867_s17 = smov [#allocation8]   ;;  %s7676_s21 = scalar_lea.hbm %s9061_s4, 2048 }
  0x17   :  { %s66_s18 = sshll.u32 %s7867_s17, 4  ;;  %p7677_p8 = scmp.ne.s32.totalorder %s9061_s4, %s7676_s21  ;;  %s67_s18 = int_to_ptr.vmem [resolvable:$true] %s66_s18 }
  0x18   :  { %p7680_p9 = scmp.lt.u32.totalorder %s7676_s21, %s9061_s4 }
  0x1a   :  { %p7682_p10 = pnand %p7680_p9, %p7677_p8 }
  0x1c   :  { %7685 = shalt.err (!%p7682_p10)
}
  0x1d   :  { %s7686_s27 = scalar_lea.vmem %s67_s18, 2048  ;;  %p7691_p12 = scmp.lt.s32.totalorder %s67_s18, %s67_s18 }
  0x1e   :  { %p7687_p11 = scmp.ne.s32.totalorder %s67_s18, %s7686_s27  ;;  %p7692_p13 = scmp.lt.s32.totalorder %s7686_s27, %s7686_s27 }
  0x20   :  { %p7693_p0 = por %p7692_p13, %p7691_p12 }
  0x22   :  { %p7694_p1 = pnand %p7693_p0, %p7687_p11 }
  0x24   :  { %7697 = shalt.err (!%p7694_p1)
}
  0x25   :  { %s7868_s2 = smov 64   ;;  %s7869_s22 = smov 4  }
  0x26   :  { %72 = dma.hbm_to_vmem [thread:$0]  %s9061_s4, 2048, %s67_s18, [#allocation9], %s7868_s2, %s7868_s2, %s7869_s22  }
  0x27   :  { %s7870_s30 = smov [#allocation11]   ;;  %s7871_s14 = smov [#allocation2]  }
  0x28   :  { %s92_s13 = sshll.u32 %s7870_s30, 4  ;;  %s28_s15 = sshll.u32 %s7871_s14, 4  ;;  %s93_s13 = int_to_ptr.vmem [resolvable:$true] %s92_s13  ;;  %s7983_s15 = int_to_ptr.vmem [resolvable:$true] %s28_s15 }
  0x29   :  { %s7698_s19 = scalar_lea.hbm %s9064_s7, 256 }
  0x2a   :  { %p7699_p2 = scmp.ne.s32.totalorder %s9064_s7, %s7698_s19  ;;  %p7702_p3 = scmp.lt.u32.totalorder %s7698_s19, %s9064_s7 }
  0x2c   :  { %p7704_p4 = pnand %p7702_p3, %p7699_p2 }
  0x2e   :  { %7707 = shalt.err (!%p7704_p4)
}
  0x2f   :  { %s7708_s4 = scalar_lea.vmem %s93_s13, 256  ;;  %p7713_p6 = scmp.lt.s32.totalorder %s93_s13, %s93_s13 }
  0x30   :  { %p7709_p5 = scmp.ne.s32.totalorder %s93_s13, %s7708_s4  ;;  %p7714_p7 = scmp.lt.s32.totalorder %s7708_s4, %s7708_s4 }
  0x32   :  { %p7715_p8 = por %p7714_p7, %p7713_p6 }
  0x34   :  { %p7716_p9 = pnand %p7715_p8, %p7709_p5 }
  0x36   :  { %7719 = shalt.err (!%p7716_p9)
}
  0x37   :  { %s7872_s18 = smov 128   ;;  %s7873_s25 = smov 8  }
  0x38   :  { %98 = dma.hbm_to_vmem [thread:$0]  %s9064_s7, 256, %s93_s13, [#allocation12], %s7872_s18, %s7872_s18, %s7873_s25  }
  0x39   :  { %s7720_s30 = scalar_lea.hbm %s9057_s0, 256 }
  0x3a   :  { %p7721_p10 = scmp.ne.s32.totalorder %s9057_s0, %s7720_s30  ;;  %p7724_p11 = scmp.lt.u32.totalorder %s7720_s30, %s9057_s0 }
  0x3c   :  { %p7726_p12 = pnand %p7724_p11, %p7721_p10 }
  0x3e   :  { %7729 = shalt.err (!%p7726_p12)
}
  0x3f   :  { %s7730_s20 = scalar_lea.vmem %s7983_s15, 256  ;;  %p7735_p0 = scmp.lt.s32.totalorder %s7983_s15, %s7983_s15 }
  0x40   :  { %p7731_p13 = scmp.ne.s32.totalorder %s7983_s15, %s7730_s20  ;;  %p7736_p1 = scmp.lt.s32.totalorder %s7730_s20, %s7730_s20 }
  0x42   :  { %p7737_p2 = por %p7736_p1, %p7735_p0 }
  0x44   :  { %p7738_p3 = pnand %p7737_p2, %p7731_p13 }
  0x46   :  { %7741 = shalt.err (!%p7738_p3)
}
  0x47   :  { %34 = dma.hbm_to_vmem [thread:$0]  %s9057_s0, 256, %s7983_s15, [#allocation3], %s7872_s18, %s7872_s18, %s7873_s25  }
  0x48   :  { %s7874_s21 = smov [#allocation7]   ;;  %s7742_s26 = scalar_lea.hbm %s9060_s3, 96 }
  0x49   :  { %s54_s23 = sshll.u32 %s7874_s21, 4  ;;  %p7743_p4 = scmp.ne.s32.totalorder %s9060_s3, %s7742_s26  ;;  %s55_s23 = int_to_ptr.vmem [resolvable:$true] %s54_s23 }
  0x4a   :  { %p7746_p5 = scmp.lt.u32.totalorder %s7742_s26, %s9060_s3 }
  0x4c   :  { %p7748_p6 = pnand %p7746_p5, %p7743_p4 }
  0x4e   :  { %7751 = shalt.err (!%p7748_p6)
}
  0x4f   :  { %s7752_s14 = scalar_lea.vmem %s55_s23, 96  ;;  %p7757_p8 = scmp.lt.s32.totalorder %s55_s23, %s55_s23 }
  0x50   :  { %p7753_p7 = scmp.ne.s32.totalorder %s55_s23, %s7752_s14  ;;  %p7758_p9 = scmp.lt.s32.totalorder %s7752_s14, %s7752_s14 }
  0x52   :  { %p7759_p10 = por %p7758_p9, %p7757_p8 }
  0x54   :  { %p7760_p11 = pnand %p7759_p10, %p7753_p7 }
  0x56   :  { %7763 = shalt.err (!%p7760_p11)
}
  0x57   :  { %s7875_s0 = smov 48   ;;  %s7876_s15 = smov 3  }
  0x58   :  { %60 = dma.hbm_to_vmem [thread:$0]  %s9060_s3, 96, %s55_s23, [#allocation6], %s7875_s0, %s7875_s0, %s7876_s15  }
  0x59   :  { %s7877_s19 = smov [#allocation10]   ;;  %s7764_s21 = scalar_lea.hbm %s9062_s5, 32 }
  0x5a   :  { %s78_s20 = sshll.u32 %s7877_s19, 4  ;;  %p7765_p12 = scmp.ne.s32.totalorder %s9062_s5, %s7764_s21  ;;  %s79_s20 = int_to_ptr.vmem [resolvable:$true] %s78_s20 }
  0x5b   :  { %p7768_p13 = scmp.lt.u32.totalorder %s7764_s21, %s9062_s5 }
  0x5d   :  { %p7770_p0 = pnand %p7768_p13, %p7765_p12 }
  0x5f   :  { %7773 = shalt.err (!%p7770_p0)
}
  0x60   :  { %s7774_s28 = scalar_lea.vmem %s79_s20, 32  ;;  %p7779_p2 = scmp.lt.s32.totalorder %s79_s20, %s79_s20 }
  0x61   :  { %p7775_p1 = scmp.ne.s32.totalorder %s79_s20, %s7774_s28  ;;  %p7780_p3 = scmp.lt.s32.totalorder %s7774_s28, %s7774_s28 }
  0x63   :  { %p7781_p4 = por %p7780_p3, %p7779_p2 }
  0x65   :  { %p7782_p5 = pnand %p7781_p4, %p7775_p1 }
  0x67   :  { %7785 = shalt.err (!%p7782_p5)
}
  0x68   :  { %s7878_s3 = smov 16   ;;  %s7879_s23 = smov 1  }
  0x69   :  { %84 = dma.hbm_to_vmem [thread:$0]  %s9062_s5, 32, %s79_s20, [#allocation9], %s7878_s3, %s7878_s3, %s7879_s23  }
  0x6a   :  { %s7880_s14 = smov [#allocation13]   ;;  %s7881_s16 = smov [#allocation14]  }
  0x6b   :  { %s104_s15 = sshll.u32 %s7880_s14, 4  ;;  %s118_s17 = sshll.u32 %s7881_s16, 4  ;;  %s105_s15 = int_to_ptr.vmem [resolvable:$true] %s104_s15  ;;  %s119_s17 = int_to_ptr.vmem [resolvable:$true] %s118_s17 }
  0x6c   :  { %s7786_s13 = scalar_lea.hbm %s9065_s8, 8192 }
  0x6d   :  { %p7787_p6 = scmp.ne.s32.totalorder %s9065_s8, %s7786_s13  ;;  %p7790_p7 = scmp.lt.u32.totalorder %s7786_s13, %s9065_s8 }
  0x6f   :  { %p7792_p8 = pnand %p7790_p7, %p7787_p6 }
  0x71   :  { %7795 = shalt.err (!%p7792_p8)
}
  0x72   :  { %s7796_s5 = scalar_lea.vmem %s105_s15, 8192  ;;  %p7801_p10 = scmp.lt.s32.totalorder %s105_s15, %s105_s15 }
  0x73   :  { %p7797_p9 = scmp.ne.s32.totalorder %s105_s15, %s7796_s5  ;;  %p7802_p11 = scmp.lt.s32.totalorder %s7796_s5, %s7796_s5 }
  0x75   :  { %p7803_p12 = por %p7802_p11, %p7801_p10 }
  0x77   :  { %p7804_p13 = pnand %p7803_p12, %p7797_p9 }
  0x79   :  { %7807 = shalt.err (!%p7804_p13)
}
  0x7a   :  { %s7882_s20 = smov 256   ;;  %s7808_s30 = scalar_lea.hbm %s9067_s10, 8192 }
  0x7b   :  { %110 = dma.hbm_to_vmem [thread:$0]  %s9065_s8, 8192, %s105_s15, [#allocation12], %s7882_s20, %s7882_s20, %s7878_s3  }
  0x7c   :  { %p7809_p0 = scmp.ne.s32.totalorder %s9067_s10, %s7808_s30  ;;  %p7812_p1 = scmp.lt.u32.totalorder %s7808_s30, %s9067_s10 }
  0x7e   :  { %p7814_p2 = pnand %p7812_p1, %p7809_p0 }
  0x80   :  { %7817 = shalt.err (!%p7814_p2)
}
  0x81   :  { %s7818_s13 = scalar_lea.vmem %s119_s17, 8192  ;;  %p7823_p4 = scmp.lt.s32.totalorder %s119_s17, %s119_s17 }
  0x82   :  { %p7819_p3 = scmp.ne.s32.totalorder %s119_s17, %s7818_s13  ;;  %p7824_p5 = scmp.lt.s32.totalorder %s7818_s13, %s7818_s13 }
  0x84   :  { %p7825_p6 = por %p7824_p5, %p7823_p4 }
  0x86   :  { %p7826_p7 = pnand %p7825_p6, %p7819_p3 }
  0x88   :  { %7829 = shalt.err (!%p7826_p7)
}
  0x89   :  { %124 = dma.hbm_to_vmem [thread:$0]  %s9067_s10, 8192, %s119_s17, [#allocation15], %s7868_s2, %s7868_s2, %s7869_s22  }
  0x8a   :  { %7852 = dma.done.wait [#allocation3], 256  }
  0x8b   :  { %7853 = vsyncadd [#allocation3], 4294967040 }
  0x8c   :  { %7854 = dma.done.wait [#allocation6], 6240  }
  0x8d   :  { %7855 = vsyncadd [#allocation6], 4294961056 }
  0x8e   :  { %7856 = dma.done.wait [#allocation9], 2080  }
  0x8f   :  { %7857 = vsyncadd [#allocation9], 4294965216 }
  0x90   :  { %7858 = dma.done.wait [#allocation12], 8448  }
  0x91   :  { %7859 = vsyncadd [#allocation12], 4294958848 }
  0x92   :  { %7860 = dma.done.wait [#allocation15], 8192  }
  0x93   :  { %7861 = vsyncadd [#allocation15], 4294959104  ;;  %v7883_v0 = vmov 0   ;;  %v7884_v1 = vmov 0.0   ;;  %v7262_v2 = vld [vmem:[#allocation5 + $0x4] ss:$12 sps:$4 sm:$0xff]   ;;  %v308_v29 = vlaneseq }
  0x94   :  { %483 = vmatprep.mubr.bf16.mxu0 %v7883_v0  ;;  %6701 = vmatprep.subr.bf16.mxu1 %v7884_v1  ;;  %v7264_v3 = vld [vmem:[#allocation5] ss:$12 sps:$4 sm:$0xff]   ;;  %v7265_v4 = vld [vmem:[#allocation5 + $0x1c] ss:$12 sps:$4 sm:$0xff]   ;;  %v7267_v5 = vld [vmem:[#allocation5 + $0x18] ss:$12 sps:$4 sm:$0xff]  }
  0x95   :  { %451 = vmatprep.subr.bf16.mxu0 %v7262_v2  ;;  %v7268_v6 = vld [vmem:[#allocation5 + $0x34] ss:$12 sps:$4 sm:$0xff]   ;;  %v7270_v7 = vld [vmem:[#allocation5 + $0x30] ss:$12 sps:$4 sm:$0xff]   ;;  %v7271_v8 = vld [vmem:[#allocation5 + $0x4c] ss:$12 sps:$4 sm:$0xff]  }
  0x96   :  { %452 = vmatpush1.bf16.msra.mxu0 %v7264_v3  ;;  %v7273_v9 = vld [vmem:[#allocation5 + $0x48] ss:$12 sps:$4 sm:$0xff]   ;;  %v7274_v10 = vld [vmem:[#allocation5 + $0x64] ss:$12 sps:$4 sm:$0xff]   ;;  %v7287_v12 = vld [vmem:[#allocation5 + $0x20] ss:$12 sps:$4 sm:$0xff]  }
  0x97   :  { %453 = vmatprep.subr.bf16.mxu0 %v7265_v4  ;;  %v7286_v11 = vld [vmem:[#allocation5 + $0x8] ss:$12 sps:$4 sm:$0xff]   ;;  %v7276_v13 = vld [vmem:[#allocation5 + $0x60] ss:$12 sps:$4 sm:$0xff]   ;;  %v7288_v15 = vld [vmem:[#allocation5 + $0x38] ss:$12 sps:$4 sm:$0xff]  }
  0x98   :  { %6702 = vmatpush3.bf16.msra.mxu1 %v7286_v11  ;;  %v7277_v14 = vld [vmem:[#allocation5 + $0x7c] ss:$12 sps:$4 sm:$0xff]   ;;  %v7279_v16 = vld [vmem:[#allocation5 + $0x78] ss:$12 sps:$4 sm:$0xff]   ;;  %v7280_v17 = vld [vmem:[#allocation5 + $0x94] ss:$12 sps:$4 sm:$0xff]  }
  0x99   :  { %6703 = vmatprep.subr.bf16.mxu1 %v7884_v1  ;;  %v7289_v18 = vld [vmem:[#allocation5 + $0x50] ss:$12 sps:$4 sm:$0xff]   ;;  %v7283_v20 = vld [vmem:[#allocation5 + $0xac] ss:$12 sps:$4 sm:$0xff]   ;;  %v7290_v21 = vld [vmem:[#allocation5 + $0x68] ss:$12 sps:$4 sm:$0xff]  }
  0x9a   :  { %454 = vmatpush1.bf16.msra.mxu0 %v7267_v5  ;;  %v7282_v19 = vld [vmem:[#allocation5 + $0x90] ss:$12 sps:$4 sm:$0xff]   ;;  %v7285_v22 = vld [vmem:[#allocation5 + $0xa8] ss:$12 sps:$4 sm:$0xff]   ;;  %v7291_v25 = vld [vmem:[#allocation5 + $0x80] ss:$12 sps:$4 sm:$0xff]  }
  0x9b   :  { %455 = vmatprep.subr.bf16.mxu0 %v7268_v6  ;;  %v154_v23 = vld [vmem:[#allocation2] sm:$0xff]  ;;  %v155_v24 = vld [vmem:[#allocation2 + $0x8] sm:$0xff]  ;;  %vm7885_vm0 = vmmov 0   ;;  %v8093_v30 = vshrl.u32 %v308_v29, 7  ;;  %v188_v32 = vld [vmem:[#allocation7] sm:$0x7] }
  0x9c   :  { %6704 = vmatpush3.bf16.msra.mxu1 %v7287_v12  ;;  %v306_v26 = vpack.c.bf16 %v155_v24, %v154_v23  ;;  %v7292_v27 = vld [vmem:[#allocation5 + $0x98] ss:$12 sps:$4 sm:$0xff]   ;;  %v7293_v28 = vld [vmem:[#allocation5 + $0xb0] ss:$12 sps:$4 sm:$0xff]   ;;  %6717 = vmatprep.mubr.msk.bf16.mxu1 %vm7885_vm0, %v7884_v1  ;;  %vm565_vm1 = vcmask 130048   ;;  %vm686_vm2 = vcmask 1043456  }
  0x9d   :  { %6705 = vmatprep.subr.bf16.mxu1 %v7884_v1  ;;  %v8096_v31 = vsub.s32 1, %v8093_v30  ;;  %v8100_v34 = vsub.s32 0, %v8093_v30  ;;  %v8126_v50 = vsub.s32 2, %v8093_v30  ;;  %v8137_v60 = vld [vmem:[%s9058_s1] ss:$0 sm:$0xff]  ;;  %vm658_vm3 = vcmask 64512  }
  0x9e   :  { %456 = vmatpush1.bf16.msra.mxu0 %v7270_v7  ;;  %v8144_v5 = vld [vmem:[%s9058_s1 + $0x1] ss:$0 sm:$0xff]  ;;  %s7886_s24 = smov 112   ;;  %s7887_s4 = smov 96   ;;  %vm2374_vm4 = vcmask 261120   ;;  %vm2377_vm5 = vcmask 392192  }
  0x9f   :  { %457 = vmatprep.subr.bf16.mxu0 %v7271_v8  ;;  %v315_v33 = vrot.slane %v188_v32, %v8096_v31  ;;  %v311_v40 = vrot.slane %v188_v32, %v8100_v34  ;;  %v319_v51 = vrot.slane %v188_v32, %v8126_v50  ;;  %s7888_s26 = smov 80   ;;  %s7889_s5 = smov 32   ;;  %vm2380_vm6 = vcmask 523264  }
  0xa0   :  { %6706 = vmatpush3.bf16.msra.mxu1 %v7288_v15  ;;  %vm2383_vm7 = vcmask 654336   ;;  %vm2386_vm8 = vcmask 785408   ;;  %vm2389_vm9 = vcmask 916480  }
  0xa1   :  { %6707 = vmatprep.subr.bf16.mxu1 %v7884_v1 }
  0xa2   :  { %458 = vmatpush1.bf16.msra.mxu0 %v7273_v9 }
  0xa3   :  { %459 = vmatprep.subr.bf16.mxu0 %v7274_v10 }
  0xa4   :  { %6708 = vmatpush3.bf16.msra.mxu1 %v7289_v18 }
  0xa5   :  { %6709 = vmatprep.subr.bf16.mxu1 %v7884_v1 }
  0xa6   :  { %460 = vmatpush1.bf16.msra.mxu0 %v7276_v13 }
  0xa7   :  { %461 = vmatprep.subr.bf16.mxu0 %v7277_v14 }
  0xa8   :  { %6710 = vmatpush3.bf16.msra.mxu1 %v7290_v21 }
  0xa9   :  { %6711 = vmatprep.subr.bf16.mxu1 %v7884_v1 }
  0xaa   :  { %462 = vmatpush1.bf16.msra.mxu0 %v7279_v16 }
  0xab   :  { %463 = vmatprep.subr.bf16.mxu0 %v7280_v17 }
  0xac   :  { %6712 = vmatpush3.bf16.msra.mxu1 %v7291_v25 }
  0xad   :  { %6713 = vmatprep.subr.bf16.mxu1 %v7884_v1 }
  0xae   :  { %464 = vmatpush1.bf16.msra.mxu0 %v7282_v19 }
  0xaf   :  { %465 = vmatprep.subr.bf16.mxu0 %v7283_v20 }
  0xb0   :  { %6714 = vmatpush3.bf16.msra.mxu1 %v7292_v27 }
  0xb1   :  { %6715 = vmatprep.subr.bf16.mxu1 %v7884_v1 }
  0xb2   :  { %466 = vmatpush1.bf16.msra.mxu0 %v7285_v22 }
  0xb3   :  { %6745 = vmatprep.subr.bf16.mxu0 %v7884_v1 }
  0xb4   :  { %6716 = vmatpush3.bf16.msra.mxu1 %v7293_v28 }
  0xb5   :  { %484 = vmatmul.mubr.bf16.vlgmr.msra.gmra.mrb[0].mxu0 %v306_v26  ;;  %6721 = vmatprep.subr.bf16.mxu1 %v7884_v1 }
  0xb6   :  { %6747 = vmatprep.mubr.msk.bf16.mxu0 %vm7885_vm0, %v7884_v1 }
  0xb7   :  { %6718 = vmatmul.mubr.bf16.vlgmr.msra.gmra.mrb[0].mxu1 %v306_v26 }
  0xb8   :  { %6723 = vmatprep.mubr.msk.bf16.mxu1 %vm7885_vm0, %v7884_v1 }
 0x188   :  { %v485_v35 = vpop.f32.mrb[0].mxu0 }
 0x189   :  { %v487_v36 = vpop.f32.mrb[1].mxu0  ;;  %v486_v44 = vadd.f32 %v485_v35, %v311_v40 }
 0x18a   :  { %v488_v37 = vadd.f32 %v487_v36, %v315_v33  ;;  %v489_v38 = vpop.f32.mrb[2].mxu0  ;;  %v528_v52 = vpop.f32.mrb[0].mxu1 }
 0x18b   :  { %v491_v39 = vpop.f32.mrb[3].mxu0  ;;  %v8110_v46 = vpack.c.bf16 %v486_v44, %v486_v44  ;;  %v490_v48 = vadd.f32 %v489_v38, %v311_v40  ;;  %v529_v53 = vadd.f32 %v528_v52, %v319_v51  ;;  %v6719_v54 = vpop.f32.mrb[1].mxu1 }
 0x18c   :  { %v8103_v41 = vpack.c.bf16 %v488_v37, %v488_v37  ;;  %v492_v42 = vadd.f32 %v491_v39, %v315_v33  ;;  %v531_v55 = vpop.f32.mrb[2].mxu1 }
 0x18d   :  { %v8119_v49 = vpack.c.bf16 %v490_v48, %v490_v48  ;;  %v8129_v56 = vpack.c.bf16 %v529_v53, %v529_v53  ;;  %v532_v57 = vadd.f32 %v531_v55, %v319_v51  ;;  %v6720_v58 = vpop.f32.mrb[3].mxu1 }
 0x18e   :  { %v570_v43 = vsel %vm565_vm1, %v8103_v41, 0  ;;  %v8108_v45 = vpack.c.bf16 %v492_v42, %v492_v42 }
 0x18f   :  { %6722 = vmatpush3.bf16.xpose.msra.mxu1 %v570_v43  ;;  %v688_v59 = vsel %vm686_vm2, %v8129_v56, 0  ;;  %v8160_v26 = vpack.c.bf16 %v532_v57, %v532_v57 }
 0x190   :  { %6727 = vmatprep.subr.bf16.mxu1 %v7884_v1  ;;  %v616_v47 = vsel %vm565_vm1, %v8108_v45, 0 }
 0x191   :  { %v734_v29 = vsel %vm686_vm2, %v8160_v26, 0 }
 0x196   :  { %6724 = vmatmul.mubr.msk.bf16.vlgmr.msra.gmra.mrb[4].mxu1 %vm565_vm1, %v8110_v46 }
 0x197   :  { %6728 = vmatpush3.bf16.xpose.msra.mxu1 %v616_v47  ;;  %6729 = vmatprep.mubr.msk.bf16.mxu1 %vm7885_vm0, %v7884_v1 }
 0x198   :  { %6733 = vmatprep.subr.bf16.mxu1 %v7884_v1 }
 0x19e   :  { %6730 = vmatmul.mubr.msk.bf16.vlgmr.msra.gmra.mrb[8].mxu1 %vm565_vm1, %v8119_v49 }
 0x19f   :  { %6735 = vmatprep.mubr.msk.bf16.mxu1 %vm7885_vm0, %v7884_v1  ;;  %6734 = vmatpush3.bf16.msra.mxu1 %v688_v59 }
 0x1a0   :  { %6739 = vmatprep.subr.bf16.mxu1 %v7884_v1 }
 0x269   :  { %v606_v61 = vpop.f32.mrb[4].mxu1 }
 0x26a   :  { %v607_v62 = vadd.f32 %v8137_v60, %v606_v61  ;;  %v6725_v63 = vpop.f32.mrb[5].mxu1 }
 0x26b   :  { %v609_v2 = vpop.f32.mrb[6].mxu1 }
 0x26c   :  { %v6726_v3 = vpop.f32.mrb[7].mxu1  ;;  %v659_v4 = vsel %vm658_vm3, %v607_v62, -inf }
 0x26d   :  { %660 = vmax.xlane.f32.xlu0 %v659_v4 }
 0x271   :  { %v652_v6 = vpop.f32.mrb[8].mxu1 }
 0x272   :  { %v653_v7 = vadd.f32 %v8144_v5, %v652_v6  ;;  %v6731_v8 = vpop.f32.mrb[9].mxu1 }
 0x273   :  { %v655_v9 = vpop.f32.mrb[10].mxu1 }
 0x274   :  { %v6732_v10 = vpop.f32.mrb[11].mxu1  ;;  %v662_v11 = vsel %vm658_vm3, %v653_v7, -inf }
 0x275   :  { %663 = vmax.xlane.f32.xlu0 %v662_v11 }
 0x28b   :  { %778 = vrot.lane.b32.xlu0 %v8103_v41, %s7886_s24 }
 0x2fa   :  { %v661_v12 = vpop.xlane.xlu0 %660 }
 0x2fb   :  { %v665_v13 = vsub.f32 %v607_v62, %v661_v12 }
 0x2fd   :  { %v667_v14 = vmul.f32 1.442695, %v665_v13 }
 0x2ff   :  { %7502 = vpow2.f32 %v667_v14 }
 0x302   :  { %v664_v15 = vpop.xlane.xlu0 %663 }
 0x303   :  { %v666_v20 = vsub.f32 %v653_v7, %v664_v15 }
 0x305   :  { %v669_v21 = vmul.f32 1.442695, %v666_v20 }
 0x306   :  { %v779_v16 = vpop.permute.xlu0 %778 }
 0x307   :  { %v784_v17 = vsel %vm565_vm1, %v779_v16, 0  ;;  %7504 = vpow2.f32 %v669_v21 }
 0x308   :  { %6746 = vmatpush3.bf16.xpose.msra.mxu0 %v784_v17 }
 0x309   :  { %v7503_v18 = vpop.eup %7502  ;;  %6757 = vmatprep.subr.bf16.mxu0 %v7884_v1 }
 0x30a   :  { %v671_v19 = vsel %vm658_vm3, %v7503_v18, 0.0 }
 0x30b   :  { %672 = vadd.xlane.f32.xlu1 %v671_v19 }
 0x311   :  { %v7505_v22 = vpop.eup %7504 }
 0x312   :  { %v674_v23 = vsel %vm658_vm3, %v7505_v22, 0.0 }
 0x31c   :  { %828 = vrot.lane.b32.xlu1 %v8108_v45, %s7886_s24 }
 0x340   :  { %675 = vadd.xlane.f32.xlu1 %v674_v23 }
 0x351   :  { %776 = vrot.lane.b32.xlu1 %v8110_v46, %s7886_s24 }
 0x355   :  { %826 = vrot.lane.b32.xlu1 %v8119_v49, %s7886_s24 }
 0x398   :  { %v673_v24 = vpop.xlane.xlu1 %672 }
 0x399   :  { %7506 = vrcp.f32 %v673_v24 }
 0x39c   :  { %v829_v32 = vpop.permute.xlu1 %828 }
 0x39d   :  { %v834_v39 = vsel %vm565_vm1, %v829_v32, 0 }
 0x3a3   :  { %v7507_v25 = vpop.eup %7506 }
 0x3a4   :  { %v678_v27 = vmul.f32 %v7507_v25, %v7503_v18 }
 0x3a6   :  { %v681_v28 = vpack.c.bf16 %v678_v27, %v678_v27 }
 0x3a8   :  { %6736 = vmatmul.mubr.msk.bf16.vlgmr.msra.gmra.mrb[12].mxu1 %vm658_vm3, %v681_v28 }
 0x3a9   :  { %6740 = vmatpush3.bf16.msra.mxu1 %v734_v29  ;;  %6741 = vmatprep.mubr.msk.bf16.mxu1 %vm7885_vm0, %v7884_v1 }
 0x3aa   :  { %6751 = vmatprep.subr.bf16.mxu1 %v7884_v1 }
 0x3cd   :  { %v676_v33 = vpop.xlane.xlu1 %675 }
 0x3ce   :  { %7508 = vrcp.f32 %v676_v33 }
 0x3d1   :  { %v777_v35 = vpop.permute.xlu1 %776 }
 0x3d2   :  { %6748 = vmatmul.mubr.msk.bf16.vlgmr.msra.gmra.mrb[4].mxu0 %vm565_vm1, %v777_v35 }
 0x3d3   :  { %6759 = vmatprep.mubr.msk.bf16.mxu0 %vm7885_vm0, %v7884_v1 }
 0x3d5   :  { %v827_v40 = vpop.permute.xlu1 %826 }
 0x3d8   :  { %v7509_v36 = vpop.eup %7508 }
 0x3d9   :  { %v680_v37 = vmul.f32 %v7509_v36, %v7505_v22 }
 0x3db   :  { %v682_v38 = vpack.c.bf16 %v680_v37, %v680_v37 }
 0x3dd   :  { %6742 = vmatmul.mubr.msk.bf16.vlgmr.msra.gmra.mrb[16].mxu1 %vm658_vm3, %v682_v38 }
 0x3de   :  { %6752 = vmatpush3.bf16.xpose.msra.mxu1 %v834_v39  ;;  %6753 = vmatprep.mubr.msk.bf16.mxu1 %vm7885_vm0, %v7884_v1 }
 0x3df   :  { %6763 = vmatprep.subr.bf16.mxu1 %v7884_v1 }
 0x3e5   :  { %6754 = vmatmul.mubr.msk.bf16.vlgmr.msra.gmra.mrb[20].mxu1 %vm565_vm1, %v827_v40 }
 0x3e6   :  { %6765 = vmatprep.mubr.msk.bf16.mxu1 %vm7885_vm0, %v7884_v1 }
 0x47b   :  { %v8179_v42 = vpop.f32.mrb[12].mxu1 }
 0x47c   :  { %v6737_v43 = vpop.f32.mrb[13].mxu1 }
 0x47d   :  { %v727_v44 = vpop.f32.mrb[14].mxu1 }
 0x47e   :  { %v6738_v47 = vpop.f32.mrb[15].mxu1 }
 0x4a5   :  { %v820_v48 = vpop.f32.mrb[4].mxu0 }
 0x4a6   :  { %v821_v51 = vadd.f32 %v8137_v60, %v820_v48  ;;  %v6749_v52 = vpop.f32.mrb[5].mxu0 }
 0x4a7   :  { %v823_v53 = vpop.f32.mrb[6].mxu0 }
 0x4a8   :  { %v6750_v54 = vpop.f32.mrb[7].mxu0  ;;  %v876_v55 = vsel %vm658_vm3, %v821_v51, -inf }
 0x4a9   :  { %877 = vmax.xlane.f32.xlu0 %v876_v55 }
 0x4b0   :  { %v8183_v57 = vpop.f32.mrb[16].mxu1 }
 0x4b1   :  { %v6743_v58 = vpop.f32.mrb[17].mxu1 }
 0x4b2   :  { %v773_v59 = vpop.f32.mrb[18].mxu1 }
 0x4b3   :  { %v6744_v61 = vpop.f32.mrb[19].mxu1 }
 0x4b8   :  { %v870_v62 = vpop.f32.mrb[20].mxu1 }
 0x4b9   :  { %v871_v63 = vadd.f32 %v8144_v5, %v870_v62  ;;  %v6755_v2 = vpop.f32.mrb[21].mxu1 }
 0x4ba   :  { %v873_v3 = vpop.f32.mrb[22].mxu1 }
 0x4bb   :  { %v6756_v4 = vpop.f32.mrb[23].mxu1  ;;  %v879_v6 = vsel %vm658_vm3, %v871_v63, -inf }
 0x4bc   :  { %880 = vmax.xlane.f32.xlu1 %v879_v6 }
 0x4cd   :  { %948 = vrot.lane.b32.xlu1 %v8160_v26, %s7886_s24 }
 0x4d1   :  { %998 = vrot.lane.b32.xlu1 %v8103_v41, %s7887_s4 }
 0x4d5   :  { %1048 = vrot.lane.b32.xlu1 %v8108_v45, %s7887_s4 }
 0x4d9   :  { %1046 = vrot.lane.b32.xlu1 %v8119_v49, %s7887_s4 }
 0x536   :  { %v878_v7 = vpop.xlane.xlu0 %877 }
 0x537   :  { %v882_v8 = vsub.f32 %v821_v51, %v878_v7 }
 0x539   :  { %v884_v9 = vmul.f32 1.442695, %v882_v8 }
 0x53b   :  { %7510 = vpow2.f32 %v884_v9 }
 0x545   :  { %v7511_v10 = vpop.eup %7510 }
 0x546   :  { %v888_v11 = vsel %vm658_vm3, %v7511_v10, 0.0 }
 0x547   :  { %889 = vadd.xlane.f32.xlu0 %v888_v11 }
 0x549   :  { %v881_v12 = vpop.xlane.xlu1 %880 }
 0x54a   :  { %v883_v13 = vsub.f32 %v871_v63, %v881_v12 }
 0x54c   :  { %v886_v14 = vmul.f32 1.442695, %v883_v13 }
 0x54d   :  { %v949_v15 = vpop.permute.xlu1 %948 }
 0x54e   :  { %7512 = vpow2.f32 %v886_v14  ;;  %v954_v16 = vsel %vm686_vm2, %v949_v15, 0 }
 0x54f   :  { %6764 = vmatpush3.bf16.msra.mxu1 %v954_v16 }
 0x550   :  { %6775 = vmatprep.subr.bf16.mxu1 %v7884_v1 }
 0x551   :  { %v999_v25 = vpop.permute.xlu1 %998 }
 0x552   :  { %v1004_v33 = vsel %vm565_vm1, %v999_v25, 0 }
 0x555   :  { %v1049_v32 = vpop.permute.xlu1 %1048 }
 0x556   :  { %v1054_v36 = vsel %vm565_vm1, %v1049_v32, 0 }
 0x558   :  { %v7513_v17 = vpop.eup %7512 }
 0x559   :  { %v891_v18 = vsel %vm658_vm3, %v7513_v17, 0.0  ;;  %v1047_v38 = vpop.permute.xlu1 %1046 }
 0x55a   :  { %892 = vadd.xlane.f32.xlu0 %v891_v18 }
 0x570   :  { %900 = vrot.lane.b32.xlu0 %v8129_v56, %s7886_s24 }
 0x574   :  { %996 = vrot.lane.b32.xlu0 %v8110_v46, %s7887_s4 }
 0x5d4   :  { %v890_v19 = vpop.xlane.xlu0 %889 }
 0x5d5   :  { %7514 = vrcp.f32 %v890_v19 }
 0x5df   :  { %v7515_v20 = vpop.eup %7514 }
 0x5e0   :  { %v895_v22 = vmul.f32 %v7515_v20, %v7511_v10 }
 0x5e2   :  { %v898_v27 = vpack.c.bf16 %v895_v22, %v895_v22 }
 0x5e7   :  { %v893_v21 = vpop.xlane.xlu0 %892 }
 0x5e8   :  { %7516 = vrcp.f32 %v893_v21 }
 0x5eb   :  { %v901_v23 = vpop.permute.xlu0 %900 }
 0x5ec   :  { %v906_v24 = vsel %vm686_vm2, %v901_v23, 0 }
 0x5ed   :  { %6758 = vmatpush3.bf16.msra.mxu0 %v906_v24 }
 0x5ee   :  { %6769 = vmatprep.subr.bf16.mxu0 %v7884_v1 }
 0x5ef   :  { %v997_v37 = vpop.permute.xlu0 %996 }
 0x5f0   :  { %6760 = vmatmul.mubr.msk.bf16.vlgmr.msra.gmra.mrb[8].mxu0 %vm658_vm3, %v898_v27 }
 0x5f1   :  { %6771 = vmatprep.mubr.msk.bf16.mxu0 %vm7885_vm0, %v7884_v1 }
 0x5f2   :  { %v7517_v28 = vpop.eup %7516 }
 0x5f3   :  { %v897_v29 = vmul.f32 %v7517_v28, %v7513_v17 }
 0x5f5   :  { %v899_v35 = vpack.c.bf16 %v897_v29, %v897_v29 }
 0x5f6   :  { %6770 = vmatpush3.bf16.xpose.msra.mxu0 %v1004_v33 }
 0x5f7   :  { %6766 = vmatmul.mubr.msk.bf16.vlgmr.msra.gmra.mrb[24].mxu1 %vm658_vm3, %v899_v35  ;;  %6781 = vmatprep.subr.bf16.mxu0 %v7884_v1 }
 0x5f8   :  { %6776 = vmatpush3.bf16.xpose.msra.mxu1 %v1054_v36  ;;  %6777 = vmatprep.mubr.msk.bf16.mxu1 %vm7885_vm0, %v7884_v1 }
 0x5f9   :  { %6787 = vmatprep.subr.bf16.mxu1 %v7884_v1 }
 0x5fd   :  { %6772 = vmatmul.mubr.msk.bf16.vlgmr.msra.gmra.mrb[12].mxu0 %vm565_vm1, %v997_v37 }
 0x5fe   :  { %6783 = vmatprep.mubr.msk.bf16.mxu0 %vm7885_vm0, %v7884_v1 }
 0x5ff   :  { %6778 = vmatmul.mubr.msk.bf16.vlgmr.msra.gmra.mrb[28].mxu1 %vm565_vm1, %v1047_v38 }
 0x600   :  { %6789 = vmatprep.mubr.msk.bf16.mxu1 %vm7885_vm0, %v7884_v1 }
 0x6c3   :  { %v8221_v39 = vpop.f32.mrb[8].mxu0 }
 0x6c4   :  { %v6761_v40 = vpop.f32.mrb[9].mxu0 }
 0x6c5   :  { %v945_v43 = vpop.f32.mrb[10].mxu0 }
 0x6c6   :  { %v6762_v44 = vpop.f32.mrb[11].mxu0 }
 0x6ca   :  { %v8223_v47 = vpop.f32.mrb[24].mxu1 }
 0x6cb   :  { %v7192_v48 = vpack.i.bf16 %v8223_v47, %v8221_v39  ;;  %v6767_v51 = vpop.f32.mrb[25].mxu1 }
 0x6cc   :  { %v993_v52 = vpop.f32.mrb[26].mxu1 }
 0x6cd   :  { %v6768_v53 = vpop.f32.mrb[27].mxu1 }
 0x6d0   :  { %v1040_v54 = vpop.f32.mrb[12].mxu0 }
 0x6d1   :  { %v1041_v55 = vadd.f32 %v8137_v60, %v1040_v54  ;;  %v6773_v58 = vpop.f32.mrb[13].mxu0 }
 0x6d2   :  { %v1043_v59 = vpop.f32.mrb[14].mxu0  ;;  %v1090_v61 = vpop.f32.mrb[28].mxu1 }
 0x6d3   :  { %v1091_v62 = vadd.f32 %v8144_v5, %v1090_v61  ;;  %v6774_v63 = vpop.f32.mrb[15].mxu0  ;;  %v6779_v2 = vpop.f32.mrb[29].mxu1  ;;  %v1096_v3 = vsel %vm658_vm3, %v1041_v55, -inf }
 0x6d4   :  { %v1093_v4 = vpop.f32.mrb[30].mxu1  ;;  %1097 = vmax.xlane.f32.xlu0 %v1096_v3 }
 0x6d5   :  { %v6780_v6 = vpop.f32.mrb[31].mxu1  ;;  %v1099_v7 = vsel %vm658_vm3, %v1091_v62, -inf }
 0x6d6   :  { %1100 = vmax.xlane.f32.xlu1 %v1099_v7 }
 0x6e7   :  { %1168 = vrot.lane.b32.xlu1 %v8160_v26, %s7887_s4 }
 0x6eb   :  { %1218 = vrot.lane.b32.xlu1 %v8103_v41, %s7888_s26 }
 0x6ef   :  { %1268 = vrot.lane.b32.xlu1 %v8108_v45, %s7888_s26 }
 0x6f3   :  { %1266 = vrot.lane.b32.xlu1 %v8119_v49, %s7888_s26 }
 0x761   :  { %v1098_v8 = vpop.xlane.xlu0 %1097 }
 0x762   :  { %v1102_v9 = vsub.f32 %v1041_v55, %v1098_v8 }
 0x763   :  { %v1101_v10 = vpop.xlane.xlu1 %1100 }
 0x764   :  { %v1104_v11 = vmul.f32 1.442695, %v1102_v9  ;;  %v1103_v12 = vsub.f32 %v1091_v62, %v1101_v10 }
 0x766   :  { %7518 = vpow2.f32 %v1104_v11  ;;  %v1106_v13 = vmul.f32 1.442695, %v1103_v12 }
 0x767   :  { %v1169_v14 = vpop.permute.xlu1 %1168 }
 0x768   :  { %7520 = vpow2.f32 %v1106_v13  ;;  %v1174_v15 = vsel %vm686_vm2, %v1169_v14, 0 }
 0x769   :  { %6788 = vmatpush3.bf16.msra.mxu1 %v1174_v15 }
 0x76a   :  { %6799 = vmatprep.subr.bf16.mxu1 %v7884_v1 }
 0x76b   :  { %v1219_v25 = vpop.permute.xlu1 %1218 }
 0x76c   :  { %v1224_v35 = vsel %vm565_vm1, %v1219_v25, 0 }
 0x76f   :  { %v1269_v33 = vpop.permute.xlu1 %1268 }
 0x770   :  { %v7519_v16 = vpop.eup %7518  ;;  %v1274_v37 = vsel %vm565_vm1, %v1269_v33, 0 }
 0x771   :  { %v1108_v17 = vsel %vm658_vm3, %v7519_v16, 0.0 }
 0x772   :  { %v7521_v18 = vpop.eup %7520  ;;  %1109 = vadd.xlane.f32.xlu0 %v1108_v17 }
 0x773   :  { %v1111_v19 = vsel %vm658_vm3, %v7521_v18, 0.0  ;;  %v1267_v40 = vpop.permute.xlu1 %1266 }
 0x776   :  { %1112 = vadd.xlane.f32.xlu0 %v1111_v19 }
 0x78c   :  { %1120 = vrot.lane.b32.xlu0 %v8129_v56, %s7887_s4 }
 0x790   :  { %1216 = vrot.lane.b32.xlu0 %v8110_v46, %s7888_s26 }
 0x7ff   :  { %v1110_v20 = vpop.xlane.xlu0 %1109 }
 0x800   :  { %7522 = vrcp.f32 %v1110_v20 }
 0x803   :  { %v1113_v21 = vpop.xlane.xlu0 %1112 }
 0x804   :  { %7524 = vrcp.f32 %v1113_v21 }
 0x807   :  { %v1121_v22 = vpop.permute.xlu0 %1120 }
 0x808   :  { %v1126_v23 = vsel %vm686_vm2, %v1121_v22, 0 }
 0x809   :  { %6782 = vmatpush3.bf16.msra.mxu0 %v1126_v23 }
 0x80a   :  { %v7523_v24 = vpop.eup %7522  ;;  %6793 = vmatprep.subr.bf16.mxu0 %v7884_v1 }
 0x80b   :  { %v1115_v27 = vmul.f32 %v7523_v24, %v7519_v16  ;;  %v1217_v38 = vpop.permute.xlu0 %1216 }
 0x80d   :  { %v1118_v28 = vpack.c.bf16 %v1115_v27, %v1115_v27 }
 0x80e   :  { %v7525_v29 = vpop.eup %7524 }
 0x80f   :  { %6784 = vmatmul.mubr.msk.bf16.vlgmr.msra.gmra.mrb[16].mxu0 %vm658_vm3, %v1118_v28  ;;  %v1117_v32 = vmul.f32 %v7525_v29, %v7521_v18 }
 0x810   :  { %6795 = vmatprep.mubr.msk.bf16.mxu0 %vm7885_vm0, %v7884_v1 }
 0x811   :  { %v1119_v36 = vpack.c.bf16 %v1117_v32, %v1117_v32 }
 0x812   :  { %6794 = vmatpush3.bf16.xpose.msra.mxu0 %v1224_v35 }
 0x813   :  { %6790 = vmatmul.mubr.msk.bf16.vlgmr.msra.gmra.mrb[32].mxu1 %vm658_vm3, %v1119_v36  ;;  %6805 = vmatprep.subr.bf16.mxu0 %v7884_v1 }
 0x814   :  { %6800 = vmatpush3.bf16.xpose.msra.mxu1 %v1274_v37  ;;  %6801 = vmatprep.mubr.msk.bf16.mxu1 %vm7885_vm0, %v7884_v1 }
 0x815   :  { %6811 = vmatprep.subr.bf16.mxu1 %v7884_v1 }
 0x819   :  { %6796 = vmatmul.mubr.msk.bf16.vlgmr.msra.gmra.mrb[20].mxu0 %vm565_vm1, %v1217_v38 }
 0x81a   :  { %6807 = vmatprep.mubr.msk.bf16.mxu0 %vm7885_vm0, %v7884_v1 }
 0x81b   :  { %6802 = vmatmul.mubr.msk.bf16.vlgmr.msra.gmra.mrb[36].mxu1 %vm565_vm1, %v1267_v40 }
 0x81c   :  { %6813 = vmatprep.mubr.msk.bf16.mxu1 %vm7885_vm0, %v7884_v1 }
 0x8e2   :  { %v8265_v43 = vpop.f32.mrb[16].mxu0 }
 0x8e3   :  { %v6785_v44 = vpop.f32.mrb[17].mxu0 }
 0x8e4   :  { %v1165_v51 = vpop.f32.mrb[18].mxu0 }
 0x8e5   :  { %v6786_v52 = vpop.f32.mrb[19].mxu0 }
 0x8e6   :  { %v8267_v53 = vpop.f32.mrb[32].mxu1 }
 0x8e7   :  { %v7197_v54 = vpack.i.bf16 %v8267_v53, %v8265_v43  ;;  %v6791_v55 = vpop.f32.mrb[33].mxu1 }
 0x8e8   :  { %v1213_v58 = vpop.f32.mrb[34].mxu1 }
 0x8e9   :  { %v6792_v59 = vpop.f32.mrb[35].mxu1 }
 0x8ec   :  { %v1260_v61 = vpop.f32.mrb[20].mxu0 }
 0x8ed   :  { %v1261_v62 = vadd.f32 %v8137_v60, %v1260_v61  ;;  %v6797_v63 = vpop.f32.mrb[21].mxu0 }
 0x8ee   :  { %v1263_v2 = vpop.f32.mrb[22].mxu0  ;;  %v1310_v3 = vpop.f32.mrb[36].mxu1 }
 0x8ef   :  { %v1311_v4 = vadd.f32 %v8144_v5, %v1310_v3  ;;  %v6798_v6 = vpop.f32.mrb[23].mxu0  ;;  %v6803_v7 = vpop.f32.mrb[37].mxu1  ;;  %v1316_v8 = vsel %vm658_vm3, %v1261_v62, -inf }
 0x8f0   :  { %v1313_v9 = vpop.f32.mrb[38].mxu1  ;;  %1317 = vmax.xlane.f32.xlu0 %v1316_v8 }
 0x8f1   :  { %v6804_v10 = vpop.f32.mrb[39].mxu1  ;;  %v1319_v11 = vsel %vm658_vm3, %v1311_v4, -inf }
 0x8f2   :  { %1320 = vmax.xlane.f32.xlu1 %v1319_v11 }
 0x903   :  { %1388 = vrot.lane.b32.xlu1 %v8160_v26, %s7888_s26 }
 0x907   :  { %1438 = vrot.lane.b32.xlu1 %v8103_v41, %s7868_s2 }
 0x90b   :  { %1488 = vrot.lane.b32.xlu1 %v8108_v45, %s7868_s2 }
 0x90f   :  { %1486 = vrot.lane.b32.xlu1 %v8119_v49, %s7868_s2 }
 0x97d   :  { %v1318_v12 = vpop.xlane.xlu0 %1317 }
 0x97e   :  { %v1322_v13 = vsub.f32 %v1261_v62, %v1318_v12 }
 0x97f   :  { %v1321_v14 = vpop.xlane.xlu1 %1320 }
 0x980   :  { %v1324_v15 = vmul.f32 1.442695, %v1322_v13  ;;  %v1323_v16 = vsub.f32 %v1311_v4, %v1321_v14 }
 0x982   :  { %7526 = vpow2.f32 %v1324_v15  ;;  %v1326_v17 = vmul.f32 1.442695, %v1323_v16 }
 0x983   :  { %v1389_v18 = vpop.permute.xlu1 %1388 }
 0x984   :  { %7528 = vpow2.f32 %v1326_v17  ;;  %v1394_v19 = vsel %vm686_vm2, %v1389_v18, 0 }
 0x985   :  { %6812 = vmatpush3.bf16.msra.mxu1 %v1394_v19 }
 0x986   :  { %6823 = vmatprep.subr.bf16.mxu1 %v7884_v1 }
 0x987   :  { %v1439_v32 = vpop.permute.xlu1 %1438 }
 0x988   :  { %v1444_v40 = vsel %vm565_vm1, %v1439_v32, 0 }
 0x98b   :  { %v1489_v38 = vpop.permute.xlu1 %1488 }
 0x98c   :  { %v7527_v20 = vpop.eup %7526  ;;  %v1494_v51 = vsel %vm565_vm1, %v1489_v38, 0 }
 0x98d   :  { %v1328_v21 = vsel %vm658_vm3, %v7527_v20, 0.0 }
 0x98e   :  { %v7529_v22 = vpop.eup %7528  ;;  %1329 = vadd.xlane.f32.xlu0 %v1328_v21 }
 0x98f   :  { %v1331_v23 = vsel %vm658_vm3, %v7529_v22, 0.0  ;;  %v1487_v55 = vpop.permute.xlu1 %1486 }
 0x992   :  { %1332 = vadd.xlane.f32.xlu0 %v1331_v23 }
 0x9a8   :  { %1340 = vrot.lane.b32.xlu0 %v8129_v56, %s7888_s26 }
 0x9ac   :  { %1436 = vrot.lane.b32.xlu0 %v8110_v46, %s7868_s2 }
 0xa1b   :  { %v1330_v24 = vpop.xlane.xlu0 %1329 }
 0xa1c   :  { %7530 = vrcp.f32 %v1330_v24 }
 0xa1f   :  { %v1333_v25 = vpop.xlane.xlu0 %1332 }
 0xa20   :  { %7532 = vrcp.f32 %v1333_v25 }
 0xa23   :  { %v1341_v27 = vpop.permute.xlu0 %1340 }
 0xa24   :  { %v1346_v28 = vsel %vm686_vm2, %v1341_v27, 0 }
 0xa25   :  { %6806 = vmatpush3.bf16.msra.mxu0 %v1346_v28 }
 0xa26   :  { %v7531_v29 = vpop.eup %7530  ;;  %6817 = vmatprep.subr.bf16.mxu0 %v7884_v1 }
 0xa27   :  { %v1335_v33 = vmul.f32 %v7531_v29, %v7527_v20  ;;  %v1437_v52 = vpop.permute.xlu0 %1436 }
 0xa29   :  { %v1338_v35 = vpack.c.bf16 %v1335_v33, %v1335_v33 }
 0xa2a   :  { %v7533_v36 = vpop.eup %7532 }
 0xa2b   :  { %6808 = vmatmul.mubr.msk.bf16.vlgmr.msra.gmra.mrb[24].mxu0 %vm658_vm3, %v1338_v35  ;;  %v1337_v37 = vmul.f32 %v7533_v36, %v7529_v22 }
 0xa2c   :  { %6819 = vmatprep.mubr.msk.bf16.mxu0 %vm7885_vm0, %v7884_v1 }
 0xa2d   :  { %v1339_v44 = vpack.c.bf16 %v1337_v37, %v1337_v37 }
 0xa2e   :  { %6818 = vmatpush3.bf16.xpose.msra.mxu0 %v1444_v40 }
 0xa2f   :  { %6814 = vmatmul.mubr.msk.bf16.vlgmr.msra.gmra.mrb[40].mxu1 %vm658_vm3, %v1339_v44  ;;  %6829 = vmatprep.subr.bf16.mxu0 %v7884_v1 }
 0xa30   :  { %6824 = vmatpush3.bf16.xpose.msra.mxu1 %v1494_v51  ;;  %6825 = vmatprep.mubr.msk.bf16.mxu1 %vm7885_vm0, %v7884_v1 }
 0xa31   :  { %6835 = vmatprep.subr.bf16.mxu1 %v7884_v1 }
 0xa35   :  { %6820 = vmatmul.mubr.msk.bf16.vlgmr.msra.gmra.mrb[28].mxu0 %vm565_vm1, %v1437_v52 }
 0xa36   :  { %6831 = vmatprep.mubr.msk.bf16.mxu0 %vm7885_vm0, %v7884_v1 }
 0xa37   :  { %6826 = vmatmul.mubr.msk.bf16.vlgmr.msra.gmra.mrb[44].mxu1 %vm565_vm1, %v1487_v55 }
 0xa38   :  { %6837 = vmatprep.mubr.msk.bf16.mxu1 %vm7885_vm0, %v7884_v1 }
 0xafe   :  { %v8309_v58 = vpop.f32.mrb[24].mxu0 }
 0xaff   :  { %v6809_v59 = vpop.f32.mrb[25].mxu0 }
 0xb00   :  { %v1385_v61 = vpop.f32.mrb[26].mxu0 }
 0xb01   :  { %v6810_v62 = vpop.f32.mrb[27].mxu0 }
 0xb02   :  { %v8311_v63 = vpop.f32.mrb[40].mxu1 }
 0xb03   :  { %v7202_v2 = vpack.i.bf16 %v8311_v63, %v8309_v58  ;;  %v6815_v3 = vpop.f32.mrb[41].mxu1 }
 0xb04   :  { %v1433_v4 = vpop.f32.mrb[42].mxu1 }
 0xb05   :  { %v6816_v6 = vpop.f32.mrb[43].mxu1 }
 0xb08   :  { %v1480_v7 = vpop.f32.mrb[28].mxu0 }
 0xb09   :  { %v1481_v8 = vadd.f32 %v8137_v60, %v1480_v7  ;;  %v6821_v9 = vpop.f32.mrb[29].mxu0 }
 0xb0a   :  { %v1483_v10 = vpop.f32.mrb[30].mxu0  ;;  %v1530_v11 = vpop.f32.mrb[44].mxu1 }
 0xb0b   :  { %v1531_v12 = vadd.f32 %v8144_v5, %v1530_v11  ;;  %v6822_v13 = vpop.f32.mrb[31].mxu0  ;;  %v6827_v14 = vpop.f32.mrb[45].mxu1  ;;  %v1536_v15 = vsel %vm658_vm3, %v1481_v8, -inf }
 0xb0c   :  { %v1533_v16 = vpop.f32.mrb[46].mxu1  ;;  %1537 = vmax.xlane.f32.xlu0 %v1536_v15 }
 0xb0d   :  { %v6828_v17 = vpop.f32.mrb[47].mxu1  ;;  %v1539_v18 = vsel %vm658_vm3, %v1531_v12, -inf }
 0xb0e   :  { %1540 = vmax.xlane.f32.xlu1 %v1539_v18 }
 0xb1f   :  { %1608 = vrot.lane.b32.xlu1 %v8160_v26, %s7868_s2 }
 0xb23   :  { %1658 = vrot.lane.b32.xlu1 %v8103_v41, %s7875_s0 }
 0xb27   :  { %1708 = vrot.lane.b32.xlu1 %v8108_v45, %s7875_s0 }
 0xb2b   :  { %1706 = vrot.lane.b32.xlu1 %v8119_v49, %s7875_s0 }
 0xb99   :  { %v1538_v19 = vpop.xlane.xlu0 %1537 }
 0xb9a   :  { %v1542_v20 = vsub.f32 %v1481_v8, %v1538_v19 }
 0xb9b   :  { %v1541_v21 = vpop.xlane.xlu1 %1540 }
 0xb9c   :  { %v1544_v22 = vmul.f32 1.442695, %v1542_v20  ;;  %v1543_v23 = vsub.f32 %v1531_v12, %v1541_v21 }
 0xb9e   :  { %7534 = vpow2.f32 %v1544_v22  ;;  %v1546_v24 = vmul.f32 1.442695, %v1543_v23 }
 0xb9f   :  { %v1609_v25 = vpop.permute.xlu1 %1608 }
 0xba0   :  { %7536 = vpow2.f32 %v1546_v24  ;;  %v1614_v27 = vsel %vm686_vm2, %v1609_v25, 0 }
 0xba1   :  { %6836 = vmatpush3.bf16.msra.mxu1 %v1614_v27 }
 0xba2   :  { %6847 = vmatprep.subr.bf16.mxu1 %v7884_v1 }
 0xba3   :  { %v1659_v44 = vpop.permute.xlu1 %1658 }
 0xba4   :  { %v1664_v62 = vsel %vm565_vm1, %v1659_v44, 0 }
 0xba7   :  { %v1709_v61 = vpop.permute.xlu1 %1708 }
 0xba8   :  { %v7535_v28 = vpop.eup %7534  ;;  %v1714_v4 = vsel %vm565_vm1, %v1709_v61, 0 }
 0xba9   :  { %v1548_v29 = vsel %vm658_vm3, %v7535_v28, 0.0 }
 0xbaa   :  { %v7537_v32 = vpop.eup %7536  ;;  %1549 = vadd.xlane.f32.xlu0 %v1548_v29 }
 0xbab   :  { %v1551_v33 = vsel %vm658_vm3, %v7537_v32, 0.0  ;;  %v1707_v7 = vpop.permute.xlu1 %1706 }
 0xbae   :  { %1552 = vadd.xlane.f32.xlu0 %v1551_v33 }
 0xbc4   :  { %1560 = vrot.lane.b32.xlu0 %v8129_v56, %s7868_s2 }
 0xbc8   :  { %1656 = vrot.lane.b32.xlu0 %v8110_v46, %s7875_s0 }
 0xc37   :  { %v1550_v35 = vpop.xlane.xlu0 %1549 }
 0xc38   :  { %7538 = vrcp.f32 %v1550_v35 }
 0xc3b   :  { %v1553_v36 = vpop.xlane.xlu0 %1552 }
 0xc3c   :  { %7540 = vrcp.f32 %v1553_v36 }
 0xc3f   :  { %v1561_v37 = vpop.permute.xlu0 %1560 }
 0xc40   :  { %v1566_v38 = vsel %vm686_vm2, %v1561_v37, 0 }
 0xc41   :  { %6830 = vmatpush3.bf16.msra.mxu0 %v1566_v38 }
 0xc42   :  { %v7539_v40 = vpop.eup %7538  ;;  %6841 = vmatprep.subr.bf16.mxu0 %v7884_v1 }
 0xc43   :  { %v1555_v51 = vmul.f32 %v7539_v40, %v7535_v28  ;;  %v1657_v6 = vpop.permute.xlu0 %1656 }
 0xc45   :  { %v1558_v52 = vpack.c.bf16 %v1555_v51, %v1555_v51 }
 0xc46   :  { %v7541_v55 = vpop.eup %7540 }
 0xc47   :  { %6832 = vmatmul.mubr.msk.bf16.vlgmr.msra.gmra.mrb[32].mxu0 %vm658_vm3, %v1558_v52  ;;  %v1557_v59 = vmul.f32 %v7541_v55, %v7537_v32 }
 0xc48   :  { %6843 = vmatprep.mubr.msk.bf16.mxu0 %vm7885_vm0, %v7884_v1 }
 0xc49   :  { %v1559_v3 = vpack.c.bf16 %v1557_v59, %v1557_v59 }
 0xc4a   :  { %6842 = vmatpush3.bf16.xpose.msra.mxu0 %v1664_v62 }
 0xc4b   :  { %6838 = vmatmul.mubr.msk.bf16.vlgmr.msra.gmra.mrb[48].mxu1 %vm658_vm3, %v1559_v3  ;;  %6853 = vmatprep.subr.bf16.mxu0 %v7884_v1 }
 0xc4c   :  { %6848 = vmatpush3.bf16.xpose.msra.mxu1 %v1714_v4  ;;  %6849 = vmatprep.mubr.msk.bf16.mxu1 %vm7885_vm0, %v7884_v1 }
 0xc4d   :  { %6859 = vmatprep.subr.bf16.mxu1 %v7884_v1 }
 0xc51   :  { %6844 = vmatmul.mubr.msk.bf16.vlgmr.msra.gmra.mrb[36].mxu0 %vm565_vm1, %v1657_v6 }
 0xc52   :  { %6855 = vmatprep.mubr.msk.bf16.mxu0 %vm7885_vm0, %v7884_v1 }
 0xc53   :  { %6850 = vmatmul.mubr.msk.bf16.vlgmr.msra.gmra.mrb[52].mxu1 %vm565_vm1, %v1707_v7 }
 0xc54   :  { %6861 = vmatprep.mubr.msk.bf16.mxu1 %vm7885_vm0, %v7884_v1 }
 0xd1a   :  { %v8353_v8 = vpop.f32.mrb[32].mxu0 }
 0xd1b   :  { %v6833_v9 = vpop.f32.mrb[33].mxu0 }
 0xd1c   :  { %v1605_v10 = vpop.f32.mrb[34].mxu0 }
 0xd1d   :  { %v6834_v11 = vpop.f32.mrb[35].mxu0 }
 0xd1e   :  { %v8355_v12 = vpop.f32.mrb[48].mxu1 }
 0xd1f   :  { %v7207_v13 = vpack.i.bf16 %v8355_v12, %v8353_v8  ;;  %v6839_v14 = vpop.f32.mrb[49].mxu1 }
 0xd20   :  { %v1653_v15 = vpop.f32.mrb[50].mxu1 }
 0xd21   :  { %v6840_v16 = vpop.f32.mrb[51].mxu1 }
 0xd24   :  { %v1700_v17 = vpop.f32.mrb[36].mxu0 }
 0xd25   :  { %v1701_v18 = vadd.f32 %v8137_v60, %v1700_v17  ;;  %v6845_v19 = vpop.f32.mrb[37].mxu0 }
 0xd26   :  { %v1703_v20 = vpop.f32.mrb[38].mxu0  ;;  %v1750_v21 = vpop.f32.mrb[52].mxu1 }
 0xd27   :  { %v1751_v22 = vadd.f32 %v8144_v5, %v1750_v21  ;;  %v6846_v23 = vpop.f32.mrb[39].mxu0  ;;  %v6851_v24 = vpop.f32.mrb[53].mxu1  ;;  %v1756_v25 = vsel %vm658_vm3, %v1701_v18, -inf }
 0xd28   :  { %v1753_v27 = vpop.f32.mrb[54].mxu1  ;;  %1757 = vmax.xlane.f32.xlu0 %v1756_v25 }
 0xd29   :  { %v6852_v28 = vpop.f32.mrb[55].mxu1  ;;  %v1759_v29 = vsel %vm658_vm3, %v1751_v22, -inf }
 0xd2a   :  { %1760 = vmax.xlane.f32.xlu1 %v1759_v29 }
 0xd3b   :  { %1828 = vrot.lane.b32.xlu1 %v8160_v26, %s7875_s0 }
 0xd3f   :  { %1878 = vrot.lane.b32.xlu1 %v8103_v41, %s7889_s5 }
 0xd43   :  { %1928 = vrot.lane.b32.xlu1 %v8108_v45, %s7889_s5 }
 0xd47   :  { %1926 = vrot.lane.b32.xlu1 %v8119_v49, %s7889_s5 }
 0xdb5   :  { %v1758_v32 = vpop.xlane.xlu0 %1757 }
 0xdb6   :  { %v1762_v33 = vsub.f32 %v1701_v18, %v1758_v32 }
 0xdb7   :  { %v1761_v35 = vpop.xlane.xlu1 %1760 }
 0xdb8   :  { %v1764_v36 = vmul.f32 1.442695, %v1762_v33  ;;  %v1763_v37 = vsub.f32 %v1751_v22, %v1761_v35 }
 0xdba   :  { %7542 = vpow2.f32 %v1764_v36  ;;  %v1766_v38 = vmul.f32 1.442695, %v1763_v37 }
 0xdbb   :  { %v1829_v40 = vpop.permute.xlu1 %1828 }
 0xdbc   :  { %7544 = vpow2.f32 %v1766_v38  ;;  %v1834_v44 = vsel %vm686_vm2, %v1829_v40, 0 }
 0xdbd   :  { %6860 = vmatpush3.bf16.msra.mxu1 %v1834_v44 }
 0xdbe   :  { %6871 = vmatprep.subr.bf16.mxu1 %v7884_v1 }
 0xdbf   :  { %v1879_v7 = vpop.permute.xlu1 %1878 }
 0xdc0   :  { %v1884_v16 = vsel %vm565_vm1, %v1879_v7, 0 }
 0xdc3   :  { %v1929_v15 = vpop.permute.xlu1 %1928 }
 0xdc4   :  { %v7543_v51 = vpop.eup %7542  ;;  %v1934_v18 = vsel %vm565_vm1, %v1929_v15, 0 }
 0xdc5   :  { %v1768_v52 = vsel %vm658_vm3, %v7543_v51, 0.0 }
 0xdc6   :  { %v7545_v55 = vpop.eup %7544  ;;  %1769 = vadd.xlane.f32.xlu0 %v1768_v52 }
 0xdc7   :  { %v1771_v59 = vsel %vm658_vm3, %v7545_v55, 0.0  ;;  %v1927_v20 = vpop.permute.xlu1 %1926 }
 0xdca   :  { %1772 = vadd.xlane.f32.xlu0 %v1771_v59 }
 0xde0   :  { %1780 = vrot.lane.b32.xlu0 %v8129_v56, %s7875_s0 }
 0xde4   :  { %1876 = vrot.lane.b32.xlu0 %v8110_v46, %s7889_s5 }
 0xe53   :  { %v1770_v61 = vpop.xlane.xlu0 %1769 }
 0xe54   :  { %7546 = vrcp.f32 %v1770_v61 }
 0xe57   :  { %v1773_v62 = vpop.xlane.xlu0 %1772 }
 0xe58   :  { %7548 = vrcp.f32 %v1773_v62 }
 0xe5b   :  { %v1781_v3 = vpop.permute.xlu0 %1780 }
 0xe5c   :  { %v1786_v4 = vsel %vm686_vm2, %v1781_v3, 0 }
 0xe5d   :  { %6854 = vmatpush3.bf16.msra.mxu0 %v1786_v4 }
 0xe5e   :  { %v7547_v6 = vpop.eup %7546  ;;  %6865 = vmatprep.subr.bf16.mxu0 %v7884_v1 }
 0xe5f   :  { %v1775_v9 = vmul.f32 %v7547_v6, %v7543_v51  ;;  %v1877_v19 = vpop.permute.xlu0 %1876 }
 0xe61   :  { %v1778_v10 = vpack.c.bf16 %v1775_v9, %v1775_v9 }
 0xe62   :  { %v7549_v11 = vpop.eup %7548 }
 0xe63   :  { %6856 = vmatmul.mubr.msk.bf16.vlgmr.msra.gmra.mrb[40].mxu0 %vm658_vm3, %v1778_v10  ;;  %v1777_v14 = vmul.f32 %v7549_v11, %v7545_v55 }
 0xe64   :  { %6867 = vmatprep.mubr.msk.bf16.mxu0 %vm7885_vm0, %v7884_v1 }
 0xe65   :  { %v1779_v17 = vpack.c.bf16 %v1777_v14, %v1777_v14 }
 0xe66   :  { %6866 = vmatpush3.bf16.xpose.msra.mxu0 %v1884_v16 }
 0xe67   :  { %6862 = vmatmul.mubr.msk.bf16.vlgmr.msra.gmra.mrb[56].mxu1 %vm658_vm3, %v1779_v17  ;;  %6877 = vmatprep.subr.bf16.mxu0 %v7884_v1 }
 0xe68   :  { %6872 = vmatpush3.bf16.xpose.msra.mxu1 %v1934_v18  ;;  %6873 = vmatprep.mubr.msk.bf16.mxu1 %vm7885_vm0, %v7884_v1 }
 0xe69   :  { %6883 = vmatprep.subr.bf16.mxu1 %v7884_v1 }
 0xe6d   :  { %6868 = vmatmul.mubr.msk.bf16.vlgmr.msra.gmra.mrb[44].mxu0 %vm565_vm1, %v1877_v19 }
 0xe6e   :  { %6879 = vmatprep.mubr.msk.bf16.mxu0 %vm7885_vm0, %v7884_v1 }
 0xe6f   :  { %6874 = vmatmul.mubr.msk.bf16.vlgmr.msra.gmra.mrb[60].mxu1 %vm565_vm1, %v1927_v20 }
 0xe70   :  { %6885 = vmatprep.mubr.msk.bf16.mxu1 %vm7885_vm0, %v7884_v1 }
 0xf36   :  { %v8397_v21 = vpop.f32.mrb[40].mxu0 }
 0xf37   :  { %v6857_v22 = vpop.f32.mrb[41].mxu0 }
 0xf38   :  { %v1825_v23 = vpop.f32.mrb[42].mxu0 }
 0xf39   :  { %v6858_v24 = vpop.f32.mrb[43].mxu0 }
 0xf3a   :  { %v8399_v25 = vpop.f32.mrb[56].mxu1 }
 0xf3b   :  { %v7212_v27 = vpack.i.bf16 %v8399_v25, %v8397_v21  ;;  %v6863_v28 = vpop.f32.mrb[57].mxu1  ;;  %v7294_v21 = vld [vmem:[#allocation8] sm:$0xff]   ;;  %v7295_v25 = vld [vmem:[#allocation8 + $0x8] sm:$0xff]  }
 0xf3c   :  { %v1873_v29 = vpop.f32.mrb[58].mxu1 }
 0xf3d   :  { %v6864_v32 = vpop.f32.mrb[59].mxu1 }
 0xf40   :  { %v1920_v33 = vpop.f32.mrb[44].mxu0 }
 0xf41   :  { %v1921_v35 = vadd.f32 %v8137_v60, %v1920_v33  ;;  %v6869_v36 = vpop.f32.mrb[45].mxu0 }
 0xf42   :  { %v1923_v37 = vpop.f32.mrb[46].mxu0  ;;  %v1970_v38 = vpop.f32.mrb[60].mxu1 }
 0xf43   :  { %v1971_v40 = vadd.f32 %v8144_v5, %v1970_v38  ;;  %v6870_v44 = vpop.f32.mrb[47].mxu0  ;;  %v6875_v51 = vpop.f32.mrb[61].mxu1  ;;  %v1976_v52 = vsel %vm658_vm3, %v1921_v35, -inf }
 0xf44   :  { %v1973_v55 = vpop.f32.mrb[62].mxu1  ;;  %1977 = vmax.xlane.f32.xlu0 %v1976_v52 }
 0xf45   :  { %v6876_v59 = vpop.f32.mrb[63].mxu1  ;;  %v1979_v61 = vsel %vm658_vm3, %v1971_v40, -inf }
 0xf46   :  { %1980 = vmax.xlane.f32.xlu1 %v1979_v61  ;;  %v7646_v61 = vld [vmem:[%s9058_s1] ss:$0 sm:$0xff] }
 0xf57   :  { %2048 = vrot.lane.b32.xlu1 %v8160_v26, %s7889_s5 }
 0xf5b   :  { %2098 = vrot.lane.b32.xlu1 %v8103_v41, %s7878_s3 }
 0xf5f   :  { %2148 = vrot.lane.b32.xlu1 %v8108_v45, %s7878_s3 }
 0xf63   :  { %2146 = vrot.lane.b32.xlu1 %v8119_v49, %s7878_s3 }
 0xfd1   :  { %v1978_v60 = vpop.xlane.xlu0 %1977 }
 0xfd2   :  { %v1982_v5 = vsub.f32 %v1921_v35, %v1978_v60 }
 0xfd3   :  { %v1981_v62 = vpop.xlane.xlu1 %1980 }
 0xfd4   :  { %v1984_v3 = vmul.f32 1.442695, %v1982_v5  ;;  %v1983_v4 = vsub.f32 %v1971_v40, %v1981_v62 }
 0xfd6   :  { %7550 = vpow2.f32 %v1984_v3  ;;  %v1986_v6 = vmul.f32 1.442695, %v1983_v4  ;;  %v7647_v4 = vld [vmem:[%s9058_s1 + $0x1] ss:$0 sm:$0xff] }
 0xfd7   :  { %v2049_v7 = vpop.permute.xlu1 %2048 }
 0xfd8   :  { %7552 = vpow2.f32 %v1986_v6  ;;  %v2054_v9 = vsel %vm686_vm2, %v2049_v7, 0 }
 0xfd9   :  { %6884 = vmatpush3.bf16.msra.mxu1 %v2054_v9 }
 0xfda   :  { %6895 = vmatprep.subr.bf16.mxu1 %v7884_v1 }
 0xfdb   :  { %v2099_v18 = vpop.permute.xlu1 %2098 }
 0xfdf   :  { %v2149_v24 = vpop.permute.xlu1 %2148 }
 0xfe0   :  { %v7551_v41 = vpop.eup %7550  ;;  %v2154_v29 = vsel %vm565_vm1, %v2149_v24, 0  ;;  %v7299_v24 = vld [vmem:[#allocation8 + $0x28] sm:$0xff]  }
 0xfe1   :  { %v1988_v45 = vsel %vm658_vm3, %v7551_v41, 0.0 }
 0xfe2   :  { %v7553_v10 = vpop.eup %7552  ;;  %1989 = vadd.xlane.f32.xlu0 %v1988_v45 }
 0xfe3   :  { %v1991_v49 = vsel %vm658_vm3, %v7553_v10, 0.0  ;;  %v2147_v33 = vpop.permute.xlu1 %2146 }
 0xfe6   :  { %1992 = vadd.xlane.f32.xlu0 %v1991_v49 }
 0xffc   :  { %2000 = vrot.lane.b32.xlu0 %v8129_v56, %s7889_s5 }
0x1000   :  { %2096 = vrot.lane.b32.xlu0 %v8110_v46, %s7878_s3  ;;  %v2104_v46 = vsel %vm565_vm1, %v2099_v18, 0 }
0x106f   :  { %v1990_v11 = vpop.xlane.xlu0 %1989 }
0x1070   :  { %7554 = vrcp.f32 %v1990_v11 }
0x1073   :  { %v1993_v14 = vpop.xlane.xlu0 %1992 }
0x1074   :  { %7556 = vrcp.f32 %v1993_v14 }
0x1077   :  { %v2001_v15 = vpop.permute.xlu0 %2000 }
0x1078   :  { %v2006_v16 = vsel %vm686_vm2, %v2001_v15, 0 }
0x1079   :  { %6878 = vmatpush3.bf16.msra.mxu0 %v2006_v16 }
0x107a   :  { %v7555_v17 = vpop.eup %7554  ;;  %6889 = vmatprep.subr.bf16.mxu0 %v7884_v1 }
0x107b   :  { %v1995_v19 = vmul.f32 %v7555_v17, %v7551_v41  ;;  %v2097_v32 = vpop.permute.xlu0 %2096 }
0x107d   :  { %v1998_v20 = vpack.c.bf16 %v1995_v19, %v1995_v19 }
0x107e   :  { %v7557_v22 = vpop.eup %7556 }
0x107f   :  { %6880 = vmatmul.mubr.msk.bf16.vlgmr.msra.gmra.mrb[48].mxu0 %vm658_vm3, %v1998_v20  ;;  %v1997_v23 = vmul.f32 %v7557_v22, %v7553_v10  ;;  %v7297_v22 = vld [vmem:[#allocation8 + $0x18] sm:$0xff]  }
0x1080   :  { %6891 = vmatprep.mubr.msk.bf16.mxu0 %vm7885_vm0, %v7884_v1 }
0x1081   :  { %v1999_v28 = vpack.c.bf16 %v1997_v23, %v1997_v23  ;;  %v7298_v23 = vld [vmem:[#allocation8 + $0x20] sm:$0xff]  }
0x1082   :  { %6890 = vmatpush3.bf16.xpose.msra.mxu0 %v2104_v46  ;;  %v7300_v46 = vld [vmem:[#allocation8 + $0x30] sm:$0xff]  }
0x1083   :  { %6886 = vmatmul.mubr.msk.bf16.vlgmr.msra.gmra.mrb[64].mxu1 %vm658_vm3, %v1999_v28  ;;  %6901 = vmatprep.subr.bf16.mxu0 %v7884_v1  ;;  %v7301_v28 = vld [vmem:[#allocation8 + $0x38] sm:$0xff]  }
0x1084   :  { %6896 = vmatpush3.bf16.xpose.msra.mxu1 %v2154_v29  ;;  %6897 = vmatprep.mubr.msk.bf16.mxu1 %vm7885_vm0, %v7884_v1 }
0x1085   :  { %6907 = vmatprep.subr.bf16.mxu1 %v7884_v1 }
0x1089   :  { %6892 = vmatmul.mubr.msk.bf16.vlgmr.msra.gmra.mrb[52].mxu0 %vm565_vm1, %v2097_v32 }
0x108a   :  { %6903 = vmatprep.mubr.msk.bf16.mxu0 %vm7885_vm0, %v7884_v1 }
0x108b   :  { %6898 = vmatmul.mubr.msk.bf16.vlgmr.msra.gmra.mrb[68].mxu1 %vm565_vm1, %v2147_v33 }
0x108c   :  { %6909 = vmatprep.mubr.msk.bf16.mxu1 %vm7885_vm0, %v7884_v1 }
0x1152   :  { %v2042_v35 = vpop.f32.mrb[48].mxu0 }
0x1153   :  { %v6881_v36 = vpop.f32.mrb[49].mxu0 }
0x1154   :  { %v2045_v37 = vpop.f32.mrb[50].mxu0 }
0x1155   :  { %v6882_v38 = vpop.f32.mrb[51].mxu0 }
0x1156   :  { %v2090_v40 = vpop.f32.mrb[64].mxu1 }
0x1157   :  { %v7217_v44 = vpack.i.bf16 %v2090_v40, %v2042_v35  ;;  %v6887_v51 = vpop.f32.mrb[65].mxu1 }
0x1158   :  { %v2093_v52 = vpop.f32.mrb[66].mxu1 }
0x1159   :  { %v6888_v55 = vpop.f32.mrb[67].mxu1 }
0x115c   :  { %v2140_v59 = vpop.f32.mrb[52].mxu0 }
0x115d   :  { %v2141_v60 = vadd.f32 %v7646_v61, %v2140_v59  ;;  %v6893_v5 = vpop.f32.mrb[53].mxu0 }
0x115e   :  { %v2143_v62 = vpop.f32.mrb[54].mxu0  ;;  %v2190_v3 = vpop.f32.mrb[68].mxu1 }
0x115f   :  { %v2191_v6 = vadd.f32 %v7647_v4, %v2190_v3  ;;  %v6894_v7 = vpop.f32.mrb[55].mxu0  ;;  %v6899_v9 = vpop.f32.mrb[69].mxu1  ;;  %v2196_v41 = vsel %vm658_vm3, %v2141_v60, -inf }
0x1160   :  { %v2193_v45 = vpop.f32.mrb[70].mxu1  ;;  %2197 = vmax.xlane.f32.xlu0 %v2196_v41 }
0x1161   :  { %v6900_v10 = vpop.f32.mrb[71].mxu1  ;;  %v2199_v49 = vsel %vm658_vm3, %v2191_v6, -inf }
0x1162   :  { %2200 = vmax.xlane.f32.xlu1 %v2199_v49 }
0x1173   :  { %2268 = vrot.lane.b32.xlu1 %v8160_v26, %s7878_s3 }
0x1177   :  { %7193 = vrot.lane.b32.xlu1 %v7192_v48, %s7878_s3 }
0x117b   :  { %7198 = vrot.lane.b32.xlu1 %v7197_v54, %s7889_s5 }
0x117f   :  { %7208 = vrot.lane.b32.xlu1 %v7207_v13, %s7868_s2 }
0x1183   :  { %7218 = vrot.lane.b32.xlu1 %v7217_v44, %s7887_s4 }
0x11ed   :  { %v2198_v11 = vpop.xlane.xlu0 %2197 }
0x11ee   :  { %v2202_v14 = vsub.f32 %v2141_v60, %v2198_v11 }
0x11ef   :  { %v2201_v26 = vpop.xlane.xlu1 %2200 }
0x11f0   :  { %v2204_v15 = vmul.f32 1.442695, %v2202_v14  ;;  %v2203_v16 = vsub.f32 %v2191_v6, %v2201_v26 }
0x11f2   :  { %7558 = vpow2.f32 %v2204_v15  ;;  %v2206_v39 = vmul.f32 1.442695, %v2203_v16 }
0x11f3   :  { %v2269_v47 = vpop.permute.xlu1 %2268 }
0x11f4   :  { %7560 = vpow2.f32 %v2206_v39  ;;  %v2274_v48 = vsel %vm686_vm2, %v2269_v47, 0 }
0x11f5   :  { %6908 = vmatpush3.bf16.msra.mxu1 %v2274_v48 }
0x11f7   :  { %v7194_v51 = vpop.permute.xlu1 %7193 }
0x11f8   :  { %v7196_v59 = vunpack.i.h.bf16 %v7194_v51  ;;  %v7195_v61 = vunpack.i.l.bf16 %v7194_v51 }
0x11fa   :  { %v2373_v7 = vsel %vm565_vm1, %v8183_v57, %v7196_v59  ;;  %v2372_v9 = vsel %vm565_vm1, %v8179_v42, %v7195_v61 }
0x11fb   :  { %v7199_v52 = vpop.permute.xlu1 %7198 }
0x11fc   :  { %v7559_v43 = vpop.eup %7558  ;;  %v7201_v60 = vunpack.i.h.bf16 %v7199_v52  ;;  %v7200_v5 = vunpack.i.l.bf16 %v7199_v52 }
0x11fd   :  { %v2208_v53 = vsel %vm658_vm3, %v7559_v43, 0.0 }
0x11fe   :  { %v7561_v54 = vpop.eup %7560  ;;  %2209 = vadd.xlane.f32.xlu0 %v2208_v53  ;;  %v2375_v41 = vsel %vm2374_vm4, %v2372_v9, %v7200_v5  ;;  %v2376_v45 = vsel %vm2374_vm4, %v2373_v7, %v7201_v60  ;;  %v7302_v7 = vld [vmem:[#allocation13] ss:$16 sps:$4 sm:$0xff]   ;;  %v7305_v9 = vld [vmem:[#allocation13 + $0x8] ss:$16 sps:$4 sm:$0xff]  }
0x11ff   :  { %v2211_v8 = vsel %vm658_vm3, %v7561_v54, 0.0  ;;  %v7209_v62 = vpop.permute.xlu1 %7208 }
0x1200   :  { %v7211_v26 = vunpack.i.h.bf16 %v7209_v62  ;;  %v7210_v15 = vunpack.i.l.bf16 %v7209_v62 }
0x1202   :  { %2212 = vadd.xlane.f32.xlu0 %v2211_v8 }
0x1203   :  { %v7219_v16 = vpop.permute.xlu1 %7218 }
0x1204   :  { %v7221_v48 = vunpack.i.h.bf16 %v7219_v16 }
0x1218   :  { %2220 = vrot.lane.b32.xlu0 %v8129_v56, %s7878_s3 }
0x121c   :  { %7203 = vrot.lane.b32.xlu0 %v7202_v2, %s7875_s0 }
0x1220   :  { %7213 = vrot.lane.b32.xlu0 %v7212_v27, %s7888_s26  ;;  %v7296_v27 = vld [vmem:[#allocation8 + $0x10] sm:$0xff]  }
0x128b   :  { %v2210_v12 = vpop.xlane.xlu0 %2209 }
0x128c   :  { %7562 = vrcp.f32 %v2210_v12 }
0x128f   :  { %v2213_v13 = vpop.xlane.xlu0 %2212 }
0x1290   :  { %7564 = vrcp.f32 %v2213_v13 }
0x1293   :  { %v2221_v17 = vpop.permute.xlu0 %2220 }
0x1294   :  { %v2226_v18 = vsel %vm686_vm2, %v2221_v17, 0 }
0x1295   :  { %6902 = vmatpush3.bf16.msra.mxu0 %v2226_v18 }
0x1296   :  { %v7563_v19 = vpop.eup %7562  ;;  %6913 = vmatprep.subr.bf16.mxu0 %v7884_v1 }
0x1297   :  { %v2215_v56 = vmul.f32 %v7563_v19, %v7559_v43  ;;  %v7204_v55 = vpop.permute.xlu0 %7203  ;;  %v7220_v43 = vunpack.i.l.bf16 %v7219_v16  ;;  %v7322_v16 = vld [vmem:[#allocation13 + $0x64] ss:$16 sps:$4 sm:$0xff]  }
0x1298   :  { %v7206_v3 = vunpack.i.h.bf16 %v7204_v55  ;;  %v7205_v4 = vunpack.i.l.bf16 %v7204_v55 }
0x1299   :  { %v2218_v20 = vpack.c.bf16 %v2215_v56, %v2215_v56  ;;  %v6224_v56 = vld [vmem:[#allocation10] ss:$0 sm:$0xff] }
0x129a   :  { %v7565_v58 = vpop.eup %7564  ;;  %v2379_v10 = vsel %vm2377_vm5, %v2376_v45, %v7206_v3  ;;  %v2378_v49 = vsel %vm2377_vm5, %v2375_v41, %v7205_v4  ;;  %v7304_v4 = vld [vmem:[#allocation13 + $0x4] ss:$16 sps:$4 sm:$0xff]   ;;  %v7313_v45 = vld [vmem:[#allocation13 + $0x2c] ss:$16 sps:$4 sm:$0xff]  }
0x129b   :  { %6904 = vmatmul.mubr.msk.bf16.vlgmr.msra.gmra.mrb[56].mxu0 %vm658_vm3, %v2218_v20  ;;  %v2217_v63 = vmul.f32 %v7565_v58, %v7561_v54  ;;  %v7214_v6 = vpop.permute.xlu0 %7213  ;;  %v2381_v57 = vsel %vm2380_vm6, %v2378_v49, %v7210_v15  ;;  %v2382_v39 = vsel %vm2380_vm6, %v2379_v10, %v7211_v26  ;;  %2722 = vmatprep.subr.bf16.mxu1 %v7304_v4  ;;  %v7310_v41 = vld [vmem:[#allocation13 + $0x24] ss:$16 sps:$4 sm:$0xff]   ;;  %v7308_v10 = vld [vmem:[#allocation13 + $0x20] ss:$16 sps:$4 sm:$0xff]   ;;  %v7311_v49 = vld [vmem:[#allocation13 + $0x28] ss:$16 sps:$4 sm:$0xff]  }
0x129c   :  { %6929 = vmatprep.mubr.msk.bf16.mxu0 %vm7885_vm0, %v7884_v1  ;;  %6914 = vmatpush3.bf16.msra.mxu0 %v7294_v21  ;;  %v7216_v11 = vunpack.i.h.bf16 %v7214_v6  ;;  %v7215_v14 = vunpack.i.l.bf16 %v7214_v6  ;;  %v7307_v6 = vld [vmem:[#allocation13 + $0xc] ss:$16 sps:$4 sm:$0xff]   ;;  %v7314_v26 = vld [vmem:[#allocation13 + $0x40] ss:$16 sps:$4 sm:$0xff]   ;;  %v7317_v15 = vld [vmem:[#allocation13 + $0x48] ss:$16 sps:$4 sm:$0xff]  }
0x129d   :  { %v2219_v2 = vpack.c.bf16 %v2217_v63, %v2217_v63  ;;  %6915 = vmatprep.subr.bf16.mxu0 %v7884_v1 }
0x129e   :  { %v2384_v42 = vsel %vm2383_vm7, %v2381_v57, %v7215_v14  ;;  %v2385_v47 = vsel %vm2383_vm7, %v2382_v39, %v7216_v11  ;;  %v7316_v11 = vld [vmem:[#allocation13 + $0x44] ss:$16 sps:$4 sm:$0xff]   ;;  %v7319_v14 = vld [vmem:[#allocation13 + $0x4c] ss:$16 sps:$4 sm:$0xff]   ;;  %v7320_v39 = vld [vmem:[#allocation13 + $0x60] ss:$16 sps:$4 sm:$0xff]  }
0x129f   :  { %6910 = vmatmul.mubr.msk.bf16.vlgmr.msra.gmra.mrb[72].mxu1 %vm658_vm3, %v2219_v2  ;;  %v2387_v12 = vsel %vm2386_vm8, %v2384_v42, %v7220_v43  ;;  %v2388_v13 = vsel %vm2386_vm8, %v2385_v47, %v7221_v48  ;;  %v7325_v57 = vld [vmem:[#allocation13 + $0x6c] ss:$16 sps:$4 sm:$0xff]   ;;  %v7323_v42 = vld [vmem:[#allocation13 + $0x68] ss:$16 sps:$4 sm:$0xff]   ;;  %v7328_v47 = vld [vmem:[#allocation13 + $0x84] ss:$16 sps:$4 sm:$0xff]  }
0x12a0   :  { %2754 = vmatprep.mubr.bf16.mxu1 %v7883_v0  ;;  %6916 = vmatpush3.bf16.msra.mxu0 %v7295_v25  ;;  %v7326_v48 = vld [vmem:[#allocation13 + $0x80] ss:$16 sps:$4 sm:$0xff]   ;;  %v7329_v43 = vld [vmem:[#allocation13 + $0x88] ss:$16 sps:$4 sm:$0xff]  }
0x12a1   :  { %6917 = vmatprep.subr.bf16.mxu0 %v7884_v1  ;;  %2723 = vmatpush1.bf16.msra.mxu1 %v7302_v7  ;;  %v8525_v7 = vld [vmem:[#allocation11] sm:$0xff] }
0x12a2   :  { %2724 = vmatprep.subr.bf16.mxu1 %v7310_v41 }
0x12a4   :  { %6918 = vmatpush3.bf16.msra.mxu0 %v7296_v27  ;;  %v7648_v27 = vld [vmem:[#allocation2] sm:$0xff] }
0x12a5   :  { %6919 = vmatprep.subr.bf16.mxu0 %v7884_v1  ;;  %2725 = vmatpush1.bf16.msra.mxu1 %v7308_v10  ;;  %v7353_v10 = vld [vmem:[#allocation14 + $0x80] sm:$0xff]  }
0x12a6   :  { %2726 = vmatprep.subr.bf16.mxu1 %v7316_v11  ;;  %v7354_v11 = vld [vmem:[#allocation14 + $0x48] sm:$0xff]  }
0x12a8   :  { %6920 = vmatpush3.bf16.msra.mxu0 %v7297_v22 }
0x12a9   :  { %6921 = vmatprep.subr.bf16.mxu0 %v7884_v1  ;;  %2727 = vmatpush1.bf16.msra.mxu1 %v7314_v26  ;;  %v7357_v26 = vld [vmem:[#allocation14 + $0x88] sm:$0xff]  }
0x12aa   :  { %2728 = vmatprep.subr.bf16.mxu1 %v7322_v16  ;;  %v7359_v16 = vld [vmem:[#allocation14 + $0xd0] sm:$0xff]  }
0x12ac   :  { %6922 = vmatpush3.bf16.msra.mxu0 %v7298_v23  ;;  %v7649_v23 = vld [vmem:[#allocation2 + $0x8] sm:$0xff] }
0x12ad   :  { %6923 = vmatprep.subr.bf16.mxu0 %v7884_v1  ;;  %2729 = vmatpush1.bf16.msra.mxu1 %v7320_v39  ;;  %v7361_v39 = vld [vmem:[#allocation14 + $0x90] sm:$0xff]  }
0x12ae   :  { %2730 = vmatprep.subr.bf16.mxu1 %v7328_v47  ;;  %v7363_v47 = vld [vmem:[#allocation14 + $0xd8] sm:$0xff]  }
0x12b0   :  { %6924 = vmatpush3.bf16.msra.mxu0 %v7299_v24 }
0x12b1   :  { %6925 = vmatprep.subr.bf16.mxu0 %v7884_v1  ;;  %2731 = vmatpush1.bf16.msra.mxu1 %v7326_v48  ;;  %v7364_v48 = vld [vmem:[#allocation14 + $0x18] sm:$0xff]  }
0x12b4   :  { %6926 = vmatpush3.bf16.msra.mxu0 %v7300_v46 }
0x12b5   :  { %6927 = vmatprep.subr.bf16.mxu0 %v7884_v1 }
0x12b8   :  { %6928 = vmatpush3.bf16.msra.mxu0 %v7301_v28 }
0x12b9   :  { %2765 = vmatprep.subr.bf16.mxu0 %v7307_v6 }
0x136e   :  { %v2262_v29 = vpop.f32.mrb[56].mxu0 }
0x136f   :  { %v6905_v32 = vpop.f32.mrb[57].mxu0 }
0x1370   :  { %v2265_v33 = vpop.f32.mrb[58].mxu0 }
0x1371   :  { %v6906_v35 = vpop.f32.mrb[59].mxu0 }
0x1372   :  { %v2310_v36 = vpop.f32.mrb[72].mxu1 }
0x1373   :  { %v7222_v37 = vpack.i.bf16 %v2310_v36, %v2262_v29  ;;  %v6911_v38 = vpop.f32.mrb[73].mxu1 }
0x1374   :  { %v2313_v40 = vpop.f32.mrb[74].mxu1 }
0x1375   :  { %v6912_v44 = vpop.f32.mrb[75].mxu1  ;;  %7223 = vrot.lane.b32.xlu0 %v7222_v37, %s7886_s24 }
0x13e7   :  { %v7224_v53 = vpop.permute.xlu0 %7223 }
0x13e8   :  { %v7226_v54 = vunpack.i.h.bf16 %v7224_v53  ;;  %v7225_v8 = vunpack.i.l.bf16 %v7224_v53  ;;  %v7331_v53 = vld [vmem:[#allocation13 + $0x8c] ss:$16 sps:$4 sm:$0xff]  }
0x13ea   :  { %v2391_v17 = vsel %vm2389_vm9, %v2388_v13, %v7226_v54  ;;  %v2390_v18 = vsel %vm2389_vm9, %v2387_v12, %v7225_v8  ;;  %v7334_v54 = vld [vmem:[#allocation13 + $0xa4] ss:$16 sps:$4 sm:$0xff]   ;;  %v7337_v8 = vld [vmem:[#allocation13 + $0xac] ss:$16 sps:$4 sm:$0xff]   ;;  %v7332_v12 = vld [vmem:[#allocation13 + $0xa0] ss:$16 sps:$4 sm:$0xff]  }
0x13eb   :  { %v2392_v19 = vpack.c.bf16 %v2391_v17, %v2390_v18  ;;  %v7335_v13 = vld [vmem:[#allocation13 + $0xa8] ss:$16 sps:$4 sm:$0xff]   ;;  %2732 = vmatprep.subr.bf16.mxu1 %v7334_v54  ;;  %v7340_v17 = vld [vmem:[#allocation13 + $0xc4] ss:$16 sps:$4 sm:$0xff]   ;;  %v7343_v18 = vld [vmem:[#allocation13 + $0xcc] ss:$16 sps:$4 sm:$0xff]  }
0x13ec   :  { %2733 = vmatpush1.bf16.msra.mxu1 %v7332_v12  ;;  %v7367_v54 = vld [vmem:[#allocation14 + $0xe0] sm:$0xff]  }
0x13ed   :  { %6930 = vmatmul.mubr.bf16.vlgmr.msra.gmra.mrb[60].mxu0 %v2392_v19  ;;  %v7338_v19 = vld [vmem:[#allocation13 + $0xc0] ss:$16 sps:$4 sm:$0xff]   ;;  %2734 = vmatprep.subr.bf16.mxu1 %v7340_v17  ;;  %v7371_v17 = vld [vmem:[#allocation14 + $0xe8] sm:$0xff]  }
0x13ee   :  { %2797 = vmatprep.mubr.bf16.mxu0 %v7883_v0  ;;  %2766 = vmatpush1.bf16.msra.mxu0 %v7305_v9  ;;  %v7369_v12 = vld [vmem:[#allocation14 + $0xa0] sm:$0xff]  }
0x13ef   :  { %2767 = vmatprep.subr.bf16.mxu0 %v7313_v45 }
0x13f0   :  { %2735 = vmatpush1.bf16.msra.mxu1 %v7338_v19  ;;  %v7373_v19 = vld [vmem:[#allocation14 + $0xa8] sm:$0xff]  }
0x13f2   :  { %2768 = vmatpush1.bf16.msra.mxu0 %v7311_v49 }
0x13f3   :  { %2769 = vmatprep.subr.bf16.mxu0 %v7319_v14  ;;  %v7355_v14 = vld [vmem:[#allocation14 + $0xc8] sm:$0xff]  }
0x13f6   :  { %2770 = vmatpush1.bf16.msra.mxu0 %v7317_v15  ;;  %v7358_v15 = vld [vmem:[#allocation14 + $0x50] sm:$0xff]  }
0x13f7   :  { %2771 = vmatprep.subr.bf16.mxu0 %v7325_v57  ;;  %v7360_v57 = vld [vmem:[#allocation14 + $0x10] sm:$0xff]  }
0x13fa   :  { %2772 = vmatpush1.bf16.msra.mxu0 %v7323_v42  ;;  %v7362_v42 = vld [vmem:[#allocation14 + $0x58] sm:$0xff]  }
0x13fb   :  { %2773 = vmatprep.subr.bf16.mxu0 %v7331_v53  ;;  %v7366_v53 = vld [vmem:[#allocation14 + $0x60] sm:$0xff]  }
0x13fe   :  { %2774 = vmatpush1.bf16.msra.mxu0 %v7329_v43  ;;  %v7365_v43 = vld [vmem:[#allocation14 + $0x98] sm:$0xff]  }
0x13ff   :  { %2775 = vmatprep.subr.bf16.mxu0 %v7337_v8  ;;  %v7368_v8 = vld [vmem:[#allocation14 + $0x20] sm:$0xff]  }
0x1402   :  { %2776 = vmatpush1.bf16.msra.mxu0 %v7335_v13  ;;  %v7370_v13 = vld [vmem:[#allocation14 + $0x68] sm:$0xff]  }
0x1403   :  { %2777 = vmatprep.subr.bf16.mxu0 %v7343_v18  ;;  %v7372_v18 = vld [vmem:[#allocation14 + $0x28] sm:$0xff]  }
0x14c0   :  { %v2481_v20 = vpop.f32.mrb[60].mxu0 }
0x14c1   :  { %v2482_v58 = vadd.f32 %v6224_v56, %v2481_v20  ;;  %v6931_v63 = vpop.f32.mrb[61].mxu0  ;;  %v7346_v20 = vld [vmem:[#allocation13 + $0xe4] ss:$16 sps:$4 sm:$0xff]  }
0x14c2   :  { %v2484_v2 = vpop.f32.mrb[62].mxu0  ;;  %v7344_v63 = vld [vmem:[#allocation13 + $0xe0] ss:$16 sps:$4 sm:$0xff]   ;;  %2736 = vmatprep.subr.bf16.mxu1 %v7346_v20 }
0x14c3   :  { %v2485_v21 = vadd.f32 %v6224_v56, %v2484_v2  ;;  %v6932_v25 = vpop.f32.mrb[63].mxu0  ;;  %v2488_v22 = vadd.f32 %v7648_v27, %v2482_v58  ;;  %v7341_v56 = vld [vmem:[#allocation13 + $0xc8] ss:$16 sps:$4 sm:$0xff]   ;;  %v7349_v58 = vld [vmem:[#allocation13 + $0xec] ss:$16 sps:$4 sm:$0xff]   ;;  %2737 = vmatpush1.bf16.msra.mxu1 %v7344_v63  ;;  %v7375_v20 = vld [vmem:[#allocation14 + $0xf0] sm:$0xff]  }
0x14c4   :  { %2778 = vmatpush1.bf16.msra.mxu0 %v7341_v56  ;;  %v7347_v2 = vld [vmem:[#allocation13 + $0xe8] ss:$16 sps:$4 sm:$0xff]   ;;  %v7351_v25 = vld [vmem:[#allocation14 + $0xc0] sm:$0xff]   ;;  %v7374_v56 = vld [vmem:[#allocation14 + $0x70] sm:$0xff]  }
0x14c5   :  { %2490 = vadd.xlane.f32.xlu1 %v2488_v22  ;;  %v2489_v24 = vadd.f32 %v7649_v23, %v2485_v21  ;;  %2779 = vmatprep.subr.bf16.mxu0 %v7349_v58  ;;  %v7350_v21 = vld [vmem:[#allocation14 + $0x40] sm:$0xff]   ;;  %v7376_v58 = vld [vmem:[#allocation14 + $0x30] sm:$0xff]  }
0x14c6   :  { %6531 = vmatprep.subr.bf16.mxu1 %v7350_v21  ;;  %v7377_v63 = vld [vmem:[#allocation14 + $0xb0] sm:$0xff]   ;;  %v7379_v21 = vld [vmem:[#allocation14 + $0xf8] sm:$0xff]  }
0x14c7   :  { %2492 = vadd.xlane.f32.xlu0 %v2489_v24 }
0x14c8   :  { %2780 = vmatpush1.bf16.msra.mxu0 %v7347_v2  ;;  %v7378_v2 = vld [vmem:[#allocation14 + $0x78] sm:$0xff]  }
0x14c9   :  { %6553 = vmatprep.subr.bf16.mxu0 %v7351_v25  ;;  %v7380_v25 = vld [vmem:[#allocation14 + $0x38] sm:$0xff]  }
0x1552   :  { %v2491_v46 = vpop.xlane.xlu1 %2490 }
0x1553   :  { %v2494_v28 = vrot.slane %v2491_v46, 4 }
0x1554   :  { %v2493_v29 = vpop.xlane.xlu0 %2492 }
0x1555   :  { %v2495_v32 = vadd.f32 %v2494_v28, %v2491_v46  ;;  %v2500_v33 = vrot.slane %v2493_v29, 4 }
0x1557   :  { %v2496_v35 = vrot.slane %v2495_v32, 2  ;;  %v2501_v36 = vadd.f32 %v2500_v33, %v2493_v29 }
0x1559   :  { %v2497_v37 = vadd.f32 %v2496_v35, %v2495_v32  ;;  %v2502_v38 = vrot.slane %v2501_v36, 2 }
0x155b   :  { %v2498_v40 = vrot.slane %v2497_v37, 1  ;;  %v2503_v44 = vadd.f32 %v2502_v38, %v2501_v36 }
0x155d   :  { %v2499_v51 = vadd.f32 %v2498_v40, %v2497_v37  ;;  %v2504_v52 = vrot.slane %v2503_v44, 1 }
0x155f   :  { %v2505_v55 = vadd.f32 %v2504_v52, %v2503_v44  ;;  %v2506_v59 = vmul.f32 0.0009765625, %v2499_v51 }
0x1561   :  { %v8509_v61 = vsub.f32 %v2488_v22, %v2506_v59  ;;  %v2507_v60 = vmul.f32 0.0009765625, %v2505_v55 }
0x1563   :  { %v2510_v5 = vmul.f32 %v8509_v61, %v8509_v61  ;;  %v8513_v62 = vsub.f32 %v2489_v24, %v2507_v60 }
0x1565   :  { %2512 = vadd.xlane.f32.xlu0 %v2510_v5  ;;  %v2511_v3 = vmul.f32 %v8513_v62, %v8513_v62  ;;  %v8521_v5 = vld [vmem:[%s9063_s6] sm:$0xff] }
0x1569   :  { %2514 = vadd.xlane.f32.xlu0 %v2511_v3 }
0x15f2   :  { %v2513_v27 = vpop.xlane.xlu0 %2512 }
0x15f3   :  { %v2516_v22 = vrot.slane %v2513_v27, 4 }
0x15f5   :  { %v2517_v23 = vadd.f32 %v2516_v22, %v2513_v27  ;;  %v7381_v27 = vld [vmem:[#allocation14 + $0xb8] sm:$0xff]  }
0x15f6   :  { %v2515_v24 = vpop.xlane.xlu0 %2514  ;;  %v240_v22 = vld [vmem:[%s9066_s9] sm:$0xf] }
0x15f7   :  { %v2518_v46 = vrot.slane %v2517_v23, 2  ;;  %v2522_v28 = vrot.slane %v2515_v24, 4 }
0x15f9   :  { %v2519_v29 = vadd.f32 %v2518_v46, %v2517_v23  ;;  %v2523_v32 = vadd.f32 %v2522_v28, %v2515_v24  ;;  %v2556_v23 = vsub.s32 3, %v8093_v30  ;;  %v2545_v24 = vrot.slane %v240_v22, %v8100_v34 }
0x15fa   :  { %v2553_v46 = vrot.slane %v240_v22, %v8126_v50  ;;  %v2549_v28 = vrot.slane %v240_v22, %v8096_v31 }
0x15fb   :  { %v2520_v33 = vrot.slane %v2519_v29, 1  ;;  %v2524_v35 = vrot.slane %v2523_v32, 2 }
0x15fd   :  { %v2521_v36 = vadd.f32 %v2520_v33, %v2519_v29  ;;  %v2525_v37 = vadd.f32 %v2524_v35, %v2523_v32  ;;  %v2557_v29 = vrot.slane %v240_v22, %v2556_v23 }
0x15ff   :  { %v2528_v38 = vmul.f32 0.0009765625, %v2521_v36  ;;  %v2526_v40 = vrot.slane %v2525_v37, 1 }
0x1601   :  { %v2530_v44 = vadd.f32 1e-06, %v2528_v38  ;;  %v2527_v51 = vadd.f32 %v2526_v40, %v2525_v37 }
0x1603   :  { %7566 = vrsqrt.f32 %v2530_v44  ;;  %v2529_v52 = vmul.f32 0.0009765625, %v2527_v51 }
0x1605   :  { %v2531_v55 = vadd.f32 1e-06, %v2529_v52 }
0x1607   :  { %7568 = vrsqrt.f32 %v2531_v55 }
0x160d   :  { %v7567_v59 = vpop.eup %7566 }
0x160e   :  { %v2534_v60 = vmul.f32 %v7567_v59, %v8509_v61  ;;  %v7352_v61 = vld [vmem:[#allocation14] sm:$0xff]  }
0x1610   :  { %v2536_v6 = vmul.f32 %v2534_v60, %v8521_v5 }
0x1611   :  { %v7569_v3 = vpop.eup %7568 }
0x1612   :  { %v2535_v4 = vmul.f32 %v7569_v3, %v8513_v62  ;;  %v8529_v41 = vadd.f32 %v2536_v6, %v8525_v7  ;;  %v7356_v62 = vld [vmem:[#allocation14 + $0x8] sm:$0xff]  }
0x1614   :  { %v2537_v9 = vmul.f32 %v2535_v4, %v8521_v5 }
0x1616   :  { %v8532_v45 = vadd.f32 %v2537_v9, %v8525_v7 }
0x1618   :  { %v2540_v49 = vpack.c.bf16 %v8532_v45, %v8529_v41 }
0x161a   :  { %2755 = vmatmul.mubr.bf16.vlgmr.msra.gmra.mrb[76].mxu1 %v2540_v49  ;;  %2798 = vmatmul.mubr.bf16.vlgmr.msra.gmra.mrb[64].mxu0 %v2540_v49 }
0x161b   :  { %6532 = vmatpush3.bf16.msra.mxu1 %v7352_v61  ;;  %6554 = vmatpush3.bf16.msra.mxu0 %v7353_v10 }
0x161c   :  { %6533 = vmatprep.subr.bf16.mxu1 %v7354_v11  ;;  %6555 = vmatprep.subr.bf16.mxu0 %v7355_v14 }
0x161f   :  { %6534 = vmatpush3.bf16.msra.mxu1 %v7356_v62  ;;  %6556 = vmatpush3.bf16.msra.mxu0 %v7357_v26 }
0x1620   :  { %6535 = vmatprep.subr.bf16.mxu1 %v7358_v15  ;;  %6557 = vmatprep.subr.bf16.mxu0 %v7359_v16 }
0x1623   :  { %6536 = vmatpush3.bf16.msra.mxu1 %v7360_v57  ;;  %6558 = vmatpush3.bf16.msra.mxu0 %v7361_v39 }
0x1624   :  { %6537 = vmatprep.subr.bf16.mxu1 %v7362_v42  ;;  %6559 = vmatprep.subr.bf16.mxu0 %v7363_v47 }
0x1627   :  { %6538 = vmatpush3.bf16.msra.mxu1 %v7364_v48  ;;  %6560 = vmatpush3.bf16.msra.mxu0 %v7365_v43  ;;  %v6265_v48 = vld [vmem:[%s9068_s11] ss:$0 sm:$0xff] }
0x1628   :  { %6539 = vmatprep.subr.bf16.mxu1 %v7366_v53  ;;  %6561 = vmatprep.subr.bf16.mxu0 %v7367_v54 }
0x162b   :  { %6540 = vmatpush3.bf16.msra.mxu1 %v7368_v8  ;;  %6562 = vmatpush3.bf16.msra.mxu0 %v7369_v12 }
0x162c   :  { %6541 = vmatprep.subr.bf16.mxu1 %v7370_v13  ;;  %6563 = vmatprep.subr.bf16.mxu0 %v7371_v17 }
0x162f   :  { %6542 = vmatpush3.bf16.msra.mxu1 %v7372_v18  ;;  %6564 = vmatpush3.bf16.msra.mxu0 %v7373_v19 }
0x1630   :  { %6543 = vmatprep.subr.bf16.mxu1 %v7374_v56  ;;  %6565 = vmatprep.subr.bf16.mxu0 %v7375_v20 }
0x1633   :  { %6544 = vmatpush3.bf16.msra.mxu1 %v7376_v58  ;;  %6566 = vmatpush3.bf16.msra.mxu0 %v7377_v63 }
0x1634   :  { %6545 = vmatprep.subr.bf16.mxu1 %v7378_v2  ;;  %6567 = vmatprep.subr.bf16.mxu0 %v7379_v21 }
0x1637   :  { %6546 = vmatpush3.bf16.msra.mxu1 %v7380_v25  ;;  %6568 = vmatpush3.bf16.msra.mxu0 %v7381_v27 }
0x1638   :  { %6933 = vmatprep.subr.bf16.mxu0 %v7884_v1 }
0x16ed   :  { %v2756_v32 = vpop.f32.mrb[76].mxu1  ;;  %v2799_v33 = vpop.f32.mrb[64].mxu0 }
0x16ee   :  { %v2757_v35 = vadd.f32 %v2756_v32, %v2545_v24  ;;  %v2800_v36 = vadd.f32 %v2799_v33, %v2553_v46  ;;  %v2758_v37 = vpop.f32.mrb[77].mxu1  ;;  %v2801_v38 = vpop.f32.mrb[65].mxu0 }
0x16ef   :  { %v2759_v40 = vadd.f32 %v2758_v37, %v2549_v28  ;;  %v2802_v44 = vadd.f32 %v2801_v38, %v2557_v29  ;;  %v2760_v51 = vpop.f32.mrb[78].mxu1  ;;  %v2803_v52 = vpop.f32.mrb[66].mxu0 }
0x16f0   :  { %v2761_v55 = vadd.f32 %v2760_v51, %v2545_v24  ;;  %v2804_v59 = vadd.f32 %v2803_v52, %v2553_v46  ;;  %v2762_v60 = vpop.f32.mrb[79].mxu1  ;;  %v2805_v3 = vpop.f32.mrb[67].mxu0  ;;  %v2808_v9 = vmax.f32 %v2757_v35, 0.0  ;;  %v2810_v61 = vmax.f32 %v2800_v36, 0.0 }
0x16f1   :  { %v2763_v4 = vadd.f32 %v2762_v60, %v2549_v28  ;;  %v2806_v6 = vadd.f32 %v2805_v3, %v2557_v29  ;;  %v2809_v11 = vmax.f32 %v2759_v40, 0.0  ;;  %v2811_v14 = vmax.f32 %v2802_v44, 0.0  ;;  %v7384_v60 = vld [vmem:[#allocation5 + $0xc4] ss:$12 sps:$4 sm:$0xff]   ;;  %v7382_v3 = vld [vmem:[#allocation5 + $0xc0] ss:$12 sps:$4 sm:$0xff]  }
0x16f2   :  { %v2812_v10 = vmax.f32 %v2761_v55, 0.0  ;;  %v2814_v49 = vmax.f32 %v2804_v59, 0.0  ;;  %3457 = vmatprep.subr.bf16.mxu1 %v7384_v60 }
0x16f3   :  { %v2813_v62 = vmax.f32 %v2763_v4, 0.0  ;;  %v2815_v26 = vmax.f32 %v2806_v6, 0.0  ;;  %v7385_v4 = vld [vmem:[#allocation5 + $0xc8] ss:$12 sps:$4 sm:$0xff]  }
0x16f4   :  { %v2816_v15 = vpack.c.bf16 %v2812_v10, %v2808_v9  ;;  %v2818_v16 = vpack.c.bf16 %v2814_v49, %v2810_v61  ;;  %v7388_v6 = vld [vmem:[#allocation5 + $0xdc] ss:$12 sps:$4 sm:$0xff]   ;;  %v7386_v9 = vld [vmem:[#allocation5 + $0xd8] ss:$12 sps:$4 sm:$0xff]   ;;  %v7389_v61 = vld [vmem:[#allocation5 + $0xe0] ss:$12 sps:$4 sm:$0xff]  }
0x16f5   :  { %v2817_v57 = vpack.c.bf16 %v2813_v62, %v2809_v11  ;;  %v2819_v39 = vpack.c.bf16 %v2815_v26, %v2811_v14  ;;  %v7392_v10 = vld [vmem:[#allocation5 + $0xf4] ss:$12 sps:$4 sm:$0xff]   ;;  %v7390_v49 = vld [vmem:[#allocation5 + $0xf0] ss:$12 sps:$4 sm:$0xff]   ;;  %v7393_v11 = vld [vmem:[#allocation5 + $0xf8] ss:$12 sps:$4 sm:$0xff]  }
0x16f6   :  { %v7396_v14 = vld [vmem:[#allocation5 + $0x10c] ss:$12 sps:$4 sm:$0xff]   ;;  %v7394_v62 = vld [vmem:[#allocation5 + $0x108] ss:$12 sps:$4 sm:$0xff]   ;;  %v7397_v26 = vld [vmem:[#allocation5 + $0x110] ss:$12 sps:$4 sm:$0xff]  }
0x16f7   :  { %3050 = vmatprep.mubr.bf16.mxu1 %v2817_v57  ;;  %3091 = vmatprep.mubr.bf16.mxu0 %v2819_v39  ;;  %v7401_v57 = vld [vmem:[#allocation5 + $0x128] ss:$12 sps:$4 sm:$0xff]  }
0x16f8   :  { %3051 = vmatmul.mubr.bf16.vlgmr.msra.gmra.mrb[80].mxu1 %v2816_v15  ;;  %3092 = vmatmul.mubr.bf16.vlgmr.msra.gmra.mrb[68].mxu0 %v2818_v16  ;;  %v7400_v15 = vld [vmem:[#allocation5 + $0x124] ss:$12 sps:$4 sm:$0xff]   ;;  %v7398_v16 = vld [vmem:[#allocation5 + $0x120] ss:$12 sps:$4 sm:$0xff]   ;;  %v7404_v39 = vld [vmem:[#allocation5 + $0x13c] ss:$12 sps:$4 sm:$0xff]  }
0x16f9   :  { %3489 = vmatprep.mubr.bf16.mxu1 %v7883_v0  ;;  %6949 = vmatprep.mubr.msk.bf16.mxu0 %vm7885_vm0, %v7884_v1 }
0x16fa   :  { %3458 = vmatpush1.bf16.msra.mxu1 %v7382_v3  ;;  %6934 = vmatpush3.bf16.msra.mxu0 %v7385_v4 }
0x16fb   :  { %6935 = vmatprep.subr.bf16.mxu0 %v7884_v1  ;;  %3459 = vmatprep.subr.bf16.mxu1 %v7388_v6 }
0x16fe   :  { %3460 = vmatpush1.bf16.msra.mxu1 %v7386_v9  ;;  %6936 = vmatpush3.bf16.msra.mxu0 %v7389_v61 }
0x16ff   :  { %6937 = vmatprep.subr.bf16.mxu0 %v7884_v1  ;;  %3461 = vmatprep.subr.bf16.mxu1 %v7392_v10 }
0x1702   :  { %3462 = vmatpush1.bf16.msra.mxu1 %v7390_v49  ;;  %6938 = vmatpush3.bf16.msra.mxu0 %v7393_v11 }
0x1703   :  { %6939 = vmatprep.subr.bf16.mxu0 %v7884_v1  ;;  %3463 = vmatprep.subr.bf16.mxu1 %v7396_v14 }
0x1706   :  { %3464 = vmatpush1.bf16.msra.mxu1 %v7394_v62  ;;  %6940 = vmatpush3.bf16.msra.mxu0 %v7397_v26 }
0x1707   :  { %3465 = vmatprep.subr.bf16.mxu1 %v7400_v15  ;;  %6941 = vmatprep.subr.bf16.mxu0 %v7884_v1 }
0x170a   :  { %3466 = vmatpush1.bf16.msra.mxu1 %v7398_v16  ;;  %6942 = vmatpush3.bf16.msra.mxu0 %v7401_v57 }
0x170b   :  { %3467 = vmatprep.subr.bf16.mxu1 %v7404_v39  ;;  %6943 = vmatprep.subr.bf16.mxu0 %v7884_v1 }
0x17cb   :  { %v6547_v42 = vpop.f32.mrb[80].mxu1  ;;  %v6569_v47 = vpop.f32.mrb[68].mxu0 }
0x17cc   :  { %v6548_v43 = vpop.f32.mrb[81].mxu1  ;;  %v6570_v53 = vpop.f32.mrb[69].mxu0 }
0x17cd   :  { %v6549_v54 = vadd.f32 %v6548_v43, %v6547_v42  ;;  %v6571_v8 = vadd.f32 %v6570_v53, %v6569_v47  ;;  %v6550_v12 = vpop.f32.mrb[82].mxu1  ;;  %v6572_v13 = vpop.f32.mrb[70].mxu0  ;;  %v7402_v42 = vld [vmem:[#allocation5 + $0x138] ss:$12 sps:$4 sm:$0xff]   ;;  %v7405_v47 = vld [vmem:[#allocation5 + $0x140] ss:$12 sps:$4 sm:$0xff]  }
0x17ce   :  { %v6551_v17 = vpop.f32.mrb[83].mxu1  ;;  %v6573_v18 = vpop.f32.mrb[71].mxu0  ;;  %3468 = vmatpush1.bf16.msra.mxu1 %v7402_v42  ;;  %6944 = vmatpush3.bf16.msra.mxu0 %v7405_v47  ;;  %v7406_v43 = vld [vmem:[#allocation5 + $0x150] ss:$12 sps:$4 sm:$0xff]   ;;  %v7409_v53 = vld [vmem:[#allocation5 + $0x158] ss:$12 sps:$4 sm:$0xff]  }
0x17cf   :  { %v3053_v19 = vadd.f32 %v6549_v54, %v6265_v48  ;;  %v6552_v56 = vadd.f32 %v6551_v17, %v6550_v12  ;;  %v6574_v20 = vadd.f32 %v6573_v18, %v6572_v13  ;;  %6945 = vmatprep.subr.bf16.mxu0 %v7884_v1  ;;  %v7412_v54 = vld [vmem:[#allocation5 + $0x16c] ss:$12 sps:$4 sm:$0xff]   ;;  %v7413_v12 = vld [vmem:[#allocation5 + $0x170] ss:$12 sps:$4 sm:$0xff]  }
0x17d1   :  { %v3094_v58 = vadd.f32 %v6571_v8, %v3053_v19  ;;  %v3056_v63 = vadd.f32 %v6552_v56, %v6265_v48  ;;  %v7408_v48 = vld [vmem:[#allocation5 + $0x154] ss:$12 sps:$4 sm:$0xff]  }
0x17d2   :  { %3469 = vmatprep.subr.bf16.mxu1 %v7408_v48  ;;  %6946 = vmatpush3.bf16.msra.mxu0 %v7409_v53  ;;  %v7410_v8 = vld [vmem:[#allocation5 + $0x168] ss:$12 sps:$4 sm:$0xff]  }
0x17d3   :  { %v3097_v2 = vadd.f32 %v6574_v20, %v3056_v63  ;;  %v3100_v21 = vadd.f32 %v3094_v58, %v8529_v41  ;;  %3470 = vmatpush1.bf16.msra.mxu1 %v7406_v43  ;;  %6947 = vmatprep.subr.bf16.mxu0 %v7884_v1 }
0x17d4   :  { %3471 = vmatprep.subr.bf16.mxu1 %v7412_v54  ;;  %v8622_v54 = vld [vmem:[%s9058_s1] ss:$0 sm:$0xff] }
0x17d5   :  { %3102 = vadd.xlane.f32.xlu1 %v3100_v21  ;;  %v3101_v25 = vadd.f32 %v3097_v2, %v8532_v45 }
0x17d6   :  { %6948 = vmatpush3.bf16.msra.mxu0 %v7413_v12 }
0x17d7   :  { %3104 = vadd.xlane.f32.xlu0 %v3101_v25  ;;  %3472 = vmatpush1.bf16.msra.mxu1 %v7410_v8 }
0x17d8   :  { %6953 = vmatprep.subr.bf16.mxu1 %v7884_v1  ;;  %6977 = vmatprep.subr.bf16.mxu0 %v7884_v1 }
0x1862   :  { %v3103_v27 = vpop.xlane.xlu1 %3102 }
0x1863   :  { %v3106_v22 = vrot.slane %v3103_v27, 4 }
0x1864   :  { %v3105_v24 = vpop.xlane.xlu0 %3104 }
0x1865   :  { %v3107_v46 = vadd.f32 %v3106_v22, %v3103_v27  ;;  %v3112_v28 = vrot.slane %v3105_v24, 4 }
0x1867   :  { %v3108_v29 = vrot.slane %v3107_v46, 2  ;;  %v3113_v32 = vadd.f32 %v3112_v28, %v3105_v24 }
0x1869   :  { %v3109_v33 = vadd.f32 %v3108_v29, %v3107_v46  ;;  %v3114_v35 = vrot.slane %v3113_v32, 2 }
0x186b   :  { %v3110_v36 = vrot.slane %v3109_v33, 1  ;;  %v3115_v37 = vadd.f32 %v3114_v35, %v3113_v32 }
0x186d   :  { %v3111_v38 = vadd.f32 %v3110_v36, %v3109_v33  ;;  %v3116_v40 = vrot.slane %v3115_v37, 1 }
0x186f   :  { %v3117_v44 = vadd.f32 %v3116_v40, %v3115_v37  ;;  %v3118_v51 = vmul.f32 0.0009765625, %v3111_v38 }
0x1871   :  { %v8554_v41 = vsub.f32 %v3100_v21, %v3118_v51  ;;  %v3119_v52 = vmul.f32 0.0009765625, %v3117_v44 }
0x1873   :  { %v3122_v45 = vmul.f32 %v8554_v41, %v8554_v41  ;;  %v8558_v55 = vsub.f32 %v3101_v25, %v3119_v52 }
0x1875   :  { %3124 = vadd.xlane.f32.xlu1 %v3122_v45  ;;  %v3123_v59 = vmul.f32 %v8558_v55, %v8558_v55 }
0x1877   :  { %3126 = vadd.xlane.f32.xlu0 %v3123_v59 }
0x1902   :  { %v3125_v13 = vpop.xlane.xlu1 %3124 }
0x1903   :  { %v3128_v17 = vrot.slane %v3125_v13, 4 }
0x1904   :  { %v3127_v18 = vpop.xlane.xlu0 %3126 }
0x1905   :  { %v3129_v19 = vadd.f32 %v3128_v17, %v3125_v13  ;;  %v3134_v56 = vrot.slane %v3127_v18, 4 }
0x1907   :  { %v3130_v20 = vrot.slane %v3129_v19, 2  ;;  %v3135_v58 = vadd.f32 %v3134_v56, %v3127_v18  ;;  %v8629_v56 = vld [vmem:[%s9058_s1 + $0x1] ss:$0 sm:$0xff] }
0x1909   :  { %v3131_v63 = vadd.f32 %v3130_v20, %v3129_v19  ;;  %v3136_v2 = vrot.slane %v3135_v58, 2 }
0x190b   :  { %v3132_v21 = vrot.slane %v3131_v63, 1  ;;  %v3137_v25 = vadd.f32 %v3136_v2, %v3135_v58 }
0x190d   :  { %v3133_v27 = vadd.f32 %v3132_v21, %v3131_v63  ;;  %v3138_v22 = vrot.slane %v3137_v25, 1 }
0x190f   :  { %v3140_v24 = vmul.f32 0.0009765625, %v3133_v27  ;;  %v3139_v46 = vadd.f32 %v3138_v22, %v3137_v25 }
0x1911   :  { %v3142_v28 = vadd.f32 1e-06, %v3140_v24  ;;  %v3141_v29 = vmul.f32 0.0009765625, %v3139_v46 }
0x1913   :  { %7570 = vrsqrt.f32 %v3142_v28  ;;  %v3143_v32 = vadd.f32 1e-06, %v3141_v29 }
0x1915   :  { %7572 = vrsqrt.f32 %v3143_v32 }
0x191d   :  { %v7571_v33 = vpop.eup %7570 }
0x191e   :  { %v3146_v35 = vmul.f32 %v7571_v33, %v8554_v41  ;;  %v3186_v41 = vld [vmem:[#allocation7 + $0x3] sm:$0x7] }
0x191f   :  { %v7573_v36 = vpop.eup %7572  ;;  %v3325_v59 = vrot.slane %v3186_v41, %v8126_v50  ;;  %v3317_v49 = vrot.slane %v3186_v41, %v8100_v34 }
0x1920   :  { %v3147_v37 = vmul.f32 %v7573_v36, %v8558_v55  ;;  %v3148_v38 = vmul.f32 %v3146_v35, %v8521_v5 }
0x1922   :  { %v3149_v40 = vmul.f32 %v3147_v37, %v8521_v5  ;;  %v8576_v44 = vadd.f32 %v3148_v38, %v8525_v7  ;;  %v3321_v5 = vrot.slane %v3186_v41, %v8096_v31 }
0x1924   :  { %v8579_v51 = vadd.f32 %v3149_v40, %v8525_v7 }
0x1926   :  { %v3312_v52 = vpack.c.bf16 %v8579_v51, %v8576_v44 }
0x1928   :  { %3490 = vmatmul.mubr.bf16.vlgmr.msra.gmra.mrb[84].mxu1 %v3312_v52  ;;  %6950 = vmatmul.mubr.bf16.vlgmr.msra.gmra.mrb[72].mxu0 %v3312_v52 }
0x1929   :  { %6955 = vmatprep.mubr.msk.bf16.mxu1 %vm7885_vm0, %v7884_v1  ;;  %6979 = vmatprep.mubr.msk.bf16.mxu0 %vm7885_vm0, %v7884_v1 }
0x19fb   :  { %v3491_v45 = vpop.f32.mrb[84].mxu1  ;;  %v3534_v55 = vpop.f32.mrb[72].mxu0 }
0x19fc   :  { %v3493_v7 = vpop.f32.mrb[85].mxu1  ;;  %v6951_v60 = vpop.f32.mrb[73].mxu0  ;;  %v3492_v26 = vadd.f32 %v3491_v45, %v3317_v49  ;;  %v3535_v57 = vadd.f32 %v3534_v55, %v3325_v59 }
0x19fd   :  { %v3494_v3 = vadd.f32 %v3493_v7, %v3321_v5  ;;  %v3495_v4 = vpop.f32.mrb[86].mxu1  ;;  %v3537_v6 = vpop.f32.mrb[74].mxu0 }
0x19fe   :  { %v8589_v9 = vadd.f32 %v3537_v6, %v3325_v59  ;;  %v3497_v61 = vpop.f32.mrb[87].mxu1  ;;  %v6952_v10 = vpop.f32.mrb[75].mxu0  ;;  %v8599_v16 = vpack.c.bf16 %v3492_v26, %v3492_v26  ;;  %v3496_v42 = vadd.f32 %v3495_v4, %v3317_v49  ;;  %v8608_v47 = vpack.c.bf16 %v3535_v57, %v3535_v57 }
0x19ff   :  { %v8592_v11 = vpack.c.bf16 %v3494_v3, %v3494_v3  ;;  %v3498_v14 = vadd.f32 %v3497_v61, %v3321_v5 }
0x1a00   :  { %v8610_v48 = vpack.c.bf16 %v3496_v42, %v3496_v42  ;;  %v3679_v43 = vsel %vm686_vm2, %v8608_v47, 0  ;;  %v8647_v41 = vpack.c.bf16 %v8589_v9, %v8589_v9 }
0x1a01   :  { %v3563_v62 = vsel %vm565_vm1, %v8592_v11, 0  ;;  %v8597_v15 = vpack.c.bf16 %v3498_v14, %v3498_v14 }
0x1a02   :  { %6954 = vmatpush3.bf16.xpose.msra.mxu1 %v3563_v62  ;;  %v3725_v59 = vsel %vm686_vm2, %v8647_v41, 0 }
0x1a03   :  { %6959 = vmatprep.subr.bf16.mxu1 %v7884_v1  ;;  %v3609_v39 = vsel %vm565_vm1, %v8597_v15, 0 }
0x1a09   :  { %6956 = vmatmul.mubr.msk.bf16.vlgmr.msra.gmra.mrb[88].mxu1 %vm565_vm1, %v8599_v16 }
0x1a0a   :  { %6960 = vmatpush3.bf16.xpose.msra.mxu1 %v3609_v39  ;;  %6961 = vmatprep.mubr.msk.bf16.mxu1 %vm7885_vm0, %v7884_v1 }
0x1a0b   :  { %6965 = vmatprep.subr.bf16.mxu1 %v7884_v1 }
0x1a11   :  { %6962 = vmatmul.mubr.msk.bf16.vlgmr.msra.gmra.mrb[92].mxu1 %vm565_vm1, %v8610_v48 }
0x1a12   :  { %6966 = vmatpush3.bf16.msra.mxu1 %v3679_v43  ;;  %6967 = vmatprep.mubr.msk.bf16.mxu1 %vm7885_vm0, %v7884_v1 }
0x1a13   :  { %6971 = vmatprep.subr.bf16.mxu1 %v7884_v1 }
0x1adc   :  { %v3599_v53 = vpop.f32.mrb[88].mxu1 }
0x1add   :  { %v3600_v8 = vadd.f32 %v8622_v54, %v3599_v53  ;;  %v6957_v12 = vpop.f32.mrb[89].mxu1 }
0x1ade   :  { %v3602_v13 = vpop.f32.mrb[90].mxu1 }
0x1adf   :  { %v6958_v17 = vpop.f32.mrb[91].mxu1  ;;  %v3651_v18 = vsel %vm658_vm3, %v3600_v8, -inf }
0x1ae0   :  { %3652 = vmax.xlane.f32.xlu1 %v3651_v18 }
0x1ae4   :  { %v3645_v19 = vpop.f32.mrb[92].mxu1 }
0x1ae5   :  { %v3646_v20 = vadd.f32 %v8629_v56, %v3645_v19  ;;  %v6963_v58 = vpop.f32.mrb[93].mxu1 }
0x1ae6   :  { %v3648_v63 = vpop.f32.mrb[94].mxu1 }
0x1ae7   :  { %v6964_v2 = vpop.f32.mrb[95].mxu1  ;;  %v3654_v21 = vsel %vm658_vm3, %v3646_v20, -inf }
0x1ae8   :  { %3655 = vmax.xlane.f32.xlu0 %v3654_v21 }
0x1b6d   :  { %v3653_v25 = vpop.xlane.xlu1 %3652 }
0x1b6e   :  { %v3657_v27 = vsub.f32 %v3600_v8, %v3653_v25 }
0x1b70   :  { %v3659_v22 = vmul.f32 1.442695, %v3657_v27 }
0x1b72   :  { %7574 = vpow2.f32 %v3659_v22 }
0x1b75   :  { %v3656_v24 = vpop.xlane.xlu0 %3655 }
0x1b76   :  { %v3658_v46 = vsub.f32 %v3646_v20, %v3656_v24 }
0x1b78   :  { %v3661_v28 = vmul.f32 1.442695, %v3658_v46 }
0x1b7a   :  { %7576 = vpow2.f32 %v3661_v28 }
0x1b7c   :  { %v7575_v29 = vpop.eup %7574 }
0x1b7d   :  { %v3663_v32 = vsel %vm658_vm3, %v7575_v29, 0.0 }
0x1b7e   :  { %3664 = vadd.xlane.f32.xlu1 %v3663_v32 }
0x1b84   :  { %v7577_v33 = vpop.eup %7576 }
0x1b85   :  { %v3666_v35 = vsel %vm658_vm3, %v7577_v33, 0.0 }
0x1b86   :  { %3667 = vadd.xlane.f32.xlu0 %v3666_v35 }
0x1b8f   :  { %3769 = vrot.lane.b32.xlu1 %v8592_v11, %s7886_s24 }
0x1b93   :  { %3767 = vrot.lane.b32.xlu1 %v8599_v16, %s7886_s24 }
0x1b97   :  { %3817 = vrot.lane.b32.xlu1 %v8610_v48, %s7886_s24 }
0x1b9c   :  { %3819 = vrot.lane.b32.xlu0 %v8597_v15, %s7886_s24 }
0x1c0b   :  { %v3665_v36 = vpop.xlane.xlu1 %3664 }
0x1c0c   :  { %7578 = vrcp.f32 %v3665_v36 }
0x1c0f   :  { %v3770_v37 = vpop.permute.xlu1 %3769 }
0x1c10   :  { %v3775_v38 = vsel %vm565_vm1, %v3770_v37, 0 }
0x1c11   :  { %6978 = vmatpush3.bf16.xpose.msra.mxu0 %v3775_v38 }
0x1c12   :  { %6989 = vmatprep.subr.bf16.mxu0 %v7884_v1 }
0x1c13   :  { %v3668_v40 = vpop.xlane.xlu0 %3667  ;;  %v3768_v45 = vpop.permute.xlu1 %3767 }
0x1c14   :  { %7580 = vrcp.f32 %v3668_v40 }
0x1c16   :  { %v7579_v52 = vpop.eup %7578 }
0x1c17   :  { %v3670_v5 = vmul.f32 %v7579_v52, %v7575_v29  ;;  %v3820_v3 = vpop.permute.xlu0 %3819  ;;  %v3818_v9 = vpop.permute.xlu1 %3817 }
0x1c18   :  { %6980 = vmatmul.mubr.msk.bf16.vlgmr.msra.gmra.mrb[76].mxu0 %vm565_vm1, %v3768_v45  ;;  %v3825_v6 = vsel %vm565_vm1, %v3820_v3, 0 }
0x1c19   :  { %v3673_v55 = vpack.c.bf16 %v3670_v5, %v3670_v5  ;;  %6991 = vmatprep.mubr.msk.bf16.mxu0 %vm7885_vm0, %v7884_v1 }
0x1c1b   :  { %6968 = vmatmul.mubr.msk.bf16.vlgmr.msra.gmra.mrb[96].mxu1 %vm658_vm3, %v3673_v55 }
0x1c1c   :  { %6972 = vmatpush3.bf16.msra.mxu1 %v3725_v59  ;;  %6973 = vmatprep.mubr.msk.bf16.mxu1 %vm7885_vm0, %v7884_v1 }
0x1c1d   :  { %6983 = vmatprep.subr.bf16.mxu1 %v7884_v1 }
0x1c1e   :  { %v7581_v7 = vpop.eup %7580 }
0x1c1f   :  { %v3672_v60 = vmul.f32 %v7581_v7, %v7577_v33 }
0x1c21   :  { %v3674_v4 = vpack.c.bf16 %v3672_v60, %v3672_v60 }
0x1c23   :  { %6974 = vmatmul.mubr.msk.bf16.vlgmr.msra.gmra.mrb[100].mxu1 %vm658_vm3, %v3674_v4 }
0x1c24   :  { %6985 = vmatprep.mubr.msk.bf16.mxu1 %vm7885_vm0, %v7884_v1 }
0x1c25   :  { %6984 = vmatpush3.bf16.xpose.msra.mxu1 %v3825_v6 }
0x1c26   :  { %6995 = vmatprep.subr.bf16.mxu1 %v7884_v1 }
0x1c2c   :  { %6986 = vmatmul.mubr.msk.bf16.vlgmr.msra.gmra.mrb[104].mxu1 %vm565_vm1, %v3818_v9 }
0x1c2d   :  { %6997 = vmatprep.mubr.msk.bf16.mxu1 %vm7885_vm0, %v7884_v1 }
0x1ceb   :  { %v3811_v61 = vpop.f32.mrb[76].mxu0 }
0x1cec   :  { %v3812_v10 = vadd.f32 %v8622_v54, %v3811_v61  ;;  %v6981_v49 = vpop.f32.mrb[77].mxu0 }
0x1ced   :  { %v3814_v14 = vpop.f32.mrb[78].mxu0 }
0x1cee   :  { %v8667_v62 = vpop.f32.mrb[96].mxu1  ;;  %v6982_v26 = vpop.f32.mrb[79].mxu0  ;;  %v3867_v57 = vsel %vm658_vm3, %v3812_v10, -inf }
0x1cef   :  { %3868 = vmax.xlane.f32.xlu1 %v3867_v57  ;;  %v6969_v39 = vpop.f32.mrb[97].mxu1 }
0x1cf0   :  { %v3718_v42 = vpop.f32.mrb[98].mxu1 }
0x1cf1   :  { %v6970_v43 = vpop.f32.mrb[99].mxu1 }
0x1cf6   :  { %v8670_v53 = vpop.f32.mrb[100].mxu1 }
0x1cf7   :  { %v6975_v8 = vpop.f32.mrb[101].mxu1 }
0x1cf8   :  { %v3764_v12 = vpop.f32.mrb[102].mxu1 }
0x1cf9   :  { %v6976_v13 = vpop.f32.mrb[103].mxu1 }
0x1cff   :  { %v3861_v17 = vpop.f32.mrb[104].mxu1 }
0x1d00   :  { %v3862_v18 = vadd.f32 %v8629_v56, %v3861_v17  ;;  %v6987_v19 = vpop.f32.mrb[105].mxu1  ;;  %3891 = vrot.lane.b32.xlu1 %v8608_v47, %s7886_s24 }
0x1d01   :  { %v3864_v20 = vpop.f32.mrb[106].mxu1 }
0x1d02   :  { %v6988_v58 = vpop.f32.mrb[107].mxu1  ;;  %v3870_v63 = vsel %vm658_vm3, %v3862_v18, -inf }
0x1d03   :  { %3871 = vmax.xlane.f32.xlu0 %v3870_v63 }
0x1d04   :  { %3989 = vrot.lane.b32.xlu1 %v8592_v11, %s7887_s4 }
0x1d08   :  { %4039 = vrot.lane.b32.xlu1 %v8597_v15, %s7887_s4 }
0x1d0c   :  { %3987 = vrot.lane.b32.xlu1 %v8599_v16, %s7887_s4 }
0x1d7c   :  { %v3869_v2 = vpop.xlane.xlu1 %3868 }
0x1d7d   :  { %v3873_v21 = vsub.f32 %v3812_v10, %v3869_v2 }
0x1d7f   :  { %v3875_v25 = vmul.f32 1.442695, %v3873_v21 }
0x1d80   :  { %v3892_v27 = vpop.permute.xlu1 %3891 }
0x1d81   :  { %7582 = vpow2.f32 %v3875_v25  ;;  %v3897_v22 = vsel %vm686_vm2, %v3892_v27, 0 }
0x1d82   :  { %6990 = vmatpush3.bf16.msra.mxu0 %v3897_v22 }
0x1d83   :  { %7001 = vmatprep.subr.bf16.mxu0 %v7884_v1 }
0x1d84   :  { %v3990_v38 = vpop.permute.xlu1 %3989 }
0x1d85   :  { %v3995_v5 = vsel %vm565_vm1, %v3990_v38, 0 }
0x1d88   :  { %v4040_v45 = vpop.permute.xlu1 %4039 }
0x1d89   :  { %v4045_v9 = vsel %vm565_vm1, %v4040_v45, 0 }
0x1d8b   :  { %v7583_v24 = vpop.eup %7582 }
0x1d8c   :  { %v3879_v46 = vsel %vm658_vm3, %v7583_v24, 0.0  ;;  %v3988_v59 = vpop.permute.xlu1 %3987 }
0x1d8d   :  { %3880 = vadd.xlane.f32.xlu0 %v3879_v46 }
0x1d90   :  { %v3872_v28 = vpop.xlane.xlu0 %3871 }
0x1d91   :  { %v3874_v29 = vsub.f32 %v3862_v18, %v3872_v28 }
0x1d93   :  { %v3877_v32 = vmul.f32 1.442695, %v3874_v29 }
0x1d95   :  { %7584 = vpow2.f32 %v3877_v32 }
0x1d9f   :  { %v7585_v33 = vpop.eup %7584 }
0x1da0   :  { %v3882_v35 = vsel %vm658_vm3, %v7585_v33, 0.0 }
0x1da1   :  { %3883 = vadd.xlane.f32.xlu0 %v3882_v35 }
0x1db7   :  { %3939 = vrot.lane.b32.xlu0 %v8647_v41, %s7886_s24 }
0x1dbb   :  { %4037 = vrot.lane.b32.xlu0 %v8610_v48, %s7887_s4 }
0x1e1a   :  { %v3881_v36 = vpop.xlane.xlu0 %3880 }
0x1e1b   :  { %7586 = vrcp.f32 %v3881_v36 }
0x1e25   :  { %v7587_v37 = vpop.eup %7586 }
0x1e26   :  { %v3886_v40 = vmul.f32 %v7587_v37, %v7583_v24 }
0x1e28   :  { %v3889_v52 = vpack.c.bf16 %v3886_v40, %v3886_v40 }
0x1e2a   :  { %6992 = vmatmul.mubr.msk.bf16.vlgmr.msra.gmra.mrb[80].mxu0 %vm658_vm3, %v3889_v52 }
0x1e2b   :  { %7002 = vmatpush3.bf16.xpose.msra.mxu0 %v3995_v5  ;;  %7003 = vmatprep.mubr.msk.bf16.mxu0 %vm7885_vm0, %v7884_v1 }
0x1e2c   :  { %7013 = vmatprep.subr.bf16.mxu0 %v7884_v1 }
0x1e2e   :  { %v3884_v55 = vpop.xlane.xlu0 %3883 }
0x1e2f   :  { %7588 = vrcp.f32 %v3884_v55 }
0x1e32   :  { %v3940_v7 = vpop.permute.xlu0 %3939  ;;  %7004 = vmatmul.mubr.msk.bf16.vlgmr.msra.gmra.mrb[84].mxu0 %vm565_vm1, %v3988_v59 }
0x1e33   :  { %v3945_v60 = vsel %vm686_vm2, %v3940_v7, 0  ;;  %7015 = vmatprep.mubr.msk.bf16.mxu0 %vm7885_vm0, %v7884_v1 }
0x1e34   :  { %6996 = vmatpush3.bf16.msra.mxu1 %v3945_v60 }
0x1e35   :  { %7007 = vmatprep.subr.bf16.mxu1 %v7884_v1 }
0x1e36   :  { %v4038_v61 = vpop.permute.xlu0 %4037 }
0x1e39   :  { %v7589_v3 = vpop.eup %7588 }
0x1e3a   :  { %v3888_v4 = vmul.f32 %v7589_v3, %v7585_v33 }
0x1e3c   :  { %v3890_v6 = vpack.c.bf16 %v3888_v4, %v3888_v4 }
0x1e3e   :  { %6998 = vmatmul.mubr.msk.bf16.vlgmr.msra.gmra.mrb[108].mxu1 %vm658_vm3, %v3890_v6 }
0x1e3f   :  { %7008 = vmatpush3.bf16.xpose.msra.mxu1 %v4045_v9  ;;  %7009 = vmatprep.mubr.msk.bf16.mxu1 %vm7885_vm0, %v7884_v1 }
0x1e40   :  { %7019 = vmatprep.subr.bf16.mxu1 %v7884_v1 }
0x1e46   :  { %7010 = vmatmul.mubr.msk.bf16.vlgmr.msra.gmra.mrb[112].mxu1 %vm565_vm1, %v4038_v61 }
0x1e47   :  { %7021 = vmatprep.mubr.msk.bf16.mxu1 %vm7885_vm0, %v7884_v1 }
0x1efd   :  { %v8708_v10 = vpop.f32.mrb[80].mxu0 }
0x1efe   :  { %v6993_v49 = vpop.f32.mrb[81].mxu0 }
0x1eff   :  { %v3936_v14 = vpop.f32.mrb[82].mxu0 }
0x1f00   :  { %v6994_v26 = vpop.f32.mrb[83].mxu0 }
0x1f05   :  { %v4031_v57 = vpop.f32.mrb[84].mxu0 }
0x1f06   :  { %v4032_v39 = vadd.f32 %v8622_v54, %v4031_v57  ;;  %v7005_v42 = vpop.f32.mrb[85].mxu0 }
0x1f07   :  { %v4034_v43 = vpop.f32.mrb[86].mxu0 }
0x1f08   :  { %v7006_v8 = vpop.f32.mrb[87].mxu0  ;;  %v4087_v12 = vsel %vm658_vm3, %v4032_v39, -inf }
0x1f09   :  { %4088 = vmax.xlane.f32.xlu1 %v4087_v12 }
0x1f11   :  { %v8712_v13 = vpop.f32.mrb[108].mxu1 }
0x1f12   :  { %v7227_v17 = vpack.i.bf16 %v8712_v13, %v8708_v10  ;;  %v6999_v18 = vpop.f32.mrb[109].mxu1 }
0x1f13   :  { %v3984_v19 = vpop.f32.mrb[110].mxu1 }
0x1f14   :  { %v7000_v20 = vpop.f32.mrb[111].mxu1 }
0x1f19   :  { %v4081_v58 = vpop.f32.mrb[112].mxu1 }
0x1f1a   :  { %v4082_v63 = vadd.f32 %v8629_v56, %v4081_v58  ;;  %v7011_v2 = vpop.f32.mrb[113].mxu1  ;;  %4111 = vrot.lane.b32.xlu1 %v8608_v47, %s7887_s4 }
0x1f1b   :  { %v4084_v21 = vpop.f32.mrb[114].mxu1 }
0x1f1c   :  { %v7012_v25 = vpop.f32.mrb[115].mxu1  ;;  %v4090_v27 = vsel %vm658_vm3, %v4082_v63, -inf }
0x1f1d   :  { %4091 = vmax.xlane.f32.xlu0 %v4090_v27 }
0x1f1e   :  { %4209 = vrot.lane.b32.xlu1 %v8592_v11, %s7888_s26 }
0x1f22   :  { %4259 = vrot.lane.b32.xlu1 %v8597_v15, %s7888_s26 }
0x1f26   :  { %4207 = vrot.lane.b32.xlu1 %v8599_v16, %s7888_s26 }
0x1f96   :  { %v4089_v22 = vpop.xlane.xlu1 %4088 }
0x1f97   :  { %v4093_v24 = vsub.f32 %v4032_v39, %v4089_v22 }
0x1f99   :  { %v4095_v46 = vmul.f32 1.442695, %v4093_v24 }
0x1f9a   :  { %v4112_v28 = vpop.permute.xlu1 %4111 }
0x1f9b   :  { %7590 = vpow2.f32 %v4095_v46  ;;  %v4117_v29 = vsel %vm686_vm2, %v4112_v28, 0 }
0x1f9c   :  { %7014 = vmatpush3.bf16.msra.mxu0 %v4117_v29 }
0x1f9d   :  { %7025 = vmatprep.subr.bf16.mxu0 %v7884_v1 }
0x1f9e   :  { %v4210_v45 = vpop.permute.xlu1 %4209 }
0x1f9f   :  { %v4215_v7 = vsel %vm565_vm1, %v4210_v45, 0 }
0x1fa2   :  { %v4260_v60 = vpop.permute.xlu1 %4259 }
0x1fa3   :  { %v4265_v26 = vsel %vm565_vm1, %v4260_v60, 0 }
0x1fa5   :  { %v7591_v32 = vpop.eup %7590 }
0x1fa6   :  { %v4099_v33 = vsel %vm658_vm3, %v7591_v32, 0.0  ;;  %v4208_v4 = vpop.permute.xlu1 %4207 }
0x1fa7   :  { %4100 = vadd.xlane.f32.xlu0 %v4099_v33 }
0x1faa   :  { %v4092_v35 = vpop.xlane.xlu0 %4091 }
0x1fab   :  { %v4094_v36 = vsub.f32 %v4082_v63, %v4092_v35 }
0x1fad   :  { %v4097_v37 = vmul.f32 1.442695, %v4094_v36 }
0x1faf   :  { %7592 = vpow2.f32 %v4097_v37 }
0x1fb9   :  { %v7593_v38 = vpop.eup %7592 }
0x1fba   :  { %v4102_v40 = vsel %vm658_vm3, %v7593_v38, 0.0 }
0x1fbb   :  { %4103 = vadd.xlane.f32.xlu0 %v4102_v40 }
0x1fd1   :  { %4159 = vrot.lane.b32.xlu0 %v8647_v41, %s7887_s4 }
0x1fd5   :  { %4257 = vrot.lane.b32.xlu0 %v8610_v48, %s7888_s26 }
0x2034   :  { %v4101_v52 = vpop.xlane.xlu0 %4100 }
0x2035   :  { %7594 = vrcp.f32 %v4101_v52 }
0x203f   :  { %v7595_v5 = vpop.eup %7594 }
0x2040   :  { %v4106_v55 = vmul.f32 %v7595_v5, %v7591_v32 }
0x2042   :  { %v4109_v59 = vpack.c.bf16 %v4106_v55, %v4106_v55 }
0x2044   :  { %7016 = vmatmul.mubr.msk.bf16.vlgmr.msra.gmra.mrb[88].mxu0 %vm658_vm3, %v4109_v59 }
0x2045   :  { %7026 = vmatpush3.bf16.xpose.msra.mxu0 %v4215_v7  ;;  %7027 = vmatprep.mubr.msk.bf16.mxu0 %vm7885_vm0, %v7884_v1 }
0x2046   :  { %7037 = vmatprep.subr.bf16.mxu0 %v7884_v1 }
0x2048   :  { %v4104_v3 = vpop.xlane.xlu0 %4103 }
0x2049   :  { %7596 = vrcp.f32 %v4104_v3 }
0x204c   :  { %v4160_v6 = vpop.permute.xlu0 %4159  ;;  %7028 = vmatmul.mubr.msk.bf16.vlgmr.msra.gmra.mrb[92].mxu0 %vm565_vm1, %v4208_v4 }
0x204d   :  { %v4165_v9 = vsel %vm686_vm2, %v4160_v6, 0  ;;  %7039 = vmatprep.mubr.msk.bf16.mxu0 %vm7885_vm0, %v7884_v1 }
0x204e   :  { %7020 = vmatpush3.bf16.msra.mxu1 %v4165_v9 }
0x204f   :  { %7031 = vmatprep.subr.bf16.mxu1 %v7884_v1 }
0x2050   :  { %v4258_v57 = vpop.permute.xlu0 %4257 }
0x2053   :  { %v7597_v61 = vpop.eup %7596 }
0x2054   :  { %v4108_v49 = vmul.f32 %v7597_v61, %v7593_v38 }
0x2056   :  { %v4110_v14 = vpack.c.bf16 %v4108_v49, %v4108_v49 }
0x2058   :  { %7022 = vmatmul.mubr.msk.bf16.vlgmr.msra.gmra.mrb[116].mxu1 %vm658_vm3, %v4110_v14 }
0x2059   :  { %7032 = vmatpush3.bf16.xpose.msra.mxu1 %v4265_v26  ;;  %7033 = vmatprep.mubr.msk.bf16.mxu1 %vm7885_vm0, %v7884_v1 }
0x205a   :  { %7043 = vmatprep.subr.bf16.mxu1 %v7884_v1 }
0x2060   :  { %7034 = vmatmul.mubr.msk.bf16.vlgmr.msra.gmra.mrb[120].mxu1 %vm565_vm1, %v4258_v57 }
0x2061   :  { %7045 = vmatprep.mubr.msk.bf16.mxu1 %vm7885_vm0, %v7884_v1 }
0x2117   :  { %v8752_v39 = vpop.f32.mrb[88].mxu0 }
0x2118   :  { %v7017_v42 = vpop.f32.mrb[89].mxu0 }
0x2119   :  { %v4156_v43 = vpop.f32.mrb[90].mxu0 }
0x211a   :  { %v7018_v8 = vpop.f32.mrb[91].mxu0 }
0x211f   :  { %v4251_v12 = vpop.f32.mrb[92].mxu0 }
0x2120   :  { %v4252_v18 = vadd.f32 %v8622_v54, %v4251_v12  ;;  %v7029_v19 = vpop.f32.mrb[93].mxu0 }
0x2121   :  { %v4254_v20 = vpop.f32.mrb[94].mxu0 }
0x2122   :  { %v7030_v58 = vpop.f32.mrb[95].mxu0  ;;  %v4307_v63 = vsel %vm658_vm3, %v4252_v18, -inf }
0x2123   :  { %4308 = vmax.xlane.f32.xlu1 %v4307_v63 }
0x212b   :  { %v8756_v2 = vpop.f32.mrb[116].mxu1 }
0x212c   :  { %v7232_v21 = vpack.i.bf16 %v8756_v2, %v8752_v39  ;;  %v7023_v25 = vpop.f32.mrb[117].mxu1 }
0x212d   :  { %v4204_v27 = vpop.f32.mrb[118].mxu1 }
0x212e   :  { %v7024_v22 = vpop.f32.mrb[119].mxu1 }
0x2133   :  { %v4301_v24 = vpop.f32.mrb[120].mxu1 }
0x2134   :  { %v4302_v46 = vadd.f32 %v8629_v56, %v4301_v24  ;;  %v7035_v28 = vpop.f32.mrb[121].mxu1  ;;  %4331 = vrot.lane.b32.xlu1 %v8608_v47, %s7888_s26 }
0x2135   :  { %v4304_v29 = vpop.f32.mrb[122].mxu1 }
0x2136   :  { %v7036_v32 = vpop.f32.mrb[123].mxu1  ;;  %v4310_v33 = vsel %vm658_vm3, %v4302_v46, -inf }
0x2137   :  { %4311 = vmax.xlane.f32.xlu0 %v4310_v33 }
0x2138   :  { %4429 = vrot.lane.b32.xlu1 %v8592_v11, %s7868_s2 }
0x213c   :  { %4479 = vrot.lane.b32.xlu1 %v8597_v15, %s7868_s2 }
0x2140   :  { %4427 = vrot.lane.b32.xlu1 %v8599_v16, %s7868_s2 }
0x21b0   :  { %v4309_v35 = vpop.xlane.xlu1 %4308 }
0x21b1   :  { %v4313_v36 = vsub.f32 %v4252_v18, %v4309_v35 }
0x21b3   :  { %v4315_v37 = vmul.f32 1.442695, %v4313_v36 }
0x21b4   :  { %v4332_v38 = vpop.permute.xlu1 %4331 }
0x21b5   :  { %7598 = vpow2.f32 %v4315_v37  ;;  %v4337_v40 = vsel %vm686_vm2, %v4332_v38, 0 }
0x21b6   :  { %7038 = vmatpush3.bf16.msra.mxu0 %v4337_v40 }
0x21b7   :  { %7049 = vmatprep.subr.bf16.mxu0 %v7884_v1 }
0x21b8   :  { %v4430_v6 = vpop.permute.xlu1 %4429 }
0x21b9   :  { %v4435_v49 = vsel %vm565_vm1, %v4430_v6, 0 }
0x21bc   :  { %v4480_v14 = vpop.permute.xlu1 %4479 }
0x21bd   :  { %v4485_v19 = vsel %vm565_vm1, %v4480_v14, 0 }
0x21bf   :  { %v7599_v52 = vpop.eup %7598 }
0x21c0   :  { %v4319_v5 = vsel %vm658_vm3, %v7599_v52, 0.0  ;;  %v4428_v57 = vpop.permute.xlu1 %4427 }
0x21c1   :  { %4320 = vadd.xlane.f32.xlu0 %v4319_v5 }
0x21c4   :  { %v4312_v45 = vpop.xlane.xlu0 %4311 }
0x21c5   :  { %v4314_v55 = vsub.f32 %v4302_v46, %v4312_v45 }
0x21c7   :  { %v4317_v59 = vmul.f32 1.442695, %v4314_v55 }
0x21c9   :  { %7600 = vpow2.f32 %v4317_v59 }
0x21d3   :  { %v7601_v7 = vpop.eup %7600 }
0x21d4   :  { %v4322_v60 = vsel %vm658_vm3, %v7601_v7, 0.0 }
0x21d5   :  { %4323 = vadd.xlane.f32.xlu0 %v4322_v60 }
0x21eb   :  { %4379 = vrot.lane.b32.xlu0 %v8647_v41, %s7888_s26 }
0x21ef   :  { %4477 = vrot.lane.b32.xlu0 %v8610_v48, %s7868_s2 }
0x224e   :  { %v4321_v3 = vpop.xlane.xlu0 %4320 }
0x224f   :  { %7602 = vrcp.f32 %v4321_v3 }
0x2259   :  { %v7603_v4 = vpop.eup %7602 }
0x225a   :  { %v4326_v9 = vmul.f32 %v7603_v4, %v7599_v52 }
0x225c   :  { %v4329_v61 = vpack.c.bf16 %v4326_v9, %v4326_v9 }
0x225e   :  { %7040 = vmatmul.mubr.msk.bf16.vlgmr.msra.gmra.mrb[96].mxu0 %vm658_vm3, %v4329_v61 }
0x225f   :  { %7050 = vmatpush3.bf16.xpose.msra.mxu0 %v4435_v49  ;;  %7051 = vmatprep.mubr.msk.bf16.mxu0 %vm7885_vm0, %v7884_v1 }
0x2260   :  { %7061 = vmatprep.subr.bf16.mxu0 %v7884_v1 }
0x2262   :  { %v4324_v26 = vpop.xlane.xlu0 %4323 }
0x2263   :  { %7604 = vrcp.f32 %v4324_v26 }
0x2266   :  { %v4380_v42 = vpop.permute.xlu0 %4379  ;;  %7052 = vmatmul.mubr.msk.bf16.vlgmr.msra.gmra.mrb[100].mxu0 %vm565_vm1, %v4428_v57 }
0x2267   :  { %v4385_v43 = vsel %vm686_vm2, %v4380_v42, 0  ;;  %7063 = vmatprep.mubr.msk.bf16.mxu0 %vm7885_vm0, %v7884_v1 }
0x2268   :  { %7044 = vmatpush3.bf16.msra.mxu1 %v4385_v43 }
0x2269   :  { %7055 = vmatprep.subr.bf16.mxu1 %v7884_v1 }
0x226a   :  { %v4478_v20 = vpop.permute.xlu0 %4477 }
0x226d   :  { %v7605_v8 = vpop.eup %7604 }
0x226e   :  { %v4328_v12 = vmul.f32 %v7605_v8, %v7601_v7 }
0x2270   :  { %v4330_v18 = vpack.c.bf16 %v4328_v12, %v4328_v12 }
0x2272   :  { %7046 = vmatmul.mubr.msk.bf16.vlgmr.msra.gmra.mrb[124].mxu1 %vm658_vm3, %v4330_v18 }
0x2273   :  { %7056 = vmatpush3.bf16.xpose.msra.mxu1 %v4485_v19  ;;  %7057 = vmatprep.mubr.msk.bf16.mxu1 %vm7885_vm0, %v7884_v1 }
0x2274   :  { %7067 = vmatprep.subr.bf16.mxu1 %v7884_v1 }
0x227a   :  { %7058 = vmatmul.mubr.msk.bf16.vlgmr.msra.gmra.mrb[128].mxu1 %vm565_vm1, %v4478_v20 }
0x227b   :  { %7069 = vmatprep.mubr.msk.bf16.mxu1 %vm7885_vm0, %v7884_v1 }
0x2331   :  { %v8796_v58 = vpop.f32.mrb[96].mxu0 }
0x2332   :  { %v7041_v63 = vpop.f32.mrb[97].mxu0 }
0x2333   :  { %v4376_v25 = vpop.f32.mrb[98].mxu0 }
0x2334   :  { %v7042_v27 = vpop.f32.mrb[99].mxu0 }
0x2339   :  { %v4471_v22 = vpop.f32.mrb[100].mxu0 }
0x233a   :  { %v4472_v24 = vadd.f32 %v8622_v54, %v4471_v22  ;;  %v7053_v46 = vpop.f32.mrb[101].mxu0 }
0x233b   :  { %v4474_v28 = vpop.f32.mrb[102].mxu0 }
0x233c   :  { %v7054_v29 = vpop.f32.mrb[103].mxu0  ;;  %v4527_v32 = vsel %vm658_vm3, %v4472_v24, -inf }
0x233d   :  { %4528 = vmax.xlane.f32.xlu1 %v4527_v32 }
0x2345   :  { %v8800_v33 = vpop.f32.mrb[124].mxu1 }
0x2346   :  { %v7237_v35 = vpack.i.bf16 %v8800_v33, %v8796_v58  ;;  %v7047_v36 = vpop.f32.mrb[125].mxu1 }
0x2347   :  { %v4424_v37 = vpop.f32.mrb[126].mxu1 }
0x2348   :  { %v7048_v38 = vpop.f32.mrb[127].mxu1 }
0x234d   :  { %v4521_v40 = vpop.f32.mrb[128].mxu1 }
0x234e   :  { %v4522_v52 = vadd.f32 %v8629_v56, %v4521_v40  ;;  %v7059_v5 = vpop.f32.mrb[129].mxu1  ;;  %4551 = vrot.lane.b32.xlu1 %v8608_v47, %s7868_s2 }
0x234f   :  { %v4524_v45 = vpop.f32.mrb[130].mxu1 }
0x2350   :  { %v7060_v55 = vpop.f32.mrb[131].mxu1  ;;  %v4530_v59 = vsel %vm658_vm3, %v4522_v52, -inf }
0x2351   :  { %4531 = vmax.xlane.f32.xlu0 %v4530_v59 }
0x2352   :  { %4649 = vrot.lane.b32.xlu1 %v8592_v11, %s7875_s0 }
0x2356   :  { %4699 = vrot.lane.b32.xlu1 %v8597_v15, %s7875_s0 }
0x235a   :  { %4647 = vrot.lane.b32.xlu1 %v8599_v16, %s7875_s0 }
0x23ca   :  { %v4529_v7 = vpop.xlane.xlu1 %4528 }
0x23cb   :  { %v4533_v60 = vsub.f32 %v4472_v24, %v4529_v7 }
0x23cd   :  { %v4535_v3 = vmul.f32 1.442695, %v4533_v60 }
0x23ce   :  { %v4552_v4 = vpop.permute.xlu1 %4551 }
0x23cf   :  { %7606 = vpow2.f32 %v4535_v3  ;;  %v4557_v6 = vsel %vm686_vm2, %v4552_v4, 0 }
0x23d0   :  { %7062 = vmatpush3.bf16.msra.mxu0 %v4557_v6 }
0x23d1   :  { %7073 = vmatprep.subr.bf16.mxu0 %v7884_v1 }
0x23d2   :  { %v4650_v12 = vpop.permute.xlu1 %4649 }
0x23d3   :  { %v4655_v20 = vsel %vm565_vm1, %v4650_v12, 0 }
0x23d6   :  { %v4700_v63 = vpop.permute.xlu1 %4699 }
0x23d7   :  { %v4705_v32 = vsel %vm565_vm1, %v4700_v63, 0 }
0x23d9   :  { %v7607_v9 = vpop.eup %7606 }
0x23da   :  { %v4539_v61 = vsel %vm658_vm3, %v7607_v9, 0.0  ;;  %v4648_v27 = vpop.permute.xlu1 %4647 }
0x23db   :  { %4540 = vadd.xlane.f32.xlu0 %v4539_v61 }
0x23de   :  { %v4532_v49 = vpop.xlane.xlu0 %4531 }
0x23df   :  { %v4534_v14 = vsub.f32 %v4522_v52, %v4532_v49 }
0x23e1   :  { %v4537_v26 = vmul.f32 1.442695, %v4534_v14 }
0x23e3   :  { %7608 = vpow2.f32 %v4537_v26 }
0x23ed   :  { %v7609_v57 = vpop.eup %7608 }
0x23ee   :  { %v4542_v42 = vsel %vm658_vm3, %v7609_v57, 0.0 }
0x23ef   :  { %4543 = vadd.xlane.f32.xlu0 %v4542_v42 }
0x2405   :  { %4599 = vrot.lane.b32.xlu0 %v8647_v41, %s7868_s2 }
0x2409   :  { %4697 = vrot.lane.b32.xlu0 %v8610_v48, %s7875_s0 }
0x2468   :  { %v4541_v43 = vpop.xlane.xlu0 %4540 }
0x2469   :  { %7610 = vrcp.f32 %v4541_v43 }
0x2473   :  { %v7611_v8 = vpop.eup %7610 }
0x2474   :  { %v4546_v18 = vmul.f32 %v7611_v8, %v7607_v9 }
0x2476   :  { %v4549_v19 = vpack.c.bf16 %v4546_v18, %v4546_v18 }
0x2478   :  { %7064 = vmatmul.mubr.msk.bf16.vlgmr.msra.gmra.mrb[104].mxu0 %vm658_vm3, %v4549_v19 }
0x2479   :  { %7074 = vmatpush3.bf16.xpose.msra.mxu0 %v4655_v20  ;;  %7075 = vmatprep.mubr.msk.bf16.mxu0 %vm7885_vm0, %v7884_v1 }
0x247a   :  { %7085 = vmatprep.subr.bf16.mxu0 %v7884_v1 }
0x247c   :  { %v4544_v25 = vpop.xlane.xlu0 %4543 }
0x247d   :  { %7612 = vrcp.f32 %v4544_v25 }
0x2480   :  { %v4600_v22 = vpop.permute.xlu0 %4599  ;;  %7076 = vmatmul.mubr.msk.bf16.vlgmr.msra.gmra.mrb[108].mxu0 %vm565_vm1, %v4648_v27 }
0x2481   :  { %v4605_v24 = vsel %vm686_vm2, %v4600_v22, 0  ;;  %7087 = vmatprep.mubr.msk.bf16.mxu0 %vm7885_vm0, %v7884_v1 }
0x2482   :  { %7068 = vmatpush3.bf16.msra.mxu1 %v4605_v24 }
0x2483   :  { %7079 = vmatprep.subr.bf16.mxu1 %v7884_v1 }
0x2484   :  { %v4698_v36 = vpop.permute.xlu0 %4697 }
0x2487   :  { %v7613_v46 = vpop.eup %7612 }
0x2488   :  { %v4548_v28 = vmul.f32 %v7613_v46, %v7609_v57 }
0x248a   :  { %v4550_v29 = vpack.c.bf16 %v4548_v28, %v4548_v28 }
0x248c   :  { %7070 = vmatmul.mubr.msk.bf16.vlgmr.msra.gmra.mrb[132].mxu1 %vm658_vm3, %v4550_v29 }
0x248d   :  { %7080 = vmatpush3.bf16.xpose.msra.mxu1 %v4705_v32  ;;  %7081 = vmatprep.mubr.msk.bf16.mxu1 %vm7885_vm0, %v7884_v1 }
0x248e   :  { %7091 = vmatprep.subr.bf16.mxu1 %v7884_v1 }
0x2494   :  { %7082 = vmatmul.mubr.msk.bf16.vlgmr.msra.gmra.mrb[136].mxu1 %vm565_vm1, %v4698_v36 }
0x2495   :  { %7093 = vmatprep.mubr.msk.bf16.mxu1 %vm7885_vm0, %v7884_v1 }
0x254b   :  { %v8840_v37 = vpop.f32.mrb[104].mxu0 }
0x254c   :  { %v7065_v38 = vpop.f32.mrb[105].mxu0 }
0x254d   :  { %v4596_v40 = vpop.f32.mrb[106].mxu0 }
0x254e   :  { %v7066_v52 = vpop.f32.mrb[107].mxu0 }
0x2553   :  { %v4691_v5 = vpop.f32.mrb[108].mxu0 }
0x2554   :  { %v4692_v45 = vadd.f32 %v8622_v54, %v4691_v5  ;;  %v7077_v55 = vpop.f32.mrb[109].mxu0 }
0x2555   :  { %v4694_v59 = vpop.f32.mrb[110].mxu0 }
0x2556   :  { %v7078_v7 = vpop.f32.mrb[111].mxu0  ;;  %v4747_v60 = vsel %vm658_vm3, %v4692_v45, -inf }
0x2557   :  { %4748 = vmax.xlane.f32.xlu1 %v4747_v60 }
0x255f   :  { %v8844_v3 = vpop.f32.mrb[132].mxu1 }
0x2560   :  { %v7242_v4 = vpack.i.bf16 %v8844_v3, %v8840_v37  ;;  %v7071_v6 = vpop.f32.mrb[133].mxu1 }
0x2561   :  { %v4644_v9 = vpop.f32.mrb[134].mxu1 }
0x2562   :  { %v7072_v61 = vpop.f32.mrb[135].mxu1 }
0x2567   :  { %v4741_v49 = vpop.f32.mrb[136].mxu1 }
0x2568   :  { %v4742_v14 = vadd.f32 %v8629_v56, %v4741_v49  ;;  %v7083_v26 = vpop.f32.mrb[137].mxu1  ;;  %4771 = vrot.lane.b32.xlu1 %v8608_v47, %s7875_s0 }
0x2569   :  { %v4744_v57 = vpop.f32.mrb[138].mxu1 }
0x256a   :  { %v7084_v42 = vpop.f32.mrb[139].mxu1  ;;  %v4750_v43 = vsel %vm658_vm3, %v4742_v14, -inf }
0x256b   :  { %4751 = vmax.xlane.f32.xlu0 %v4750_v43 }
0x256c   :  { %4869 = vrot.lane.b32.xlu1 %v8592_v11, %s7889_s5 }
0x2570   :  { %4919 = vrot.lane.b32.xlu1 %v8597_v15, %s7889_s5 }
0x2574   :  { %4867 = vrot.lane.b32.xlu1 %v8599_v16, %s7889_s5 }
0x25e4   :  { %v4749_v8 = vpop.xlane.xlu1 %4748 }
0x25e5   :  { %v4753_v12 = vsub.f32 %v4692_v45, %v4749_v8 }
0x25e7   :  { %v4755_v18 = vmul.f32 1.442695, %v4753_v12 }
0x25e8   :  { %v4772_v19 = vpop.permute.xlu1 %4771 }
0x25e9   :  { %7614 = vpow2.f32 %v4755_v18  ;;  %v4777_v20 = vsel %vm686_vm2, %v4772_v19, 0 }
0x25ea   :  { %7086 = vmatpush3.bf16.msra.mxu0 %v4777_v20 }
0x25eb   :  { %7097 = vmatprep.subr.bf16.mxu0 %v7884_v1 }
0x25ec   :  { %v4870_v36 = vpop.permute.xlu1 %4869 }
0x25ed   :  { %v4875_v52 = vsel %vm565_vm1, %v4870_v36, 0 }
0x25f0   :  { %v4920_v5 = vpop.permute.xlu1 %4919 }
0x25f1   :  { %v4925_v61 = vsel %vm565_vm1, %v4920_v5, 0 }
0x25f3   :  { %v7615_v63 = vpop.eup %7614 }
0x25f4   :  { %v4759_v25 = vsel %vm658_vm3, %v7615_v63, 0.0  ;;  %v4868_v55 = vpop.permute.xlu1 %4867 }
0x25f5   :  { %4760 = vadd.xlane.f32.xlu0 %v4759_v25 }
0x25f8   :  { %v4752_v27 = vpop.xlane.xlu0 %4751 }
0x25f9   :  { %v4754_v22 = vsub.f32 %v4742_v14, %v4752_v27 }
0x25fb   :  { %v4757_v24 = vmul.f32 1.442695, %v4754_v22 }
0x25fd   :  { %7616 = vpow2.f32 %v4757_v24 }
0x2607   :  { %v7617_v46 = vpop.eup %7616 }
0x2608   :  { %v4762_v28 = vsel %vm658_vm3, %v7617_v46, 0.0 }
0x2609   :  { %4763 = vadd.xlane.f32.xlu0 %v4762_v28 }
0x261f   :  { %4819 = vrot.lane.b32.xlu0 %v8647_v41, %s7875_s0 }
0x2623   :  { %4917 = vrot.lane.b32.xlu0 %v8610_v48, %s7889_s5 }
0x2682   :  { %v4761_v29 = vpop.xlane.xlu0 %4760 }
0x2683   :  { %7618 = vrcp.f32 %v4761_v29 }
0x268d   :  { %v7619_v32 = vpop.eup %7618 }
0x268e   :  { %v4766_v38 = vmul.f32 %v7619_v32, %v7615_v63 }
0x2690   :  { %v4769_v40 = vpack.c.bf16 %v4766_v38, %v4766_v38 }
0x2692   :  { %7088 = vmatmul.mubr.msk.bf16.vlgmr.msra.gmra.mrb[112].mxu0 %vm658_vm3, %v4769_v40 }
0x2693   :  { %7098 = vmatpush3.bf16.xpose.msra.mxu0 %v4875_v52  ;;  %7099 = vmatprep.mubr.msk.bf16.mxu0 %vm7885_vm0, %v7884_v1 }
0x2694   :  { %7109 = vmatprep.subr.bf16.mxu0 %v7884_v1 }
0x2696   :  { %v4764_v45 = vpop.xlane.xlu0 %4763 }
0x2697   :  { %7620 = vrcp.f32 %v4764_v45 }
0x269a   :  { %v4820_v59 = vpop.permute.xlu0 %4819  ;;  %7100 = vmatmul.mubr.msk.bf16.vlgmr.msra.gmra.mrb[116].mxu0 %vm565_vm1, %v4868_v55 }
0x269b   :  { %v4825_v7 = vsel %vm686_vm2, %v4820_v59, 0  ;;  %7111 = vmatprep.mubr.msk.bf16.mxu0 %vm7885_vm0, %v7884_v1 }
0x269c   :  { %7092 = vmatpush3.bf16.msra.mxu1 %v4825_v7 }
0x269d   :  { %7103 = vmatprep.subr.bf16.mxu1 %v7884_v1 }
0x269e   :  { %v4918_v49 = vpop.permute.xlu0 %4917 }
0x26a1   :  { %v7621_v60 = vpop.eup %7620 }
0x26a2   :  { %v4768_v6 = vmul.f32 %v7621_v60, %v7617_v46 }
0x26a4   :  { %v4770_v9 = vpack.c.bf16 %v4768_v6, %v4768_v6 }
0x26a6   :  { %7094 = vmatmul.mubr.msk.bf16.vlgmr.msra.gmra.mrb[140].mxu1 %vm658_vm3, %v4770_v9 }
0x26a7   :  { %7104 = vmatpush3.bf16.xpose.msra.mxu1 %v4925_v61  ;;  %7105 = vmatprep.mubr.msk.bf16.mxu1 %vm7885_vm0, %v7884_v1 }
0x26a8   :  { %7115 = vmatprep.subr.bf16.mxu1 %v7884_v1 }
0x26ae   :  { %7106 = vmatmul.mubr.msk.bf16.vlgmr.msra.gmra.mrb[144].mxu1 %vm565_vm1, %v4918_v49 }
0x26af   :  { %7117 = vmatprep.mubr.msk.bf16.mxu1 %vm7885_vm0, %v7884_v1 }
0x2765   :  { %v8884_v14 = vpop.f32.mrb[112].mxu0 }
0x2766   :  { %v7089_v26 = vpop.f32.mrb[113].mxu0 }
0x2767   :  { %v4816_v57 = vpop.f32.mrb[114].mxu0 }
0x2768   :  { %v7090_v42 = vpop.f32.mrb[115].mxu0 }
0x276d   :  { %v4911_v43 = vpop.f32.mrb[116].mxu0 }
0x276e   :  { %v4912_v8 = vadd.f32 %v8622_v54, %v4911_v43  ;;  %v7101_v12 = vpop.f32.mrb[117].mxu0 }
0x276f   :  { %v4914_v18 = vpop.f32.mrb[118].mxu0 }
0x2770   :  { %v7102_v19 = vpop.f32.mrb[119].mxu0  ;;  %v4967_v20 = vsel %vm658_vm3, %v4912_v8, -inf }
0x2771   :  { %4968 = vmax.xlane.f32.xlu1 %v4967_v20 }
0x2779   :  { %v8888_v63 = vpop.f32.mrb[140].mxu1 }
0x277a   :  { %v7247_v25 = vpack.i.bf16 %v8888_v63, %v8884_v14  ;;  %v7095_v27 = vpop.f32.mrb[141].mxu1 }
0x277b   :  { %v4864_v22 = vpop.f32.mrb[142].mxu1 }
0x277c   :  { %v7096_v24 = vpop.f32.mrb[143].mxu1 }
0x2781   :  { %v4961_v46 = vpop.f32.mrb[144].mxu1 }
0x2782   :  { %v4962_v28 = vadd.f32 %v8629_v56, %v4961_v46  ;;  %v7107_v29 = vpop.f32.mrb[145].mxu1  ;;  %4991 = vrot.lane.b32.xlu1 %v8608_v47, %s7889_s5 }
0x2783   :  { %v4964_v54 = vpop.f32.mrb[146].mxu1 }
0x2784   :  { %v7108_v32 = vpop.f32.mrb[147].mxu1  ;;  %v4970_v36 = vsel %vm658_vm3, %v4962_v28, -inf  ;;  %v7652_v54 = vld [vmem:[%s9058_s1] ss:$0 sm:$0xff] }
0x2785   :  { %4971 = vmax.xlane.f32.xlu0 %v4970_v36 }
0x2786   :  { %5089 = vrot.lane.b32.xlu1 %v8592_v11, %s7878_s3 }
0x278a   :  { %5139 = vrot.lane.b32.xlu1 %v8597_v15, %s7878_s3 }
0x278e   :  { %5087 = vrot.lane.b32.xlu1 %v8599_v16, %s7878_s3 }
0x27fe   :  { %v4969_v38 = vpop.xlane.xlu1 %4968 }
0x27ff   :  { %v4973_v56 = vsub.f32 %v4912_v8, %v4969_v38 }
0x2801   :  { %v4975_v40 = vmul.f32 1.442695, %v4973_v56 }
0x2802   :  { %v4992_v52 = vpop.permute.xlu1 %4991 }
0x2803   :  { %7622 = vpow2.f32 %v4975_v40  ;;  %v4997_v5 = vsel %vm686_vm2, %v4992_v52, 0 }
0x2804   :  { %7110 = vmatpush3.bf16.msra.mxu0 %v4997_v5 }
0x2805   :  { %7121 = vmatprep.subr.bf16.mxu0 %v7884_v1 }
0x2806   :  { %v5090_v9 = vpop.permute.xlu1 %5089 }
0x2807   :  { %v5095_v26 = vsel %vm565_vm1, %v5090_v9, 0 }
0x280a   :  { %v5140_v57 = vpop.permute.xlu1 %5139 }
0x280b   :  { %v5145_v20 = vsel %vm565_vm1, %v5140_v57, 0 }
0x280d   :  { %v7623_v45 = vpop.eup %7622 }
0x280e   :  { %v4979_v55 = vsel %vm658_vm3, %v7623_v45, 0.0 }
0x280f   :  { %4980 = vadd.xlane.f32.xlu0 %v4979_v55 }
0x2812   :  { %v4972_v11 = vpop.xlane.xlu0 %4971 }
0x2813   :  { %v4974_v59 = vsub.f32 %v4962_v28, %v4972_v11 }
0x2815   :  { %v4977_v15 = vmul.f32 1.442695, %v4974_v59 }
0x2817   :  { %7624 = vpow2.f32 %v4977_v15  ;;  %v7653_v15 = vld [vmem:[%s9058_s1 + $0x1] ss:$0 sm:$0xff] }
0x2821   :  { %v7625_v7 = vpop.eup %7624 }
0x2822   :  { %v4982_v16 = vsel %vm658_vm3, %v7625_v7, 0.0 }
0x2823   :  { %4983 = vadd.xlane.f32.xlu0 %v4982_v16 }
0x2839   :  { %5039 = vrot.lane.b32.xlu0 %v8647_v41, %s7889_s5 }
0x283d   :  { %5137 = vrot.lane.b32.xlu0 %v8610_v48, %s7878_s3  ;;  %v5088_v48 = vpop.permute.xlu1 %5087 }
0x289c   :  { %v4981_v60 = vpop.xlane.xlu0 %4980 }
0x289d   :  { %7626 = vrcp.f32 %v4981_v60 }
0x28a7   :  { %v7627_v6 = vpop.eup %7626 }
0x28a8   :  { %v4986_v61 = vmul.f32 %v7627_v6, %v7623_v45 }
0x28aa   :  { %v4989_v49 = vpack.c.bf16 %v4986_v61, %v4986_v61 }
0x28ac   :  { %7112 = vmatmul.mubr.msk.bf16.vlgmr.msra.gmra.mrb[120].mxu0 %vm658_vm3, %v4989_v49 }
0x28ad   :  { %7122 = vmatpush3.bf16.xpose.msra.mxu0 %v5095_v26  ;;  %7123 = vmatprep.mubr.msk.bf16.mxu0 %vm7885_vm0, %v7884_v1 }
0x28ae   :  { %7133 = vmatprep.subr.bf16.mxu0 %v7884_v1 }
0x28b0   :  { %v4984_v42 = vpop.xlane.xlu0 %4983 }
0x28b1   :  { %7628 = vrcp.f32 %v4984_v42 }
0x28b4   :  { %v5040_v43 = vpop.permute.xlu0 %5039  ;;  %7124 = vmatmul.mubr.msk.bf16.vlgmr.msra.gmra.mrb[124].mxu0 %vm565_vm1, %v5088_v48  ;;  %v7414_v48 = vld [vmem:[#allocation8 + $0x40] sm:$0xff]  }
0x28b5   :  { %v5045_v8 = vsel %vm686_vm2, %v5040_v43, 0  ;;  %7135 = vmatprep.mubr.msk.bf16.mxu0 %vm7885_vm0, %v7884_v1  ;;  %v7415_v43 = vld [vmem:[#allocation8 + $0x48] sm:$0xff]  }
0x28b6   :  { %7116 = vmatpush3.bf16.msra.mxu1 %v5045_v8  ;;  %v7416_v8 = vld [vmem:[#allocation8 + $0x50] sm:$0xff]  }
0x28b7   :  { %7127 = vmatprep.subr.bf16.mxu1 %v7884_v1 }
0x28b8   :  { %v5138_v27 = vpop.permute.xlu0 %5137 }
0x28bb   :  { %v7629_v12 = vpop.eup %7628 }
0x28bc   :  { %v4988_v18 = vmul.f32 %v7629_v12, %v7625_v7  ;;  %v7417_v12 = vld [vmem:[#allocation8 + $0x58] sm:$0xff]  }
0x28be   :  { %v4990_v19 = vpack.c.bf16 %v4988_v18, %v4988_v18  ;;  %v7418_v18 = vld [vmem:[#allocation8 + $0x60] sm:$0xff]  }
0x28c0   :  { %7118 = vmatmul.mubr.msk.bf16.vlgmr.msra.gmra.mrb[148].mxu1 %vm658_vm3, %v4990_v19  ;;  %v7419_v19 = vld [vmem:[#allocation8 + $0x68] sm:$0xff]  }
0x28c1   :  { %7128 = vmatpush3.bf16.xpose.msra.mxu1 %v5145_v20  ;;  %7129 = vmatprep.mubr.msk.bf16.mxu1 %vm7885_vm0, %v7884_v1  ;;  %v7420_v20 = vld [vmem:[#allocation8 + $0x70] sm:$0xff]  }
0x28c2   :  { %7139 = vmatprep.subr.bf16.mxu1 %v7884_v1 }
0x28c8   :  { %7130 = vmatmul.mubr.msk.bf16.vlgmr.msra.gmra.mrb[152].mxu1 %vm565_vm1, %v5138_v27 }
0x28c9   :  { %7141 = vmatprep.mubr.msk.bf16.mxu1 %vm7885_vm0, %v7884_v1 }
0x297f   :  { %v5033_v22 = vpop.f32.mrb[120].mxu0 }
0x2980   :  { %v7113_v24 = vpop.f32.mrb[121].mxu0 }
0x2981   :  { %v5036_v46 = vpop.f32.mrb[122].mxu0 }
0x2982   :  { %v7114_v28 = vpop.f32.mrb[123].mxu0 }
0x2983   :  { %v7421_v28 = vld [vmem:[#allocation8 + $0x78] sm:$0xff]  }
0x2987   :  { %v5131_v29 = vpop.f32.mrb[124].mxu0 }
0x2988   :  { %v5132_v32 = vadd.f32 %v7652_v54, %v5131_v29  ;;  %v7125_v36 = vpop.f32.mrb[125].mxu0 }
0x2989   :  { %v5134_v38 = vpop.f32.mrb[126].mxu0 }
0x298a   :  { %v7126_v56 = vpop.f32.mrb[127].mxu0  ;;  %v5187_v40 = vsel %vm658_vm3, %v5132_v32, -inf }
0x298b   :  { %5188 = vmax.xlane.f32.xlu1 %v5187_v40 }
0x2993   :  { %v5081_v52 = vpop.f32.mrb[148].mxu1 }
0x2994   :  { %v7252_v5 = vpack.i.bf16 %v5081_v52, %v5033_v22  ;;  %v7119_v45 = vpop.f32.mrb[149].mxu1 }
0x2995   :  { %v5084_v55 = vpop.f32.mrb[150].mxu1 }
0x2996   :  { %v7120_v11 = vpop.f32.mrb[151].mxu1 }
0x299b   :  { %v5181_v59 = vpop.f32.mrb[152].mxu1 }
0x299c   :  { %v5182_v7 = vadd.f32 %v7653_v15, %v5181_v59  ;;  %v7131_v16 = vpop.f32.mrb[153].mxu1  ;;  %5211 = vrot.lane.b32.xlu1 %v8608_v47, %s7878_s3 }
0x299d   :  { %v5184_v60 = vpop.f32.mrb[154].mxu1 }
0x299e   :  { %v7132_v6 = vpop.f32.mrb[155].mxu1  ;;  %v5190_v9 = vsel %vm658_vm3, %v5182_v7, -inf }
0x299f   :  { %5191 = vmax.xlane.f32.xlu0 %v5190_v9 }
0x29a0   :  { %7228 = vrot.lane.b32.xlu1 %v7227_v17, %s7878_s3 }
0x29a4   :  { %7233 = vrot.lane.b32.xlu1 %v7232_v21, %s7889_s5 }
0x29a8   :  { %7238 = vrot.lane.b32.xlu1 %v7237_v35, %s7875_s0 }
0x29ac   :  { %7248 = vrot.lane.b32.xlu1 %v7247_v25, %s7888_s26 }
0x2a18   :  { %v5189_v47 = vpop.xlane.xlu1 %5188 }
0x2a19   :  { %v5193_v61 = vsub.f32 %v5132_v32, %v5189_v47 }
0x2a1b   :  { %v5195_v49 = vmul.f32 1.442695, %v5193_v61 }
0x2a1c   :  { %v5212_v10 = vpop.permute.xlu1 %5211 }
0x2a1d   :  { %7630 = vpow2.f32 %v5195_v49  ;;  %v5217_v13 = vsel %vm686_vm2, %v5212_v10, 0 }
0x2a1e   :  { %7134 = vmatpush3.bf16.msra.mxu0 %v5217_v13 }
0x2a1f   :  { %7145 = vmatprep.subr.bf16.mxu0 %v7884_v1 }
0x2a20   :  { %v7229_v56 = vpop.permute.xlu1 %7228 }
0x2a21   :  { %v7231_v45 = vunpack.i.h.bf16 %v7229_v56  ;;  %v7230_v55 = vunpack.i.l.bf16 %v7229_v56 }
0x2a23   :  { %v5364_v60 = vsel %vm565_vm1, %v8670_v53, %v7231_v45  ;;  %v5363_v6 = vsel %vm565_vm1, %v8667_v62, %v7230_v55 }
0x2a24   :  { %v7234_v40 = vpop.permute.xlu1 %7233 }
0x2a25   :  { %v7235_v11 = vunpack.i.l.bf16 %v7234_v40 }
0x2a27   :  { %v7631_v17 = vpop.eup %7630  ;;  %v5365_v47 = vsel %vm2374_vm4, %v5363_v6, %v7235_v11  ;;  %v7427_v11 = vld [vmem:[#allocation13 + $0x10c] ss:$16 sps:$4 sm:$0xff]   ;;  %v7431_v6 = vld [vmem:[#allocation13 + $0x128] ss:$16 sps:$4 sm:$0xff]  }
0x2a28   :  { %v5199_v39 = vsel %vm658_vm3, %v7631_v17, 0.0 }
0x2a29   :  { %5200 = vadd.xlane.f32.xlu0 %v5199_v39 }
0x2a2c   :  { %v5192_v2 = vpop.xlane.xlu0 %5191 }
0x2a2d   :  { %v5194_v21 = vsub.f32 %v5182_v7, %v5192_v2 }
0x2a2f   :  { %v5197_v58 = vmul.f32 1.442695, %v5194_v21 }
0x2a31   :  { %7632 = vpow2.f32 %v5197_v58 }
0x2a3b   :  { %v7633_v33 = vpop.eup %7632 }
0x2a3c   :  { %v5202_v35 = vsel %vm658_vm3, %v7633_v33, 0.0 }
0x2a3d   :  { %5203 = vadd.xlane.f32.xlu0 %v5202_v35 }
0x2a53   :  { %5259 = vrot.lane.b32.xlu0 %v8647_v41, %s7878_s3 }
0x2a57   :  { %7243 = vrot.lane.b32.xlu0 %v7242_v4, %s7868_s2 }
0x2a5b   :  { %7253 = vrot.lane.b32.xlu0 %v7252_v5, %s7887_s4  ;;  %v7239_v5 = vpop.permute.xlu1 %7238 }
0x2a5c   :  { %v7241_v59 = vunpack.i.h.bf16 %v7239_v5  ;;  %v7240_v15 = vunpack.i.l.bf16 %v7239_v5 }
0x2a5e   :  { %v5367_v10 = vsel %vm2377_vm5, %v5365_v47, %v7240_v15  ;;  %v7425_v15 = vld [vmem:[#allocation13 + $0x108] ss:$16 sps:$4 sm:$0xff]   ;;  %v7439_v47 = vld [vmem:[#allocation13 + $0x14c] ss:$16 sps:$4 sm:$0xff]  }
0x2a5f   :  { %v7249_v49 = vpop.permute.xlu1 %7248 }
0x2a60   :  { %v7251_v53 = vunpack.i.h.bf16 %v7249_v49  ;;  %v7250_v58 = vunpack.i.l.bf16 %v7249_v49  ;;  %v7437_v49 = vld [vmem:[#allocation13 + $0x148] ss:$16 sps:$4 sm:$0xff]  }
0x2ab6   :  { %v5201_v14 = vpop.xlane.xlu0 %5200 }
0x2ab7   :  { %7634 = vrcp.f32 %v5201_v14 }
0x2ac1   :  { %v7635_v63 = vpop.eup %7634 }
0x2ac2   :  { %v5206_v25 = vmul.f32 %v7635_v63, %v7631_v17 }
0x2ac4   :  { %v5209_v26 = vpack.c.bf16 %v5206_v25, %v5206_v25 }
0x2ac6   :  { %7136 = vmatmul.mubr.msk.bf16.vlgmr.msra.gmra.mrb[128].mxu0 %vm658_vm3, %v5209_v26 }
0x2ac7   :  { %7161 = vmatprep.mubr.msk.bf16.mxu0 %vm7885_vm0, %v7884_v1  ;;  %7146 = vmatpush3.bf16.msra.mxu0 %v7414_v48 }
0x2ac8   :  { %7147 = vmatprep.subr.bf16.mxu0 %v7884_v1 }
0x2aca   :  { %v5204_v57 = vpop.xlane.xlu0 %5203 }
0x2acb   :  { %7636 = vrcp.f32 %v5204_v57  ;;  %7148 = vmatpush3.bf16.msra.mxu0 %v7415_v43 }
0x2acc   :  { %7149 = vmatprep.subr.bf16.mxu0 %v7884_v1 }
0x2ace   :  { %v5260_v41 = vpop.permute.xlu0 %5259 }
0x2acf   :  { %v5265_v42 = vsel %vm686_vm2, %v5260_v41, 0  ;;  %7150 = vmatpush3.bf16.msra.mxu0 %v7416_v8 }
0x2ad0   :  { %7140 = vmatpush3.bf16.msra.mxu1 %v5265_v42  ;;  %7151 = vmatprep.subr.bf16.mxu0 %v7884_v1 }
0x2ad2   :  { %v7244_v52 = vpop.permute.xlu0 %7243 }
0x2ad3   :  { %7152 = vmatpush3.bf16.msra.mxu0 %v7417_v12  ;;  %v7246_v7 = vunpack.i.h.bf16 %v7244_v52  ;;  %v7245_v16 = vunpack.i.l.bf16 %v7244_v52 }
0x2ad4   :  { %7153 = vmatprep.subr.bf16.mxu0 %v7884_v1 }
0x2ad5   :  { %v7637_v37 = vpop.eup %7636  ;;  %v5369_v39 = vsel %vm2380_vm6, %v5367_v10, %v7245_v16  ;;  %v7433_v16 = vld [vmem:[#allocation13 + $0x12c] ss:$16 sps:$4 sm:$0xff]   ;;  %v7442_v10 = vld [vmem:[#allocation13 + $0x164] ss:$16 sps:$4 sm:$0xff]  }
0x2ad6   :  { %v5208_v3 = vmul.f32 %v7637_v37, %v7633_v33  ;;  %v7254_v9 = vpop.permute.xlu0 %7253  ;;  %v5371_v62 = vsel %vm2383_vm7, %v5369_v39, %v7250_v58  ;;  %v6363_v37 = vld [vmem:[#allocation10 + $0x1] ss:$0 sm:$0xff]  ;;  %v7443_v39 = vld [vmem:[#allocation13 + $0x168] ss:$16 sps:$4 sm:$0xff]  }
0x2ad7   :  { %7154 = vmatpush3.bf16.msra.mxu0 %v7418_v18  ;;  %v7256_v2 = vunpack.i.h.bf16 %v7254_v9  ;;  %v7255_v21 = vunpack.i.l.bf16 %v7254_v9  ;;  %v7436_v9 = vld [vmem:[#allocation13 + $0x144] ss:$16 sps:$4 sm:$0xff]   ;;  %v7451_v58 = vld [vmem:[#allocation13 + $0x18c] ss:$16 sps:$4 sm:$0xff]  }
0x2ad8   :  { %v5210_v4 = vpack.c.bf16 %v5208_v3, %v5208_v3  ;;  %7155 = vmatprep.subr.bf16.mxu0 %v7884_v1 }
0x2ad9   :  { %v5373_v25 = vsel %vm2386_vm8, %v5371_v62, %v7255_v21  ;;  %v7446_v21 = vld [vmem:[#allocation13 + $0x180] ss:$16 sps:$4 sm:$0xff]   ;;  %v7457_v62 = vld [vmem:[#allocation13 + $0x1ac] ss:$16 sps:$4 sm:$0xff]  }
0x2ada   :  { %7142 = vmatmul.mubr.msk.bf16.vlgmr.msra.gmra.mrb[156].mxu1 %vm658_vm3, %v5210_v4 }
0x2adb   :  { %5739 = vmatprep.mubr.bf16.mxu1 %v7883_v0  ;;  %7156 = vmatpush3.bf16.msra.mxu0 %v7419_v19 }
0x2adc   :  { %7157 = vmatprep.subr.bf16.mxu0 %v7884_v1 }
0x2adf   :  { %7158 = vmatpush3.bf16.msra.mxu0 %v7420_v20 }
0x2ae0   :  { %7159 = vmatprep.subr.bf16.mxu0 %v7884_v1  ;;  %v7236_v1 = vunpack.i.h.bf16 %v7234_v40 }
0x2ae2   :  { %v5366_v61 = vsel %vm2374_vm4, %v5364_v60, %v7236_v1  ;;  %v7424_v1 = vld [vmem:[#allocation13 + $0x104] ss:$16 sps:$4 sm:$0xff]   ;;  %v7428_v60 = vld [vmem:[#allocation13 + $0x120] ss:$16 sps:$4 sm:$0xff]  }
0x2ae3   :  { %7160 = vmatpush3.bf16.msra.mxu0 %v7421_v28  ;;  %v5368_v13 = vsel %vm2377_vm5, %v5366_v61, %v7241_v59  ;;  %v7422_v59 = vld [vmem:[#allocation13 + $0x100] ss:$16 sps:$4 sm:$0xff]   ;;  %5707 = vmatprep.subr.bf16.mxu1 %v7424_v1 }
0x2ae4   :  { %v5370_v17 = vsel %vm2380_vm6, %v5368_v13, %v7246_v7  ;;  %5750 = vmatprep.subr.bf16.mxu0 %v7427_v11  ;;  %5708 = vmatpush1.bf16.msra.mxu1 %v7422_v59  ;;  %v7430_v7 = vld [vmem:[#allocation13 + $0x124] ss:$16 sps:$4 sm:$0xff]   ;;  %v7434_v61 = vld [vmem:[#allocation13 + $0x140] ss:$16 sps:$4 sm:$0xff]   ;;  %v7445_v13 = vld [vmem:[#allocation13 + $0x16c] ss:$16 sps:$4 sm:$0xff]  }
0x2ae5   :  { %v5372_v35 = vsel %vm2383_vm7, %v5370_v17, %v7251_v53  ;;  %5709 = vmatprep.subr.bf16.mxu1 %v7430_v7  ;;  %v7440_v17 = vld [vmem:[#allocation13 + $0x160] ss:$16 sps:$4 sm:$0xff]   ;;  %v7449_v53 = vld [vmem:[#allocation13 + $0x188] ss:$16 sps:$4 sm:$0xff]  }
0x2ae6   :  { %v5374_v26 = vsel %vm2386_vm8, %v5372_v35, %v7256_v2  ;;  %v7448_v2 = vld [vmem:[#allocation13 + $0x184] ss:$16 sps:$4 sm:$0xff]   ;;  %v7452_v35 = vld [vmem:[#allocation13 + $0x1a0] ss:$16 sps:$4 sm:$0xff]   ;;  %v9014_v11 = vld [vmem:[#allocation11 + $0x8] sm:$0xff] }
0x2ae8   :  { %5710 = vmatpush1.bf16.msra.mxu1 %v7428_v60 }
0x2ae9   :  { %5711 = vmatprep.subr.bf16.mxu1 %v7436_v9  ;;  %v7475_v9 = vld [vmem:[#allocation14 + $0x1c8] sm:$0xff]  }
0x2aec   :  { %5712 = vmatpush1.bf16.msra.mxu1 %v7434_v61  ;;  %v7478_v61 = vld [vmem:[#allocation14 + $0x150] sm:$0xff]  }
0x2aed   :  { %5713 = vmatprep.subr.bf16.mxu1 %v7442_v10  ;;  %v7480_v10 = vld [vmem:[#allocation14 + $0x110] sm:$0xff]  }
0x2af0   :  { %5714 = vmatpush1.bf16.msra.mxu1 %v7440_v17  ;;  %v7482_v17 = vld [vmem:[#allocation14 + $0x158] sm:$0xff]  }
0x2af1   :  { %5715 = vmatprep.subr.bf16.mxu1 %v7448_v2  ;;  %v7484_v2 = vld [vmem:[#allocation14 + $0x118] sm:$0xff]  }
0x2af4   :  { %5716 = vmatpush1.bf16.msra.mxu1 %v7446_v21  ;;  %v7485_v21 = vld [vmem:[#allocation14 + $0x198] sm:$0xff]  }
0x2b99   :  { %v5253_v27 = vpop.f32.mrb[128].mxu0 }
0x2b9a   :  { %v7137_v22 = vpop.f32.mrb[129].mxu0 }
0x2b9b   :  { %v5256_v24 = vpop.f32.mrb[130].mxu0 }
0x2b9c   :  { %v7138_v46 = vpop.f32.mrb[131].mxu0 }
0x2bad   :  { %v5301_v29 = vpop.f32.mrb[156].mxu1 }
0x2bae   :  { %v7257_v54 = vpack.i.bf16 %v5301_v29, %v5253_v27  ;;  %v7143_v32 = vpop.f32.mrb[157].mxu1 }
0x2baf   :  { %v5304_v36 = vpop.f32.mrb[158].mxu1 }
0x2bb0   :  { %7258 = vrot.lane.b32.xlu1 %v7257_v54, %s7886_s24  ;;  %v7144_v38 = vpop.f32.mrb[159].mxu1 }
0x2c22   :  { %v7259_v33 = vpop.permute.xlu1 %7258 }
0x2c23   :  { %v7261_v14 = vunpack.i.h.bf16 %v7259_v33  ;;  %v7260_v63 = vunpack.i.l.bf16 %v7259_v33  ;;  %v7454_v33 = vld [vmem:[#allocation13 + $0x1a4] ss:$16 sps:$4 sm:$0xff]  }
0x2c24   :  { %5717 = vmatprep.subr.bf16.mxu1 %v7454_v33  ;;  %v7488_v33 = vld [vmem:[#allocation14 + $0x120] sm:$0xff]  }
0x2c25   :  { %v5376_v57 = vsel %vm2389_vm9, %v5374_v26, %v7261_v14  ;;  %v5375_v41 = vsel %vm2389_vm9, %v5373_v25, %v7260_v63  ;;  %v7455_v14 = vld [vmem:[#allocation13 + $0x1a8] ss:$16 sps:$4 sm:$0xff]   ;;  %v7460_v63 = vld [vmem:[#allocation13 + $0x1c4] ss:$16 sps:$4 sm:$0xff]   ;;  %v7463_v25 = vld [vmem:[#allocation13 + $0x1cc] ss:$16 sps:$4 sm:$0xff]   ;;  %5718 = vmatpush1.bf16.msra.mxu1 %v7452_v35 }
0x2c26   :  { %v5377_v42 = vpack.c.bf16 %v5376_v57, %v5375_v41  ;;  %v7458_v26 = vld [vmem:[#allocation13 + $0x1c0] ss:$16 sps:$4 sm:$0xff]   ;;  %v7461_v57 = vld [vmem:[#allocation13 + $0x1c8] ss:$16 sps:$4 sm:$0xff]   ;;  %5719 = vmatprep.subr.bf16.mxu1 %v7460_v63  ;;  %v7466_v41 = vld [vmem:[#allocation13 + $0x1e4] ss:$16 sps:$4 sm:$0xff]  }
0x2c27   :  { %v7490_v35 = vld [vmem:[#allocation14 + $0x168] sm:$0xff]  }
0x2c28   :  { %7162 = vmatmul.mubr.bf16.vlgmr.msra.gmra.mrb[132].mxu0 %v5377_v42  ;;  %v7469_v42 = vld [vmem:[#allocation13 + $0x1ec] ss:$16 sps:$4 sm:$0xff]  }
0x2c29   :  { %5782 = vmatprep.mubr.bf16.mxu0 %v7883_v0  ;;  %5751 = vmatpush1.bf16.msra.mxu0 %v7425_v15  ;;  %v7492_v63 = vld [vmem:[#allocation14 + $0x128] sm:$0xff]  }
0x2c2a   :  { %5752 = vmatprep.subr.bf16.mxu0 %v7433_v16  ;;  %5720 = vmatpush1.bf16.msra.mxu1 %v7458_v26  ;;  %v7473_v16 = vld [vmem:[#allocation14 + $0x180] sm:$0xff]   ;;  %v7494_v26 = vld [vmem:[#allocation14 + $0x170] sm:$0xff]  }
0x2c2b   :  { %5721 = vmatprep.subr.bf16.mxu1 %v7466_v41  ;;  %v7496_v41 = vld [vmem:[#allocation14 + $0x130] sm:$0xff]  }
0x2c2d   :  { %5753 = vmatpush1.bf16.msra.mxu0 %v7431_v6  ;;  %v7474_v6 = vld [vmem:[#allocation14 + $0x148] sm:$0xff]  }
0x2c2e   :  { %5754 = vmatprep.subr.bf16.mxu0 %v7439_v47  ;;  %v7477_v47 = vld [vmem:[#allocation14 + $0x188] sm:$0xff]  }
0x2c31   :  { %5755 = vmatpush1.bf16.msra.mxu0 %v7437_v49  ;;  %v7479_v49 = vld [vmem:[#allocation14 + $0x1d0] sm:$0xff]  }
0x2c32   :  { %5756 = vmatprep.subr.bf16.mxu0 %v7445_v13  ;;  %v7481_v13 = vld [vmem:[#allocation14 + $0x190] sm:$0xff]  }
0x2c35   :  { %5757 = vmatpush1.bf16.msra.mxu0 %v7443_v39  ;;  %v7483_v39 = vld [vmem:[#allocation14 + $0x1d8] sm:$0xff]  }
0x2c36   :  { %5758 = vmatprep.subr.bf16.mxu0 %v7451_v58  ;;  %v7487_v58 = vld [vmem:[#allocation14 + $0x1e0] sm:$0xff]  }
0x2c39   :  { %5759 = vmatpush1.bf16.msra.mxu0 %v7449_v53  ;;  %v7486_v53 = vld [vmem:[#allocation14 + $0x160] sm:$0xff]  }
0x2c3a   :  { %5760 = vmatprep.subr.bf16.mxu0 %v7457_v62  ;;  %v7489_v62 = vld [vmem:[#allocation14 + $0x1a0] sm:$0xff]  }
0x2c3d   :  { %5761 = vmatpush1.bf16.msra.mxu0 %v7455_v14  ;;  %v7491_v14 = vld [vmem:[#allocation14 + $0x1e8] sm:$0xff]  }
0x2c3e   :  { %5762 = vmatprep.subr.bf16.mxu0 %v7463_v25  ;;  %v7493_v25 = vld [vmem:[#allocation14 + $0x1a8] sm:$0xff]  }
0x2c41   :  { %5763 = vmatpush1.bf16.msra.mxu0 %v7461_v57  ;;  %v7495_v57 = vld [vmem:[#allocation14 + $0x1f0] sm:$0xff]  }
0x2c42   :  { %5764 = vmatprep.subr.bf16.mxu0 %v7469_v42  ;;  %v7497_v42 = vld [vmem:[#allocation14 + $0x1b0] sm:$0xff]  }
0x2cfb   :  { %v5466_v3 = vpop.f32.mrb[132].mxu0 }
0x2cfc   :  { %v5467_v4 = vadd.f32 %v6363_v37, %v5466_v3  ;;  %v7163_v48 = vpop.f32.mrb[133].mxu0  ;;  %v7467_v3 = vld [vmem:[#allocation13 + $0x1e8] ss:$16 sps:$4 sm:$0xff]  }
0x2cfd   :  { %v5469_v43 = vpop.f32.mrb[134].mxu0  ;;  %5765 = vmatpush1.bf16.msra.mxu0 %v7467_v3  ;;  %v7471_v48 = vld [vmem:[#allocation14 + $0x1c0] sm:$0xff]   ;;  %v7499_v3 = vld [vmem:[#allocation14 + $0x1f8] sm:$0xff]  }
0x2cfe   :  { %v5473_v8 = vadd.f32 %v5467_v4, %v8576_v44  ;;  %v5470_v12 = vadd.f32 %v6363_v37, %v5469_v43  ;;  %v7164_v18 = vpop.f32.mrb[135].mxu0  ;;  %v7464_v37 = vld [vmem:[#allocation13 + $0x1e0] ss:$16 sps:$4 sm:$0xff]   ;;  %6679 = vmatprep.subr.bf16.mxu0 %v7471_v48  ;;  %v7501_v48 = vld [vmem:[#allocation14 + $0x1b8] sm:$0xff]  }
0x2cff   :  { %5722 = vmatpush1.bf16.msra.mxu1 %v7464_v37  ;;  %v7470_v4 = vld [vmem:[#allocation14 + $0x140] sm:$0xff]   ;;  %v7498_v37 = vld [vmem:[#allocation14 + $0x178] sm:$0xff]  }
0x2d00   :  { %v5474_v19 = vadd.f32 %v5470_v12, %v8579_v51  ;;  %5475 = vadd.xlane.f32.xlu0 %v5473_v8  ;;  %6657 = vmatprep.subr.bf16.mxu1 %v7470_v4  ;;  %v7500_v4 = vld [vmem:[#allocation14 + $0x138] sm:$0xff]  }
0x2d02   :  { %5477 = vadd.xlane.f32.xlu1 %v5474_v19 }
0x2d8d   :  { %v5476_v20 = vpop.xlane.xlu0 %5475 }
0x2d8e   :  { %v5479_v27 = vrot.slane %v5476_v20, 4 }
0x2d8f   :  { %v5478_v22 = vpop.xlane.xlu1 %5477 }
0x2d90   :  { %v5480_v24 = vadd.f32 %v5479_v27, %v5476_v20  ;;  %v5485_v46 = vrot.slane %v5478_v22, 4 }
0x2d92   :  { %v5481_v28 = vrot.slane %v5480_v24, 2  ;;  %v5486_v0 = vadd.f32 %v5485_v46, %v5478_v22 }
0x2d94   :  { %v5482_v29 = vadd.f32 %v5481_v28, %v5480_v24  ;;  %v5487_v54 = vrot.slane %v5486_v0, 2 }
0x2d96   :  { %v5483_v32 = vrot.slane %v5482_v29, 1  ;;  %v5488_v36 = vadd.f32 %v5487_v54, %v5486_v0 }
0x2d98   :  { %v5484_v38 = vadd.f32 %v5483_v32, %v5482_v29  ;;  %v5489_v56 = vrot.slane %v5488_v36, 1 }
0x2d9a   :  { %v5491_v44 = vmul.f32 0.0009765625, %v5484_v38  ;;  %v5490_v40 = vadd.f32 %v5489_v56, %v5488_v36 }
0x2d9c   :  { %v5492_v52 = vmul.f32 0.0009765625, %v5490_v40  ;;  %v8998_v5 = vsub.f32 %v5473_v8, %v5491_v44 }
0x2d9e   :  { %v5495_v51 = vmul.f32 %v8998_v5, %v8998_v5  ;;  %v9002_v45 = vsub.f32 %v5474_v19, %v5492_v52  ;;  %v9010_v52 = vld [vmem:[%s9063_s6 + $0x8] sm:$0xff] }
0x2da0   :  { %5497 = vadd.xlane.f32.xlu0 %v5495_v51  ;;  %v5496_v55 = vmul.f32 %v9002_v45, %v9002_v45 }
0x2da4   :  { %5499 = vadd.xlane.f32.xlu0 %v5496_v55 }
0x2e2d   :  { %v5498_v43 = vpop.xlane.xlu0 %5497 }
0x2e2e   :  { %v5501_v8 = vrot.slane %v5498_v43, 4 }
0x2e30   :  { %v5502_v12 = vadd.f32 %v5501_v8, %v5498_v43  ;;  %v6299_v43 = vld [vmem:[%s9066_s9 + $0x4] sm:$0xf] }
0x2e31   :  { %v5500_v18 = vpop.xlane.xlu0 %5499  ;;  %v5530_v8 = vrot.slane %v6299_v43, %v8100_v34 }
0x2e32   :  { %v5503_v19 = vrot.slane %v5502_v12, 2  ;;  %v5507_v20 = vrot.slane %v5500_v18, 4 }
0x2e34   :  { %v5504_v27 = vadd.f32 %v5503_v19, %v5502_v12  ;;  %v5508_v22 = vadd.f32 %v5507_v20, %v5500_v18  ;;  %v5538_v12 = vrot.slane %v6299_v43, %v8126_v50  ;;  %v5534_v18 = vrot.slane %v6299_v43, %v8096_v31 }
0x2e35   :  { %v5542_v19 = vrot.slane %v6299_v43, %v2556_v23 }
0x2e36   :  { %v5505_v24 = vrot.slane %v5504_v27, 1  ;;  %v5509_v46 = vrot.slane %v5508_v22, 2 }
0x2e38   :  { %v5506_v28 = vadd.f32 %v5505_v24, %v5504_v27  ;;  %v5510_v0 = vadd.f32 %v5509_v46, %v5508_v22 }
0x2e3a   :  { %v5513_v29 = vmul.f32 0.0009765625, %v5506_v28  ;;  %v5511_v54 = vrot.slane %v5510_v0, 1 }
0x2e3c   :  { %v5515_v32 = vadd.f32 1e-06, %v5513_v29  ;;  %v5512_v36 = vadd.f32 %v5511_v54, %v5510_v0 }
0x2e3e   :  { %7638 = vrsqrt.f32 %v5515_v32  ;;  %v5514_v38 = vmul.f32 0.0009765625, %v5512_v36 }
0x2e40   :  { %v5516_v56 = vadd.f32 1e-06, %v5514_v38 }
0x2e42   :  { %7640 = vrsqrt.f32 %v5516_v56 }
0x2e48   :  { %v7639_v44 = vpop.eup %7638 }
0x2e49   :  { %v5519_v40 = vmul.f32 %v7639_v44, %v8998_v5  ;;  %v7472_v5 = vld [vmem:[#allocation14 + $0x100] sm:$0xff]  }
0x2e4b   :  { %v5521_v1 = vmul.f32 %v9010_v52, %v5519_v40 }
0x2e4c   :  { %v7641_v51 = vpop.eup %7640 }
0x2e4d   :  { %v5520_v55 = vmul.f32 %v7641_v51, %v9002_v45  ;;  %v9018_v15 = vadd.f32 %v5521_v1, %v9014_v11  ;;  %v7476_v45 = vld [vmem:[#allocation14 + $0x108] sm:$0xff]  }
0x2e4f   :  { %v5522_v59 = vmul.f32 %v9010_v52, %v5520_v55 }
0x2e51   :  { %v9021_v7 = vadd.f32 %v5522_v59, %v9014_v11 }
0x2e53   :  { %v5525_v60 = vpack.c.bf16 %v9021_v7, %v9018_v15 }
0x2e55   :  { %5740 = vmatmul.mubr.bf16.vlgmr.msra.gmra.mrb[160].mxu1 %v5525_v60  ;;  %5783 = vmatmul.mubr.bf16.vlgmr.msra.gmra.mrb[136].mxu0 %v5525_v60 }
0x2e56   :  { %6658 = vmatpush3.bf16.msra.mxu1 %v7472_v5  ;;  %6680 = vmatpush3.bf16.msra.mxu0 %v7473_v16 }
0x2e57   :  { %6659 = vmatprep.subr.bf16.mxu1 %v7474_v6  ;;  %6681 = vmatprep.subr.bf16.mxu0 %v7475_v9 }
0x2e5a   :  { %6660 = vmatpush3.bf16.msra.mxu1 %v7476_v45  ;;  %6682 = vmatpush3.bf16.msra.mxu0 %v7477_v47  ;;  %v6404_v47 = vld [vmem:[%s9068_s11 + $0x1] ss:$0 sm:$0xff]  ;;  %s7890_s11 = smov [#allocation16]  }
0x2e5b   :  { %6661 = vmatprep.subr.bf16.mxu1 %v7478_v61  ;;  %6683 = vmatprep.subr.bf16.mxu0 %v7479_v49  ;;  %s6144_s24 = sshll.u32 %s7890_s11, 4  ;;  %s6145_s24 = int_to_ptr.vmem [resolvable:$true] %s6144_s24 }
0x2e5c   :  { %s7830_s4 = scalar_lea.vmem %s6145_s24, 256  ;;  %p7835_p9 = scmp.lt.s32.totalorder %s6145_s24, %s6145_s24 }
0x2e5d   :  { %p7831_p8 = scmp.ne.s32.totalorder %s6145_s24, %s7830_s4  ;;  %p7836_p10 = scmp.lt.s32.totalorder %s7830_s4, %s7830_s4 }
0x2e5e   :  { %6662 = vmatpush3.bf16.msra.mxu1 %v7480_v10  ;;  %6684 = vmatpush3.bf16.msra.mxu0 %v7481_v13 }
0x2e5f   :  { %6663 = vmatprep.subr.bf16.mxu1 %v7482_v17  ;;  %6685 = vmatprep.subr.bf16.mxu0 %v7483_v39  ;;  %p7837_p11 = por %p7836_p10, %p7835_p9 }
0x2e61   :  { %p7838_p12 = pnand %p7837_p11, %p7831_p8 }
0x2e62   :  { %6664 = vmatpush3.bf16.msra.mxu1 %v7484_v2  ;;  %6686 = vmatpush3.bf16.msra.mxu0 %v7485_v21 }
0x2e63   :  { %6665 = vmatprep.subr.bf16.mxu1 %v7486_v53  ;;  %6687 = vmatprep.subr.bf16.mxu0 %v7487_v58 }
0x2e66   :  { %6666 = vmatpush3.bf16.msra.mxu1 %v7488_v33  ;;  %6688 = vmatpush3.bf16.msra.mxu0 %v7489_v62 }
0x2e67   :  { %6667 = vmatprep.subr.bf16.mxu1 %v7490_v35  ;;  %6689 = vmatprep.subr.bf16.mxu0 %v7491_v14 }
0x2e6a   :  { %6668 = vmatpush3.bf16.msra.mxu1 %v7492_v63  ;;  %6690 = vmatpush3.bf16.msra.mxu0 %v7493_v25 }
0x2e6b   :  { %6669 = vmatprep.subr.bf16.mxu1 %v7494_v26  ;;  %6691 = vmatprep.subr.bf16.mxu0 %v7495_v57 }
0x2e6e   :  { %6670 = vmatpush3.bf16.msra.mxu1 %v7496_v41  ;;  %6692 = vmatpush3.bf16.msra.mxu0 %v7497_v42 }
0x2e6f   :  { %6671 = vmatprep.subr.bf16.mxu1 %v7498_v37  ;;  %6693 = vmatprep.subr.bf16.mxu0 %v7499_v3 }
0x2e72   :  { %6672 = vmatpush3.bf16.msra.mxu1 %v7500_v4  ;;  %6694 = vmatpush3.bf16.msra.mxu0 %v7501_v48 }
0x2f28   :  { %v5741_v20 = vpop.f32.mrb[160].mxu1  ;;  %v5784_v27 = vpop.f32.mrb[136].mxu0 }
0x2f29   :  { %v5742_v22 = vadd.f32 %v5741_v20, %v5530_v8  ;;  %v5785_v24 = vadd.f32 %v5784_v27, %v5538_v12  ;;  %v5743_v46 = vpop.f32.mrb[161].mxu1  ;;  %v5786_v28 = vpop.f32.mrb[137].mxu0 }
0x2f2a   :  { %v5744_v0 = vadd.f32 %v5743_v46, %v5534_v18  ;;  %v5787_v29 = vadd.f32 %v5786_v28, %v5542_v19  ;;  %v5745_v54 = vpop.f32.mrb[162].mxu1  ;;  %v5788_v32 = vpop.f32.mrb[138].mxu0 }
0x2f2b   :  { %v5746_v36 = vadd.f32 %v5745_v54, %v5530_v8  ;;  %v5789_v38 = vadd.f32 %v5788_v32, %v5538_v12  ;;  %v5747_v34 = vpop.f32.mrb[163].mxu1  ;;  %v5790_v56 = vpop.f32.mrb[139].mxu0  ;;  %v5793_v31 = vmax.f32 %v5742_v22, 0.0  ;;  %v5795_v40 = vmax.f32 %v5785_v24, 0.0 }
0x2f2c   :  { %v5748_v50 = vadd.f32 %v5747_v34, %v5534_v18  ;;  %v5791_v44 = vadd.f32 %v5790_v56, %v5542_v19  ;;  %v5794_v51 = vmax.f32 %v5744_v0, 0.0  ;;  %v5796_v55 = vmax.f32 %v5787_v29, 0.0 }
0x2f2d   :  { %v5797_v30 = vmax.f32 %v5746_v36, 0.0  ;;  %v5799_v23 = vmax.f32 %v5789_v38, 0.0 }
0x2f2e   :  { %v5798_v1 = vmax.f32 %v5748_v50, 0.0  ;;  %v5800_v59 = vmax.f32 %v5791_v44, 0.0 }
0x2f2f   :  { %v5801_v5 = vpack.c.bf16 %v5797_v30, %v5793_v31  ;;  %v5803_v16 = vpack.c.bf16 %v5799_v23, %v5795_v40 }
0x2f30   :  { %v5802_v60 = vpack.c.bf16 %v5798_v1, %v5794_v51  ;;  %v5804_v6 = vpack.c.bf16 %v5800_v59, %v5796_v55 }
0x2f32   :  { %6035 = vmatprep.mubr.bf16.mxu1 %v5802_v60  ;;  %6076 = vmatprep.mubr.bf16.mxu0 %v5804_v6 }
0x2f33   :  { %6036 = vmatmul.mubr.bf16.vlgmr.msra.gmra.mrb[164].mxu1 %v5801_v5  ;;  %6077 = vmatmul.mubr.bf16.vlgmr.msra.gmra.mrb[140].mxu0 %v5803_v16 }
0x3006   :  { %v6673_v9 = vpop.f32.mrb[164].mxu1  ;;  %v6695_v45 = vpop.f32.mrb[140].mxu0 }
0x3007   :  { %v6674_v61 = vpop.f32.mrb[165].mxu1  ;;  %v6696_v49 = vpop.f32.mrb[141].mxu0 }
0x3008   :  { %v6675_v10 = vadd.f32 %v6674_v61, %v6673_v9  ;;  %v6697_v13 = vadd.f32 %v6696_v49, %v6695_v45  ;;  %v6676_v17 = vpop.f32.mrb[166].mxu1  ;;  %v6698_v39 = vpop.f32.mrb[142].mxu0 }
0x3009   :  { %v6677_v2 = vpop.f32.mrb[167].mxu1  ;;  %v6699_v21 = vpop.f32.mrb[143].mxu0 }
0x300a   :  { %v6038_v53 = vadd.f32 %v6675_v10, %v6404_v47  ;;  %v6678_v58 = vadd.f32 %v6677_v2, %v6676_v17  ;;  %v6700_v33 = vadd.f32 %v6699_v21, %v6698_v39 }
0x300c   :  { %v6079_v62 = vadd.f32 %v6697_v13, %v6038_v53  ;;  %v6041_v35 = vadd.f32 %v6678_v58, %v6404_v47 }
0x300e   :  { %v6082_v14 = vadd.f32 %v6700_v33, %v6041_v35  ;;  %v6085_v63 = vadd.f32 %v6079_v62, %v9018_v15 }
0x3010   :  { %6087 = vadd.xlane.f32.xlu0 %v6085_v63  ;;  %v6086_v25 = vadd.f32 %v6082_v14, %v9021_v7 }
0x3012   :  { %6089 = vadd.xlane.f32.xlu1 %v6086_v25 }
0x309d   :  { %v6088_v26 = vpop.xlane.xlu0 %6087 }
0x309e   :  { %v6091_v57 = vrot.slane %v6088_v26, 4 }
0x309f   :  { %v6090_v41 = vpop.xlane.xlu1 %6089 }
0x30a0   :  { %v6092_v42 = vadd.f32 %v6091_v57, %v6088_v26  ;;  %v6097_v37 = vrot.slane %v6090_v41, 4 }
0x30a2   :  { %v6093_v3 = vrot.slane %v6092_v42, 2  ;;  %v6098_v4 = vadd.f32 %v6097_v37, %v6090_v41 }
0x30a4   :  { %v6094_v48 = vadd.f32 %v6093_v3, %v6092_v42  ;;  %v6099_v43 = vrot.slane %v6098_v4, 2 }
0x30a6   :  { %v6095_v8 = vrot.slane %v6094_v48, 1  ;;  %v6100_v12 = vadd.f32 %v6099_v43, %v6098_v4 }
0x30a8   :  { %v6096_v18 = vadd.f32 %v6095_v8, %v6094_v48  ;;  %v6101_v19 = vrot.slane %v6100_v12, 1 }
0x30aa   :  { %v6103_v20 = vmul.f32 0.0009765625, %v6096_v18  ;;  %v6102_v27 = vadd.f32 %v6101_v19, %v6100_v12 }
0x30ac   :  { %v6104_v15 = vmul.f32 0.0009765625, %v6102_v27  ;;  %v6105_v22 = vsub.f32 %v6085_v63, %v6103_v20 }
0x30ae   :  { %v6107_v24 = vmul.f32 %v6105_v22, %v6105_v22  ;;  %v6106_v7 = vsub.f32 %v6086_v25, %v6104_v15 }
0x30b0   :  { %6109 = vadd.xlane.f32.xlu0 %v6107_v24  ;;  %v6108_v46 = vmul.f32 %v6106_v7, %v6106_v7 }
0x30b2   :  { %6111 = vadd.xlane.f32.xlu1 %v6108_v46 }
0x313d   :  { %v6110_v28 = vpop.xlane.xlu0 %6109 }
0x313e   :  { %v6113_v0 = vrot.slane %v6110_v28, 4 }
0x313f   :  { %v6112_v29 = vpop.xlane.xlu1 %6111 }
0x3140   :  { %v6114_v54 = vadd.f32 %v6113_v0, %v6110_v28  ;;  %v6119_v32 = vrot.slane %v6112_v29, 4 }
0x3142   :  { %v6115_v36 = vrot.slane %v6114_v54, 2  ;;  %v6120_v38 = vadd.f32 %v6119_v32, %v6112_v29 }
0x3144   :  { %v6116_v34 = vadd.f32 %v6115_v36, %v6114_v54  ;;  %v6121_v56 = vrot.slane %v6120_v38, 2 }
0x3146   :  { %v6117_v50 = vrot.slane %v6116_v34, 1  ;;  %v6122_v44 = vadd.f32 %v6121_v56, %v6120_v38 }
0x3148   :  { %v6118_v31 = vadd.f32 %v6117_v50, %v6116_v34  ;;  %v6123_v40 = vrot.slane %v6122_v44, 1 }
0x314a   :  { %v6125_v30 = vmul.f32 0.0009765625, %v6118_v31  ;;  %v6124_v23 = vadd.f32 %v6123_v40, %v6122_v44 }
0x314c   :  { %v6127_v51 = vadd.f32 1e-06, %v6125_v30  ;;  %v6126_v55 = vmul.f32 0.0009765625, %v6124_v23 }
0x314e   :  { %7642 = vrsqrt.f32 %v6127_v51  ;;  %v6128_v1 = vadd.f32 1e-06, %v6126_v55 }
0x3150   :  { %7644 = vrsqrt.f32 %v6128_v1 }
0x3158   :  { %v7643_v59 = vpop.eup %7642 }
0x3159   :  { %v6131_v5 = vmul.f32 %v7643_v59, %v6105_v22 }
0x315a   :  { %v7645_v16 = vpop.eup %7644 }
0x315b   :  { %v6132_v60 = vmul.f32 %v7645_v16, %v6106_v7  ;;  %v6133_v6 = vmul.f32 %v9010_v52, %v6131_v5 }
0x315d   :  { %v6134_v9 = vmul.f32 %v9010_v52, %v6132_v60  ;;  %v6135_v45 = vadd.f32 %v6133_v6, %v9014_v11 }
0x315f   :  { %v6136_v47 = vadd.f32 %v6134_v9, %v9014_v11  ;;  %6137 = vst [vmem:[#allocation16] sm:$0xff] %v6135_v45 }
0x3161   :  { %6138 = vst [vmem:[#allocation16 + $0x8] sm:$0xff] %v6136_v47 }
0x3162   :  { %7841 = shalt.err (!%p7838_p12)
}
0x3163   :  { %s7842_s27 = scalar_lea.hbm %s9069_s12, 256 }
0x3164   :  { %p7843_p13 = scmp.ne.s32.totalorder %s9069_s12, %s7842_s27  ;;  %p7846_p0 = scmp.lt.u32.totalorder %s7842_s27, %s9069_s12 }
0x3166   :  { %p7848_p1 = pnand %p7846_p0, %p7843_p13 }
0x3168   :  { %7851 = shalt.err (!%p7848_p1)
}
0x3169   :  { %6150 = dma.vmem_to_hbm [thread:$0]  %s6145_s24, 256, %s9069_s12, [#allocation4], %s7872_s18, %s7872_s18, %s7873_s25  }
0x316a   :  { %7862 = dma.done.wait [#allocation4], 256  }
0x316b   :  { %7863 = vsyncadd [#allocation4], 4294967040 }
0x316c   :  { %6154 = vsyncpa [#allocation3], 1 }
0x316d   :  { %6155 = vsyncpa [#allocation6], 1 }
0x316e   :  { %6156 = vsyncpa [#allocation9], 1 }
0x316f   :  { %6157 = vsyncpa [#allocation12], 1 }
0x3170   :  { %6158 = vsyncpa [#allocation15], 1 }
0x3171   :  { %6159 = vsyncpa [#allocation4], 1 }

</bundles_post_ra>
